<compile_context>
chip_gen: v7x
topology: tpu7x:2x2x1
jax: 0.10.0
libtpu: 0.0.40
codegen_flags: <defaults>
</compile_context>

<pallas_src>
import numpy as np

import jax
import jax.numpy as jnp
from jax.experimental import pallas as pl
from jax.experimental.pallas import tpu as pltpu

BATCH = 2
IN_CHANNELS = 3
IMAGE_SIZE = 16
NUM_FILTERS = [8, 16, 32]
EMBED_DIM = 32
BN_EPS = 1e-5

CPAD = 128                                   # channel / contraction lane padding


def _round_up(x, m):
    return ((x + m - 1) // m) * m


# ---------------------------------------------------------------------------
# Static geometry
# ---------------------------------------------------------------------------
# Layer 1: dense (n,h,w) rows, im2col packed on the host (single matmul).
H1 = IMAGE_SIZE                               # 16
M1 = BATCH * H1 * H1                          # 512
Y1_TAIL = _round_up(H1 + 2, 8)                # 24  (>= max pool shift H1+1)
Y1_ROWS = M1 + Y1_TAIL                        # 536

# Layer 2: zero-halo slab, per-image pitch P2 (multiple of 8).
H2 = H1 // 2                                  # 8
P2 = _round_up(H2 + 2, 8)                     # 16
IMG2 = (H2 + 2) * P2                          # 160
SLAB2 = BATCH * IMG2                          # 320
G2 = _round_up(P2 + 2, 8)                     # 24  guard rows (>= P2+1)
A2_ROWS = SLAB2 + 2 * G2                      # 368
Y2_TAIL = _round_up(P2 + 2, 8)                # 24
Y2_ROWS = SLAB2 + Y2_TAIL                     # 344

# Layer 3: zero-halo slab.
H3 = H2 // 2                                  # 4
P3 = _round_up(H3 + 2, 8)                     # 8
IMG3 = (H3 + 2) * P3                          # 48
SLAB3 = BATCH * IMG3                          # 96
G3 = _round_up(P3 + 2, 8)                     # 16  guard rows (>= P3+1)
A3_ROWS = SLAB3 + 2 * G3                      # 128
Y3_TAIL = _round_up(P3 + 2, 8)                # 16
Y3_ROWS = SLAB3 + Y3_TAIL                     # 112

H4 = H3 // 2                                  # 2  final spatial size
NSP = H4 * H4                                 # 4  spatial positions per image


# ---------------------------------------------------------------------------
# In-kernel building blocks
# ---------------------------------------------------------------------------
def _conv_halo(a_ref, guard, slab, pitch, w_ref, b_ref):
    """Conv3x3 over a zero-halo slab: 9 constant-offset slices + MXU matmuls.

    No boundary masks: halo rows/columns of the slab are zero, so border taps
    read zeros; conv outputs at halo anchor rows are garbage but are discarded
    by the (host-precomputed) pool/scatter selection matrix downstream.
    """
    acc = jnp.zeros((slab, CPAD), jnp.float32)
    for dy in range(3):
        for dx in range(3):
            off = (dy - 1) * pitch + (dx - 1)
            src = a_ref[guard + off:guard + off + slab, :]          # bf16
            acc = acc + jnp.dot(src, w_ref[dy * 3 + dx],
                                preferred_element_type=jnp.float32)
    # Fused BN shift + ReLU; store activations as bf16.
    return jnp.maximum(acc + b_ref[...], 0.0).astype(jnp.bfloat16)


def _window_max(y_ref, rows, pitch):
    """2x2 pooling window max in row space via 4 static slices (bf16)."""
    return jnp.maximum(
        jnp.maximum(y_ref[0:rows, :], y_ref[1:rows + 1, :]),
        jnp.maximum(y_ref[pitch:rows + pitch, :],
                    y_ref[pitch + 1:rows + pitch + 1, :]))


def _fused_forward_kernel(x_ref, w1_ref, b1_ref, s1_ref, b2_ref, b3_ref,
                          sfc_ref, bfc_ref,
                          w2_hbm, w3_hbm, s2_hbm, vfc_hbm,
                          out_ref,
                          y1, a2, y2, a3, y3,
                          w2v, w3v, s2v, vfcv, sems):
    # Overlap later-layer parameter DMA with layer-1 / pool-1 compute.
    cp_w2 = pltpu.make_async_copy(w2_hbm, w2v, sems.at[0])
    cp_w3 = pltpu.make_async_copy(w3_hbm, w3v, sems.at[1])
    cp_s2 = pltpu.make_async_copy(s2_hbm, s2v, sems.at[2])
    cp_vfc = pltpu.make_async_copy(vfc_hbm, vfcv, sems.at[3])
    for cp in (cp_w2, cp_w3, cp_s2, cp_vfc):
        cp.start()

    # Zero ONLY the guard / tail padding rows (never the full slabs).
    def zeros(r):
        return jnp.zeros((r, CPAD), jnp.bfloat16)

    y1[M1:Y1_ROWS, :] = zeros(Y1_ROWS - M1)
    a2[0:G2, :] = zeros(G2)
    a2[G2 + SLAB2:A2_ROWS, :] = zeros(A2_ROWS - G2 - SLAB2)
    y2[SLAB2:Y2_ROWS, :] = zeros(Y2_ROWS - SLAB2)
    a3[0:G3, :] = zeros(G3)
    a3[G3 + SLAB3:A3_ROWS, :] = zeros(A3_ROWS - G3 - SLAB3)
    y3[SLAB3:Y3_ROWS, :] = zeros(Y3_ROWS - SLAB3)

    # ---- Layer 1: host-side im2col -> ONE (512,128)@(128,128) MXU matmul.
    acc1 = jnp.dot(x_ref[...], w1_ref[...], preferred_element_type=jnp.float32)
    y1[0:M1, :] = jnp.maximum(acc1 + b1_ref[...], 0.0).astype(jnp.bfloat16)
    win1 = _window_max(y1, M1, H1)
    # 2x2 max-pool subsample + scatter into the zero-halo layer-2 slab in one
    # host-precomputed bf16 selection matmul (halo rows come out exactly zero).
    a2[G2:G2 + SLAB2, :] = jnp.dot(
        s1_ref[...], win1,
        preferred_element_type=jnp.float32).astype(jnp.bfloat16)

    # ---- Layer 2.
    cp_w2.wait()
    y2[0:SLAB2, :] = _conv_halo(a2, G2, SLAB2, P2, w2v, b2_ref)
    win2 = _window_max(y2, SLAB2, P2)
    cp_s2.wait()
    a3[G3:G3 + SLAB3, :] = jnp.dot(
        s2v[...], win2,
        preferred_element_type=jnp.float32).astype(jnp.bfloat16)

    # ---- Layer 3.
    cp_w3.wait()
    y3[0:SLAB3, :] = _conv_halo(a3, G3, SLAB3, P3, w3v, b3_ref)
    win3 = _window_max(y3, SLAB3, P3)

    # ---- Flatten (NCHW order folded into vfc) + Dropout(eval=id) + Linear.
    # TODO(synk): training-mode dropout / batch-stat BatchNorm not modeled.
    cp_vfc.wait()
    acc = jnp.zeros((BATCH, EMBED_DIM), jnp.float32)
    for r in range(NSP):
        xr = jnp.dot(sfc_ref[r], win3,
                     preferred_element_type=jnp.float32).astype(jnp.bfloat16)
        acc = acc + jnp.dot(xr, vfcv[r], preferred_element_type=jnp.float32)
    out_ref[...] = acc + bfc_ref[...]


# ---------------------------------------------------------------------------
# Host-side glue (one-time XLA ops / constants)
# ---------------------------------------------------------------------------
def _pack_input_im2col(x_nchw):
    """NCHW -> im2col rows: lane (k*cin + c) holds x[n, c, h+dy-1, w+dx-1]."""
    n, c, h, w = x_nchw.shape
    x = jnp.transpose(x_nchw, (0, 2, 3, 1))                  # NHWC
    xp = jnp.pad(x, ((0, 0), (1, 1), (1, 1), (0, 0)))
    taps = [xp[:, dy:dy + h, dx:dx + w, :] for dy in range(3) for dx in range(3)]
    cols = jnp.concatenate(taps, axis=-1).reshape(n * h * w, 9 * c)
    out = jnp.zeros((n * h * w, CPAD), jnp.float32).at[:, :9 * c].set(cols)
    return out.astype(jnp.bfloat16)


def _build_pool_scatter_1():
    """Dense layer-1 rows (n,h,w) -> zero-halo layer-2 slab (pool anchors)."""
    s = np.zeros((SLAB2, M1), np.float32)
    for n in range(BATCH):
        for ho in range(H2):
            for wo in range(H2):
                dst = n * IMG2 + (ho + 1) * P2 + (wo + 1)
                src = n * H1 * H1 + (2 * ho) * H1 + (2 * wo)
                s[dst, src] = 1.0
    return jnp.asarray(s, jnp.bfloat16)


def _build_pool_scatter_2():
    """Layer-2 halo-slab pool anchors -> zero-halo layer-3 slab."""
    s = np.zeros((SLAB3, SLAB2), np.float32)
    for n in range(BATCH):
        for ho in range(H3):
            for wo in range(H3):
                dst = n * IMG3 + (ho + 1) * P3 + (wo + 1)
                src = n * IMG2 + (2 * ho + 1) * P2 + (2 * wo + 1)
                s[dst, src] = 1.0
    return jnp.asarray(s, jnp.bfloat16)


def _build_fc_select():
    """Layer-3 halo-slab pool anchors -> (spatial position r, image n) rows."""
    s = np.zeros((NSP, BATCH, SLAB3), np.float32)
    for r in range(NSP):
        ho, wo = r // H4, r % H4
        for n in range(BATCH):
            src = n * IMG3 + (2 * ho + 1) * P3 + (2 * wo + 1)
            s[r, n, src] = 1.0
    return jnp.asarray(s, jnp.bfloat16)


def _full_spec(shape):
    zeros = (0,) * len(shape)
    return pl.BlockSpec(shape, lambda i, z=zeros: z)


def prototypical_net_forward(params, x_nchw):
    x_packed = _pack_input_im2col(x_nchw)
    blocked = (x_packed, params["w1"], params["b1"], params["s1"],
               params["b2"], params["b3"], params["sfc"], params["fc_b"])
    anyspace = (params["w2"], params["w3"], params["s2"], params["vfc"])

    return pl.pallas_call(
        _fused_forward_kernel,
        grid=(1,),
        in_specs=[_full_spec(a.shape) for a in blocked]
        + [pl.BlockSpec(memory_space=pl.ANY) for _ in anyspace],
        out_specs=_full_spec((BATCH, EMBED_DIM)),
        out_shape=jax.ShapeDtypeStruct((BATCH, EMBED_DIM), jnp.float32),
        scratch_shapes=[
            pltpu.VMEM((Y1_ROWS, CPAD), jnp.bfloat16),     # y1
            pltpu.VMEM((A2_ROWS, CPAD), jnp.bfloat16),     # a2 (zero-halo slab)
            pltpu.VMEM((Y2_ROWS, CPAD), jnp.bfloat16),     # y2
            pltpu.VMEM((A3_ROWS, CPAD), jnp.bfloat16),     # a3 (zero-halo slab)
            pltpu.VMEM((Y3_ROWS, CPAD), jnp.bfloat16),     # y3
            pltpu.VMEM((9, CPAD, CPAD), jnp.bfloat16),     # w2 (DMA dest)
            pltpu.VMEM((9, CPAD, CPAD), jnp.bfloat16),     # w3 (DMA dest)
            pltpu.VMEM((SLAB3, SLAB2), jnp.bfloat16),      # s2 (DMA dest)
            pltpu.VMEM((NSP, CPAD, EMBED_DIM), jnp.bfloat16),  # vfc (DMA dest)
            pltpu.SemaphoreType.DMA((4,)),
        ],
    )(*blocked, *anyspace)


# ---------------------------------------------------------------------------
# Deterministic synthetic parameters (mirrors the PyTorch shapes, kernel layout)
# ---------------------------------------------------------------------------
def init_params(key):
    raw_convs = []
    kernel_blocks = []
    cin = IN_CHANNELS
    for li, cout in enumerate(NUM_FILTERS):
        key, kw, kb, kg, kbeta = jax.random.split(key, 5)
        w = jax.random.normal(kw, (cout, cin, 3, 3), jnp.float32) * 0.1
        conv_b = jax.random.normal(kb, (cout,), jnp.float32) * 0.1
        gamma = 1.0 + 0.1 * jax.random.normal(kg, (cout,), jnp.float32)
        beta = 0.1 * jax.random.normal(kbeta, (cout,), jnp.float32)
        run_mean = jnp.zeros((cout,), jnp.float32)
        run_var = jnp.ones((cout,), jnp.float32)
        raw_convs.append((w, conv_b, gamma, beta, run_mean, run_var))

        # Inference-mode BN fused into a per-channel affine; fold the scale
        # into the conv weights so only `+shift` remains in-kernel.
        scale = gamma / jnp.sqrt(run_var + BN_EPS)
        shift = (conv_b - run_mean) * scale + beta
        w_s = w * scale[:, None, None, None]
        shift_pad = jnp.zeros((1, CPAD), jnp.float32).at[0, :cout].set(shift)

        if li == 0:
            # Layer 1: fold im2col into the weight: row (k*cin + c) -> cout.
            w_cols = jnp.transpose(w_s, (2, 3, 1, 0)).reshape(9 * cin, cout)
            w_pack = jnp.zeros((CPAD, CPAD), jnp.float32)
            w_pack = w_pack.at[:9 * cin, :cout].set(w_cols)
            kernel_blocks.append((w_pack.astype(jnp.bfloat16), shift_pad))
        else:
            # Per-tap (9, 128, 128) weights for the halo-slice conv.
            w_off = jnp.transpose(w_s, (2, 3, 1, 0)).reshape(9, cin, cout)
            w_pad = jnp.zeros((9, CPAD, CPAD), jnp.float32)
            w_pad = w_pad.at[:, :cin, :cout].set(w_off)
            kernel_blocks.append((w_pad.astype(jnp.bfloat16), shift_pad))
        cin = cout

    # FC: fold the NCHW flatten permutation into the weight layout:
    #   vfc[r, c, e] = fc_w[e, c*NSP + r],  r = ho*H4 + wo.
    fc_in = NUM_FILTERS[-1] * H4 * H4
    key, kfw, kfb = jax.random.split(key, 3)
    fc_w = jax.random.normal(kfw, (EMBED_DIM, fc_in), jnp.float32) * 0.05
    fc_b = jax.random.normal(kfb, (EMBED_DIM,), jnp.float32) * 0.05
    v = jnp.transpose(fc_w.reshape(EMBED_DIM, NUM_FILTERS[-1], NSP), (2, 1, 0))
    vfc = jnp.zeros((NSP, CPAD, EMBED_DIM), jnp.float32)
    vfc = vfc.at[:, :NUM_FILTERS[-1], :].set(v)

    return {
        "w1": kernel_blocks[0][0], "b1": kernel_blocks[0][1],
        "w2": kernel_blocks[1][0], "b2": kernel_blocks[1][1],
        "w3": kernel_blocks[2][0], "b3": kernel_blocks[2][1],
        "s1": _build_pool_scatter_1(),
        "s2": _build_pool_scatter_2(),
        "sfc": _build_fc_select(),
        "vfc": vfc.astype(jnp.bfloat16),
        "fc_b": fc_b.reshape(1, EMBED_DIM),
        "raw": {"convs": raw_convs, "fc_w": fc_w, "fc_b": fc_b},
    }


# ---------------------------------------------------------------------------
# Pure-JAX f32 reference (matches the PyTorch eval-mode forward)
# ---------------------------------------------------------------------------
def reference_forward(params, x):
    h = x
    for (w, conv_b, gamma, beta, mean, var) in params["raw"]["convs"]:
        h = jax.lax.conv_general_dilated(
            h, w, window_strides=(1, 1), padding="SAME",
            dimension_numbers=("NCHW", "OIHW", "NCHW"),
            precision=jax.lax.Precision.HIGHEST)
        h = h + conv_b[None, :, None, None]
        h = (h - mean[None, :, None, None]) * (
            gamma[None, :, None, None]
            / jnp.sqrt(var[None, :, None, None] + BN_EPS)
        ) + beta[None, :, None, None]
        h = jnp.maximum(h, 0.0)
        h = jax.lax.reduce_window(h, -jnp.inf, jax.lax.max,
                                  (1, 1, 2, 2), (1, 1, 2, 2), "VALID")
    h = h.reshape(h.shape[0], -1)          # NCHW flatten; dropout eval = identity
    return jnp.dot(h, params["raw"]["fc_w"].T,
                   precision=jax.lax.Precision.HIGHEST) + params["raw"]["fc_b"][None, :]


# ---------------------------------------------------------------------------
if __name__ == "__main__":
    key = jax.random.PRNGKey(0)
    key, kx, kp = jax.random.split(key, 3)
    x = jax.random.normal(kx, (BATCH, IN_CHANNELS, IMAGE_SIZE, IMAGE_SIZE),
                          jnp.float32)  # NCHW, like PyTorch
    params = init_params(kp)

    fwd = jax.jit(lambda xx: prototypical_net_forward(params, xx))
    emb = jax.block_until_ready(fwd(x))

    assert emb.shape == (BATCH, EMBED_DIM), emb.shape
    assert emb.dtype == jnp.float32
    assert bool(jnp.all(jnp.isfinite(emb)))

    # bf16 weights/activations => compare against f32 reference with headroom.
    ref = reference_forward(params, x)
    rel_err = float(jnp.max(jnp.abs(emb - ref)) / (jnp.max(jnp.abs(ref)) + 1e-6))
    assert rel_err < 5e-2, f"mismatch vs f32 reference: rel-to-max err {rel_err}"

    print("KERNEL_OK")
</pallas_src>

<mosaic_0001>
module attributes {stable_mosaic.version = 11 : i64} {
  func.func @_fused_forward_kernel(%arg0: i32, %arg1: memref<512x128xbf16, #tpu.memory_space<vmem>>, %arg2: memref<128x128xbf16, #tpu.memory_space<vmem>>, %arg3: memref<1x128xf32, #tpu.memory_space<vmem>>, %arg4: memref<320x512xbf16, #tpu.memory_space<vmem>>, %arg5: memref<1x128xf32, #tpu.memory_space<vmem>>, %arg6: memref<1x128xf32, #tpu.memory_space<vmem>>, %arg7: memref<4x2x96xbf16, #tpu.memory_space<vmem>>, %arg8: memref<1x32xf32, #tpu.memory_space<vmem>>, %arg9: memref<9x128x128xbf16, #tpu.memory_space<any>>, %arg10: memref<9x128x128xbf16, #tpu.memory_space<any>>, %arg11: memref<96x320xbf16, #tpu.memory_space<any>>, %arg12: memref<4x128x32xbf16, #tpu.memory_space<any>>, %arg13: memref<2x32xf32, #tpu.memory_space<vmem>>, %arg14: memref<536x128xbf16, #tpu.memory_space<vmem>>, %arg15: memref<368x128xbf16, #tpu.memory_space<vmem>>, %arg16: memref<344x128xbf16, #tpu.memory_space<vmem>>, %arg17: memref<128x128xbf16, #tpu.memory_space<vmem>>, %arg18: memref<112x128xbf16, #tpu.memory_space<vmem>>, %arg19: memref<9x128x128xbf16, #tpu.memory_space<vmem>>, %arg20: memref<9x128x128xbf16, #tpu.memory_space<vmem>>, %arg21: memref<96x320xbf16, #tpu.memory_space<vmem>>, %arg22: memref<4x128x32xbf16, #tpu.memory_space<vmem>>, %arg23: memref<4x!tpu.dma_semaphore, #tpu.memory_space<semaphore_mem>>) attributes {dimension_semantics = [#tpu.dimension_semantics<arbitrary>], iteration_bounds = array<i64: 1>, scalar_prefetch = 0 : i64, scratch_operands = 10 : i64, tpu.core_type = #tpu.core_type<tc>, window_params = [{pipeline_mode = #tpu.pipeline_mode<synchronous>, transform_indices = @transform_0, window_bounds = array<i64: 512, 128>}, {pipeline_mode = #tpu.pipeline_mode<synchronous>, transform_indices = @transform_1, window_bounds = array<i64: 128, 128>}, {pipeline_mode = #tpu.pipeline_mode<synchronous>, transform_indices = @transform_2, window_bounds = array<i64: 1, 128>}, {pipeline_mode = #tpu.pipeline_mode<synchronous>, transform_indices = @transform_3, window_bounds = array<i64: 320, 512>}, {pipeline_mode = #tpu.pipeline_mode<synchronous>, transform_indices = @transform_4, window_bounds = array<i64: 1, 128>}, {pipeline_mode = #tpu.pipeline_mode<synchronous>, transform_indices = @transform_5, window_bounds = array<i64: 1, 128>}, {pipeline_mode = #tpu.pipeline_mode<synchronous>, transform_indices = @transform_6, window_bounds = array<i64: 4, 2, 96>}, {pipeline_mode = #tpu.pipeline_mode<synchronous>, transform_indices = @transform_7, window_bounds = array<i64: 1, 32>}, {}, {}, {}, {}, {pipeline_mode = #tpu.pipeline_mode<synchronous>, transform_indices = @transform_12, window_bounds = array<i64: 2, 32>}]} {
    %c0_i32 = arith.constant 0 : i32
    %0 = tpu.memref_slice %arg23[%c0_i32] : memref<4x!tpu.dma_semaphore, #tpu.memory_space<semaphore_mem>> -> memref<1x!tpu.dma_semaphore, #tpu.memory_space<semaphore_mem>>
    %1 = tpu.memref_squeeze %0 : memref<1x!tpu.dma_semaphore, #tpu.memory_space<semaphore_mem>> -> memref<!tpu.dma_semaphore, #tpu.memory_space<semaphore_mem>>
    tpu.enqueue_dma source(%arg9 : memref<9x128x128xbf16, #tpu.memory_space<any>>) target(%arg19 : memref<9x128x128xbf16, #tpu.memory_space<vmem>>) target_semaphore(%1 : memref<!tpu.dma_semaphore, #tpu.memory_space<semaphore_mem>>)
    %c1_i32 = arith.constant 1 : i32
    %2 = tpu.memref_slice %arg23[%c1_i32] : memref<4x!tpu.dma_semaphore, #tpu.memory_space<semaphore_mem>> -> memref<1x!tpu.dma_semaphore, #tpu.memory_space<semaphore_mem>>
    %3 = tpu.memref_squeeze %2 : memref<1x!tpu.dma_semaphore, #tpu.memory_space<semaphore_mem>> -> memref<!tpu.dma_semaphore, #tpu.memory_space<semaphore_mem>>
    tpu.enqueue_dma source(%arg10 : memref<9x128x128xbf16, #tpu.memory_space<any>>) target(%arg20 : memref<9x128x128xbf16, #tpu.memory_space<vmem>>) target_semaphore(%3 : memref<!tpu.dma_semaphore, #tpu.memory_space<semaphore_mem>>)
    %c2_i32 = arith.constant 2 : i32
    %4 = tpu.memref_slice %arg23[%c2_i32] : memref<4x!tpu.dma_semaphore, #tpu.memory_space<semaphore_mem>> -> memref<1x!tpu.dma_semaphore, #tpu.memory_space<semaphore_mem>>
    %5 = tpu.memref_squeeze %4 : memref<1x!tpu.dma_semaphore, #tpu.memory_space<semaphore_mem>> -> memref<!tpu.dma_semaphore, #tpu.memory_space<semaphore_mem>>
    tpu.enqueue_dma source(%arg11 : memref<96x320xbf16, #tpu.memory_space<any>>) target(%arg21 : memref<96x320xbf16, #tpu.memory_space<vmem>>) target_semaphore(%5 : memref<!tpu.dma_semaphore, #tpu.memory_space<semaphore_mem>>)
    %c3_i32 = arith.constant 3 : i32
    %6 = tpu.memref_slice %arg23[%c3_i32] : memref<4x!tpu.dma_semaphore, #tpu.memory_space<semaphore_mem>> -> memref<1x!tpu.dma_semaphore, #tpu.memory_space<semaphore_mem>>
    %7 = tpu.memref_squeeze %6 : memref<1x!tpu.dma_semaphore, #tpu.memory_space<semaphore_mem>> -> memref<!tpu.dma_semaphore, #tpu.memory_space<semaphore_mem>>
    tpu.enqueue_dma source(%arg12 : memref<4x128x32xbf16, #tpu.memory_space<any>>) target(%arg22 : memref<4x128x32xbf16, #tpu.memory_space<vmem>>) target_semaphore(%7 : memref<!tpu.dma_semaphore, #tpu.memory_space<semaphore_mem>>)
    %cst = arith.constant 0.000000e+00 : bf16
    %8 = vector.broadcast %cst : bf16 to vector<24x128xbf16>
    %c512 = arith.constant 512 : index
    %c0 = arith.constant 0 : index
    %9 = vector.load %arg14[%c512, %c0] : memref<536x128xbf16, #tpu.memory_space<vmem>>, vector<24x128xbf16>
    tpu.vector_store %arg14[%c512, %c0], %8 {strides = array<i32>} : memref<536x128xbf16, #tpu.memory_space<vmem>>, vector<24x128xbf16>,
    %cst_0 = arith.constant 0.000000e+00 : bf16
    %10 = vector.broadcast %cst_0 : bf16 to vector<24x128xbf16>
    %c0_1 = arith.constant 0 : index
    %c0_2 = arith.constant 0 : index
    %11 = vector.load %arg15[%c0_1, %c0_2] : memref<368x128xbf16, #tpu.memory_space<vmem>>, vector<24x128xbf16>
    tpu.vector_store %arg15[%c0_1, %c0_2], %10 {strides = array<i32>} : memref<368x128xbf16, #tpu.memory_space<vmem>>, vector<24x128xbf16>,
    %cst_3 = arith.constant 0.000000e+00 : bf16
    %12 = vector.broadcast %cst_3 : bf16 to vector<24x128xbf16>
    %c344 = arith.constant 344 : index
    %c0_4 = arith.constant 0 : index
    %13 = vector.load %arg15[%c344, %c0_4] : memref<368x128xbf16, #tpu.memory_space<vmem>>, vector<24x128xbf16>
    tpu.vector_store %arg15[%c344, %c0_4], %12 {strides = array<i32>} : memref<368x128xbf16, #tpu.memory_space<vmem>>, vector<24x128xbf16>,
    %cst_5 = arith.constant 0.000000e+00 : bf16
    %14 = vector.broadcast %cst_5 : bf16 to vector<24x128xbf16>
    %c320 = arith.constant 320 : index
    %c0_6 = arith.constant 0 : index
    %15 = vector.load %arg16[%c320, %c0_6] : memref<344x128xbf16, #tpu.memory_space<vmem>>, vector<24x128xbf16>
    tpu.vector_store %arg16[%c320, %c0_6], %14 {strides = array<i32>} : memref<344x128xbf16, #tpu.memory_space<vmem>>, vector<24x128xbf16>,
    %cst_7 = arith.constant 0.000000e+00 : bf16
    %16 = vector.broadcast %cst_7 : bf16 to vector<16x128xbf16>
    %c0_8 = arith.constant 0 : index
    %c0_9 = arith.constant 0 : index
    %17 = vector.load %arg17[%c0_8, %c0_9] : memref<128x128xbf16, #tpu.memory_space<vmem>>, vector<16x128xbf16>
    tpu.vector_store %arg17[%c0_8, %c0_9], %16 {strides = array<i32>} : memref<128x128xbf16, #tpu.memory_space<vmem>>, vector<16x128xbf16>,
    %cst_10 = arith.constant 0.000000e+00 : bf16
    %18 = vector.broadcast %cst_10 : bf16 to vector<16x128xbf16>
    %c112 = arith.constant 112 : index
    %c0_11 = arith.constant 0 : index
    %19 = vector.load %arg17[%c112, %c0_11] : memref<128x128xbf16, #tpu.memory_space<vmem>>, vector<16x128xbf16>
    tpu.vector_store %arg17[%c112, %c0_11], %18 {strides = array<i32>} : memref<128x128xbf16, #tpu.memory_space<vmem>>, vector<16x128xbf16>,
    %cst_12 = arith.constant 0.000000e+00 : bf16
    %20 = vector.broadcast %cst_12 : bf16 to vector<16x128xbf16>
    %c96 = arith.constant 96 : index
    %c0_13 = arith.constant 0 : index
    %21 = vector.load %arg18[%c96, %c0_13] : memref<112x128xbf16, #tpu.memory_space<vmem>>, vector<16x128xbf16>
    tpu.vector_store %arg18[%c96, %c0_13], %20 {strides = array<i32>} : memref<112x128xbf16, #tpu.memory_space<vmem>>, vector<16x128xbf16>,
    %c0_14 = arith.constant 0 : index
    %c0_15 = arith.constant 0 : index
    %22 = vector.load %arg1[%c0_14, %c0_15] : memref<512x128xbf16, #tpu.memory_space<vmem>>, vector<512x128xbf16>
    %c0_16 = arith.constant 0 : index
    %c0_17 = arith.constant 0 : index
    %23 = vector.load %arg2[%c0_16, %c0_17] : memref<128x128xbf16, #tpu.memory_space<vmem>>, vector<128x128xbf16>
    %cst_18 = arith.constant dense<0.000000e+00> : vector<512x128xf32>
    %24 = tpu.matmul %22, %23, %cst_18 {dimension_numbers = #tpu.dot_dimension_numbers<[1], [0], [0], [1], [0, 0, 1, 1], [], []>} : vector<512x128xbf16>, vector<128x128xbf16>, vector<512x128xf32> -> vector<512x128xf32>
    %c0_19 = arith.constant 0 : index
    %c0_20 = arith.constant 0 : index
    %25 = vector.load %arg3[%c0_19, %c0_20] : memref<1x128xf32, #tpu.memory_space<vmem>>, vector<1x128xf32>
    %26 = vector.broadcast %25 : vector<1x128xf32> to vector<512x128xf32>
    %27 = arith.addf %24, %26 : vector<512x128xf32>
    %cst_21 = arith.constant 0.000000e+00 : f32
    %28 = vector.broadcast %cst_21 : f32 to vector<512x128xf32>
    %29 = arith.maximumf %27, %28 : vector<512x128xf32>
    %30 = arith.truncf %29 : vector<512x128xf32> to vector<512x128xbf16>
    %c0_22 = arith.constant 0 : index
    %c0_23 = arith.constant 0 : index
    %31 = vector.load %arg14[%c0_22, %c0_23] : memref<536x128xbf16, #tpu.memory_space<vmem>>, vector<512x128xbf16>
    tpu.vector_store %arg14[%c0_22, %c0_23], %30 {strides = array<i32>} : memref<536x128xbf16, #tpu.memory_space<vmem>>, vector<512x128xbf16>,
    %c0_24 = arith.constant 0 : index
    %c0_25 = arith.constant 0 : index
    %32 = vector.load %arg14[%c0_24, %c0_25] : memref<536x128xbf16, #tpu.memory_space<vmem>>, vector<512x128xbf16>
    %c1 = arith.constant 1 : index
    %c0_26 = arith.constant 0 : index
    %33 = vector.load %arg14[%c1, %c0_26] : memref<536x128xbf16, #tpu.memory_space<vmem>>, vector<512x128xbf16>
    %34 = arith.maximumf %32, %33 : vector<512x128xbf16>
    %c16 = arith.constant 16 : index
    %c0_27 = arith.constant 0 : index
    %35 = vector.load %arg14[%c16, %c0_27] : memref<536x128xbf16, #tpu.memory_space<vmem>>, vector<512x128xbf16>
    %c17 = arith.constant 17 : index
    %c0_28 = arith.constant 0 : index
    %36 = vector.load %arg14[%c17, %c0_28] : memref<536x128xbf16, #tpu.memory_space<vmem>>, vector<512x128xbf16>
    %37 = arith.maximumf %35, %36 : vector<512x128xbf16>
    %38 = arith.maximumf %34, %37 : vector<512x128xbf16>
    %c0_29 = arith.constant 0 : index
    %c0_30 = arith.constant 0 : index
    %39 = vector.load %arg4[%c0_29, %c0_30] : memref<320x512xbf16, #tpu.memory_space<vmem>>, vector<320x512xbf16>
    %cst_31 = arith.constant dense<0.000000e+00> : vector<320x128xf32>
    %40 = tpu.matmul %39, %38, %cst_31 {dimension_numbers = #tpu.dot_dimension_numbers<[1], [0], [0], [1], [0, 0, 1, 1], [], []>} : vector<320x512xbf16>, vector<512x128xbf16>, vector<320x128xf32> -> vector<320x128xf32>
    %41 = arith.truncf %40 : vector<320x128xf32> to vector<320x128xbf16>
    %c24 = arith.constant 24 : index
    %c0_32 = arith.constant 0 : index
    %42 = vector.load %arg15[%c24, %c0_32] : memref<368x128xbf16, #tpu.memory_space<vmem>>, vector<320x128xbf16>
    tpu.vector_store %arg15[%c24, %c0_32], %41 {strides = array<i32>} : memref<368x128xbf16, #tpu.memory_space<vmem>>, vector<320x128xbf16>,
    %c0_i32_33 = arith.constant 0 : i32
    %43 = tpu.memref_slice %arg23[%c0_i32_33] : memref<4x!tpu.dma_semaphore, #tpu.memory_space<semaphore_mem>> -> memref<1x!tpu.dma_semaphore, #tpu.memory_space<semaphore_mem>>
    %44 = tpu.memref_squeeze %43 : memref<1x!tpu.dma_semaphore, #tpu.memory_space<semaphore_mem>> -> memref<!tpu.dma_semaphore, #tpu.memory_space<semaphore_mem>>
    tpu.wait_dma2 semaphore(%44 : memref<!tpu.dma_semaphore, #tpu.memory_space<semaphore_mem>>) src(%arg9 : memref<9x128x128xbf16, #tpu.memory_space<any>>) dst(%arg19 : memref<9x128x128xbf16, #tpu.memory_space<vmem>>)
    %cst_34 = arith.constant 0.000000e+00 : f32
    %45 = vector.broadcast %cst_34 : f32 to vector<320x128xf32>
    %c7 = arith.constant 7 : index
    %c0_35 = arith.constant 0 : index
    %46 = vector.load %arg15[%c7, %c0_35] : memref<368x128xbf16, #tpu.memory_space<vmem>>, vector<320x128xbf16>
    %c0_36 = arith.constant 0 : index
    %c0_37 = arith.constant 0 : index
    %c0_38 = arith.constant 0 : index
    %47 = vector.load %arg19[%c0_36, %c0_37, %c0_38] : memref<9x128x128xbf16, #tpu.memory_space<vmem>>, vector<1x128x128xbf16>
    %48 = vector.shape_cast %47 : vector<1x128x128xbf16> to vector<128x128xbf16>
    %cst_39 = arith.constant dense<0.000000e+00> : vector<320x128xf32>
    %49 = tpu.matmul %46, %48, %cst_39 {dimension_numbers = #tpu.dot_dimension_numbers<[1], [0], [0], [1], [0, 0, 1, 1], [], []>} : vector<320x128xbf16>, vector<128x128xbf16>, vector<320x128xf32> -> vector<320x128xf32>
    %50 = arith.addf %45, %49 : vector<320x128xf32>
    %c8 = arith.constant 8 : index
    %c0_40 = arith.constant 0 : index
    %51 = vector.load %arg15[%c8, %c0_40] : memref<368x128xbf16, #tpu.memory_space<vmem>>, vector<320x128xbf16>
    %c1_41 = arith.constant 1 : index
    %c0_42 = arith.constant 0 : index
    %c0_43 = arith.constant 0 : index
    %52 = vector.load %arg19[%c1_41, %c0_42, %c0_43] : memref<9x128x128xbf16, #tpu.memory_space<vmem>>, vector<1x128x128xbf16>
    %53 = vector.shape_cast %52 : vector<1x128x128xbf16> to vector<128x128xbf16>
    %cst_44 = arith.constant dense<0.000000e+00> : vector<320x128xf32>
    %54 = tpu.matmul %51, %53, %cst_44 {dimension_numbers = #tpu.dot_dimension_numbers<[1], [0], [0], [1], [0, 0, 1, 1], [], []>} : vector<320x128xbf16>, vector<128x128xbf16>, vector<320x128xf32> -> vector<320x128xf32>
    %55 = arith.addf %50, %54 : vector<320x128xf32>
    %c9 = arith.constant 9 : index
    %c0_45 = arith.constant 0 : index
    %56 = vector.load %arg15[%c9, %c0_45] : memref<368x128xbf16, #tpu.memory_space<vmem>>, vector<320x128xbf16>
    %c2 = arith.constant 2 : index
    %c0_46 = arith.constant 0 : index
    %c0_47 = arith.constant 0 : index
    %57 = vector.load %arg19[%c2, %c0_46, %c0_47] : memref<9x128x128xbf16, #tpu.memory_space<vmem>>, vector<1x128x128xbf16>
    %58 = vector.shape_cast %57 : vector<1x128x128xbf16> to vector<128x128xbf16>
    %cst_48 = arith.constant dense<0.000000e+00> : vector<320x128xf32>
    %59 = tpu.matmul %56, %58, %cst_48 {dimension_numbers = #tpu.dot_dimension_numbers<[1], [0], [0], [1], [0, 0, 1, 1], [], []>} : vector<320x128xbf16>, vector<128x128xbf16>, vector<320x128xf32> -> vector<320x128xf32>
    %60 = arith.addf %55, %59 : vector<320x128xf32>
    %c23 = arith.constant 23 : index
    %c0_49 = arith.constant 0 : index
    %61 = vector.load %arg15[%c23, %c0_49] : memref<368x128xbf16, #tpu.memory_space<vmem>>, vector<320x128xbf16>
    %c3 = arith.constant 3 : index
    %c0_50 = arith.constant 0 : index
    %c0_51 = arith.constant 0 : index
    %62 = vector.load %arg19[%c3, %c0_50, %c0_51] : memref<9x128x128xbf16, #tpu.memory_space<vmem>>, vector<1x128x128xbf16>
    %63 = vector.shape_cast %62 : vector<1x128x128xbf16> to vector<128x128xbf16>
    %cst_52 = arith.constant dense<0.000000e+00> : vector<320x128xf32>
    %64 = tpu.matmul %61, %63, %cst_52 {dimension_numbers = #tpu.dot_dimension_numbers<[1], [0], [0], [1], [0, 0, 1, 1], [], []>} : vector<320x128xbf16>, vector<128x128xbf16>, vector<320x128xf32> -> vector<320x128xf32>
    %65 = arith.addf %60, %64 : vector<320x128xf32>
    %c24_53 = arith.constant 24 : index
    %c0_54 = arith.constant 0 : index
    %66 = vector.load %arg15[%c24_53, %c0_54] : memref<368x128xbf16, #tpu.memory_space<vmem>>, vector<320x128xbf16>
    %c4 = arith.constant 4 : index
    %c0_55 = arith.constant 0 : index
    %c0_56 = arith.constant 0 : index
    %67 = vector.load %arg19[%c4, %c0_55, %c0_56] : memref<9x128x128xbf16, #tpu.memory_space<vmem>>, vector<1x128x128xbf16>
    %68 = vector.shape_cast %67 : vector<1x128x128xbf16> to vector<128x128xbf16>
    %cst_57 = arith.constant dense<0.000000e+00> : vector<320x128xf32>
    %69 = tpu.matmul %66, %68, %cst_57 {dimension_numbers = #tpu.dot_dimension_numbers<[1], [0], [0], [1], [0, 0, 1, 1], [], []>} : vector<320x128xbf16>, vector<128x128xbf16>, vector<320x128xf32> -> vector<320x128xf32>
    %70 = arith.addf %65, %69 : vector<320x128xf32>
    %c25 = arith.constant 25 : index
    %c0_58 = arith.constant 0 : index
    %71 = vector.load %arg15[%c25, %c0_58] : memref<368x128xbf16, #tpu.memory_space<vmem>>, vector<320x128xbf16>
    %c5 = arith.constant 5 : index
    %c0_59 = arith.constant 0 : index
    %c0_60 = arith.constant 0 : index
    %72 = vector.load %arg19[%c5, %c0_59, %c0_60] : memref<9x128x128xbf16, #tpu.memory_space<vmem>>, vector<1x128x128xbf16>
    %73 = vector.shape_cast %72 : vector<1x128x128xbf16> to vector<128x128xbf16>
    %cst_61 = arith.constant dense<0.000000e+00> : vector<320x128xf32>
    %74 = tpu.matmul %71, %73, %cst_61 {dimension_numbers = #tpu.dot_dimension_numbers<[1], [0], [0], [1], [0, 0, 1, 1], [], []>} : vector<320x128xbf16>, vector<128x128xbf16>, vector<320x128xf32> -> vector<320x128xf32>
    %75 = arith.addf %70, %74 : vector<320x128xf32>
    %c39 = arith.constant 39 : index
    %c0_62 = arith.constant 0 : index
    %76 = vector.load %arg15[%c39, %c0_62] : memref<368x128xbf16, #tpu.memory_space<vmem>>, vector<320x128xbf16>
    %c6 = arith.constant 6 : index
    %c0_63 = arith.constant 0 : index
    %c0_64 = arith.constant 0 : index
    %77 = vector.load %arg19[%c6, %c0_63, %c0_64] : memref<9x128x128xbf16, #tpu.memory_space<vmem>>, vector<1x128x128xbf16>
    %78 = vector.shape_cast %77 : vector<1x128x128xbf16> to vector<128x128xbf16>
    %cst_65 = arith.constant dense<0.000000e+00> : vector<320x128xf32>
    %79 = tpu.matmul %76, %78, %cst_65 {dimension_numbers = #tpu.dot_dimension_numbers<[1], [0], [0], [1], [0, 0, 1, 1], [], []>} : vector<320x128xbf16>, vector<128x128xbf16>, vector<320x128xf32> -> vector<320x128xf32>
    %80 = arith.addf %75, %79 : vector<320x128xf32>
    %c40 = arith.constant 40 : index
    %c0_66 = arith.constant 0 : index
    %81 = vector.load %arg15[%c40, %c0_66] : memref<368x128xbf16, #tpu.memory_space<vmem>>, vector<320x128xbf16>
    %c7_67 = arith.constant 7 : index
    %c0_68 = arith.constant 0 : index
    %c0_69 = arith.constant 0 : index
    %82 = vector.load %arg19[%c7_67, %c0_68, %c0_69] : memref<9x128x128xbf16, #tpu.memory_space<vmem>>, vector<1x128x128xbf16>
    %83 = vector.shape_cast %82 : vector<1x128x128xbf16> to vector<128x128xbf16>
    %cst_70 = arith.constant dense<0.000000e+00> : vector<320x128xf32>
    %84 = tpu.matmul %81, %83, %cst_70 {dimension_numbers = #tpu.dot_dimension_numbers<[1], [0], [0], [1], [0, 0, 1, 1], [], []>} : vector<320x128xbf16>, vector<128x128xbf16>, vector<320x128xf32> -> vector<320x128xf32>
    %85 = arith.addf %80, %84 : vector<320x128xf32>
    %c41 = arith.constant 41 : index
    %c0_71 = arith.constant 0 : index
    %86 = vector.load %arg15[%c41, %c0_71] : memref<368x128xbf16, #tpu.memory_space<vmem>>, vector<320x128xbf16>
    %c8_72 = arith.constant 8 : index
    %c0_73 = arith.constant 0 : index
    %c0_74 = arith.constant 0 : index
    %87 = vector.load %arg19[%c8_72, %c0_73, %c0_74] : memref<9x128x128xbf16, #tpu.memory_space<vmem>>, vector<1x128x128xbf16>
    %88 = vector.shape_cast %87 : vector<1x128x128xbf16> to vector<128x128xbf16>
    %cst_75 = arith.constant dense<0.000000e+00> : vector<320x128xf32>
    %89 = tpu.matmul %86, %88, %cst_75 {dimension_numbers = #tpu.dot_dimension_numbers<[1], [0], [0], [1], [0, 0, 1, 1], [], []>} : vector<320x128xbf16>, vector<128x128xbf16>, vector<320x128xf32> -> vector<320x128xf32>
    %90 = arith.addf %85, %89 : vector<320x128xf32>
    %c0_76 = arith.constant 0 : index
    %c0_77 = arith.constant 0 : index
    %91 = vector.load %arg5[%c0_76, %c0_77] : memref<1x128xf32, #tpu.memory_space<vmem>>, vector<1x128xf32>
    %92 = vector.broadcast %91 : vector<1x128xf32> to vector<320x128xf32>
    %93 = arith.addf %90, %92 : vector<320x128xf32>
    %cst_78 = arith.constant 0.000000e+00 : f32
    %94 = vector.broadcast %cst_78 : f32 to vector<320x128xf32>
    %95 = arith.maximumf %93, %94 : vector<320x128xf32>
    %96 = arith.truncf %95 : vector<320x128xf32> to vector<320x128xbf16>
    %c0_79 = arith.constant 0 : index
    %c0_80 = arith.constant 0 : index
    %97 = vector.load %arg16[%c0_79, %c0_80] : memref<344x128xbf16, #tpu.memory_space<vmem>>, vector<320x128xbf16>
    tpu.vector_store %arg16[%c0_79, %c0_80], %96 {strides = array<i32>} : memref<344x128xbf16, #tpu.memory_space<vmem>>, vector<320x128xbf16>,
    %c0_81 = arith.constant 0 : index
    %c0_82 = arith.constant 0 : index
    %98 = vector.load %arg16[%c0_81, %c0_82] : memref<344x128xbf16, #tpu.memory_space<vmem>>, vector<320x128xbf16>
    %c1_83 = arith.constant 1 : index
    %c0_84 = arith.constant 0 : index
    %99 = vector.load %arg16[%c1_83, %c0_84] : memref<344x128xbf16, #tpu.memory_space<vmem>>, vector<320x128xbf16>
    %100 = arith.maximumf %98, %99 : vector<320x128xbf16>
    %c16_85 = arith.constant 16 : index
    %c0_86 = arith.constant 0 : index
    %101 = vector.load %arg16[%c16_85, %c0_86] : memref<344x128xbf16, #tpu.memory_space<vmem>>, vector<320x128xbf16>
    %c17_87 = arith.constant 17 : index
    %c0_88 = arith.constant 0 : index
    %102 = vector.load %arg16[%c17_87, %c0_88] : memref<344x128xbf16, #tpu.memory_space<vmem>>, vector<320x128xbf16>
    %103 = arith.maximumf %101, %102 : vector<320x128xbf16>
    %104 = arith.maximumf %100, %103 : vector<320x128xbf16>
    %c2_i32_89 = arith.constant 2 : i32
    %105 = tpu.memref_slice %arg23[%c2_i32_89] : memref<4x!tpu.dma_semaphore, #tpu.memory_space<semaphore_mem>> -> memref<1x!tpu.dma_semaphore, #tpu.memory_space<semaphore_mem>>
    %106 = tpu.memref_squeeze %105 : memref<1x!tpu.dma_semaphore, #tpu.memory_space<semaphore_mem>> -> memref<!tpu.dma_semaphore, #tpu.memory_space<semaphore_mem>>
    tpu.wait_dma2 semaphore(%106 : memref<!tpu.dma_semaphore, #tpu.memory_space<semaphore_mem>>) src(%arg11 : memref<96x320xbf16, #tpu.memory_space<any>>) dst(%arg21 : memref<96x320xbf16, #tpu.memory_space<vmem>>)
    %c0_90 = arith.constant 0 : index
    %c0_91 = arith.constant 0 : index
    %107 = vector.load %arg21[%c0_90, %c0_91] : memref<96x320xbf16, #tpu.memory_space<vmem>>, vector<96x320xbf16>
    %cst_92 = arith.constant dense<0.000000e+00> : vector<96x128xf32>
    %108 = tpu.matmul %107, %104, %cst_92 {dimension_numbers = #tpu.dot_dimension_numbers<[1], [0], [0], [1], [0, 0, 1, 1], [], []>} : vector<96x320xbf16>, vector<320x128xbf16>, vector<96x128xf32> -> vector<96x128xf32>
    %109 = arith.truncf %108 : vector<96x128xf32> to vector<96x128xbf16>
    %c16_93 = arith.constant 16 : index
    %c0_94 = arith.constant 0 : index
    %110 = vector.load %arg17[%c16_93, %c0_94] : memref<128x128xbf16, #tpu.memory_space<vmem>>, vector<96x128xbf16>
    tpu.vector_store %arg17[%c16_93, %c0_94], %109 {strides = array<i32>} : memref<128x128xbf16, #tpu.memory_space<vmem>>, vector<96x128xbf16>,
    %c1_i32_95 = arith.constant 1 : i32
    %111 = tpu.memref_slice %arg23[%c1_i32_95] : memref<4x!tpu.dma_semaphore, #tpu.memory_space<semaphore_mem>> -> memref<1x!tpu.dma_semaphore, #tpu.memory_space<semaphore_mem>>
    %112 = tpu.memref_squeeze %111 : memref<1x!tpu.dma_semaphore, #tpu.memory_space<semaphore_mem>> -> memref<!tpu.dma_semaphore, #tpu.memory_space<semaphore_mem>>
    tpu.wait_dma2 semaphore(%112 : memref<!tpu.dma_semaphore, #tpu.memory_space<semaphore_mem>>) src(%arg10 : memref<9x128x128xbf16, #tpu.memory_space<any>>) dst(%arg20 : memref<9x128x128xbf16, #tpu.memory_space<vmem>>)
    %cst_96 = arith.constant 0.000000e+00 : f32
    %113 = vector.broadcast %cst_96 : f32 to vector<96x128xf32>
    %c7_97 = arith.constant 7 : index
    %c0_98 = arith.constant 0 : index
    %114 = vector.load %arg17[%c7_97, %c0_98] : memref<128x128xbf16, #tpu.memory_space<vmem>>, vector<96x128xbf16>
    %c0_99 = arith.constant 0 : index
    %c0_100 = arith.constant 0 : index
    %c0_101 = arith.constant 0 : index
    %115 = vector.load %arg20[%c0_99, %c0_100, %c0_101] : memref<9x128x128xbf16, #tpu.memory_space<vmem>>, vector<1x128x128xbf16>
    %116 = vector.shape_cast %115 : vector<1x128x128xbf16> to vector<128x128xbf16>
    %cst_102 = arith.constant dense<0.000000e+00> : vector<96x128xf32>
    %117 = tpu.matmul %114, %116, %cst_102 {dimension_numbers = #tpu.dot_dimension_numbers<[1], [0], [0], [1], [0, 0, 1, 1], [], []>} : vector<96x128xbf16>, vector<128x128xbf16>, vector<96x128xf32> -> vector<96x128xf32>
    %118 = arith.addf %113, %117 : vector<96x128xf32>
    %c8_103 = arith.constant 8 : index
    %c0_104 = arith.constant 0 : index
    %119 = vector.load %arg17[%c8_103, %c0_104] : memref<128x128xbf16, #tpu.memory_space<vmem>>, vector<96x128xbf16>
    %c1_105 = arith.constant 1 : index
    %c0_106 = arith.constant 0 : index
    %c0_107 = arith.constant 0 : index
    %120 = vector.load %arg20[%c1_105, %c0_106, %c0_107] : memref<9x128x128xbf16, #tpu.memory_space<vmem>>, vector<1x128x128xbf16>
    %121 = vector.shape_cast %120 : vector<1x128x128xbf16> to vector<128x128xbf16>
    %cst_108 = arith.constant dense<0.000000e+00> : vector<96x128xf32>
    %122 = tpu.matmul %119, %121, %cst_108 {dimension_numbers = #tpu.dot_dimension_numbers<[1], [0], [0], [1], [0, 0, 1, 1], [], []>} : vector<96x128xbf16>, vector<128x128xbf16>, vector<96x128xf32> -> vector<96x128xf32>
    %123 = arith.addf %118, %122 : vector<96x128xf32>
    %c9_109 = arith.constant 9 : index
    %c0_110 = arith.constant 0 : index
    %124 = vector.load %arg17[%c9_109, %c0_110] : memref<128x128xbf16, #tpu.memory_space<vmem>>, vector<96x128xbf16>
    %c2_111 = arith.constant 2 : index
    %c0_112 = arith.constant 0 : index
    %c0_113 = arith.constant 0 : index
    %125 = vector.load %arg20[%c2_111, %c0_112, %c0_113] : memref<9x128x128xbf16, #tpu.memory_space<vmem>>, vector<1x128x128xbf16>
    %126 = vector.shape_cast %125 : vector<1x128x128xbf16> to vector<128x128xbf16>
    %cst_114 = arith.constant dense<0.000000e+00> : vector<96x128xf32>
    %127 = tpu.matmul %124, %126, %cst_114 {dimension_numbers = #tpu.dot_dimension_numbers<[1], [0], [0], [1], [0, 0, 1, 1], [], []>} : vector<96x128xbf16>, vector<128x128xbf16>, vector<96x128xf32> -> vector<96x128xf32>
    %128 = arith.addf %123, %127 : vector<96x128xf32>
    %c15 = arith.constant 15 : index
    %c0_115 = arith.constant 0 : index
    %129 = vector.load %arg17[%c15, %c0_115] : memref<128x128xbf16, #tpu.memory_space<vmem>>, vector<96x128xbf16>
    %c3_116 = arith.constant 3 : index
    %c0_117 = arith.constant 0 : index
    %c0_118 = arith.constant 0 : index
    %130 = vector.load %arg20[%c3_116, %c0_117, %c0_118] : memref<9x128x128xbf16, #tpu.memory_space<vmem>>, vector<1x128x128xbf16>
    %131 = vector.shape_cast %130 : vector<1x128x128xbf16> to vector<128x128xbf16>
    %cst_119 = arith.constant dense<0.000000e+00> : vector<96x128xf32>
    %132 = tpu.matmul %129, %131, %cst_119 {dimension_numbers = #tpu.dot_dimension_numbers<[1], [0], [0], [1], [0, 0, 1, 1], [], []>} : vector<96x128xbf16>, vector<128x128xbf16>, vector<96x128xf32> -> vector<96x128xf32>
    %133 = arith.addf %128, %132 : vector<96x128xf32>
    %c16_120 = arith.constant 16 : index
    %c0_121 = arith.constant 0 : index
    %134 = vector.load %arg17[%c16_120, %c0_121] : memref<128x128xbf16, #tpu.memory_space<vmem>>, vector<96x128xbf16>
    %c4_122 = arith.constant 4 : index
    %c0_123 = arith.constant 0 : index
    %c0_124 = arith.constant 0 : index
    %135 = vector.load %arg20[%c4_122, %c0_123, %c0_124] : memref<9x128x128xbf16, #tpu.memory_space<vmem>>, vector<1x128x128xbf16>
    %136 = vector.shape_cast %135 : vector<1x128x128xbf16> to vector<128x128xbf16>
    %cst_125 = arith.constant dense<0.000000e+00> : vector<96x128xf32>
    %137 = tpu.matmul %134, %136, %cst_125 {dimension_numbers = #tpu.dot_dimension_numbers<[1], [0], [0], [1], [0, 0, 1, 1], [], []>} : vector<96x128xbf16>, vector<128x128xbf16>, vector<96x128xf32> -> vector<96x128xf32>
    %138 = arith.addf %133, %137 : vector<96x128xf32>
    %c17_126 = arith.constant 17 : index
    %c0_127 = arith.constant 0 : index
    %139 = vector.load %arg17[%c17_126, %c0_127] : memref<128x128xbf16, #tpu.memory_space<vmem>>, vector<96x128xbf16>
    %c5_128 = arith.constant 5 : index
    %c0_129 = arith.constant 0 : index
    %c0_130 = arith.constant 0 : index
    %140 = vector.load %arg20[%c5_128, %c0_129, %c0_130] : memref<9x128x128xbf16, #tpu.memory_space<vmem>>, vector<1x128x128xbf16>
    %141 = vector.shape_cast %140 : vector<1x128x128xbf16> to vector<128x128xbf16>
    %cst_131 = arith.constant dense<0.000000e+00> : vector<96x128xf32>
    %142 = tpu.matmul %139, %141, %cst_131 {dimension_numbers = #tpu.dot_dimension_numbers<[1], [0], [0], [1], [0, 0, 1, 1], [], []>} : vector<96x128xbf16>, vector<128x128xbf16>, vector<96x128xf32> -> vector<96x128xf32>
    %143 = arith.addf %138, %142 : vector<96x128xf32>
    %c23_132 = arith.constant 23 : index
    %c0_133 = arith.constant 0 : index
    %144 = vector.load %arg17[%c23_132, %c0_133] : memref<128x128xbf16, #tpu.memory_space<vmem>>, vector<96x128xbf16>
    %c6_134 = arith.constant 6 : index
    %c0_135 = arith.constant 0 : index
    %c0_136 = arith.constant 0 : index
    %145 = vector.load %arg20[%c6_134, %c0_135, %c0_136] : memref<9x128x128xbf16, #tpu.memory_space<vmem>>, vector<1x128x128xbf16>
    %146 = vector.shape_cast %145 : vector<1x128x128xbf16> to vector<128x128xbf16>
    %cst_137 = arith.constant dense<0.000000e+00> : vector<96x128xf32>
    %147 = tpu.matmul %144, %146, %cst_137 {dimension_numbers = #tpu.dot_dimension_numbers<[1], [0], [0], [1], [0, 0, 1, 1], [], []>} : vector<96x128xbf16>, vector<128x128xbf16>, vector<96x128xf32> -> vector<96x128xf32>
    %148 = arith.addf %143, %147 : vector<96x128xf32>
    %c24_138 = arith.constant 24 : index
    %c0_139 = arith.constant 0 : index
    %149 = vector.load %arg17[%c24_138, %c0_139] : memref<128x128xbf16, #tpu.memory_space<vmem>>, vector<96x128xbf16>
    %c7_140 = arith.constant 7 : index
    %c0_141 = arith.constant 0 : index
    %c0_142 = arith.constant 0 : index
    %150 = vector.load %arg20[%c7_140, %c0_141, %c0_142] : memref<9x128x128xbf16, #tpu.memory_space<vmem>>, vector<1x128x128xbf16>
    %151 = vector.shape_cast %150 : vector<1x128x128xbf16> to vector<128x128xbf16>
    %cst_143 = arith.constant dense<0.000000e+00> : vector<96x128xf32>
    %152 = tpu.matmul %149, %151, %cst_143 {dimension_numbers = #tpu.dot_dimension_numbers<[1], [0], [0], [1], [0, 0, 1, 1], [], []>} : vector<96x128xbf16>, vector<128x128xbf16>, vector<96x128xf32> -> vector<96x128xf32>
    %153 = arith.addf %148, %152 : vector<96x128xf32>
    %c25_144 = arith.constant 25 : index
    %c0_145 = arith.constant 0 : index
    %154 = vector.load %arg17[%c25_144, %c0_145] : memref<128x128xbf16, #tpu.memory_space<vmem>>, vector<96x128xbf16>
    %c8_146 = arith.constant 8 : index
    %c0_147 = arith.constant 0 : index
    %c0_148 = arith.constant 0 : index
    %155 = vector.load %arg20[%c8_146, %c0_147, %c0_148] : memref<9x128x128xbf16, #tpu.memory_space<vmem>>, vector<1x128x128xbf16>
    %156 = vector.shape_cast %155 : vector<1x128x128xbf16> to vector<128x128xbf16>
    %cst_149 = arith.constant dense<0.000000e+00> : vector<96x128xf32>
    %157 = tpu.matmul %154, %156, %cst_149 {dimension_numbers = #tpu.dot_dimension_numbers<[1], [0], [0], [1], [0, 0, 1, 1], [], []>} : vector<96x128xbf16>, vector<128x128xbf16>, vector<96x128xf32> -> vector<96x128xf32>
    %158 = arith.addf %153, %157 : vector<96x128xf32>
    %c0_150 = arith.constant 0 : index
    %c0_151 = arith.constant 0 : index
    %159 = vector.load %arg6[%c0_150, %c0_151] : memref<1x128xf32, #tpu.memory_space<vmem>>, vector<1x128xf32>
    %160 = vector.broadcast %159 : vector<1x128xf32> to vector<96x128xf32>
    %161 = arith.addf %158, %160 : vector<96x128xf32>
    %cst_152 = arith.constant 0.000000e+00 : f32
    %162 = vector.broadcast %cst_152 : f32 to vector<96x128xf32>
    %163 = arith.maximumf %161, %162 : vector<96x128xf32>
    %164 = arith.truncf %163 : vector<96x128xf32> to vector<96x128xbf16>
    %c0_153 = arith.constant 0 : index
    %c0_154 = arith.constant 0 : index
    %165 = vector.load %arg18[%c0_153, %c0_154] : memref<112x128xbf16, #tpu.memory_space<vmem>>, vector<96x128xbf16>
    tpu.vector_store %arg18[%c0_153, %c0_154], %164 {strides = array<i32>} : memref<112x128xbf16, #tpu.memory_space<vmem>>, vector<96x128xbf16>,
    %c0_155 = arith.constant 0 : index
    %c0_156 = arith.constant 0 : index
    %166 = vector.load %arg18[%c0_155, %c0_156] : memref<112x128xbf16, #tpu.memory_space<vmem>>, vector<96x128xbf16>
    %c1_157 = arith.constant 1 : index
    %c0_158 = arith.constant 0 : index
    %167 = vector.load %arg18[%c1_157, %c0_158] : memref<112x128xbf16, #tpu.memory_space<vmem>>, vector<96x128xbf16>
    %168 = arith.maximumf %166, %167 : vector<96x128xbf16>
    %c8_159 = arith.constant 8 : index
    %c0_160 = arith.constant 0 : index
    %169 = vector.load %arg18[%c8_159, %c0_160] : memref<112x128xbf16, #tpu.memory_space<vmem>>, vector<96x128xbf16>
    %c9_161 = arith.constant 9 : index
    %c0_162 = arith.constant 0 : index
    %170 = vector.load %arg18[%c9_161, %c0_162] : memref<112x128xbf16, #tpu.memory_space<vmem>>, vector<96x128xbf16>
    %171 = arith.maximumf %169, %170 : vector<96x128xbf16>
    %172 = arith.maximumf %168, %171 : vector<96x128xbf16>
    %c3_i32_163 = arith.constant 3 : i32
    %173 = tpu.memref_slice %arg23[%c3_i32_163] : memref<4x!tpu.dma_semaphore, #tpu.memory_space<semaphore_mem>> -> memref<1x!tpu.dma_semaphore, #tpu.memory_space<semaphore_mem>>
    %174 = tpu.memref_squeeze %173 : memref<1x!tpu.dma_semaphore, #tpu.memory_space<semaphore_mem>> -> memref<!tpu.dma_semaphore, #tpu.memory_space<semaphore_mem>>
    tpu.wait_dma2 semaphore(%174 : memref<!tpu.dma_semaphore, #tpu.memory_space<semaphore_mem>>) src(%arg12 : memref<4x128x32xbf16, #tpu.memory_space<any>>) dst(%arg22 : memref<4x128x32xbf16, #tpu.memory_space<vmem>>)
    %cst_164 = arith.constant 0.000000e+00 : f32
    %175 = vector.broadcast %cst_164 : f32 to vector<2x32xf32>
    %c0_165 = arith.constant 0 : index
    %c0_166 = arith.constant 0 : index
    %c0_167 = arith.constant 0 : index
    %176 = vector.load %arg7[%c0_165, %c0_166, %c0_167] : memref<4x2x96xbf16, #tpu.memory_space<vmem>>, vector<1x2x96xbf16>
    %177 = vector.shape_cast %176 : vector<1x2x96xbf16> to vector<2x96xbf16>
    %cst_168 = arith.constant dense<0.000000e+00> : vector<2x128xf32>
    %178 = tpu.matmul %177, %172, %cst_168 {dimension_numbers = #tpu.dot_dimension_numbers<[1], [0], [0], [1], [0, 0, 1, 1], [], []>} : vector<2x96xbf16>, vector<96x128xbf16>, vector<2x128xf32> -> vector<2x128xf32>
    %179 = arith.truncf %178 : vector<2x128xf32> to vector<2x128xbf16>
    %c0_169 = arith.constant 0 : index
    %c0_170 = arith.constant 0 : index
    %c0_171 = arith.constant 0 : index
    %180 = vector.load %arg22[%c0_169, %c0_170, %c0_171] : memref<4x128x32xbf16, #tpu.memory_space<vmem>>, vector<1x128x32xbf16>
    %181 = vector.shape_cast %180 : vector<1x128x32xbf16> to vector<128x32xbf16>
    %cst_172 = arith.constant dense<0.000000e+00> : vector<2x32xf32>
    %182 = tpu.matmul %179, %181, %cst_172 {dimension_numbers = #tpu.dot_dimension_numbers<[1], [0], [0], [1], [0, 0, 1, 1], [], []>} : vector<2x128xbf16>, vector<128x32xbf16>, vector<2x32xf32> -> vector<2x32xf32>
    %183 = arith.addf %175, %182 : vector<2x32xf32>
    %c1_173 = arith.constant 1 : index
    %c0_174 = arith.constant 0 : index
    %c0_175 = arith.constant 0 : index
    %184 = vector.load %arg7[%c1_173, %c0_174, %c0_175] : memref<4x2x96xbf16, #tpu.memory_space<vmem>>, vector<1x2x96xbf16>
    %185 = vector.shape_cast %184 : vector<1x2x96xbf16> to vector<2x96xbf16>
    %cst_176 = arith.constant dense<0.000000e+00> : vector<2x128xf32>
    %186 = tpu.matmul %185, %172, %cst_176 {dimension_numbers = #tpu.dot_dimension_numbers<[1], [0], [0], [1], [0, 0, 1, 1], [], []>} : vector<2x96xbf16>, vector<96x128xbf16>, vector<2x128xf32> -> vector<2x128xf32>
    %187 = arith.truncf %186 : vector<2x128xf32> to vector<2x128xbf16>
    %c1_177 = arith.constant 1 : index
    %c0_178 = arith.constant 0 : index
    %c0_179 = arith.constant 0 : index
    %188 = vector.load %arg22[%c1_177, %c0_178, %c0_179] : memref<4x128x32xbf16, #tpu.memory_space<vmem>>, vector<1x128x32xbf16>
    %189 = vector.shape_cast %188 : vector<1x128x32xbf16> to vector<128x32xbf16>
    %cst_180 = arith.constant dense<0.000000e+00> : vector<2x32xf32>
    %190 = tpu.matmul %187, %189, %cst_180 {dimension_numbers = #tpu.dot_dimension_numbers<[1], [0], [0], [1], [0, 0, 1, 1], [], []>} : vector<2x128xbf16>, vector<128x32xbf16>, vector<2x32xf32> -> vector<2x32xf32>
    %191 = arith.addf %183, %190 : vector<2x32xf32>
    %c2_181 = arith.constant 2 : index
    %c0_182 = arith.constant 0 : index
    %c0_183 = arith.constant 0 : index
    %192 = vector.load %arg7[%c2_181, %c0_182, %c0_183] : memref<4x2x96xbf16, #tpu.memory_space<vmem>>, vector<1x2x96xbf16>
    %193 = vector.shape_cast %192 : vector<1x2x96xbf16> to vector<2x96xbf16>
    %cst_184 = arith.constant dense<0.000000e+00> : vector<2x128xf32>
    %194 = tpu.matmul %193, %172, %cst_184 {dimension_numbers = #tpu.dot_dimension_numbers<[1], [0], [0], [1], [0, 0, 1, 1], [], []>} : vector<2x96xbf16>, vector<96x128xbf16>, vector<2x128xf32> -> vector<2x128xf32>
    %195 = arith.truncf %194 : vector<2x128xf32> to vector<2x128xbf16>
    %c2_185 = arith.constant 2 : index
    %c0_186 = arith.constant 0 : index
    %c0_187 = arith.constant 0 : index
    %196 = vector.load %arg22[%c2_185, %c0_186, %c0_187] : memref<4x128x32xbf16, #tpu.memory_space<vmem>>, vector<1x128x32xbf16>
    %197 = vector.shape_cast %196 : vector<1x128x32xbf16> to vector<128x32xbf16>
    %cst_188 = arith.constant dense<0.000000e+00> : vector<2x32xf32>
    %198 = tpu.matmul %195, %197, %cst_188 {dimension_numbers = #tpu.dot_dimension_numbers<[1], [0], [0], [1], [0, 0, 1, 1], [], []>} : vector<2x128xbf16>, vector<128x32xbf16>, vector<2x32xf32> -> vector<2x32xf32>
    %199 = arith.addf %191, %198 : vector<2x32xf32>
    %c3_189 = arith.constant 3 : index
    %c0_190 = arith.constant 0 : index
    %c0_191 = arith.constant 0 : index
    %200 = vector.load %arg7[%c3_189, %c0_190, %c0_191] : memref<4x2x96xbf16, #tpu.memory_space<vmem>>, vector<1x2x96xbf16>
    %201 = vector.shape_cast %200 : vector<1x2x96xbf16> to vector<2x96xbf16>
    %cst_192 = arith.constant dense<0.000000e+00> : vector<2x128xf32>
    %202 = tpu.matmul %201, %172, %cst_192 {dimension_numbers = #tpu.dot_dimension_numbers<[1], [0], [0], [1], [0, 0, 1, 1], [], []>} : vector<2x96xbf16>, vector<96x128xbf16>, vector<2x128xf32> -> vector<2x128xf32>
    %203 = arith.truncf %202 : vector<2x128xf32> to vector<2x128xbf16>
    %c3_193 = arith.constant 3 : index
    %c0_194 = arith.constant 0 : index
    %c0_195 = arith.constant 0 : index
    %204 = vector.load %arg22[%c3_193, %c0_194, %c0_195] : memref<4x128x32xbf16, #tpu.memory_space<vmem>>, vector<1x128x32xbf16>
    %205 = vector.shape_cast %204 : vector<1x128x32xbf16> to vector<128x32xbf16>
    %cst_196 = arith.constant dense<0.000000e+00> : vector<2x32xf32>
    %206 = tpu.matmul %203, %205, %cst_196 {dimension_numbers = #tpu.dot_dimension_numbers<[1], [0], [0], [1], [0, 0, 1, 1], [], []>} : vector<2x128xbf16>, vector<128x32xbf16>, vector<2x32xf32> -> vector<2x32xf32>
    %207 = arith.addf %199, %206 : vector<2x32xf32>
    %c0_197 = arith.constant 0 : index
    %c0_198 = arith.constant 0 : index
    %208 = vector.load %arg8[%c0_197, %c0_198] : memref<1x32xf32, #tpu.memory_space<vmem>>, vector<1x32xf32>
    %209 = vector.broadcast %208 : vector<1x32xf32> to vector<2x32xf32>
    %210 = arith.addf %207, %209 : vector<2x32xf32>
    %c0_199 = arith.constant 0 : index
    %c0_200 = arith.constant 0 : index
    %211 = vector.load %arg13[%c0_199, %c0_200] : memref<2x32xf32, #tpu.memory_space<vmem>>, vector<2x32xf32>
    tpu.vector_store %arg13[%c0_199, %c0_200], %210 {strides = array<i32>} : memref<2x32xf32, #tpu.memory_space<vmem>>, vector<2x32xf32>,
    return
  }
  func.func @transform_0(%arg0: i32) -> (i32, i32) {
    %c0_i32 = arith.constant 0 : i32
    %c0_i32_0 = arith.constant 0 : i32
    %c0_i32_1 = arith.constant 0 : i32
    return %c0_i32, %c0_i32_0 : i32, i32
  }
  func.func @transform_1(%arg0: i32) -> (i32, i32) {
    %c0_i32 = arith.constant 0 : i32
    %c0_i32_0 = arith.constant 0 : i32
    %c0_i32_1 = arith.constant 0 : i32
    return %c0_i32, %c0_i32_0 : i32, i32
  }
  func.func @transform_2(%arg0: i32) -> (i32, i32) {
    %c0_i32 = arith.constant 0 : i32
    %c0_i32_0 = arith.constant 0 : i32
    %c0_i32_1 = arith.constant 0 : i32
    return %c0_i32, %c0_i32_0 : i32, i32
  }
  func.func @transform_3(%arg0: i32) -> (i32, i32) {
    %c0_i32 = arith.constant 0 : i32
    %c0_i32_0 = arith.constant 0 : i32
    %c0_i32_1 = arith.constant 0 : i32
    return %c0_i32, %c0_i32_0 : i32, i32
  }
  func.func @transform_4(%arg0: i32) -> (i32, i32) {
    %c0_i32 = arith.constant 0 : i32
    %c0_i32_0 = arith.constant 0 : i32
    %c0_i32_1 = arith.constant 0 : i32
    return %c0_i32, %c0_i32_0 : i32, i32
  }
  func.func @transform_5(%arg0: i32) -> (i32, i32) {
    %c0_i32 = arith.constant 0 : i32
    %c0_i32_0 = arith.constant 0 : i32
    %c0_i32_1 = arith.constant 0 : i32
    return %c0_i32, %c0_i32_0 : i32, i32
  }
  func.func @transform_6(%arg0: i32) -> (i32, i32, i32) {
    %c0_i32 = arith.constant 0 : i32
    %c0_i32_0 = arith.constant 0 : i32
    %c0_i32_1 = arith.constant 0 : i32
    %c0_i32_2 = arith.constant 0 : i32
    return %c0_i32, %c0_i32_0, %c0_i32_1 : i32, i32, i32
  }
  func.func @transform_7(%arg0: i32) -> (i32, i32) {
    %c0_i32 = arith.constant 0 : i32
    %c0_i32_0 = arith.constant 0 : i32
    %c0_i32_1 = arith.constant 0 : i32
    return %c0_i32, %c0_i32_0 : i32, i32
  }
  func.func @transform_12(%arg0: i32) -> (i32, i32) {
    %c0_i32 = arith.constant 0 : i32
    %c0_i32_0 = arith.constant 0 : i32
    %c0_i32_1 = arith.constant 0 : i32
    return %c0_i32, %c0_i32_0 : i32, i32
  }
}

</mosaic_0001>

<bundles_post_ra>
// kernel: _lambda_.1
= control target key start
LH: loop header
LB: loop body
LE: loop exit
PB: predicated region body
PF: predicated region fallthrough
CT: control target
= control target key end

     0   :  { %17 = vsyncpa [#allocation13], 0  ;;  %s19793_s0 = inlined_call_operand.vmem [shape: bf16[512,128], index: 0, kind: input, shape index: {}]   ;;  %s19794_s1 = inlined_call_operand.vmem [shape: bf16[128,128], index: 1, kind: input, shape index: {}]   ;;  %s19795_s2 = inlined_call_operand.vmem [shape: f32[1,128], index: 2, kind: input, shape index: {}]   ;;  %s19796_s3 = inlined_call_operand.vmem [shape: bf16[320,512], index: 3, kind: input, shape index: {}]   ;;  %s19797_s4 = inlined_call_operand.vmem [shape: f32[1,128], index: 4, kind: input, shape index: {}]   ;;  %s19798_s5 = inlined_call_operand.vmem [shape: f32[1,128], index: 5, kind: input, shape index: {}]   ;;  %s19799_s6 = inlined_call_operand.vmem [shape: bf16[4,2,96], index: 6, kind: input, shape index: {}]   ;;  %s19800_s7 = inlined_call_operand.vmem [shape: f32[1,32], index: 7, kind: input, shape index: {}]   ;;  %s19801_s8 = inlined_call_operand.vmem [shape: bf16[9,128,128], index: 8, kind: input, shape index: {}]   ;;  %s19802_s9 = inlined_call_operand.vmem [shape: bf16[9,128,128], index: 9, kind: input, shape index: {}]   ;;  %s19803_s10 = inlined_call_operand.vmem [shape: bf16[96,320], index: 10, kind: input, shape index: {}]   ;;  %s19804_s11 = inlined_call_operand.vmem [shape: bf16[4,128,32], index: 11, kind: input, shape index: {}]   ;;  %s19805_s12 = inlined_call_operand.hbm [shape: f32[2,32], index: 12, kind: output, shape index: {}]  }
   0x1   :  { %v14673_v0 = vld [vmem:[%s19801_s8] sm:$0xff]  ;;  %v14678_v1 = vld [vmem:[%s19801_s8 + $0x8] sm:$0xff]  ;;  %v14683_v2 = vld [vmem:[%s19801_s8 + $0x10] sm:$0xff] }
   0x2   :  { %20044 = vst [vmem:[#allocation23_spill] sm:$0xff] %v14678_v1  ;;  %20045 = vst [vmem:[#allocation24_spill] sm:$0xff] %v14683_v2  ;;  %v14688_v3 = vld [vmem:[%s19801_s8 + $0x18] sm:$0xff]  ;;  %v14693_v4 = vld [vmem:[%s19801_s8 + $0x20] sm:$0xff] }
   0x3   :  { %20046 = vst [vmem:[#allocation25_spill] sm:$0xff] %v14688_v3  ;;  %20047 = vst [vmem:[#allocation26_spill] sm:$0xff] %v14693_v4  ;;  %v14698_v5 = vld [vmem:[%s19801_s8 + $0x28] sm:$0xff]  ;;  %v14703_v6 = vld [vmem:[%s19801_s8 + $0x30] sm:$0xff] }
   0x4   :  { %20048 = vst [vmem:[#allocation27_spill] sm:$0xff] %v14698_v5  ;;  %20049 = vst [vmem:[#allocation28_spill] sm:$0xff] %v14703_v6  ;;  %v14708_v7 = vld [vmem:[%s19801_s8 + $0x38] sm:$0xff]  ;;  %v14713_v8 = vld [vmem:[%s19801_s8 + $0x40] sm:$0xff] }
   0x5   :  { %20050 = vst [vmem:[#allocation29_spill] sm:$0xff] %v14708_v7  ;;  %v14718_v9 = vld [vmem:[%s19801_s8 + $0x48] sm:$0xff]  ;;  %v14723_v10 = vld [vmem:[%s19801_s8 + $0x50] sm:$0xff]  ;;  %v14728_v11 = vld [vmem:[%s19801_s8 + $0x58] sm:$0xff] }
   0x6   :  { %v14733_v12 = vld [vmem:[%s19801_s8 + $0x60] sm:$0xff]  ;;  %v14738_v13 = vld [vmem:[%s19801_s8 + $0x68] sm:$0xff]  ;;  %v14743_v14 = vld [vmem:[%s19801_s8 + $0x70] sm:$0xff] }
   0x7   :  { %v14748_v15 = vld [vmem:[%s19801_s8 + $0x78] sm:$0xff]  ;;  %v14753_v16 = vld [vmem:[%s19801_s8 + $0x80] sm:$0xff]  ;;  %v14758_v17 = vld [vmem:[%s19801_s8 + $0x88] sm:$0xff] }
   0x8   :  { %20051 = vst [vmem:[#allocation30_spill] sm:$0xff] %v14753_v16  ;;  %20052 = vst [vmem:[#allocation31_spill] sm:$0xff] %v14758_v17  ;;  %v14763_v18 = vld [vmem:[%s19801_s8 + $0x90] sm:$0xff]  ;;  %v14768_v19 = vld [vmem:[%s19801_s8 + $0x98] sm:$0xff] }
   0x9   :  { %20053 = vst [vmem:[#allocation32_spill] sm:$0xff] %v14763_v18  ;;  %20054 = vst [vmem:[#allocation33_spill] sm:$0xff] %v14768_v19  ;;  %v14773_v20 = vld [vmem:[%s19801_s8 + $0xa0] sm:$0xff]  ;;  %v14778_v21 = vld [vmem:[%s19801_s8 + $0xa8] sm:$0xff] }
   0xa   :  { %20055 = vst [vmem:[#allocation34_spill] sm:$0xff] %v14773_v20  ;;  %20056 = vst [vmem:[#allocation35_spill] sm:$0xff] %v14778_v21  ;;  %v14783_v22 = vld [vmem:[%s19801_s8 + $0xb0] sm:$0xff]  ;;  %v14788_v23 = vld [vmem:[%s19801_s8 + $0xb8] sm:$0xff] }
   0xb   :  { %20057 = vst [vmem:[#allocation36_spill] sm:$0xff] %v14783_v22  ;;  %20058 = vst [vmem:[#allocation37_spill] sm:$0xff] %v14788_v23  ;;  %v14793_v24 = vld [vmem:[%s19801_s8 + $0xc0] sm:$0xff]  ;;  %v14798_v25 = vld [vmem:[%s19801_s8 + $0xc8] sm:$0xff] }
   0xc   :  { %20059 = vst [vmem:[#allocation38_spill] sm:$0xff] %v14793_v24  ;;  %20060 = vst [vmem:[#allocation39_spill] sm:$0xff] %v14798_v25  ;;  %v14803_v26 = vld [vmem:[%s19801_s8 + $0xd0] sm:$0xff]  ;;  %v14808_v27 = vld [vmem:[%s19801_s8 + $0xd8] sm:$0xff] }
   0xd   :  { %20061 = vst [vmem:[#allocation40_spill] sm:$0xff] %v14803_v26  ;;  %20062 = vst [vmem:[#allocation41_spill] sm:$0xff] %v14808_v27  ;;  %v14813_v28 = vld [vmem:[%s19801_s8 + $0xe0] sm:$0xff]  ;;  %v14818_v29 = vld [vmem:[%s19801_s8 + $0xe8] sm:$0xff] }
   0xe   :  { %20063 = vst [vmem:[#allocation42_spill] sm:$0xff] %v14813_v28  ;;  %20064 = vst [vmem:[#allocation43_spill] sm:$0xff] %v14818_v29  ;;  %v14823_v30 = vld [vmem:[%s19801_s8 + $0xf0] sm:$0xff]  ;;  %v14828_v31 = vld [vmem:[%s19801_s8 + $0xf8] sm:$0xff] }
   0xf   :  { %20065 = vst [vmem:[#allocation44_spill] sm:$0xff] %v14823_v30  ;;  %20066 = vst [vmem:[#allocation45_spill] sm:$0xff] %v14828_v31  ;;  %v14833_v32 = vld [vmem:[%s19801_s8 + $0x100] sm:$0xff]  ;;  %v14838_v33 = vld [vmem:[%s19801_s8 + $0x108] sm:$0xff] }
  0x10   :  { %20067 = vst [vmem:[#allocation46_spill] sm:$0xff] %v14833_v32  ;;  %20068 = vst [vmem:[#allocation47_spill] sm:$0xff] %v14838_v33  ;;  %v14843_v34 = vld [vmem:[%s19801_s8 + $0x110] sm:$0xff]  ;;  %v14848_v35 = vld [vmem:[%s19801_s8 + $0x118] sm:$0xff] }
  0x11   :  { %20069 = vst [vmem:[#allocation48_spill] sm:$0xff] %v14843_v34  ;;  %20070 = vst [vmem:[#allocation49_spill] sm:$0xff] %v14848_v35  ;;  %v14853_v36 = vld [vmem:[%s19801_s8 + $0x120] sm:$0xff]  ;;  %v14858_v37 = vld [vmem:[%s19801_s8 + $0x128] sm:$0xff] }
  0x12   :  { %20071 = vst [vmem:[#allocation50_spill] sm:$0xff] %v14853_v36  ;;  %20072 = vst [vmem:[#allocation51_spill] sm:$0xff] %v14858_v37  ;;  %v14863_v38 = vld [vmem:[%s19801_s8 + $0x130] sm:$0xff]  ;;  %v14868_v39 = vld [vmem:[%s19801_s8 + $0x138] sm:$0xff] }
  0x13   :  { %20073 = vst [vmem:[#allocation52_spill] sm:$0xff] %v14863_v38  ;;  %20074 = vst [vmem:[#allocation53_spill] sm:$0xff] %v14868_v39  ;;  %v14873_v40 = vld [vmem:[%s19801_s8 + $0x140] sm:$0xff]  ;;  %v14878_v41 = vld [vmem:[%s19801_s8 + $0x148] sm:$0xff] }
  0x14   :  { %20075 = vst [vmem:[#allocation54_spill] sm:$0xff] %v14873_v40  ;;  %20076 = vst [vmem:[#allocation55_spill] sm:$0xff] %v14878_v41  ;;  %v14883_v42 = vld [vmem:[%s19801_s8 + $0x150] sm:$0xff]  ;;  %v14888_v43 = vld [vmem:[%s19801_s8 + $0x158] sm:$0xff] }
  0x15   :  { %20077 = vst [vmem:[#allocation56_spill] sm:$0xff] %v14883_v42  ;;  %20078 = vst [vmem:[#allocation57_spill] sm:$0xff] %v14888_v43  ;;  %v14893_v44 = vld [vmem:[%s19801_s8 + $0x160] sm:$0xff]  ;;  %v14898_v45 = vld [vmem:[%s19801_s8 + $0x168] sm:$0xff] }
  0x16   :  { %20079 = vst [vmem:[#allocation58_spill] sm:$0xff] %v14893_v44  ;;  %20080 = vst [vmem:[#allocation59_spill] sm:$0xff] %v14898_v45  ;;  %v14903_v46 = vld [vmem:[%s19801_s8 + $0x170] sm:$0xff]  ;;  %v14908_v47 = vld [vmem:[%s19801_s8 + $0x178] sm:$0xff] }
  0x17   :  { %20081 = vst [vmem:[#allocation60_spill] sm:$0xff] %v14903_v46  ;;  %20082 = vst [vmem:[#allocation61_spill] sm:$0xff] %v14908_v47  ;;  %v14913_v48 = vld [vmem:[%s19801_s8 + $0x180] sm:$0xff]  ;;  %v14918_v49 = vld [vmem:[%s19801_s8 + $0x188] sm:$0xff] }
  0x18   :  { %20083 = vst [vmem:[#allocation62_spill] sm:$0xff] %v14913_v48  ;;  %20084 = vst [vmem:[#allocation63_spill] sm:$0xff] %v14918_v49  ;;  %v14923_v50 = vld [vmem:[%s19801_s8 + $0x190] sm:$0xff]  ;;  %v14928_v51 = vld [vmem:[%s19801_s8 + $0x198] sm:$0xff] }
  0x19   :  { %20085 = vst [vmem:[#allocation64_spill] sm:$0xff] %v14923_v50  ;;  %20086 = vst [vmem:[#allocation65_spill] sm:$0xff] %v14928_v51  ;;  %v14933_v52 = vld [vmem:[%s19801_s8 + $0x1a0] sm:$0xff]  ;;  %v14938_v53 = vld [vmem:[%s19801_s8 + $0x1a8] sm:$0xff] }
  0x1a   :  { %20087 = vst [vmem:[#allocation66_spill] sm:$0xff] %v14933_v52  ;;  %20088 = vst [vmem:[#allocation67_spill] sm:$0xff] %v14938_v53  ;;  %v14943_v54 = vld [vmem:[%s19801_s8 + $0x1b0] sm:$0xff]  ;;  %v14948_v55 = vld [vmem:[%s19801_s8 + $0x1b8] sm:$0xff] }
  0x1b   :  { %20089 = vst [vmem:[#allocation68_spill] sm:$0xff] %v14943_v54  ;;  %20090 = vst [vmem:[#allocation69_spill] sm:$0xff] %v14948_v55  ;;  %v14953_v56 = vld [vmem:[%s19801_s8 + $0x1c0] sm:$0xff]  ;;  %v14958_v57 = vld [vmem:[%s19801_s8 + $0x1c8] sm:$0xff] }
  0x1c   :  { %20091 = vst [vmem:[#allocation70_spill] sm:$0xff] %v14953_v56  ;;  %20092 = vst [vmem:[#allocation71_spill] sm:$0xff] %v14958_v57  ;;  %v14963_v58 = vld [vmem:[%s19801_s8 + $0x1d0] sm:$0xff]  ;;  %v14968_v59 = vld [vmem:[%s19801_s8 + $0x1d8] sm:$0xff] }
  0x1d   :  { %20093 = vst [vmem:[#allocation72_spill] sm:$0xff] %v14963_v58  ;;  %20094 = vst [vmem:[#allocation73_spill] sm:$0xff] %v14968_v59  ;;  %v14973_v60 = vld [vmem:[%s19801_s8 + $0x1e0] sm:$0xff]  ;;  %v14978_v61 = vld [vmem:[%s19801_s8 + $0x1e8] sm:$0xff] }
  0x1e   :  { %20095 = vst [vmem:[#allocation74_spill] sm:$0xff] %v14973_v60  ;;  %20096 = vst [vmem:[#allocation75_spill] sm:$0xff] %v14978_v61  ;;  %v14983_v62 = vld [vmem:[%s19801_s8 + $0x1f0] sm:$0xff]  ;;  %v14988_v63 = vld [vmem:[%s19801_s8 + $0x1f8] sm:$0xff] }
  0x1f   :  { %20097 = vst [vmem:[#allocation76_spill] sm:$0xff] %v14983_v62  ;;  %20098 = vst [vmem:[#allocation77_spill] sm:$0xff] %v14988_v63  ;;  %v14993_v59 = vld [vmem:[%s19801_s8 + $0x200] sm:$0xff]  ;;  %v14998_v60 = vld [vmem:[%s19801_s8 + $0x208] sm:$0xff] }
  0x20   :  { %20099 = vst [vmem:[#allocation78_spill] sm:$0xff] %v14993_v59  ;;  %20100 = vst [vmem:[#allocation79_spill] sm:$0xff] %v14998_v60  ;;  %v15003_v61 = vld [vmem:[%s19801_s8 + $0x210] sm:$0xff]  ;;  %v15008_v62 = vld [vmem:[%s19801_s8 + $0x218] sm:$0xff] }
  0x21   :  { %20101 = vst [vmem:[#allocation80_spill] sm:$0xff] %v15003_v61  ;;  %20102 = vst [vmem:[#allocation81_spill] sm:$0xff] %v15008_v62  ;;  %v15013_v63 = vld [vmem:[%s19801_s8 + $0x220] sm:$0xff]  ;;  %v15018_v59 = vld [vmem:[%s19801_s8 + $0x228] sm:$0xff] }
  0x22   :  { %20103 = vst [vmem:[#allocation82_spill] sm:$0xff] %v15013_v63  ;;  %20104 = vst [vmem:[#allocation83_spill] sm:$0xff] %v15018_v59  ;;  %v15023_v60 = vld [vmem:[%s19801_s8 + $0x230] sm:$0xff]  ;;  %v15028_v61 = vld [vmem:[%s19801_s8 + $0x238] sm:$0xff] }
  0x23   :  { %20105 = vst [vmem:[#allocation84_spill] sm:$0xff] %v15023_v60  ;;  %20106 = vst [vmem:[#allocation85_spill] sm:$0xff] %v15028_v61 }
  0x24   :  { %218 = vsyncadd [#allocation11], 9216  ;;  %v15033_v63 = vld [vmem:[%s19802_s9] sm:$0xff]  ;;  %v15038_v59 = vld [vmem:[%s19802_s9 + $0x8] sm:$0xff] }
  0x25   :  { %20107 = vst [vmem:[#allocation86_spill] sm:$0xff] %v15033_v63  ;;  %20108 = vst [vmem:[#allocation87_spill] sm:$0xff] %v15038_v59  ;;  %v15043_v60 = vld [vmem:[%s19802_s9 + $0x10] sm:$0xff]  ;;  %v15048_v61 = vld [vmem:[%s19802_s9 + $0x18] sm:$0xff] }
  0x26   :  { %20109 = vst [vmem:[#allocation88_spill] sm:$0xff] %v15043_v60  ;;  %20110 = vst [vmem:[#allocation89_spill] sm:$0xff] %v15048_v61  ;;  %v15053_v62 = vld [vmem:[%s19802_s9 + $0x20] sm:$0xff]  ;;  %v15058_v63 = vld [vmem:[%s19802_s9 + $0x28] sm:$0xff] }
  0x27   :  { %20111 = vst [vmem:[#allocation90_spill] sm:$0xff] %v15053_v62  ;;  %20112 = vst [vmem:[#allocation91_spill] sm:$0xff] %v15058_v63  ;;  %v15063_v59 = vld [vmem:[%s19802_s9 + $0x30] sm:$0xff]  ;;  %v15068_v60 = vld [vmem:[%s19802_s9 + $0x38] sm:$0xff] }
  0x28   :  { %20113 = vst [vmem:[#allocation92_spill] sm:$0xff] %v15063_v59  ;;  %20114 = vst [vmem:[#allocation93_spill] sm:$0xff] %v15068_v60  ;;  %v15073_v61 = vld [vmem:[%s19802_s9 + $0x40] sm:$0xff]  ;;  %v15078_v62 = vld [vmem:[%s19802_s9 + $0x48] sm:$0xff] }
  0x29   :  { %20115 = vst [vmem:[#allocation94_spill] sm:$0xff] %v15073_v61  ;;  %20116 = vst [vmem:[#allocation95_spill] sm:$0xff] %v15078_v62  ;;  %v15083_v63 = vld [vmem:[%s19802_s9 + $0x50] sm:$0xff]  ;;  %v15088_v59 = vld [vmem:[%s19802_s9 + $0x58] sm:$0xff] }
  0x2a   :  { %20117 = vst [vmem:[#allocation96_spill] sm:$0xff] %v15083_v63  ;;  %20118 = vst [vmem:[#allocation97_spill] sm:$0xff] %v15088_v59  ;;  %v15093_v60 = vld [vmem:[%s19802_s9 + $0x60] sm:$0xff]  ;;  %v15098_v61 = vld [vmem:[%s19802_s9 + $0x68] sm:$0xff] }
  0x2b   :  { %20119 = vst [vmem:[#allocation98_spill] sm:$0xff] %v15093_v60  ;;  %20120 = vst [vmem:[#allocation99_spill] sm:$0xff] %v15098_v61  ;;  %v15103_v62 = vld [vmem:[%s19802_s9 + $0x70] sm:$0xff]  ;;  %v15108_v63 = vld [vmem:[%s19802_s9 + $0x78] sm:$0xff] }
  0x2c   :  { %20121 = vst [vmem:[#allocation100_spill] sm:$0xff] %v15103_v62  ;;  %20122 = vst [vmem:[#allocation101_spill] sm:$0xff] %v15108_v63  ;;  %v15113_v59 = vld [vmem:[%s19802_s9 + $0x80] sm:$0xff]  ;;  %v15118_v60 = vld [vmem:[%s19802_s9 + $0x88] sm:$0xff] }
  0x2d   :  { %20123 = vst [vmem:[#allocation102_spill] sm:$0xff] %v15113_v59  ;;  %20124 = vst [vmem:[#allocation103_spill] sm:$0xff] %v15118_v60  ;;  %v15123_v61 = vld [vmem:[%s19802_s9 + $0x90] sm:$0xff]  ;;  %v15128_v62 = vld [vmem:[%s19802_s9 + $0x98] sm:$0xff] }
  0x2e   :  { %20125 = vst [vmem:[#allocation104_spill] sm:$0xff] %v15123_v61  ;;  %20126 = vst [vmem:[#allocation105_spill] sm:$0xff] %v15128_v62  ;;  %v15133_v63 = vld [vmem:[%s19802_s9 + $0xa0] sm:$0xff]  ;;  %v15138_v59 = vld [vmem:[%s19802_s9 + $0xa8] sm:$0xff] }
  0x2f   :  { %20127 = vst [vmem:[#allocation106_spill] sm:$0xff] %v15133_v63  ;;  %20128 = vst [vmem:[#allocation107_spill] sm:$0xff] %v15138_v59  ;;  %v15143_v60 = vld [vmem:[%s19802_s9 + $0xb0] sm:$0xff]  ;;  %v15148_v61 = vld [vmem:[%s19802_s9 + $0xb8] sm:$0xff] }
  0x30   :  { %20129 = vst [vmem:[#allocation108_spill] sm:$0xff] %v15143_v60  ;;  %20130 = vst [vmem:[#allocation109_spill] sm:$0xff] %v15148_v61  ;;  %v15153_v62 = vld [vmem:[%s19802_s9 + $0xc0] sm:$0xff]  ;;  %v15158_v63 = vld [vmem:[%s19802_s9 + $0xc8] sm:$0xff] }
  0x31   :  { %20131 = vst [vmem:[#allocation110_spill] sm:$0xff] %v15153_v62  ;;  %20132 = vst [vmem:[#allocation111_spill] sm:$0xff] %v15158_v63  ;;  %v15163_v59 = vld [vmem:[%s19802_s9 + $0xd0] sm:$0xff]  ;;  %v15168_v60 = vld [vmem:[%s19802_s9 + $0xd8] sm:$0xff] }
  0x32   :  { %20133 = vst [vmem:[#allocation112_spill] sm:$0xff] %v15163_v59  ;;  %20134 = vst [vmem:[#allocation113_spill] sm:$0xff] %v15168_v60  ;;  %v15173_v61 = vld [vmem:[%s19802_s9 + $0xe0] sm:$0xff]  ;;  %v15178_v62 = vld [vmem:[%s19802_s9 + $0xe8] sm:$0xff] }
  0x33   :  { %20135 = vst [vmem:[#allocation114_spill] sm:$0xff] %v15173_v61  ;;  %20136 = vst [vmem:[#allocation115_spill] sm:$0xff] %v15178_v62  ;;  %v15183_v63 = vld [vmem:[%s19802_s9 + $0xf0] sm:$0xff]  ;;  %v15188_v59 = vld [vmem:[%s19802_s9 + $0xf8] sm:$0xff] }
  0x34   :  { %20137 = vst [vmem:[#allocation116_spill] sm:$0xff] %v15183_v63  ;;  %20138 = vst [vmem:[#allocation117_spill] sm:$0xff] %v15188_v59  ;;  %v15193_v60 = vld [vmem:[%s19802_s9 + $0x100] sm:$0xff]  ;;  %v15198_v61 = vld [vmem:[%s19802_s9 + $0x108] sm:$0xff] }
  0x35   :  { %20139 = vst [vmem:[#allocation118_spill] sm:$0xff] %v15193_v60  ;;  %20140 = vst [vmem:[#allocation119_spill] sm:$0xff] %v15198_v61  ;;  %v15203_v62 = vld [vmem:[%s19802_s9 + $0x110] sm:$0xff]  ;;  %v15208_v63 = vld [vmem:[%s19802_s9 + $0x118] sm:$0xff] }
  0x36   :  { %20141 = vst [vmem:[#allocation120_spill] sm:$0xff] %v15203_v62  ;;  %20142 = vst [vmem:[#allocation121_spill] sm:$0xff] %v15208_v63  ;;  %v15213_v59 = vld [vmem:[%s19802_s9 + $0x120] sm:$0xff]  ;;  %v15218_v60 = vld [vmem:[%s19802_s9 + $0x128] sm:$0xff] }
  0x37   :  { %20143 = vst [vmem:[#allocation122_spill] sm:$0xff] %v15213_v59  ;;  %20144 = vst [vmem:[#allocation123_spill] sm:$0xff] %v15218_v60  ;;  %v15223_v61 = vld [vmem:[%s19802_s9 + $0x130] sm:$0xff]  ;;  %v15228_v62 = vld [vmem:[%s19802_s9 + $0x138] sm:$0xff] }
  0x38   :  { %20145 = vst [vmem:[#allocation124_spill] sm:$0xff] %v15223_v61  ;;  %20146 = vst [vmem:[#allocation125_spill] sm:$0xff] %v15228_v62  ;;  %v15233_v63 = vld [vmem:[%s19802_s9 + $0x140] sm:$0xff]  ;;  %v15238_v59 = vld [vmem:[%s19802_s9 + $0x148] sm:$0xff] }
  0x39   :  { %20147 = vst [vmem:[#allocation126_spill] sm:$0xff] %v15233_v63  ;;  %20148 = vst [vmem:[#allocation127_spill] sm:$0xff] %v15238_v59  ;;  %v15243_v60 = vld [vmem:[%s19802_s9 + $0x150] sm:$0xff]  ;;  %v15248_v61 = vld [vmem:[%s19802_s9 + $0x158] sm:$0xff] }
  0x3a   :  { %20149 = vst [vmem:[#allocation128_spill] sm:$0xff] %v15243_v60  ;;  %20150 = vst [vmem:[#allocation129_spill] sm:$0xff] %v15248_v61  ;;  %v15253_v62 = vld [vmem:[%s19802_s9 + $0x160] sm:$0xff]  ;;  %v15258_v63 = vld [vmem:[%s19802_s9 + $0x168] sm:$0xff] }
  0x3b   :  { %20151 = vst [vmem:[#allocation130_spill] sm:$0xff] %v15253_v62  ;;  %20152 = vst [vmem:[#allocation131_spill] sm:$0xff] %v15258_v63  ;;  %v15263_v59 = vld [vmem:[%s19802_s9 + $0x170] sm:$0xff]  ;;  %v15268_v60 = vld [vmem:[%s19802_s9 + $0x178] sm:$0xff] }
  0x3c   :  { %20153 = vst [vmem:[#allocation132_spill] sm:$0xff] %v15263_v59  ;;  %20154 = vst [vmem:[#allocation133_spill] sm:$0xff] %v15268_v60  ;;  %v15273_v61 = vld [vmem:[%s19802_s9 + $0x180] sm:$0xff]  ;;  %v15278_v62 = vld [vmem:[%s19802_s9 + $0x188] sm:$0xff] }
  0x3d   :  { %20155 = vst [vmem:[#allocation134_spill] sm:$0xff] %v15273_v61  ;;  %20156 = vst [vmem:[#allocation135_spill] sm:$0xff] %v15278_v62  ;;  %v15283_v63 = vld [vmem:[%s19802_s9 + $0x190] sm:$0xff]  ;;  %v15288_v59 = vld [vmem:[%s19802_s9 + $0x198] sm:$0xff] }
  0x3e   :  { %20157 = vst [vmem:[#allocation136_spill] sm:$0xff] %v15283_v63  ;;  %20158 = vst [vmem:[#allocation137_spill] sm:$0xff] %v15288_v59  ;;  %v15293_v60 = vld [vmem:[%s19802_s9 + $0x1a0] sm:$0xff]  ;;  %v15298_v61 = vld [vmem:[%s19802_s9 + $0x1a8] sm:$0xff] }
  0x3f   :  { %20159 = vst [vmem:[#allocation138_spill] sm:$0xff] %v15293_v60  ;;  %20160 = vst [vmem:[#allocation139_spill] sm:$0xff] %v15298_v61  ;;  %v15303_v62 = vld [vmem:[%s19802_s9 + $0x1b0] sm:$0xff]  ;;  %v15308_v63 = vld [vmem:[%s19802_s9 + $0x1b8] sm:$0xff] }
  0x40   :  { %20161 = vst [vmem:[#allocation140_spill] sm:$0xff] %v15303_v62  ;;  %20162 = vst [vmem:[#allocation141_spill] sm:$0xff] %v15308_v63  ;;  %v15313_v59 = vld [vmem:[%s19802_s9 + $0x1c0] sm:$0xff]  ;;  %v15318_v60 = vld [vmem:[%s19802_s9 + $0x1c8] sm:$0xff] }
  0x41   :  { %20163 = vst [vmem:[#allocation142_spill] sm:$0xff] %v15313_v59  ;;  %20164 = vst [vmem:[#allocation143_spill] sm:$0xff] %v15318_v60  ;;  %v15323_v61 = vld [vmem:[%s19802_s9 + $0x1d0] sm:$0xff]  ;;  %v15328_v62 = vld [vmem:[%s19802_s9 + $0x1d8] sm:$0xff] }
  0x42   :  { %20165 = vst [vmem:[#allocation144_spill] sm:$0xff] %v15323_v61  ;;  %20166 = vst [vmem:[#allocation145_spill] sm:$0xff] %v15328_v62  ;;  %v15333_v63 = vld [vmem:[%s19802_s9 + $0x1e0] sm:$0xff]  ;;  %v15338_v59 = vld [vmem:[%s19802_s9 + $0x1e8] sm:$0xff] }
  0x43   :  { %20167 = vst [vmem:[#allocation146_spill] sm:$0xff] %v15333_v63  ;;  %20168 = vst [vmem:[#allocation147_spill] sm:$0xff] %v15338_v59  ;;  %v15343_v60 = vld [vmem:[%s19802_s9 + $0x1f0] sm:$0xff]  ;;  %v15348_v61 = vld [vmem:[%s19802_s9 + $0x1f8] sm:$0xff] }
  0x44   :  { %20169 = vst [vmem:[#allocation148_spill] sm:$0xff] %v15343_v60  ;;  %20170 = vst [vmem:[#allocation149_spill] sm:$0xff] %v15348_v61  ;;  %v15353_v62 = vld [vmem:[%s19802_s9 + $0x200] sm:$0xff]  ;;  %v15358_v63 = vld [vmem:[%s19802_s9 + $0x208] sm:$0xff] }
  0x45   :  { %20171 = vst [vmem:[#allocation150_spill] sm:$0xff] %v15353_v62  ;;  %20172 = vst [vmem:[#allocation151_spill] sm:$0xff] %v15358_v63  ;;  %v15363_v59 = vld [vmem:[%s19802_s9 + $0x210] sm:$0xff]  ;;  %v15368_v60 = vld [vmem:[%s19802_s9 + $0x218] sm:$0xff] }
  0x46   :  { %20173 = vst [vmem:[#allocation152_spill] sm:$0xff] %v15363_v59  ;;  %20174 = vst [vmem:[#allocation153_spill] sm:$0xff] %v15368_v60  ;;  %v15373_v61 = vld [vmem:[%s19802_s9 + $0x220] sm:$0xff]  ;;  %v15378_v62 = vld [vmem:[%s19802_s9 + $0x228] sm:$0xff] }
  0x47   :  { %20175 = vst [vmem:[#allocation154_spill] sm:$0xff] %v15373_v61  ;;  %20176 = vst [vmem:[#allocation155_spill] sm:$0xff] %v15378_v62  ;;  %v15383_v63 = vld [vmem:[%s19802_s9 + $0x230] sm:$0xff]  ;;  %v15388_v59 = vld [vmem:[%s19802_s9 + $0x238] sm:$0xff] }
  0x48   :  { %20177 = vst [vmem:[#allocation156_spill] sm:$0xff] %v15383_v63  ;;  %20178 = vst [vmem:[#allocation157_spill] sm:$0xff] %v15388_v59 }
  0x49   :  { %403 = vsyncadd [#allocation11 + $0x1], 9216  ;;  %v422_v61 = vld [vmem:[%s19803_s10] sm:$0xf]  ;;  %v424_v60 = vld [vmem:[%s19803_s10 + $0xc] sm:$0xf] }
  0x4a   :  { %423 = vst [vmem:[#allocation9] sm:$0xf] %v422_v61  ;;  %425 = vst [vmem:[#allocation9 + $0x4] sm:$0xf] %v424_v60  ;;  %v426_v63 = vld [vmem:[%s19803_s10 + $0x4] sm:$0xf] }
  0x4b   :  { %v428_v62 = vld [vmem:[%s19803_s10 + $0x10] sm:$0xf]  ;;  %v430_v59 = vld [vmem:[%s19803_s10 + $0x8] sm:$0xf]  ;;  %427 = vst [vmem:[#allocation9 + $0x8] sm:$0xf] %v426_v63 }
  0x4c   :  { %429 = vst [vmem:[#allocation9 + $0xc] sm:$0xf] %v428_v62  ;;  %431 = vst [vmem:[#allocation9 + $0x10] sm:$0xf] %v430_v59  ;;  %v432_v61 = vld [vmem:[%s19803_s10 + $0x14] sm:$0xff]   ;;  %v444_v63 = vld [vmem:[%s19803_s10 + $0x2c] sm:$0xff]  }
  0x4d   :  { %v436_v60 = vld [vmem:[%s19803_s10 + $0x24] sm:$0xf]  ;;  %v438_v58 = vld [vmem:[%s19803_s10 + $0x1c] sm:$0xf]  ;;  %433 = vst [vmem:[#allocation9 + $0x14] sm:$0xff] %v432_v61   ;;  %445 = vst [vmem:[#allocation9 + $0x2c] sm:$0xff] %v444_v63  }
  0x4e   :  { %437 = vst [vmem:[#allocation9 + $0x1c] sm:$0xf] %v436_v60  ;;  %439 = vst [vmem:[#allocation9 + $0x20] sm:$0xf] %v438_v58  ;;  %v440_v62 = vld [vmem:[%s19803_s10 + $0x28] sm:$0xf] }
  0x4f   :  { %v442_v59 = vld [vmem:[%s19803_s10 + $0x20] sm:$0xf]  ;;  %441 = vst [vmem:[#allocation9 + $0x24] sm:$0xf] %v440_v62  ;;  %v448_v61 = vld [vmem:[%s19803_s10 + $0x3c] sm:$0xf] }
  0x50   :  { %443 = vst [vmem:[#allocation9 + $0x28] sm:$0xf] %v442_v59  ;;  %v450_v58 = vld [vmem:[%s19803_s10 + $0x34] sm:$0xf]  ;;  %v452_v60 = vld [vmem:[%s19803_s10 + $0x40] sm:$0xf] }
  0x51   :  { %449 = vst [vmem:[#allocation9 + $0x34] sm:$0xf] %v448_v61  ;;  %451 = vst [vmem:[#allocation9 + $0x38] sm:$0xf] %v450_v58  ;;  %v454_v62 = vld [vmem:[%s19803_s10 + $0x38] sm:$0xf] }
  0x52   :  { %453 = vst [vmem:[#allocation9 + $0x3c] sm:$0xf] %v452_v60  ;;  %v456_v59 = vld [vmem:[%s19803_s10 + $0x44] sm:$0xff]   ;;  %v460_v63 = vld [vmem:[%s19803_s10 + $0x54] sm:$0xf] }
  0x53   :  { %455 = vst [vmem:[#allocation9 + $0x40] sm:$0xf] %v454_v62  ;;  %457 = vst [vmem:[#allocation9 + $0x44] sm:$0xff] %v456_v59   ;;  %v462_v61 = vld [vmem:[%s19803_s10 + $0x4c] sm:$0xf]  ;;  %v468_v62 = vld [vmem:[%s19803_s10 + $0x5c] sm:$0xff]  }
  0x54   :  { %461 = vst [vmem:[#allocation9 + $0x4c] sm:$0xf] %v460_v63  ;;  %v464_v58 = vld [vmem:[%s19803_s10 + $0x58] sm:$0xf]  ;;  %v466_v60 = vld [vmem:[%s19803_s10 + $0x50] sm:$0xf] }
  0x55   :  { %463 = vst [vmem:[#allocation9 + $0x50] sm:$0xf] %v462_v61  ;;  %465 = vst [vmem:[#allocation9 + $0x54] sm:$0xf] %v464_v58  ;;  %v472_v59 = vld [vmem:[%s19803_s10 + $0x6c] sm:$0xf] }
  0x56   :  { %467 = vst [vmem:[#allocation9 + $0x58] sm:$0xf] %v466_v60  ;;  %v474_v63 = vld [vmem:[%s19803_s10 + $0x64] sm:$0xf]  ;;  %469 = vst [vmem:[#allocation9 + $0x5c] sm:$0xff] %v468_v62   ;;  %v480_v60 = vld [vmem:[%s19803_s10 + $0x74] sm:$0xff]  }
  0x57   :  { %473 = vst [vmem:[#allocation9 + $0x64] sm:$0xf] %v472_v59  ;;  %475 = vst [vmem:[#allocation9 + $0x68] sm:$0xf] %v474_v63  ;;  %v476_v61 = vld [vmem:[%s19803_s10 + $0x70] sm:$0xf] }
  0x58   :  { %v478_v58 = vld [vmem:[%s19803_s10 + $0x68] sm:$0xf]  ;;  %477 = vst [vmem:[#allocation9 + $0x6c] sm:$0xf] %v476_v61  ;;  %481 = vst [vmem:[#allocation9 + $0x74] sm:$0xff] %v480_v60  }
  0x59   :  { %479 = vst [vmem:[#allocation9 + $0x70] sm:$0xf] %v478_v58  ;;  %v484_v62 = vld [vmem:[%s19803_s10 + $0x84] sm:$0xf]  ;;  %v486_v59 = vld [vmem:[%s19803_s10 + $0x7c] sm:$0xf] }
  0x5a   :  { %v488_v63 = vld [vmem:[%s19803_s10 + $0x88] sm:$0xf]  ;;  %485 = vst [vmem:[#allocation9 + $0x7c] sm:$0xf] %v484_v62  ;;  %487 = vst [vmem:[#allocation9 + $0x80] sm:$0xf] %v486_v59 }
  0x5b   :  { %489 = vst [vmem:[#allocation9 + $0x84] sm:$0xf] %v488_v63  ;;  %v490_v61 = vld [vmem:[%s19803_s10 + $0x80] sm:$0xf]  ;;  %v492_v58 = vld [vmem:[%s19803_s10 + $0x8c] sm:$0xf] }
  0x5c   :  { %491 = vst [vmem:[#allocation9 + $0x88] sm:$0xf] %v490_v61  ;;  %493 = vst [vmem:[#allocation9 + $0x8c] sm:$0xf] %v492_v58 }
  0x5d   :  { %596 = vsyncadd [#allocation11 + $0x2], 2304  ;;  %v15486_v60 = vld [vmem:[%s19804_s11] sm:$0xff]  ;;  %v15491_v62 = vld [vmem:[%s19804_s11 + $0x8] sm:$0xff] }
  0x5e   :  { %20179 = vst [vmem:[#allocation158_spill] sm:$0xff] %v15486_v60  ;;  %20180 = vst [vmem:[#allocation159_spill] sm:$0xff] %v15491_v62  ;;  %v15496_v59 = vld [vmem:[%s19804_s11 + $0x10] sm:$0xff]  ;;  %v15501_v63 = vld [vmem:[%s19804_s11 + $0x18] sm:$0xff] }
  0x5f   :  { %20181 = vst [vmem:[#allocation160_spill] sm:$0xff] %v15496_v59  ;;  %20182 = vst [vmem:[#allocation161_spill] sm:$0xff] %v15501_v63  ;;  %v15506_v61 = vld [vmem:[%s19804_s11 + $0x20] sm:$0xff]  ;;  %v15511_v58 = vld [vmem:[%s19804_s11 + $0x28] sm:$0xff] }
  0x60   :  { %20183 = vst [vmem:[#allocation162_spill] sm:$0xff] %v15506_v61  ;;  %20184 = vst [vmem:[#allocation163_spill] sm:$0xff] %v15511_v58  ;;  %v15516_v62 = vld [vmem:[%s19804_s11 + $0x30] sm:$0xff]  ;;  %v15521_v59 = vld [vmem:[%s19804_s11 + $0x38] sm:$0xff] }
  0x61   :  { %20185 = vst [vmem:[#allocation164_spill] sm:$0xff] %v15516_v62  ;;  %20186 = vst [vmem:[#allocation165_spill] sm:$0xff] %v15521_v59  ;;  %v15526_v63 = vld [vmem:[%s19804_s11 + $0x40] sm:$0xff]  ;;  %v15531_v61 = vld [vmem:[%s19804_s11 + $0x48] sm:$0xff] }
  0x62   :  { %20187 = vst [vmem:[#allocation166_spill] sm:$0xff] %v15526_v63  ;;  %20188 = vst [vmem:[#allocation167_spill] sm:$0xff] %v15531_v61  ;;  %v15536_v58 = vld [vmem:[%s19804_s11 + $0x50] sm:$0xff]  ;;  %v15541_v62 = vld [vmem:[%s19804_s11 + $0x58] sm:$0xff] }
  0x63   :  { %20189 = vst [vmem:[#allocation168_spill] sm:$0xff] %v15536_v58  ;;  %20190 = vst [vmem:[#allocation169_spill] sm:$0xff] %v15541_v62  ;;  %v15546_v59 = vld [vmem:[%s19804_s11 + $0x60] sm:$0xff]  ;;  %v15551_v60 = vld [vmem:[%s19804_s11 + $0x68] sm:$0xff] }
  0x64   :  { %20191 = vst [vmem:[#allocation170_spill] sm:$0xff] %v15546_v59  ;;  %20192 = vst [vmem:[#allocation171_spill] sm:$0xff] %v15551_v60  ;;  %v15556_v61 = vld [vmem:[%s19804_s11 + $0x70] sm:$0xff]  ;;  %v15561_v58 = vld [vmem:[%s19804_s11 + $0x78] sm:$0xff] }
  0x65   :  { %20193 = vst [vmem:[#allocation172_spill] sm:$0xff] %v15556_v61  ;;  %20194 = vst [vmem:[#allocation173_spill] sm:$0xff] %v15561_v58  ;;  %v15566_v62 = vld [vmem:[%s19804_s11 + $0x80] sm:$0xff]  ;;  %v15571_v59 = vld [vmem:[%s19804_s11 + $0x88] sm:$0xff] }
  0x66   :  { %20195 = vst [vmem:[#allocation174_spill] sm:$0xff] %v15566_v62  ;;  %20196 = vst [vmem:[#allocation175_spill] sm:$0xff] %v15571_v59  ;;  %v15576_v60 = vld [vmem:[%s19804_s11 + $0x90] sm:$0xff]  ;;  %v15581_v61 = vld [vmem:[%s19804_s11 + $0x98] sm:$0xff] }
  0x67   :  { %20197 = vst [vmem:[#allocation176_spill] sm:$0xff] %v15576_v60  ;;  %20198 = vst [vmem:[#allocation177_spill] sm:$0xff] %v15581_v61  ;;  %v15586_v58 = vld [vmem:[%s19804_s11 + $0xa0] sm:$0xff]  ;;  %v15591_v63 = vld [vmem:[%s19804_s11 + $0xa8] sm:$0xff] }
  0x68   :  { %20199 = vst [vmem:[#allocation178_spill] sm:$0xff] %v15586_v58  ;;  %20200 = vst [vmem:[#allocation179_spill] sm:$0xff] %v15591_v63  ;;  %v15596_v59 = vld [vmem:[%s19804_s11 + $0xb0] sm:$0xff]  ;;  %v15601_v60 = vld [vmem:[%s19804_s11 + $0xb8] sm:$0xff] }
  0x69   :  { %20201 = vst [vmem:[#allocation180_spill] sm:$0xff] %v15596_v59  ;;  %20202 = vst [vmem:[#allocation181_spill] sm:$0xff] %v15601_v60  ;;  %v15606_v61 = vld [vmem:[%s19804_s11 + $0xc0] sm:$0xff]  ;;  %v15611_v58 = vld [vmem:[%s19804_s11 + $0xc8] sm:$0xff] }
  0x6a   :  { %20203 = vst [vmem:[#allocation182_spill] sm:$0xff] %v15606_v61  ;;  %20204 = vst [vmem:[#allocation183_spill] sm:$0xff] %v15611_v58  ;;  %v15616_v63 = vld [vmem:[%s19804_s11 + $0xd0] sm:$0xff]  ;;  %v15621_v59 = vld [vmem:[%s19804_s11 + $0xd8] sm:$0xff] }
  0x6b   :  { %20205 = vst [vmem:[#allocation184_spill] sm:$0xff] %v15616_v63  ;;  %20206 = vst [vmem:[#allocation185_spill] sm:$0xff] %v15621_v59  ;;  %v15626_v60 = vld [vmem:[%s19804_s11 + $0xe0] sm:$0xff]  ;;  %v15631_v61 = vld [vmem:[%s19804_s11 + $0xe8] sm:$0xff] }
  0x6c   :  { %20207 = vst [vmem:[#allocation186_spill] sm:$0xff] %v15626_v60  ;;  %20208 = vst [vmem:[#allocation187_spill] sm:$0xff] %v15631_v61  ;;  %v15636_v58 = vld [vmem:[%s19804_s11 + $0xf0] sm:$0xff]  ;;  %v15641_v63 = vld [vmem:[%s19804_s11 + $0xf8] sm:$0xff] }
  0x6d   :  { %20209 = vst [vmem:[#allocation188_spill] sm:$0xff] %v15636_v58  ;;  %20210 = vst [vmem:[#allocation189_spill] sm:$0xff] %v15641_v63 }
  0x6e   :  { %701 = vsyncadd [#allocation11 + $0x3], 4096  ;;  %v14403_v60 = vld [vmem:[%s19794_s1] sm:$0xff]   ;;  %v14404_v59 = vld [vmem:[%s19794_s1 + $0x8] sm:$0xff]   ;;  %vm1780_vm0 = vsmask.f32 3328 }
  0x6f   :  { %12903 = vmatprep.subr.bf16.mxu0 %v14403_v60  ;;  %v14405_v58 = vld [vmem:[%s19794_s1 + $0x10] sm:$0xff]   ;;  %v14406_v63 = vld [vmem:[%s19794_s1 + $0x18] sm:$0xff]   ;;  %v14411_v61 = vld [vmem:[%s19793_s0] sm:$0xff]   ;;  %vm1781_vm1 = vsmask.f32 7440  ;;  %vm4556_vm3 = vcmask 1043456  }
  0x70   :  { %12904 = vmatpush3.bf16.msra.mxu0 %v14403_v60  ;;  %12919 = vmatprep.mubr.bf16.mxu0 %v14411_v61  ;;  %v14407_v60 = vld [vmem:[%s19794_s1 + $0x20] sm:$0xff]   ;;  %v14409_v62 = vld [vmem:[%s19794_s1 + $0x30] sm:$0xff]   ;;  %v14410_v61 = vld [vmem:[%s19794_s1 + $0x38] sm:$0xff]  }
  0x71   :  { %12905 = vmatprep.subr.bf16.mxu0 %v14404_v59  ;;  %vm15804_vm2 = vmor %vm1780_vm0, %vm1781_vm1 }
  0x74   :  { %12906 = vmatpush3.bf16.msra.mxu0 %v14404_v59  ;;  %v14408_v59 = vld [vmem:[%s19794_s1 + $0x28] sm:$0xff]  }
  0x75   :  { %12907 = vmatprep.subr.bf16.mxu0 %v14405_v58 }
  0x78   :  { %12908 = vmatpush3.bf16.msra.mxu0 %v14405_v58  ;;  %v14413_v58 = vld [vmem:[%s19793_s0 + $0x10] sm:$0xff]  }
  0x79   :  { %12909 = vmatprep.subr.bf16.mxu0 %v14406_v63 }
  0x7c   :  { %12910 = vmatpush3.bf16.msra.mxu0 %v14406_v63  ;;  %v14412_v63 = vld [vmem:[%s19793_s0 + $0x8] sm:$0xff]  }
  0x7d   :  { %12911 = vmatprep.subr.bf16.mxu0 %v14407_v60 }
  0x80   :  { %12912 = vmatpush3.bf16.msra.mxu0 %v14407_v60  ;;  %v14414_v60 = vld [vmem:[%s19793_s0 + $0x18] sm:$0xff]  }
  0x81   :  { %12913 = vmatprep.subr.bf16.mxu0 %v14408_v59 }
  0x84   :  { %12914 = vmatpush3.bf16.msra.mxu0 %v14408_v59  ;;  %v14416_v59 = vld [vmem:[%s19793_s0 + $0x28] sm:$0xff]  }
  0x85   :  { %12915 = vmatprep.subr.bf16.mxu0 %v14409_v62 }
  0x88   :  { %12916 = vmatpush3.bf16.msra.mxu0 %v14409_v62  ;;  %v14415_v62 = vld [vmem:[%s19793_s0 + $0x20] sm:$0xff]  }
  0x89   :  { %12917 = vmatprep.subr.bf16.mxu0 %v14410_v61 }
  0x8c   :  { %12918 = vmatpush3.bf16.msra.mxu0 %v14410_v61  ;;  %v14417_v61 = vld [vmem:[%s19793_s0 + $0x30] sm:$0xff]  }
  0x8d   :  { %12983 = vmatprep.subr.bf16.mxu0 %v14713_v8 }
  0x8f   :  { %12920 = vmatmul.mubr.bf16.vlgmr.msra.gmra.mrb[0].mxu0 %v14412_v63  ;;  %v14418_v63 = vld [vmem:[%s19793_s0 + $0x38] sm:$0xff]  }
  0x90   :  { %12923 = vmatprep.mubr.bf16.mxu0 %v14413_v58  ;;  %v14419_v58 = vld [vmem:[%s19793_s0 + $0x40] sm:$0xff]  }
  0x97   :  { %12924 = vmatmul.mubr.bf16.gmra.mrb[4].mxu0 %v14414_v60  ;;  %v14420_v60 = vld [vmem:[%s19793_s0 + $0x48] sm:$0xff]  }
  0x98   :  { %12927 = vmatprep.mubr.bf16.mxu0 %v14415_v62  ;;  %v14421_v62 = vld [vmem:[%s19793_s0 + $0x50] sm:$0xff]  }
  0x9f   :  { %12928 = vmatmul.mubr.bf16.gmra.mrb[8].mxu0 %v14416_v59  ;;  %v14422_v59 = vld [vmem:[%s19793_s0 + $0x58] sm:$0xff]  }
  0xa0   :  { %12931 = vmatprep.mubr.bf16.mxu0 %v14417_v61  ;;  %v14423_v61 = vld [vmem:[%s19793_s0 + $0x60] sm:$0xff]  }
  0xa7   :  { %12932 = vmatmul.mubr.bf16.gmra.mrb[12].mxu0 %v14418_v63  ;;  %v14424_v63 = vld [vmem:[%s19793_s0 + $0x68] sm:$0xff]  }
  0xa8   :  { %12935 = vmatprep.mubr.bf16.mxu0 %v14419_v58  ;;  %v14425_v58 = vld [vmem:[%s19793_s0 + $0x70] sm:$0xff]  }
  0xaf   :  { %12936 = vmatmul.mubr.bf16.gmra.mrb[16].mxu0 %v14420_v60  ;;  %v14426_v60 = vld [vmem:[%s19793_s0 + $0x78] sm:$0xff]  }
  0xb0   :  { %12939 = vmatprep.mubr.bf16.mxu0 %v14421_v62  ;;  %v14427_v62 = vld [vmem:[%s19793_s0 + $0x80] sm:$0xff]  }
  0xb7   :  { %12940 = vmatmul.mubr.bf16.gmra.mrb[20].mxu0 %v14422_v59  ;;  %v14428_v59 = vld [vmem:[%s19793_s0 + $0x88] sm:$0xff]  }
  0xb8   :  { %12943 = vmatprep.mubr.bf16.mxu0 %v14423_v61  ;;  %v14429_v61 = vld [vmem:[%s19793_s0 + $0x90] sm:$0xff]  }
  0xbf   :  { %12944 = vmatmul.mubr.bf16.gmra.mrb[24].mxu0 %v14424_v63  ;;  %v14430_v63 = vld [vmem:[%s19793_s0 + $0x98] sm:$0xff]  }
  0xc0   :  { %12947 = vmatprep.mubr.bf16.mxu0 %v14425_v58  ;;  %v14431_v58 = vld [vmem:[%s19793_s0 + $0xa0] sm:$0xff]  }
  0xc7   :  { %12948 = vmatmul.mubr.bf16.gmra.mrb[28].mxu0 %v14426_v60  ;;  %v14432_v60 = vld [vmem:[%s19793_s0 + $0xa8] sm:$0xff]  }
  0xc8   :  { %12951 = vmatprep.mubr.bf16.mxu0 %v14427_v62  ;;  %v14433_v62 = vld [vmem:[%s19793_s0 + $0xb0] sm:$0xff]  }
  0xcf   :  { %12952 = vmatmul.mubr.bf16.gmra.mrb[32].mxu0 %v14428_v59  ;;  %v14434_v59 = vld [vmem:[%s19793_s0 + $0xb8] sm:$0xff]  }
  0xd0   :  { %12955 = vmatprep.mubr.bf16.mxu0 %v14429_v61  ;;  %v14435_v61 = vld [vmem:[%s19793_s0 + $0xc0] sm:$0xff]  }
  0xd7   :  { %12956 = vmatmul.mubr.bf16.gmra.mrb[36].mxu0 %v14430_v63  ;;  %v14436_v63 = vld [vmem:[%s19793_s0 + $0xc8] sm:$0xff]  }
  0xd8   :  { %12959 = vmatprep.mubr.bf16.mxu0 %v14431_v58  ;;  %v14437_v58 = vld [vmem:[%s19793_s0 + $0xd0] sm:$0xff]  }
  0xdf   :  { %12960 = vmatmul.mubr.bf16.gmra.mrb[40].mxu0 %v14432_v60  ;;  %v14438_v60 = vld [vmem:[%s19793_s0 + $0xd8] sm:$0xff]  }
  0xe0   :  { %12963 = vmatprep.mubr.bf16.mxu0 %v14433_v62  ;;  %v14439_v62 = vld [vmem:[%s19793_s0 + $0xe0] sm:$0xff]  }
  0xe7   :  { %12964 = vmatmul.mubr.bf16.gmra.mrb[44].mxu0 %v14434_v59  ;;  %v14440_v59 = vld [vmem:[%s19793_s0 + $0xe8] sm:$0xff]  }
  0xe8   :  { %12967 = vmatprep.mubr.bf16.mxu0 %v14435_v61  ;;  %v14441_v61 = vld [vmem:[%s19793_s0 + $0xf0] sm:$0xff]  }
  0xef   :  { %12968 = vmatmul.mubr.bf16.gmra.mrb[48].mxu0 %v14436_v63  ;;  %v14442_v63 = vld [vmem:[%s19793_s0 + $0xf8] sm:$0xff]  }
  0xf0   :  { %12971 = vmatprep.mubr.bf16.mxu0 %v14437_v58  ;;  %v19898_v58 = vmov 0  }
  0xf1   :  { %4130 = vmatprep.subr.bf16.mxu1 %v19898_v58  ;;  %702 = vst [vmem:[#allocation2 + $0x100] sm:$0xf] %v19898_v58  ;;  %703 = vst [vmem:[#allocation2 + $0x104] sm:$0xf] %v19898_v58 }
  0xf2   :  { %704 = vst [vmem:[#allocation2 + $0x108] sm:$0xf] %v19898_v58  ;;  %705 = vst [vmem:[#allocation3] sm:$0xff] %v19898_v58 }
  0xf3   :  { %706 = vst [vmem:[#allocation3 + $0x8] sm:$0xf] %v19898_v58  ;;  %707 = vst [vmem:[#allocation3 + $0xa8] sm:$0xf0] %v19898_v58 }
  0xf4   :  { %708 = vst [vmem:[#allocation3 + $0xb0] sm:$0xff] %v19898_v58  ;;  %709 = vst [vmem:[#allocation4 + $0xa0] sm:$0xf] %v19898_v58 }
  0xf5   :  { %710 = vst [vmem:[#allocation4 + $0xa4] sm:$0xf] %v19898_v58  ;;  %711 = vst [vmem:[#allocation4 + $0xa8] sm:$0xf] %v19898_v58 }
  0xf6   :  { %712 = vst [vmem:[#allocation5] sm:$0xff] %v19898_v58  ;;  %713 = vst [vmem:[#allocation5 + $0x38] sm:$0xff] %v19898_v58 }
  0xf7   :  { %12972 = vmatmul.mubr.bf16.gmra.mrb[52].mxu0 %v14438_v60  ;;  %714 = vst [vmem:[#allocation6 + $0x30] sm:$0xff] %v19898_v58  ;;  %v15780_v60 = vld [vmem:[%s19795_s2] ss:$0 sm:$0xff] }
  0xf8   :  { %12975 = vmatprep.mubr.bf16.mxu0 %v14439_v62 }
  0xff   :  { %12976 = vmatmul.mubr.bf16.gmra.mrb[56].mxu0 %v14440_v59 }
 0x100   :  { %12979 = vmatprep.mubr.bf16.mxu0 %v14441_v61 }
 0x107   :  { %12980 = vmatmul.mubr.bf16.gmra.mrb[60].mxu0 %v14442_v63 }
 0x162   :  { %v12921_v62 = vpop.f32.mrb[0].mxu0 }
 0x163   :  { %v1085_v59 = vadd.f32 %v12921_v62, %v15780_v60  ;;  %v1076_v61 = vpop.f32.mrb[1].mxu0 }
 0x164   :  { %v1077_v57 = vadd.f32 %v15780_v60, %v1076_v61  ;;  %v12922_v56 = vpop.f32.mrb[2].mxu0 }
 0x165   :  { %v1088_v55 = vadd.f32 %v12922_v56, %v15780_v60  ;;  %v1079_v54 = vpop.f32.mrb[3].mxu0  ;;  %v1333_v52 = vmax.f32 %v1085_v59, 0.0 }
 0x166   :  { %v1080_v53 = vadd.f32 %v15780_v60, %v1079_v54  ;;  %v1331_v63 = vmax.f32 %v1077_v57, 0.0 }
 0x167   :  { %v1334_v58 = vmax.f32 %v1088_v55, 0.0 }
 0x168   :  { %v1332_v51 = vmax.f32 %v1080_v53, 0.0 }
 0x169   :  { %v12057_v50 = vpack.c.bf16 %v1334_v58, %v1333_v52 }
 0x16a   :  { %v12052_v49 = vpack.c.bf16 %v1332_v51, %v1331_v63  ;;  %v12925_v48 = vpop.f32.mrb[4].mxu0 }
 0x16b   :  { %12309 = vst [vmem:[#allocation2 + $0x8] sm:$0xff] %v12057_v50   ;;  %v1101_v47 = vadd.f32 %v12925_v48, %v15780_v60  ;;  %v1092_v62 = vpop.f32.mrb[5].mxu0 }
 0x16c   :  { %12053 = vst [vmem:[#allocation2] sm:$0xff] %v12052_v49   ;;  %v1093_v61 = vadd.f32 %v15780_v60, %v1092_v62  ;;  %v12926_v46 = vpop.f32.mrb[6].mxu0 }
 0x16d   :  { %v1104_v56 = vadd.f32 %v12926_v46, %v15780_v60  ;;  %v1095_v45 = vpop.f32.mrb[7].mxu0  ;;  %v1337_v59 = vmax.f32 %v1101_v47, 0.0 }
 0x16e   :  { %v1096_v54 = vadd.f32 %v15780_v60, %v1095_v45  ;;  %v1335_v57 = vmax.f32 %v1093_v61, 0.0 }
 0x16f   :  { %v1338_v55 = vmax.f32 %v1104_v56, 0.0 }
 0x170   :  { %v1336_v53 = vmax.f32 %v1096_v54, 0.0 }
 0x171   :  { %v12067_v52 = vpack.c.bf16 %v1338_v55, %v1337_v59 }
 0x172   :  { %v12062_v51 = vpack.c.bf16 %v1336_v53, %v1335_v57  ;;  %v12929_v50 = vpop.f32.mrb[8].mxu0  ;;  %v15790_v58 = vld [vmem:[#allocation2 + $0x8] sm:$0xf]  ;;  %v15796_v53 = vld [vmem:[#allocation2 + $0xc] sm:$0xf] }
 0x173   :  { %12311 = vst [vmem:[#allocation2 + $0x18] sm:$0xff] %v12067_v52   ;;  %v1117_v48 = vadd.f32 %v12929_v50, %v15780_v60  ;;  %v1108_v49 = vpop.f32.mrb[9].mxu0  ;;  %v1715_v63 = vld [vmem:[#allocation2] sm:$0xf]  ;;  %v1716_v46 = vld [vmem:[#allocation2 + $0x4] sm:$0xf] }
 0x174   :  { %v1803_v62 = vshll.u32 %v15790_v58, 16  ;;  %12310 = vst [vmem:[#allocation2 + $0x10] sm:$0xff] %v12062_v51   ;;  %v1109_v45 = vadd.f32 %v15780_v60, %v1108_v49  ;;  %v12930_v47 = vpop.f32.mrb[10].mxu0  ;;  %v1784_v61 = vshrl.u32 %v1715_v63, 16  ;;  %v1787_v56 = vshll.u32 %v1715_v63, 16 }
 0x175   :  { %v1793_v54 = vshll.u32 %v1716_v46, 16  ;;  %v1341_v59 = vmax.f32 %v1117_v48, 0.0  ;;  %v1120_v55 = vadd.f32 %v12930_v47, %v15780_v60  ;;  %v1111_v57 = vpop.f32.mrb[11].mxu0  ;;  %v1797_v52 = vshrl.u32 %v1716_v46, 16  ;;  %v2557_v51 = vld [vmem:[#allocation2 + $0x8] sm:$0xf] }
 0x176   :  { %v1805_v50 = vrot.slane %v1803_v62, 5  ;;  %v1339_v44 = vmax.f32 %v1109_v45, 0.0  ;;  %v1112_v43 = vadd.f32 %v15780_v60, %v1111_v57  ;;  %v1786_v42 = vrot.slane %v1784_v61, 4 }
 0x177   :  { %v1789_v41 = vrot.slane %v1787_v56, 5  ;;  %v1342_v40 = vmax.f32 %v1120_v55, 0.0  ;;  %v1795_v49 = vrot.slane %v1793_v54, 5  ;;  %v1799_v39 = vrot.slane %v1797_v52, 4  ;;  %v2558_v56 = vld [vmem:[#allocation2 + $0xc] sm:$0xf] }
 0x178   :  { %v1807_v38 = vshrl.u32 %v15790_v58, 16  ;;  %v1340_v37 = vmax.f32 %v1112_v43, 0.0  ;;  %v1813_v47 = vshll.u32 %v15796_v53, 16  ;;  %v1817_v36 = vshrl.u32 %v15796_v53, 16 }
 0x179   :  { %v1790_v48 = vor.u32 %v1789_v41, %v1786_v42  ;;  %v12077_v35 = vpack.c.bf16 %v1342_v40, %v1341_v59  ;;  %v20211_v62 = vmov 0  ;;  %v1800_v45 = vor.u32 %v1799_v39, %v1795_v49 }
 0x17a   :  { %v20212_v62 = vsel %vm15804_vm2, 4294967295, %v20211_v62  ;;  %v1809_v61 = vrot.slane %v1807_v38, 4  ;;  %v2623_v54 = vshrl.u32 %v2557_v51, 16  ;;  %v12072_v55 = vpack.c.bf16 %v1340_v37, %v1339_v44  ;;  %v12933_v57 = vpop.f32.mrb[12].mxu0 }
 0x17b   :  { %20213 = vst [vmem:[#allocation190_spill] sm:$0xff] %v20212_v62  ;;  %v1791_v52 = vrot.slane %v1790_v48, 4  ;;  %v1819_v43 = vrot.slane %v1817_v36, 4  ;;  %v2626_v41 = vshll.u32 %v2557_v51, 16  ;;  %12313 = vst [vmem:[#allocation2 + $0x28] sm:$0xff] %v12077_v35   ;;  %v1133_v42 = vadd.f32 %v12933_v57, %v15780_v60  ;;  %v1124_v34 = vpop.f32.mrb[13].mxu0 }
 0x17c   :  { %v1801_v40 = vrot.slane %v1800_v45, 4  ;;  %v1810_v59 = vor.u32 %v1809_v61, %v1805_v50  ;;  %v2625_v33 = vrot.slane %v2623_v54, 4  ;;  %12312 = vst [vmem:[#allocation2 + $0x20] sm:$0xff] %v12072_v55   ;;  %v1125_v32 = vadd.f32 %v15780_v60, %v1124_v34  ;;  %v12934_v31 = vpop.f32.mrb[14].mxu0  ;;  %v2559_v39 = vld [vmem:[#allocation2 + $0x10] sm:$0xf] }
 0x17d   :  { %v1796_v38 = vsel %vm15804_vm2, %v1791_v52, %v1795_v49  ;;  %v2628_v37 = vrot.slane %v2626_v41, 5  ;;  %v2632_v44 = vshll.u32 %v2558_v56, 16  ;;  %v1345_v48 = vmax.f32 %v1133_v42, 0.0  ;;  %v1127_v35 = vpop.f32.mrb[15].mxu0  ;;  %v15820_v30 = vld [vmem:[#allocation2 + $0x10] sm:$0xf] }
 0x17e   :  { %v1136_v36 = vadd.f32 %v12934_v31, %v15780_v60  ;;  %v1806_v51 = vsel %vm15804_vm2, %v1801_v40, %v1805_v50  ;;  %v15815_v45 = vmax.bf16 %v1796_v38, %v1715_v63  ;;  %v1343_v61 = vmax.f32 %v1125_v32, 0.0 }
 0x17f   :  { %v1128_v54 = vadd.f32 %v15780_v60, %v1127_v35  ;;  %v15818_v34 = vmax.bf16 %v1806_v51, %v1716_v46  ;;  %v2629_v55 = vor.u32 %v2628_v37, %v2625_v33  ;;  %v2634_v49 = vrot.slane %v2632_v44, 5  ;;  %v15830_v51 = vld [vmem:[#allocation2 + $0x14] sm:$0xf] }
 0x180   :  { %v1346_v57 = vmax.f32 %v1136_v36, 0.0  ;;  %v2636_v52 = vshrl.u32 %v2558_v56, 16  ;;  %v2642_v41 = vshll.u32 %v2559_v39, 16  ;;  %v2646_v29 = vshrl.u32 %v2559_v39, 16 }
 0x181   :  { %v1344_v42 = vmax.f32 %v1128_v54, 0.0  ;;  %v2630_v31 = vrot.slane %v2629_v55, 4  ;;  %v1811_v28 = vrot.slane %v1810_v59, 4  ;;  %v1815_v40 = vrot.slane %v1813_v47, 5 }
 0x182   :  { %v12087_v27 = vpack.c.bf16 %v1346_v57, %v1345_v48  ;;  %v2638_v50 = vrot.slane %v2636_v52, 4  ;;  %v2644_v63 = vrot.slane %v2642_v41, 5  ;;  %v12937_v38 = vpop.f32.mrb[16].mxu0  ;;  %v2648_v33 = vrot.slane %v2646_v29, 4 }
 0x183   :  { %v12082_v32 = vpack.c.bf16 %v1344_v42, %v1343_v61  ;;  %v2635_v46 = vsel %vm15804_vm2, %v2630_v31, %v2634_v49  ;;  %v1823_v37 = vshll.u32 %v15820_v30, 16  ;;  %v1149_v56 = vadd.f32 %v12937_v38, %v15780_v60  ;;  %v1140_v44 = vpop.f32.mrb[17].mxu0  ;;  %v2560_v31 = vld [vmem:[#allocation2 + $0x14] sm:$0xf]  ;;  %v2561_v38 = vld [vmem:[#allocation2 + $0x18] sm:$0xf] }
 0x184   :  { %12315 = vst [vmem:[#allocation2 + $0x38] sm:$0xff] %v12087_v27   ;;  %v2639_v36 = vor.u32 %v2638_v50, %v2634_v49  ;;  %v3330_v39 = vmax.bf16 %v2635_v46, %v15790_v58  ;;  %v1816_v59 = vsel %vm15804_vm2, %v1811_v28, %v1815_v40  ;;  %v1141_v47 = vadd.f32 %v15780_v60, %v1140_v44  ;;  %v12938_v48 = vpop.f32.mrb[18].mxu0 }
 0x185   :  { %12314 = vst [vmem:[#allocation2 + $0x30] sm:$0xff] %v12082_v32   ;;  %v2649_v35 = vor.u32 %v2648_v33, %v2644_v63  ;;  %v1820_v29 = vor.u32 %v1819_v43, %v1815_v40  ;;  %v1825_v61 = vrot.slane %v1823_v37, 5  ;;  %v1349_v54 = vmax.f32 %v1149_v56, 0.0  ;;  %v1143_v55 = vpop.f32.mrb[19].mxu0 }
 0x186   :  { %v1152_v27 = vadd.f32 %v12938_v48, %v15780_v60  ;;  %v2640_v57 = vrot.slane %v2639_v36, 4  ;;  %v3394_v49 = vmax.bf16 %v3330_v39, %v15815_v45  ;;  %v1347_v52 = vmax.f32 %v1141_v47, 0.0 }
 0x187   :  { %v1144_v41 = vadd.f32 %v15780_v60, %v1143_v55  ;;  %v1821_v28 = vrot.slane %v1820_v29, 4  ;;  %v1827_v42 = vshrl.u32 %v15820_v30, 16  ;;  %v1837_v43 = vshrl.u32 %v15830_v51, 16 }
 0x188   :  { %v1350_v50 = vmax.f32 %v1152_v27, 0.0  ;;  %v2645_v32 = vsel %vm15804_vm2, %v2640_v57, %v2644_v63  ;;  %v15840_v40 = vmax.bf16 %v1816_v59, %v15790_v58  ;;  %v2650_v37 = vrot.slane %v2649_v35, 4 }
 0x189   :  { %v1348_v46 = vmax.f32 %v1144_v41, 0.0  ;;  %v3331_v45 = vmax.bf16 %v2645_v32, %v15796_v53  ;;  %v1826_v33 = vsel %vm15804_vm2, %v1821_v28, %v1825_v61  ;;  %v2652_v36 = vshll.u32 %v2560_v31, 16 }
 0x18a   :  { %v12097_v56 = vpack.c.bf16 %v1350_v50, %v1349_v54  ;;  %v15846_v44 = vmax.bf16 %v1826_v33, %v15796_v53  ;;  %v2656_v39 = vshrl.u32 %v2560_v31, 16  ;;  %v12941_v48 = vpop.f32.mrb[20].mxu0  ;;  %v2662_v58 = vshll.u32 %v2561_v38, 16 }
 0x18b   :  { %v12092_v63 = vpack.c.bf16 %v1348_v46, %v1347_v52  ;;  %v3395_v47 = vmax.bf16 %v3331_v45, %v15818_v34  ;;  %v2666_v59 = vshrl.u32 %v2561_v38, 16  ;;  %v1165_v29 = vadd.f32 %v12941_v48, %v15780_v60  ;;  %v1156_v27 = vpop.f32.mrb[21].mxu0  ;;  %v15855_v46 = vld [vmem:[#allocation2 + $0x18] sm:$0xf] }
 0x18c   :  { %12317 = vst [vmem:[#allocation2 + $0x48] sm:$0xff] %v12097_v56   ;;  %v2654_v55 = vrot.slane %v2652_v36, 5  ;;  %v2658_v57 = vrot.slane %v2656_v39, 4  ;;  %v1829_v41 = vrot.slane %v1827_v42, 4  ;;  %v1157_v53 = vadd.f32 %v15780_v60, %v1156_v27  ;;  %v12942_v28 = vpop.f32.mrb[22].mxu0 }
 0x18d   :  { %12316 = vst [vmem:[#allocation2 + $0x40] sm:$0xff] %v12092_v63   ;;  %v11833_v35 = vcombine.low %v3394_v49, %v3395_v47  ;;  %v2664_v54 = vrot.slane %v2662_v58, 5  ;;  %v1833_v52 = vshll.u32 %v15830_v51, 16  ;;  %v1353_v31 = vmax.f32 %v1165_v29, 0.0  ;;  %v1159_v38 = vpop.f32.mrb[23].mxu0 }
 0x18e   :  { %v2655_v34 = vsel %vm15804_vm2, %v2650_v37, %v2654_v55  ;;  %v2659_v50 = vor.u32 %v2658_v57, %v2654_v55  ;;  %v1168_v32 = vadd.f32 %v12942_v28, %v15780_v60  ;;  %v1351_v42 = vmax.f32 %v1157_v53, 0.0  ;;  %v15861_v58 = vld [vmem:[#allocation2 + $0x1c] sm:$0xf]  ;;  %v2563_v53 = vld [vmem:[#allocation2 + $0x20] sm:$0xf] }
 0x18f   :  { %4131 = vmatpush1.bf16.msra.mxu1 %v11833_v35  ;;  %v3332_v49 = vmax.bf16 %v2655_v34, %v15820_v30  ;;  %v1160_v45 = vadd.f32 %v15780_v60, %v1159_v38  ;;  %v1830_v33 = vor.u32 %v1829_v41, %v1825_v61  ;;  %v20214_v56 = vmov 0   ;;  %v2562_v41 = vld [vmem:[#allocation2 + $0x1c] sm:$0xf] }
 0x190   :  { %4132 = vmatprep.subr.bf16.mxu1 %v20214_v56  ;;  %v2660_v36 = vrot.slane %v2659_v50, 4  ;;  %v1354_v39 = vmax.f32 %v1168_v32, 0.0  ;;  %v1835_v63 = vrot.slane %v1833_v52, 5  ;;  %v1839_v47 = vrot.slane %v1837_v43, 4 }
 0x191   :  { %v3396_v37 = vmax.bf16 %v3332_v49, %v15840_v40  ;;  %v1352_v48 = vmax.f32 %v1160_v45, 0.0  ;;  %v1831_v29 = vrot.slane %v1830_v33, 4  ;;  %v1843_v27 = vshll.u32 %v15855_v46, 16 }
 0x192   :  { %v2665_v55 = vsel %vm15804_vm2, %v2660_v36, %v2664_v54  ;;  %v12107_v57 = vpack.c.bf16 %v1354_v39, %v1353_v31  ;;  %v1840_v35 = vor.u32 %v1839_v47, %v1835_v63  ;;  %v1847_v61 = vshrl.u32 %v15855_v46, 16  ;;  %v12945_v34 = vpop.f32.mrb[24].mxu0 }
 0x193   :  { %v3333_v28 = vmax.bf16 %v2665_v55, %v15830_v51  ;;  %v12102_v43 = vpack.c.bf16 %v1352_v48, %v1351_v42  ;;  %v1836_v40 = vsel %vm15804_vm2, %v1831_v29, %v1835_v63  ;;  %v1845_v52 = vrot.slane %v1843_v27, 5  ;;  %v1172_v49 = vpop.f32.mrb[25].mxu0 }
 0x194   :  { %12319 = vst [vmem:[#allocation2 + $0x58] sm:$0xff] %v12107_v57   ;;  %v1841_v50 = vrot.slane %v1840_v35, 4  ;;  %v1857_v32 = vshrl.u32 %v15861_v58, 16  ;;  %v15872_v38 = vmax.bf16 %v1836_v40, %v15820_v30  ;;  %v2668_v31 = vrot.slane %v2666_v59, 4  ;;  %v12946_v39 = vpop.f32.mrb[26].mxu0 }
 0x195   :  { %v3397_v45 = vmax.bf16 %v3333_v28, %v15846_v44  ;;  %12318 = vst [vmem:[#allocation2 + $0x50] sm:$0xff] %v12102_v43   ;;  %v2672_v33 = vshll.u32 %v2562_v41, 16  ;;  %v2676_v36 = vshrl.u32 %v2562_v41, 16  ;;  %v2682_v42 = vshll.u32 %v2563_v53, 16  ;;  %v1175_v27 = vpop.f32.mrb[27].mxu0 }
 0x196   :  { %v1846_v63 = vsel %vm15804_vm2, %v1841_v50, %v1845_v52  ;;  %v2669_v47 = vor.u32 %v2668_v31, %v2664_v54  ;;  %v2686_v48 = vshrl.u32 %v2563_v53, 16  ;;  %v15878_v29 = vadd.f32 %v12945_v34, %v15780_v60  ;;  %v15881_v44 = vld [vmem:[#allocation2 + $0x20] sm:$0xf]  ;;  %v15887_v54 = vld [vmem:[#allocation2 + $0x24] sm:$0xf] }
 0x197   :  { %v11834_v30 = vcombine.low %v3396_v37, %v3397_v45  ;;  %v2496_v59 = vmax.bf16 %v1846_v63, %v15830_v51  ;;  %v2674_v55 = vrot.slane %v2672_v33, 5  ;;  %v2678_v57 = vrot.slane %v2676_v36, 4  ;;  %v2564_v51 = vld [vmem:[#allocation2 + $0x24] sm:$0xf]  ;;  %v15897_v63 = vld [vmem:[#allocation2 + $0x28] sm:$0xf] }
 0x198   :  { %v2670_v35 = vrot.slane %v2669_v47, 4  ;;  %v2684_v41 = vrot.slane %v2682_v42, 5  ;;  %v15885_v43 = vadd.f32 %v15780_v60, %v1172_v49  ;;  %v1849_v40 = vrot.slane %v1847_v61, 4 }
 0x199   :  { %4133 = vmatpush1.bf16.msra.mxu1 %v11834_v30  ;;  %v2679_v53 = vor.u32 %v2678_v57, %v2674_v55  ;;  %v1853_v37 = vshll.u32 %v15861_v58, 16  ;;  %v1859_v34 = vrot.slane %v1857_v32, 4  ;;  %v1863_v45 = vshll.u32 %v15881_v44, 16 }
 0x19a   :  { %4134 = vmatprep.subr.bf16.mxu1 %v20214_v56  ;;  %v2675_v50 = vsel %vm15804_vm2, %v2670_v35, %v2674_v55  ;;  %v1355_v31 = vmax.f32 %v15885_v43, 0.0  ;;  %v1867_v49 = vshrl.u32 %v15881_v44, 16  ;;  %v1850_v42 = vor.u32 %v1849_v40, %v1845_v52  ;;  %v15899_v32 = vpop.f32.mrb[28].mxu0 }
 0x19b   :  { %v2680_v33 = vrot.slane %v2679_v53, 4  ;;  %v3334_v36 = vmax.bf16 %v2675_v50, %v15855_v46  ;;  %v1855_v61 = vrot.slane %v1853_v37, 5  ;;  %v1865_v47 = vrot.slane %v1863_v45, 5  ;;  %v15902_v35 = vpop.f32.mrb[29].mxu0 }
 0x19c   :  { %v1877_v30 = vshrl.u32 %v15887_v54, 16  ;;  %v2688_v57 = vrot.slane %v2686_v48, 4  ;;  %v2692_v55 = vshll.u32 %v2564_v51, 16  ;;  %v1851_v28 = vrot.slane %v1850_v42, 4  ;;  %v15907_v52 = vpop.f32.mrb[30].mxu0 }
 0x19d   :  { %v2685_v43 = vsel %vm15804_vm2, %v2680_v33, %v2684_v41  ;;  %v3398_v53 = vmax.bf16 %v3334_v36, %v15872_v38  ;;  %v1860_v50 = vor.u32 %v1859_v34, %v1855_v61  ;;  %v2696_v45 = vshrl.u32 %v2564_v51, 16  ;;  %v15910_v25 = vpop.f32.mrb[31].mxu0 }
 0x19e   :  { %v3335_v40 = vmax.bf16 %v2685_v43, %v15861_v58  ;;  %v2689_v37 = vor.u32 %v2688_v57, %v2684_v41  ;;  %v2694_v26 = vrot.slane %v2692_v55, 5  ;;  %v1856_v48 = vsel %vm15804_vm2, %v1851_v28, %v1855_v61  ;;  %v15921_v43 = vld [vmem:[#allocation2 + $0x28] sm:$0xf] }
 0x19f   :  { %v1861_v24 = vrot.slane %v1860_v50, 4  ;;  %v2702_v23 = vshll.u32 %v15897_v63, 16  ;;  %v2706_v33 = vshrl.u32 %v15897_v63, 16  ;;  %v2497_v34 = vmax.bf16 %v1856_v48, %v15855_v46 }
 0x1a0   :  { %v3399_v38 = vmax.bf16 %v3335_v40, %v2496_v59  ;;  %v2690_v36 = vrot.slane %v2689_v37, 4  ;;  %v2698_v42 = vrot.slane %v2696_v45, 4  ;;  %v1184_v51 = vadd.f32 %v12946_v39, %v15780_v60  ;;  %v15927_v37 = vld [vmem:[#allocation2 + $0x2c] sm:$0xf] }
 0x1a1   :  { %v1866_v41 = vsel %vm15804_vm2, %v1861_v24, %v1865_v47  ;;  %v2704_v57 = vrot.slane %v2702_v23, 5  ;;  %v1176_v55 = vadd.f32 %v15780_v60, %v1175_v27  ;;  %v1869_v23 = vrot.slane %v1867_v49, 4  ;;  %v2566_v49 = vld [vmem:[#allocation2 + $0x2c] sm:$0xf] }
 0x1a2   :  { %v11835_v28 = vcombine.low %v3398_v53, %v3399_v38  ;;  %v2498_v61 = vmax.bf16 %v1866_v41, %v15861_v58  ;;  %v2695_v59 = vsel %vm15804_vm2, %v2690_v36, %v2694_v26  ;;  %v2699_v63 = vor.u32 %v2698_v42, %v2694_v26  ;;  %v15929_v24 = vpop.f32.mrb[32].mxu0  ;;  %v15938_v41 = vld [vmem:[#allocation2 + $0x30] sm:$0xf] }
 0x1a3   :  { %v3336_v46 = vmax.bf16 %v2695_v59, %v15881_v44  ;;  %v1358_v50 = vmax.f32 %v1184_v51, 0.0  ;;  %v1356_v40 = vmax.f32 %v1176_v55, 0.0  ;;  %v1873_v27 = vshll.u32 %v15887_v54, 16  ;;  %v15933_v45 = vpop.f32.mrb[33].mxu0 }
 0x1a4   :  { %4135 = vmatpush1.bf16.msra.mxu1 %v11835_v28  ;;  %v2700_v39 = vrot.slane %v2699_v63, 4  ;;  %v1879_v53 = vrot.slane %v1877_v30, 4  ;;  %v1883_v58 = vshll.u32 %v15921_v43, 16  ;;  %v20215_v48 = vmax.f32 %v15878_v29, 0.0  ;;  %v15940_v51 = vpop.f32.mrb[34].mxu0 }
 0x1a5   :  { %4136 = vmatprep.subr.bf16.mxu1 %v20214_v56  ;;  %v3400_v26 = vmax.bf16 %v3336_v46, %v2497_v34  ;;  %v12112_v36 = vpack.c.bf16 %v1356_v40, %v1355_v31  ;;  %v1870_v42 = vor.u32 %v1869_v23, %v1865_v47  ;;  %v1875_v55 = vrot.slane %v1873_v27, 5  ;;  %v15945_v63 = vpop.f32.mrb[35].mxu0  ;;  %v14445_v46 = vld [vmem:[%s19796_s3 + $0x4] ss:$16 sps:$4 sm:$0xff]  }
 0x1a6   :  { %v12117_v38 = vpack.c.bf16 %v1358_v50, %v20215_v48  ;;  %v2705_v30 = vsel %vm15804_vm2, %v2700_v39, %v2704_v57  ;;  %v1885_v28 = vrot.slane %v1883_v58, 5  ;;  %v1887_v59 = vshrl.u32 %v15921_v43, 16  ;;  %4162 = vmatprep.mubr.bf16.mxu1 %v14445_v46  ;;  %v15977_v46 = vld [vmem:[#allocation2 + $0x34] sm:$0xf] }
 0x1a7   :  { %v3337_v34 = vmax.bf16 %v2705_v30, %v15887_v54  ;;  %12320 = vst [vmem:[#allocation2 + $0x60] sm:$0xff] %v12112_v36   ;;  %v1871_v29 = vrot.slane %v1870_v42, 4  ;;  %v1897_v31 = vshrl.u32 %v15927_v37, 16  ;;  %v2708_v47 = vrot.slane %v2706_v33, 4 }
 0x1a8   :  { %12321 = vst [vmem:[#allocation2 + $0x68] sm:$0xff] %v12117_v38   ;;  %v1880_v50 = vor.u32 %v1879_v53, %v1875_v55  ;;  %v2712_v40 = vshll.u32 %v2566_v49, 16  ;;  %v2716_v23 = vshrl.u32 %v2566_v49, 16  ;;  %v2722_v39 = vshll.u32 %v15938_v41, 16 }
 0x1a9   :  { %v3401_v27 = vmax.bf16 %v3337_v34, %v2498_v61  ;;  %v1876_v58 = vsel %vm15804_vm2, %v1871_v29, %v1875_v55  ;;  %v2709_v48 = vor.u32 %v2708_v47, %v2704_v57  ;;  %v2726_v38 = vshrl.u32 %v15938_v41, 16 }
 0x1aa   :  { %v1881_v36 = vrot.slane %v1880_v50, 4  ;;  %v2499_v33 = vmax.bf16 %v1876_v58, %v15881_v44  ;;  %v2714_v42 = vrot.slane %v2712_v40, 5  ;;  %v2718_v30 = vrot.slane %v2716_v23, 4  ;;  %v15961_v61 = vpop.f32.mrb[36].mxu0  ;;  %v15969_v44 = vld [vmem:[#allocation2 + $0x30] sm:$0xf] }
 0x1ab   :  { %v11836_v22 = vcombine.low %v3400_v26, %v3401_v27  ;;  %v2710_v21 = vrot.slane %v2709_v48, 4  ;;  %v2724_v53 = vrot.slane %v2722_v39, 5  ;;  %v15959_v49 = vadd.f32 %v15899_v32, %v15780_v60  ;;  %v15971_v26 = vpop.f32.mrb[37].mxu0 }
 0x1ac   :  { %v1886_v57 = vsel %vm15804_vm2, %v1881_v36, %v1885_v28  ;;  %v2719_v55 = vor.u32 %v2718_v30, %v2714_v42  ;;  %v15967_v41 = vadd.f32 %v15780_v60, %v15902_v35  ;;  %v1889_v34 = vrot.slane %v1887_v59, 4  ;;  %v15980_v40 = vpop.f32.mrb[38].mxu0  ;;  %v2568_v36 = vld [vmem:[#allocation2 + $0x34] sm:$0xf] }
 0x1ad   :  { %4137 = vmatpush1.bf16.msra.mxu1 %v11836_v22  ;;  %v2500_v29 = vmax.bf16 %v1886_v57, %v15887_v54  ;;  %v2715_v32 = vsel %vm15804_vm2, %v2710_v21, %v2714_v42  ;;  %v1361_v47 = vmax.f32 %v15959_v49, 0.0  ;;  %v1893_v50 = vshll.u32 %v15927_v37, 16  ;;  %v15985_v54 = vld [vmem:[#allocation2 + $0x38] sm:$0xf]  ;;  %v15987_v39 = vpop.f32.mrb[39].mxu0 }
 0x1ae   :  { %4138 = vmatprep.subr.bf16.mxu1 %v20214_v56  ;;  %v2720_v35 = vrot.slane %v2719_v55, 4  ;;  %v3338_v59 = vmax.bf16 %v2715_v32, %v15921_v43  ;;  %v1359_v22 = vmax.f32 %v15967_v41, 0.0  ;;  %v1890_v23 = vor.u32 %v1889_v34, %v1885_v28 }
 0x1af   :  { %v1895_v21 = vrot.slane %v1893_v50, 5  ;;  %v1899_v27 = vrot.slane %v1897_v31, 4  ;;  %v1903_v58 = vshll.u32 %v15969_v44, 16  ;;  %v1907_v48 = vshrl.u32 %v15969_v44, 16 }
 0x1b0   :  { %v2725_v42 = vsel %vm15804_vm2, %v2720_v35, %v2724_v53  ;;  %v3402_v30 = vmax.bf16 %v3338_v59, %v2499_v33  ;;  %v1891_v49 = vrot.slane %v1890_v23, 4  ;;  %v1917_v57 = vshrl.u32 %v15977_v46, 16 }
 0x1b1   :  { %v3339_v28 = vmax.bf16 %v2725_v42, %v15927_v37  ;;  %v1900_v55 = vor.u32 %v1899_v27, %v1895_v21  ;;  %v1905_v41 = vrot.slane %v1903_v58, 5  ;;  %v2728_v34 = vrot.slane %v2726_v38, 4 }
 0x1b2   :  { %v1896_v31 = vsel %vm15804_vm2, %v1891_v49, %v1895_v21  ;;  %v2732_v32 = vshll.u32 %v2568_v36, 16  ;;  %v2736_v50 = vshrl.u32 %v2568_v36, 16  ;;  %v2742_v20 = vshll.u32 %v15985_v54, 16  ;;  %v16001_v59 = vpop.f32.mrb[40].mxu0 }
 0x1b3   :  { %v3403_v19 = vmax.bf16 %v3339_v28, %v2500_v29  ;;  %v1901_v18 = vrot.slane %v1900_v55, 4  ;;  %v15999_v35 = vmax.bf16 %v1896_v31, %v15921_v43  ;;  %v2729_v33 = vor.u32 %v2728_v34, %v2724_v53  ;;  %v16006_v58 = vpop.f32.mrb[41].mxu0  ;;  %v16017_v55 = vld [vmem:[#allocation2 + $0x38] sm:$0xf] }
 0x1b4   :  { %v2734_v23 = vrot.slane %v2732_v32, 5  ;;  %v2738_v42 = vrot.slane %v2736_v50, 4  ;;  %v16003_v27 = vrot.slane %v2742_v20, 5  ;;  %v2746_v38 = vshrl.u32 %v15985_v54, 16  ;;  %v16012_v49 = vpop.f32.mrb[42].mxu0 }
 0x1b5   :  { %v11837_v21 = vcombine.low %v3402_v30, %v3403_v19  ;;  %v1906_v36 = vsel %vm15804_vm2, %v1901_v18, %v1905_v41  ;;  %v2730_v29 = vrot.slane %v2729_v33, 4  ;;  %v1200_v43 = vadd.f32 %v15907_v52, %v15780_v60  ;;  %v16019_v34 = vpop.f32.mrb[43].mxu0 }
 0x1b6   :  { %v2502_v53 = vmax.bf16 %v1906_v36, %v15927_v37  ;;  %v2739_v28 = vor.u32 %v2738_v42, %v2734_v23  ;;  %v1192_v20 = vadd.f32 %v15780_v60, %v15910_v25  ;;  %v1909_v54 = vrot.slane %v1907_v48, 4  ;;  %v16026_v25 = vld [vmem:[#allocation2 + $0x3c] sm:$0xf] }
 0x1b7   :  { %4139 = vmatpush1.bf16.msra.mxu1 %v11837_v21  ;;  %v2735_v18 = vsel %vm15804_vm2, %v2730_v29, %v2734_v23  ;;  %v1362_v19 = vmax.f32 %v1200_v43, 0.0  ;;  %v1913_v52 = vshll.u32 %v15977_v46, 16  ;;  %v1919_v30 = vrot.slane %v1917_v57, 4  ;;  %v2570_v23 = vld [vmem:[#allocation2 + $0x3c] sm:$0xf] }
 0x1b8   :  { %4140 = vmatprep.subr.bf16.mxu1 %v20214_v56  ;;  %v2740_v37 = vrot.slane %v2739_v28, 4  ;;  %v3340_v31 = vmax.bf16 %v2735_v18, %v15969_v44  ;;  %v1360_v32 = vmax.f32 %v1192_v20, 0.0  ;;  %v1910_v50 = vor.u32 %v1909_v54, %v1905_v41  ;;  %v2571_v28 = vld [vmem:[#allocation2 + $0x40] sm:$0xf] }
 0x1b9   :  { %v12127_v48 = vpack.c.bf16 %v1362_v19, %v1361_v47  ;;  %v1915_v33 = vrot.slane %v1913_v52, 5  ;;  %v1923_v42 = vshll.u32 %v16017_v55, 16  ;;  %v1927_v21 = vshrl.u32 %v16017_v55, 16 }
 0x1ba   :  { %v2745_v57 = vsel %vm15804_vm2, %v2740_v37, %v16003_v27  ;;  %v3404_v36 = vmax.bf16 %v3340_v31, %v15999_v35  ;;  %v12122_v29 = vpack.c.bf16 %v1360_v32, %v1359_v22  ;;  %v1911_v43 = vrot.slane %v1910_v50, 4  ;;  %v16036_v18 = vpop.f32.mrb[44].mxu0 }
 0x1bb   :  { %v3341_v20 = vmax.bf16 %v2745_v57, %v15977_v46  ;;  %12323 = vst [vmem:[#allocation2 + $0x78] sm:$0xff] %v12127_v48   ;;  %v1920_v41 = vor.u32 %v1919_v30, %v1915_v33  ;;  %v1925_v47 = vrot.slane %v1923_v42, 5  ;;  %v1937_v54 = vshrl.u32 %v16026_v25, 16  ;;  %v16040_v35 = vpop.f32.mrb[45].mxu0 }
 0x1bc   :  { %12322 = vst [vmem:[#allocation2 + $0x70] sm:$0xff] %v12122_v29   ;;  %v1916_v19 = vsel %vm15804_vm2, %v1911_v43, %v1915_v33  ;;  %v2748_v52 = vrot.slane %v2746_v38, 4  ;;  %v2752_v37 = vshll.u32 %v2570_v23, 16  ;;  %v2756_v17 = vshrl.u32 %v2570_v23, 16  ;;  %v16043_v30 = vpop.f32.mrb[46].mxu0 }
 0x1bd   :  { %v3405_v22 = vmax.bf16 %v3341_v20, %v2502_v53  ;;  %v1921_v31 = vrot.slane %v1920_v41, 4  ;;  %v2503_v32 = vmax.bf16 %v1916_v19, %v15969_v44  ;;  %v2762_v50 = vshll.u32 %v2571_v28, 16  ;;  %v16046_v16 = vpop.f32.mrb[47].mxu0  ;;  %v16054_v44 = vld [vmem:[#allocation2 + $0x40] sm:$0xf] }
 0x1be   :  { %v2749_v48 = vor.u32 %v2748_v52, %v16003_v27  ;;  %v2754_v42 = vrot.slane %v2752_v37, 5  ;;  %v2758_v57 = vrot.slane %v2756_v17, 4  ;;  %v2766_v29 = vshrl.u32 %v2571_v28, 16  ;;  %v16062_v28 = vld [vmem:[#allocation2 + $0x44] sm:$0xf] }
 0x1bf   :  { %v11838_v33 = vcombine.low %v3404_v36, %v3405_v22  ;;  %v1926_v38 = vsel %vm15804_vm2, %v1921_v31, %v1925_v47  ;;  %v2764_v23 = vrot.slane %v2762_v50, 5  ;;  %v16052_v53 = vadd.f32 %v15929_v24, %v15780_v60 }
 0x1c0   :  { %v2504_v43 = vmax.bf16 %v1926_v38, %v15977_v46  ;;  %v2750_v20 = vrot.slane %v2749_v48, 4  ;;  %v2759_v27 = vor.u32 %v2758_v57, %v2754_v42  ;;  %v16059_v17 = vadd.f32 %v15780_v60, %v15933_v45  ;;  %v2573_v57 = vld [vmem:[#allocation2 + $0x48] sm:$0xf] }
 0x1c1   :  { %4141 = vmatpush1.bf16.msra.mxu1 %v11838_v33  ;;  %v1365_v36 = vmax.f32 %v16052_v53, 0.0  ;;  %v1929_v41 = vrot.slane %v1927_v21, 4  ;;  %v1933_v19 = vshll.u32 %v16026_v25, 16  ;;  %v1939_v24 = vrot.slane %v1937_v54, 4  ;;  %v2572_v21 = vld [vmem:[#allocation2 + $0x44] sm:$0xf] }
 0x1c2   :  { %4142 = vmatprep.subr.bf16.mxu1 %v20214_v56  ;;  %v2755_v46 = vsel %vm15804_vm2, %v2750_v20, %v2754_v42  ;;  %v2760_v52 = vrot.slane %v2759_v27, 4  ;;  %v1363_v37 = vmax.f32 %v16059_v17, 0.0  ;;  %v1943_v45 = vshll.u32 %v16054_v44, 16  ;;  %v16075_v53 = vpop.f32.mrb[48].mxu0 }
 0x1c3   :  { %v3342_v22 = vmax.bf16 %v2755_v46, %v16017_v55  ;;  %v1930_v31 = vor.u32 %v1929_v41, %v1925_v47  ;;  %v1935_v50 = vrot.slane %v1933_v19, 5  ;;  %v1947_v48 = vshrl.u32 %v16054_v44, 16  ;;  %v16078_v47 = vpop.f32.mrb[49].mxu0 }
 0x1c4   :  { %v2765_v54 = vsel %vm15804_vm2, %v2760_v52, %v2764_v23  ;;  %v1945_v33 = vrot.slane %v1943_v45, 5  ;;  %v1957_v38 = vshrl.u32 %v16062_v28, 16  ;;  %v2768_v42 = vrot.slane %v2766_v29, 4  ;;  %v16080_v5 = vpop.f32.mrb[50].mxu0 }
 0x1c5   :  { %v3343_v20 = vmax.bf16 %v2765_v54, %v16026_v25  ;;  %v3406_v27 = vmax.bf16 %v3342_v22, %v2503_v32  ;;  %v1931_v17 = vrot.slane %v1930_v31, 4  ;;  %v1940_v46 = vor.u32 %v1939_v24, %v1935_v50  ;;  %v16084_v3 = vpop.f32.mrb[51].mxu0 }
 0x1c6   :  { %v2769_v41 = vor.u32 %v2768_v42, %v2764_v23  ;;  %v2772_v19 = vshll.u32 %v2572_v21, 16  ;;  %v2776_v7 = vshrl.u32 %v2572_v21, 16  ;;  %v2782_v6 = vshll.u32 %v2573_v57, 16  ;;  %v16091_v42 = vld [vmem:[#allocation2 + $0x48] sm:$0xf] }
 0x1c7   :  { %v3407_v52 = vmax.bf16 %v3343_v20, %v2504_v43  ;;  %v1936_v45 = vsel %vm15804_vm2, %v1931_v17, %v1935_v50  ;;  %v1941_v29 = vrot.slane %v1940_v46, 4  ;;  %v2786_v4 = vshrl.u32 %v2573_v57, 16 }
 0x1c8   :  { %v2505_v32 = vmax.bf16 %v1936_v45, %v16017_v55  ;;  %v2770_v22 = vrot.slane %v2769_v41, 4  ;;  %v2774_v24 = vrot.slane %v2772_v19, 5  ;;  %v2778_v31 = vrot.slane %v2776_v7, 4  ;;  %v16101_v41 = vld [vmem:[#allocation2 + $0x4c] sm:$0xf] }
 0x1c9   :  { %v11839_v54 = vcombine.low %v3406_v27, %v3407_v52  ;;  %v1946_v23 = vsel %vm15804_vm2, %v1941_v29, %v1945_v33  ;;  %v2784_v21 = vrot.slane %v2782_v6, 5  ;;  %v1216_v43 = vadd.f32 %v15940_v51, %v15780_v60 }
 0x1ca   :  { %v2506_v50 = vmax.bf16 %v1946_v23, %v16026_v25  ;;  %v2775_v57 = vsel %vm15804_vm2, %v2770_v22, %v2774_v24  ;;  %v2779_v20 = vor.u32 %v2778_v31, %v2774_v24  ;;  %v1208_v55 = vadd.f32 %v15780_v60, %v15945_v63  ;;  %v2574_v63 = vld [vmem:[#allocation2 + $0x4c] sm:$0xf]  ;;  %v2575_v22 = vld [vmem:[#allocation2 + $0x50] sm:$0xf] }
 0x1cb   :  { %4143 = vmatpush1.bf16.msra.mxu1 %v11839_v54  ;;  %v3344_v7 = vmax.bf16 %v2775_v57, %v16054_v44  ;;  %v1366_v27 = vmax.f32 %v1216_v43, 0.0  ;;  %v1949_v17 = vrot.slane %v1947_v48, 4  ;;  %v1953_v6 = vshll.u32 %v16062_v28, 16 }
 0x1cc   :  { %4144 = vmatprep.subr.bf16.mxu1 %v20214_v56  ;;  %v2780_v51 = vrot.slane %v2779_v20, 4  ;;  %v1364_v46 = vmax.f32 %v1208_v55, 0.0  ;;  %v1959_v25 = vrot.slane %v1957_v38, 4  ;;  %v1963_v19 = vshll.u32 %v16091_v42, 16 }
 0x1cd   :  { %v3408_v52 = vmax.bf16 %v3344_v7, %v2505_v32  ;;  %v12137_v45 = vpack.c.bf16 %v1366_v27, %v1365_v36  ;;  %v1950_v29 = vor.u32 %v1949_v17, %v1945_v33  ;;  %v1955_v60 = vrot.slane %v1953_v6, 5 }
 0x1ce   :  { %v2785_v48 = vsel %vm15804_vm2, %v2780_v51, %v2784_v21  ;;  %v12132_v24 = vpack.c.bf16 %v1364_v46, %v1363_v37  ;;  %v1965_v31 = vrot.slane %v1963_v19, 5  ;;  %v1967_v56 = vshrl.u32 %v16091_v42, 16  ;;  %v16112_v46 = vpop.f32.mrb[52].mxu0 }
 0x1cf   :  { %v3345_v54 = vmax.bf16 %v2785_v48, %v16062_v28  ;;  %12325 = vst [vmem:[#allocation2 + $0x88] sm:$0xff] %v12137_v45   ;;  %v1951_v23 = vrot.slane %v1950_v29, 4  ;;  %v1960_v38 = vor.u32 %v1959_v25, %v1955_v60  ;;  %v1977_v43 = vshrl.u32 %v16101_v41, 16  ;;  %v16135_v48 = vld [vmem:[#allocation2 + $0x54] sm:$0xf] }
 0x1d0   :  { %12324 = vst [vmem:[#allocation2 + $0x80] sm:$0xff] %v12132_v24   ;;  %v2788_v36 = vrot.slane %v2786_v4, 4  ;;  %v2792_v33 = vshll.u32 %v2574_v63, 16  ;;  %v2796_v32 = vshrl.u32 %v2574_v63, 16  ;;  %v2802_v57 = vshll.u32 %v2575_v22, 16 }
 0x1d1   :  { %v3409_v20 = vmax.bf16 %v3345_v54, %v2506_v50  ;;  %v1956_v55 = vsel %vm15804_vm2, %v1951_v23, %v1955_v60  ;;  %v1961_v37 = vrot.slane %v1960_v38, 4  ;;  %v2806_v7 = vshrl.u32 %v2575_v22, 16  ;;  %v16119_v50 = vld [vmem:[%s19795_s2] ss:$0 sm:$0xff]  ;;  %v16138_v23 = vld [vmem:[#allocation3] sm:$0xff] }
 0x1d2   :  { %v2507_v27 = vmax.bf16 %v1956_v55, %v16054_v44  ;;  %v2789_v17 = vor.u32 %v2788_v36, %v2784_v21  ;;  %v2794_v6 = vrot.slane %v2792_v33, 5  ;;  %v2798_v51 = vrot.slane %v2796_v32, 4  ;;  %v16125_v44 = vld [vmem:[#allocation2 + $0x50] sm:$0xf]  ;;  %v16127_v21 = vpop.f32.mrb[53].mxu0 }
 0x1d3   :  { %v11840_v25 = vcombine.low %v3408_v52, %v3409_v20  ;;  %v1966_v4 = vsel %vm15804_vm2, %v1961_v37, %v1965_v31  ;;  %v2804_v19 = vrot.slane %v2802_v57, 5  ;;  %v16123_v45 = vadd.f32 %v16119_v50, %v15961_v61  ;;  %v2576_v20 = vld [vmem:[#allocation2 + $0x54] sm:$0xf] }
 0x1d4   :  { %v2508_v29 = vmax.bf16 %v1966_v4, %v16062_v28  ;;  %v2790_v52 = vrot.slane %v2789_v17, 4  ;;  %v2799_v60 = vor.u32 %v2798_v51, %v2794_v6  ;;  %v16132_v63 = vadd.f32 %v16119_v50, %v15971_v26 }
 0x1d5   :  { %4145 = vmatpush1.bf16.msra.mxu1 %v11840_v25  ;;  %v1369_v22 = vmax.f32 %v16123_v45, 0.0  ;;  %v1969_v24 = vrot.slane %v1967_v56, 4  ;;  %v1973_v61 = vshll.u32 %v16101_v41, 16  ;;  %v1979_v54 = vrot.slane %v1977_v43, 4  ;;  %v2577_v43 = vld [vmem:[#allocation2 + $0x58] sm:$0xf] }
 0x1d6   :  { %4146 = vmatprep.subr.bf16.mxu1 %v16138_v23  ;;  %v2795_v28 = vsel %vm15804_vm2, %v2790_v52, %v2794_v6  ;;  %v2800_v38 = vrot.slane %v2799_v60, 4  ;;  %v1367_v26 = vmax.f32 %v16132_v63, 0.0  ;;  %v1983_v36 = vshll.u32 %v16125_v44, 16 }
 0x1d7   :  { %v3346_v33 = vmax.bf16 %v2795_v28, %v16091_v42  ;;  %v1970_v32 = vor.u32 %v1969_v24, %v1965_v31  ;;  %v1975_v57 = vrot.slane %v1973_v61, 5  ;;  %v1987_v56 = vshrl.u32 %v16125_v44, 16 }
 0x1d8   :  { %v2805_v55 = vsel %vm15804_vm2, %v2800_v38, %v2804_v19  ;;  %v1985_v37 = vrot.slane %v1983_v36, 5  ;;  %v1997_v17 = vshrl.u32 %v16135_v48, 16  ;;  %v2808_v6 = vrot.slane %v2806_v7, 4  ;;  %v16153_v38 = vpop.f32.mrb[54].mxu0 }
 0x1d9   :  { %v3347_v51 = vmax.bf16 %v2805_v55, %v16101_v41  ;;  %v3410_v25 = vmax.bf16 %v3346_v33, %v2507_v27  ;;  %v1971_v4 = vrot.slane %v1970_v32, 4  ;;  %v1980_v45 = vor.u32 %v1979_v54, %v1975_v57  ;;  %v16156_v27 = vpop.f32.mrb[55].mxu0  ;;  %v16162_v32 = vld [vmem:[#allocation2 + $0x58] sm:$0xf] }
 0x1da   :  { %v2809_v52 = vor.u32 %v2808_v6, %v2804_v19  ;;  %v2812_v60 = vshll.u32 %v2576_v20, 16  ;;  %v2816_v31 = vshrl.u32 %v2576_v20, 16  ;;  %v2822_v63 = vshll.u32 %v2577_v43, 16 }
 0x1db   :  { %v3411_v24 = vmax.bf16 %v3347_v51, %v2508_v29  ;;  %v1976_v61 = vsel %vm15804_vm2, %v1971_v4, %v1975_v57  ;;  %v1981_v28 = vrot.slane %v1980_v45, 4  ;;  %v2826_v2 = vshrl.u32 %v2577_v43, 16 }
 0x1dc   :  { %v2509_v36 = vmax.bf16 %v1976_v61, %v16091_v42  ;;  %v2810_v7 = vrot.slane %v2809_v52, 4  ;;  %v2814_v1 = vrot.slane %v2812_v60, 5  ;;  %v2818_v55 = vrot.slane %v2816_v31, 4  ;;  %v16172_v52 = vld [vmem:[#allocation2 + $0x5c] sm:$0xf] }
 0x1dd   :  { %v11841_v54 = vcombine.low %v3410_v25, %v3411_v24  ;;  %v1986_v19 = vsel %vm15804_vm2, %v1981_v28, %v1985_v37  ;;  %v2824_v33 = vrot.slane %v2822_v63, 5  ;;  %v1232_v29 = vadd.f32 %v16119_v50, %v15980_v40  ;;  %v2578_v24 = vld [vmem:[#allocation2 + $0x5c] sm:$0xf]  ;;  %v2579_v61 = vld [vmem:[#allocation2 + $0x60] sm:$0xf] }
 0x1de   :  { %v2510_v57 = vmax.bf16 %v1986_v19, %v16101_v41  ;;  %v2815_v42 = vsel %vm15804_vm2, %v2810_v7, %v2814_v1  ;;  %v2819_v20 = vor.u32 %v2818_v55, %v2814_v1  ;;  %v1224_v43 = vadd.f32 %v16119_v50, %v15987_v39 }
 0x1df   :  { %4147 = vmatpush1.bf16.msra.mxu1 %v11841_v54  ;;  %v3348_v6 = vmax.bf16 %v2815_v42, %v16125_v44  ;;  %v1370_v51 = vmax.f32 %v1232_v29, 0.0  ;;  %v1989_v25 = vrot.slane %v1987_v56, 4  ;;  %v1993_v4 = vshll.u32 %v16135_v48, 16 }
 0x1e0   :  { %4148 = vmatprep.subr.bf16.mxu1 %v16138_v23  ;;  %v2820_v40 = vrot.slane %v2819_v20, 4  ;;  %v1368_v45 = vmax.f32 %v1224_v43, 0.0  ;;  %v1999_v41 = vrot.slane %v1997_v17, 4  ;;  %v2003_v60 = vshll.u32 %v16162_v32, 16 }
 0x1e1   :  { %v3412_v1 = vmax.bf16 %v3348_v6, %v2509_v36  ;;  %v12147_v31 = vpack.c.bf16 %v1370_v51, %v1369_v22  ;;  %v1990_v63 = vor.u32 %v1989_v25, %v1985_v37  ;;  %v1995_v39 = vrot.slane %v1993_v4, 5 }
 0x1e2   :  { %v2825_v56 = vsel %vm15804_vm2, %v2820_v40, %v2824_v33  ;;  %v12142_v28 = vpack.c.bf16 %v1368_v45, %v1367_v26  ;;  %v2005_v7 = vrot.slane %v2003_v60, 5  ;;  %v2007_v55 = vshrl.u32 %v16162_v32, 16 }
 0x1e3   :  { %v3349_v54 = vmax.bf16 %v2825_v56, %v16135_v48  ;;  %12327 = vst [vmem:[#allocation2 + $0x98] sm:$0xff] %v12147_v31   ;;  %v1991_v19 = vrot.slane %v1990_v63, 4  ;;  %v2000_v17 = vor.u32 %v1999_v41, %v1995_v39  ;;  %v2017_v29 = vshrl.u32 %v16172_v52, 16 }
 0x1e4   :  { %12326 = vst [vmem:[#allocation2 + $0x90] sm:$0xff] %v12142_v28   ;;  %v2828_v22 = vrot.slane %v2826_v2, 4  ;;  %v2832_v37 = vshll.u32 %v2578_v24, 16  ;;  %v2836_v36 = vshrl.u32 %v2578_v24, 16  ;;  %v2842_v42 = vshll.u32 %v2579_v61, 16 }
 0x1e5   :  { %v3413_v20 = vmax.bf16 %v3349_v54, %v2510_v57  ;;  %v1996_v43 = vsel %vm15804_vm2, %v1991_v19, %v1995_v39  ;;  %v2001_v26 = vrot.slane %v2000_v17, 4  ;;  %v2846_v6 = vshrl.u32 %v2579_v61, 16  ;;  %v16189_v57 = vld [vmem:[#allocation2 + $0x60] sm:$0xf] }
 0x1e6   :  { %v2511_v51 = vmax.bf16 %v1996_v43, %v16125_v44  ;;  %v2829_v25 = vor.u32 %v2828_v22, %v2824_v33  ;;  %v2834_v4 = vrot.slane %v2832_v37, 5  ;;  %v2838_v40 = vrot.slane %v2836_v36, 4  ;;  %v2581_v37 = vld [vmem:[#allocation2 + $0x68] sm:$0xf] }
 0x1e7   :  { %v11842_v45 = vcombine.low %v3412_v1, %v3413_v20  ;;  %v2006_v41 = vsel %vm15804_vm2, %v2001_v26, %v2005_v7  ;;  %v2844_v60 = vrot.slane %v2842_v42, 5  ;;  %v16187_v2 = vadd.f32 %v16119_v50, %v16001_v59  ;;  %v16197_v1 = vld [vmem:[#allocation2 + $0x64] sm:$0xf] }
 0x1e8   :  { %v2512_v31 = vmax.bf16 %v2006_v41, %v16135_v48  ;;  %v2830_v63 = vrot.slane %v2829_v25, 4  ;;  %v2839_v39 = vor.u32 %v2838_v40, %v2834_v4  ;;  %v16194_v44 = vadd.f32 %v16119_v50, %v16006_v58 }
 0x1e9   :  { %4149 = vmatpush1.bf16.msra.mxu1 %v11842_v45  ;;  %v1373_v33 = vmax.f32 %v16187_v2, 0.0  ;;  %v2009_v24 = vrot.slane %v2007_v55, 4  ;;  %v2013_v61 = vshll.u32 %v16172_v52, 16  ;;  %v2019_v59 = vrot.slane %v2017_v29, 4  ;;  %v2580_v55 = vld [vmem:[#allocation2 + $0x64] sm:$0xf] }
 0x1ea   :  { %4150 = vmatprep.subr.bf16.mxu1 %v16138_v23  ;;  %v2835_v48 = vsel %vm15804_vm2, %v2830_v63, %v2834_v4  ;;  %v2840_v56 = vrot.slane %v2839_v39, 4  ;;  %v1371_v28 = vmax.f32 %v16194_v44, 0.0  ;;  %v2023_v58 = vshll.u32 %v16189_v57, 16 }
 0x1eb   :  { %v3350_v54 = vmax.bf16 %v2835_v48, %v16162_v32  ;;  %v2010_v19 = vor.u32 %v2009_v24, %v2005_v7  ;;  %v2015_v17 = vrot.slane %v2013_v61, 5  ;;  %v2027_v22 = vshrl.u32 %v16189_v57, 16  ;;  %v16213_v24 = vpop.f32.mrb[56].mxu0 }
 0x1ec   :  { %v2845_v29 = vsel %vm15804_vm2, %v2840_v56, %v2844_v60  ;;  %v2025_v36 = vrot.slane %v2023_v58, 5  ;;  %v2037_v42 = vshrl.u32 %v16197_v1, 16  ;;  %v2848_v20 = vrot.slane %v2846_v6, 4 }
 0x1ed   :  { %v3351_v43 = vmax.bf16 %v2845_v29, %v16172_v52  ;;  %v3414_v26 = vmax.bf16 %v3350_v54, %v2511_v51  ;;  %v2011_v25 = vrot.slane %v2010_v19, 4  ;;  %v2020_v4 = vor.u32 %v2019_v59, %v2015_v17  ;;  %v16216_v51 = vpop.f32.mrb[57].mxu0  ;;  %v16222_v54 = vld [vmem:[#allocation2 + $0x68] sm:$0xf] }
 0x1ee   :  { %v2849_v40 = vor.u32 %v2848_v20, %v2844_v60  ;;  %v2852_v45 = vshll.u32 %v2580_v55, 16  ;;  %v2856_v7 = vshrl.u32 %v2580_v55, 16  ;;  %v2862_v41 = vshll.u32 %v2581_v37, 16  ;;  %v16224_v19 = vpop.f32.mrb[58].mxu0 }
 0x1ef   :  { %v3415_v2 = vmax.bf16 %v3351_v43, %v2512_v31  ;;  %v2016_v63 = vsel %vm15804_vm2, %v2011_v25, %v2015_v17  ;;  %v2021_v39 = vrot.slane %v2020_v4, 4  ;;  %v2866_v44 = vshrl.u32 %v2581_v37, 16  ;;  %v16231_v29 = vpop.f32.mrb[59].mxu0  ;;  %v16236_v4 = vld [vmem:[#allocation2 + $0x6c] sm:$0xf] }
 0x1f0   :  { %v2513_v61 = vmax.bf16 %v2016_v63, %v16162_v32  ;;  %v2850_v6 = vrot.slane %v2849_v40, 4  ;;  %v2854_v48 = vrot.slane %v2852_v45, 5  ;;  %v2858_v56 = vrot.slane %v2856_v7, 4  ;;  %v2582_v63 = vld [vmem:[#allocation2 + $0x6c] sm:$0xf] }
 0x1f1   :  { %v11843_v59 = vcombine.low %v3414_v26, %v3415_v2  ;;  %v2026_v60 = vsel %vm15804_vm2, %v2021_v39, %v2025_v36  ;;  %v2864_v58 = vrot.slane %v2862_v41, 5  ;;  %v1248_v31 = vadd.f32 %v16119_v50, %v16012_v49  ;;  %v2583_v39 = vld [vmem:[#allocation2 + $0x70] sm:$0xf] }
 0x1f2   :  { %v2514_v17 = vmax.bf16 %v2026_v60, %v16172_v52  ;;  %v2855_v32 = vsel %vm15804_vm2, %v2850_v6, %v2854_v48  ;;  %v2859_v55 = vor.u32 %v2858_v56, %v2854_v48  ;;  %v1240_v37 = vadd.f32 %v16119_v50, %v16019_v34 }
 0x1f3   :  { %4151 = vmatpush1.bf16.msra.mxu1 %v11843_v59  ;;  %v3352_v20 = vmax.bf16 %v2855_v32, %v16189_v57  ;;  %v1374_v43 = vmax.f32 %v1248_v31, 0.0  ;;  %v2029_v49 = vrot.slane %v2027_v22, 4  ;;  %v2033_v26 = vshll.u32 %v16197_v1, 16 }
 0x1f4   :  { %4152 = vmatprep.subr.bf16.mxu1 %v16138_v23  ;;  %v2860_v25 = vrot.slane %v2859_v55, 4  ;;  %v1372_v52 = vmax.f32 %v1240_v37, 0.0  ;;  %v2039_v40 = vrot.slane %v2037_v42, 4  ;;  %v2043_v45 = vshll.u32 %v16222_v54, 16 }
 0x1f5   :  { %v3416_v7 = vmax.bf16 %v3352_v20, %v2513_v61  ;;  %v12157_v34 = vpack.c.bf16 %v1374_v43, %v1373_v33  ;;  %v2030_v41 = vor.u32 %v2029_v49, %v2025_v36  ;;  %v2035_v2 = vrot.slane %v2033_v26, 5 }
 0x1f6   :  { %v2865_v22 = vsel %vm15804_vm2, %v2860_v25, %v2864_v58  ;;  %v12152_v6 = vpack.c.bf16 %v1372_v52, %v1371_v28  ;;  %v2045_v48 = vrot.slane %v2043_v45, 5  ;;  %v2047_v56 = vshrl.u32 %v16222_v54, 16 }
 0x1f7   :  { %v3353_v59 = vmax.bf16 %v2865_v22, %v16197_v1  ;;  %12329 = vst [vmem:[#allocation2 + $0xa8] sm:$0xff] %v12157_v34   ;;  %v2031_v60 = vrot.slane %v2030_v41, 4  ;;  %v2040_v42 = vor.u32 %v2039_v40, %v2035_v2  ;;  %v2057_v31 = vshrl.u32 %v16236_v4, 16 }
 0x1f8   :  { %12328 = vst [vmem:[#allocation2 + $0xa0] sm:$0xff] %v12152_v6   ;;  %v2868_v33 = vrot.slane %v2866_v44, 4  ;;  %v2872_v36 = vshll.u32 %v2582_v63, 16  ;;  %v2876_v61 = vshrl.u32 %v2582_v63, 16  ;;  %v2882_v32 = vshll.u32 %v2583_v39, 16 }
 0x1f9   :  { %v3417_v55 = vmax.bf16 %v3353_v59, %v2514_v17  ;;  %v2036_v37 = vsel %vm15804_vm2, %v2031_v60, %v2035_v2  ;;  %v2041_v28 = vrot.slane %v2040_v42, 4  ;;  %v2886_v20 = vshrl.u32 %v2583_v39, 16  ;;  %v16253_v17 = vld [vmem:[#allocation2 + $0x70] sm:$0xf] }
 0x1fa   :  { %v2515_v43 = vmax.bf16 %v2036_v37, %v16189_v57  ;;  %v2869_v49 = vor.u32 %v2868_v33, %v2864_v58  ;;  %v2874_v26 = vrot.slane %v2872_v36, 5  ;;  %v2878_v25 = vrot.slane %v2876_v61, 4  ;;  %v2585_v36 = vld [vmem:[#allocation2 + $0x78] sm:$0xf] }
 0x1fb   :  { %v11844_v52 = vcombine.low %v3416_v7, %v3417_v55  ;;  %v2046_v40 = vsel %vm15804_vm2, %v2041_v28, %v2045_v48  ;;  %v2884_v45 = vrot.slane %v2882_v32, 5  ;;  %v16251_v44 = vadd.f32 %v16119_v50, %v16036_v18  ;;  %v16261_v7 = vld [vmem:[#allocation2 + $0x74] sm:$0xf] }
 0x1fc   :  { %v2516_v34 = vmax.bf16 %v2046_v40, %v16197_v1  ;;  %v2870_v41 = vrot.slane %v2869_v49, 4  ;;  %v2879_v2 = vor.u32 %v2878_v25, %v2874_v26  ;;  %v16258_v57 = vadd.f32 %v16119_v50, %v16040_v35 }
 0x1fd   :  { %4153 = vmatpush1.bf16.msra.mxu1 %v11844_v52  ;;  %v1377_v58 = vmax.f32 %v16251_v44, 0.0  ;;  %v2049_v63 = vrot.slane %v2047_v56, 4  ;;  %v2053_v39 = vshll.u32 %v16236_v4, 16  ;;  %v2059_v18 = vrot.slane %v2057_v31, 4  ;;  %v2584_v56 = vld [vmem:[#allocation2 + $0x74] sm:$0xf] }
 0x1fe   :  { %4154 = vmatprep.subr.bf16.mxu1 %v16138_v23  ;;  %v2875_v1 = vsel %vm15804_vm2, %v2870_v41, %v2874_v26  ;;  %v2880_v22 = vrot.slane %v2879_v2, 4  ;;  %v1375_v6 = vmax.f32 %v16258_v57, 0.0  ;;  %v2063_v35 = vshll.u32 %v16253_v17, 16 }
 0x1ff   :  { %v3354_v59 = vmax.bf16 %v2875_v1, %v16222_v54  ;;  %v2050_v60 = vor.u32 %v2049_v63, %v2045_v48  ;;  %v2055_v42 = vrot.slane %v2053_v39, 5  ;;  %v2067_v33 = vshrl.u32 %v16253_v17, 16  ;;  %v16277_v63 = vpop.f32.mrb[60].mxu0 }
 0x200   :  { %v2885_v31 = vsel %vm15804_vm2, %v2880_v22, %v2884_v45  ;;  %v2065_v61 = vrot.slane %v2063_v35, 5  ;;  %v2077_v32 = vshrl.u32 %v16261_v7, 16  ;;  %v2888_v55 = vrot.slane %v2886_v20, 4 }
 0x201   :  { %v3355_v37 = vmax.bf16 %v2885_v31, %v16236_v4  ;;  %v3418_v28 = vmax.bf16 %v3354_v59, %v2515_v43  ;;  %v2051_v49 = vrot.slane %v2050_v60, 4  ;;  %v2060_v26 = vor.u32 %v2059_v18, %v2055_v42  ;;  %v16280_v43 = vpop.f32.mrb[61].mxu0  ;;  %v16286_v59 = vld [vmem:[#allocation2 + $0x78] sm:$0xf] }
 0x202   :  { %v2889_v25 = vor.u32 %v2888_v55, %v2884_v45  ;;  %v2892_v52 = vshll.u32 %v2584_v56, 16  ;;  %v2896_v48 = vshrl.u32 %v2584_v56, 16  ;;  %v2902_v40 = vshll.u32 %v2585_v36, 16  ;;  %v16288_v60 = vpop.f32.mrb[62].mxu0 }
 0x203   :  { %v3419_v44 = vmax.bf16 %v3355_v37, %v2516_v34  ;;  %v2056_v41 = vsel %vm15804_vm2, %v2051_v49, %v2055_v42  ;;  %v2061_v2 = vrot.slane %v2060_v26, 4  ;;  %v2906_v57 = vshrl.u32 %v2585_v36, 16  ;;  %v16295_v31 = vpop.f32.mrb[63].mxu0  ;;  %v16300_v26 = vld [vmem:[#allocation2 + $0x7c] sm:$0xf] }
 0x204   :  { %v2517_v39 = vmax.bf16 %v2056_v41, %v16222_v54  ;;  %v2890_v20 = vrot.slane %v2889_v25, 4  ;;  %v2894_v1 = vrot.slane %v2892_v52, 5  ;;  %v2898_v22 = vrot.slane %v2896_v48, 4  ;;  %v2586_v41 = vld [vmem:[#allocation2 + $0x7c] sm:$0xf] }
 0x205   :  { %v11845_v18 = vcombine.low %v3418_v28, %v3419_v44  ;;  %v2066_v45 = vsel %vm15804_vm2, %v2061_v2, %v2065_v61  ;;  %v2904_v35 = vrot.slane %v2902_v40, 5  ;;  %v1264_v34 = vadd.f32 %v16119_v50, %v16043_v30  ;;  %v2587_v2 = vld [vmem:[#allocation2 + $0x80] sm:$0xf] }
 0x206   :  { %v2518_v42 = vmax.bf16 %v2066_v45, %v16236_v4  ;;  %v2895_v54 = vsel %vm15804_vm2, %v2890_v20, %v2894_v1  ;;  %v2899_v56 = vor.u32 %v2898_v22, %v2894_v1  ;;  %v1256_v36 = vadd.f32 %v16119_v50, %v16046_v16 }
 0x207   :  { %4155 = vmatpush1.bf16.msra.mxu1 %v11845_v18  ;;  %v3356_v55 = vmax.bf16 %v2895_v54, %v16253_v17  ;;  %v1378_v37 = vmax.f32 %v1264_v34, 0.0  ;;  %v2069_v30 = vrot.slane %v2067_v33, 4  ;;  %v2073_v28 = vshll.u32 %v16261_v7, 16 }
 0x208   :  { %4156 = vmatprep.subr.bf16.mxu1 %v16138_v23  ;;  %v2900_v49 = vrot.slane %v2899_v56, 4  ;;  %v1376_v4 = vmax.f32 %v1256_v36, 0.0  ;;  %v2079_v25 = vrot.slane %v2077_v32, 4  ;;  %v2083_v52 = vshll.u32 %v16286_v59, 16 }
 0x209   :  { %v3420_v48 = vmax.bf16 %v3356_v55, %v2517_v39  ;;  %v12167_v16 = vpack.c.bf16 %v1378_v37, %v1377_v58  ;;  %v2070_v40 = vor.u32 %v2069_v30, %v2065_v61  ;;  %v2075_v44 = vrot.slane %v2073_v28, 5 }
 0x20a   :  { %v2905_v33 = vsel %vm15804_vm2, %v2900_v49, %v2904_v35  ;;  %v12162_v20 = vpack.c.bf16 %v1376_v4, %v1375_v6  ;;  %v2085_v1 = vrot.slane %v2083_v52, 5  ;;  %v2087_v22 = vshrl.u32 %v16286_v59, 16  ;;  %v16311_v4 = vld [vmem:[#allocation2 + $0x80] sm:$0xf] }
 0x20b   :  { %v3357_v18 = vmax.bf16 %v2905_v33, %v16261_v7  ;;  %12331 = vst [vmem:[#allocation2 + $0xb8] sm:$0xff] %v12167_v16   ;;  %v2071_v45 = vrot.slane %v2070_v40, 4  ;;  %v2080_v32 = vor.u32 %v2079_v25, %v2075_v44  ;;  %v2097_v34 = vshrl.u32 %v16300_v26, 16  ;;  %v16315_v16 = vld [vmem:[#allocation2 + $0x84] sm:$0xf] }
 0x20c   :  { %12330 = vst [vmem:[#allocation2 + $0xb0] sm:$0xff] %v12162_v20   ;;  %v2908_v58 = vrot.slane %v2906_v57, 4  ;;  %v2912_v61 = vshll.u32 %v2586_v41, 16  ;;  %v2916_v39 = vshrl.u32 %v2586_v41, 16  ;;  %v2922_v54 = vshll.u32 %v2587_v2, 16 }
 0x20d   :  { %v3421_v56 = vmax.bf16 %v3357_v18, %v2518_v42  ;;  %v2076_v36 = vsel %vm15804_vm2, %v2071_v45, %v2075_v44  ;;  %v2081_v6 = vrot.slane %v2080_v32, 4  ;;  %v2926_v55 = vshrl.u32 %v2587_v2, 16 }
 0x20e   :  { %v2519_v37 = vmax.bf16 %v2076_v36, %v16253_v17  ;;  %v2909_v30 = vor.u32 %v2908_v58, %v2904_v35  ;;  %v2914_v28 = vrot.slane %v2912_v61, 5  ;;  %v2918_v49 = vrot.slane %v2916_v39, 4 }
 0x20f   :  { %v11846_v25 = vcombine.low %v3420_v48, %v3421_v56  ;;  %v2086_v57 = vsel %vm15804_vm2, %v2081_v6, %v2085_v1  ;;  %v2924_v52 = vrot.slane %v2922_v54, 5  ;;  %v2089_v42 = vrot.slane %v2087_v22, 4  ;;  %v2588_v56 = vld [vmem:[#allocation2 + $0x84] sm:$0xf] }
 0x210   :  { %v2520_v40 = vmax.bf16 %v2086_v57, %v16261_v7  ;;  %v2910_v44 = vrot.slane %v2909_v30, 4  ;;  %v2919_v41 = vor.u32 %v2918_v49, %v2914_v28  ;;  %v2093_v2 = vshll.u32 %v16300_v26, 16  ;;  %v2589_v49 = vld [vmem:[#allocation2 + $0x88] sm:$0xf] }
 0x211   :  { %4157 = vmatpush1.bf16.msra.mxu1 %v11846_v25  ;;  %v2090_v17 = vor.u32 %v2089_v42, %v2085_v1  ;;  %v2099_v35 = vrot.slane %v2097_v34, 4  ;;  %v2103_v33 = vshll.u32 %v16311_v4, 16  ;;  %v2107_v48 = vshrl.u32 %v16311_v4, 16 }
 0x212   :  { %4158 = vmatprep.subr.bf16.mxu1 %v16138_v23  ;;  %v2915_v20 = vsel %vm15804_vm2, %v2910_v44, %v2914_v28  ;;  %v2920_v18 = vrot.slane %v2919_v41, 4  ;;  %v2095_v22 = vrot.slane %v2093_v2, 5  ;;  %v2113_v7 = vshll.u32 %v16315_v16, 16 }
 0x213   :  { %v3358_v45 = vmax.bf16 %v2915_v20, %v16286_v59  ;;  %v2091_v32 = vrot.slane %v2090_v17, 4  ;;  %v2105_v58 = vrot.slane %v2103_v33, 5  ;;  %v2109_v61 = vrot.slane %v2107_v48, 4 }
 0x214   :  { %v2925_v1 = vsel %vm15804_vm2, %v2920_v18, %v2924_v52  ;;  %v2100_v34 = vor.u32 %v2099_v35, %v2095_v22  ;;  %v2115_v39 = vrot.slane %v2113_v7, 5  ;;  %v2117_v54 = vshrl.u32 %v16315_v16, 16 }
 0x215   :  { %v3359_v36 = vmax.bf16 %v2925_v1, %v16300_v26  ;;  %v3422_v6 = vmax.bf16 %v3358_v45, %v2519_v37  ;;  %v2096_v30 = vsel %vm15804_vm2, %v2091_v32, %v2095_v22  ;;  %v2110_v28 = vor.u32 %v2109_v61, %v2105_v58  ;;  %v16336_v32 = vld [vmem:[#allocation2 + $0x88] sm:$0xf] }
 0x216   :  { %v2101_v25 = vrot.slane %v2100_v34, 4  ;;  %v2119_v57 = vrot.slane %v2117_v54, 4  ;;  %v2521_v42 = vmax.bf16 %v2096_v30, %v16286_v59  ;;  %v2928_v44 = vrot.slane %v2926_v55, 4 }
 0x217   :  { %v3423_v41 = vmax.bf16 %v3359_v36, %v2520_v40  ;;  %v2111_v2 = vrot.slane %v2110_v28, 4  ;;  %v2932_v17 = vshll.u32 %v2588_v56, 16  ;;  %v2936_v35 = vshrl.u32 %v2588_v56, 16 }
 0x218   :  { %v2106_v33 = vsel %vm15804_vm2, %v2101_v25, %v2105_v58  ;;  %v2929_v48 = vor.u32 %v2928_v44, %v2924_v52  ;;  %v2942_v20 = vshll.u32 %v2589_v49, 16  ;;  %v2946_v37 = vshrl.u32 %v2589_v49, 16  ;;  %v16342_v58 = vld [vmem:[#allocation2 + $0x8c] sm:$0xf]  ;;  %v2591_v25 = vld [vmem:[#allocation2 + $0x90] sm:$0xf] }
 0x219   :  { %v11847_v18 = vcombine.low %v3422_v6, %v3423_v41  ;;  %v2522_v22 = vmax.bf16 %v2106_v33, %v16300_v26  ;;  %v2934_v7 = vrot.slane %v2932_v17, 5  ;;  %v2938_v45 = vrot.slane %v2936_v35, 4  ;;  %v2590_v6 = vld [vmem:[#allocation2 + $0x8c] sm:$0xf] }
 0x21a   :  { %v2930_v61 = vrot.slane %v2929_v48, 4  ;;  %v2944_v59 = vrot.slane %v2942_v20, 5  ;;  %v2948_v55 = vrot.slane %v2946_v37, 4  ;;  %v1277_v40 = vadd.f32 %v16119_v50, %v16075_v53 }
 0x21b   :  { %4159 = vmatpush1.bf16.msra.mxu1 %v11847_v18  ;;  %v2939_v1 = vor.u32 %v2938_v45, %v2934_v7  ;;  %v1269_v52 = vadd.f32 %v16119_v50, %v16078_v47  ;;  %v2116_v26 = vsel %vm15804_vm2, %v2111_v2, %v2115_v39  ;;  %v2120_v34 = vor.u32 %v2119_v57, %v2115_v39 }
 0x21c   :  { %4160 = vmatprep.subr.bf16.mxu1 %v16138_v23  ;;  %v2935_v54 = vsel %vm15804_vm2, %v2930_v61, %v2934_v7  ;;  %v2949_v56 = vor.u32 %v2948_v55, %v2944_v59  ;;  %v1381_v36 = vmax.f32 %v1277_v40, 0.0  ;;  %v2123_v53 = vshll.u32 %v16336_v32, 16 }
 0x21d   :  { %v2940_v30 = vrot.slane %v2939_v1, 4  ;;  %v3360_v28 = vmax.bf16 %v2935_v54, %v16311_v4  ;;  %v1379_v47 = vmax.f32 %v1269_v52, 0.0  ;;  %v2121_v49 = vrot.slane %v2120_v34, 4 }
 0x21e   :  { %v2950_v44 = vrot.slane %v2949_v56, 4  ;;  %v2125_v41 = vrot.slane %v2123_v53, 5  ;;  %v2127_v39 = vshrl.u32 %v16336_v32, 16  ;;  %v2137_v57 = vshrl.u32 %v16342_v58, 16 }
 0x21f   :  { %v2945_v2 = vsel %vm15804_vm2, %v2940_v30, %v2944_v59  ;;  %v3424_v17 = vmax.bf16 %v3360_v28, %v2521_v42  ;;  %v16356_v35 = vmax.bf16 %v2116_v26, %v16311_v4  ;;  %v2952_v33 = vshll.u32 %v2590_v6, 16  ;;  %v16370_v26 = vld [vmem:[#allocation2 + $0x90] sm:$0xf]  ;;  %v2592_v28 = vld [vmem:[#allocation2 + $0x94] sm:$0xf] }
 0x220   :  { %v3361_v48 = vmax.bf16 %v2945_v2, %v16315_v16  ;;  %v2126_v20 = vsel %vm15804_vm2, %v2121_v49, %v2125_v41  ;;  %v2956_v37 = vshrl.u32 %v2590_v6, 16  ;;  %v2962_v18 = vshll.u32 %v2591_v25, 16 }
 0x221   :  { %v16362_v7 = vmax.bf16 %v2126_v20, %v16315_v16  ;;  %v2954_v45 = vrot.slane %v2952_v33, 5  ;;  %v2966_v61 = vshrl.u32 %v2591_v25, 16  ;;  %v1280_v59 = vadd.f32 %v16119_v50, %v16080_v5 }
 0x222   :  { %v3425_v42 = vmax.bf16 %v3361_v48, %v2522_v22  ;;  %v2958_v55 = vrot.slane %v2956_v37, 4  ;;  %v2964_v4 = vrot.slane %v2962_v18, 5  ;;  %v1272_v40 = vadd.f32 %v16119_v50, %v16084_v3  ;;  %v14443_v22 = vld [vmem:[%s19796_s3] ss:$16 sps:$4 sm:$0xff]   ;;  %v2593_v48 = vld [vmem:[#allocation2 + $0x98] sm:$0xf] }
 0x223   :  { %v2955_v1 = vsel %vm15804_vm2, %v2950_v44, %v2954_v45  ;;  %v1382_v52 = vmax.f32 %v1280_v59, 0.0  ;;  %v2129_v34 = vrot.slane %v2127_v39, 4  ;;  %v2133_v16 = vshll.u32 %v16342_v58, 16  ;;  %v16378_v39 = vld [vmem:[#allocation2 + $0x94] sm:$0xf] }
 0x224   :  { %v11848_v54 = vcombine.low %v3424_v17, %v3425_v42  ;;  %v2959_v56 = vor.u32 %v2958_v55, %v2954_v45  ;;  %v3362_v53 = vmax.bf16 %v2955_v1, %v16336_v32  ;;  %v1380_v5 = vmax.f32 %v1272_v40, 0.0  ;;  %v14446_v17 = vld [vmem:[%s19796_s3 + $0x24] ss:$16 sps:$4 sm:$0xff]  }
 0x225   :  { %v12177_v6 = vpack.c.bf16 %v1382_v52, %v1381_v36  ;;  %v2130_v3 = vor.u32 %v2129_v34, %v2125_v41  ;;  %v2135_v50 = vrot.slane %v2133_v16, 5  ;;  %v2139_v30 = vrot.slane %v2137_v57, 4 }
 0x226   :  { %4161 = vmatpush1.bf16.msra.mxu1 %v11848_v54  ;;  %v2960_v49 = vrot.slane %v2959_v56, 4  ;;  %v3426_v25 = vmax.bf16 %v3362_v53, %v16356_v35  ;;  %v12172_v44 = vpack.c.bf16 %v1380_v5, %v1379_v47  ;;  %v2143_v2 = vshll.u32 %v16370_v26, 16  ;;  %v16398_v56 = vld [vmem:[#allocation2 + $0x98] sm:$0xf] }
 0x227   :  { %4323 = vmatprep.subr.bf16.mxu1 %v16138_v23  ;;  %12333 = vst [vmem:[#allocation2 + $0xc8] sm:$0xff] %v12177_v6   ;;  %v2131_v36 = vrot.slane %v2130_v3, 4  ;;  %v2140_v41 = vor.u32 %v2139_v30, %v2135_v50  ;;  %v2147_v57 = vshrl.u32 %v16370_v26, 16  ;;  %v2157_v33 = vshrl.u32 %v16378_v39, 16  ;;  %v16401_v6 = vld [vmem:[#allocation2 + $0x9c] sm:$0xf] }
 0x228   :  { %v2965_v47 = vsel %vm15804_vm2, %v2960_v49, %v2964_v4  ;;  %12332 = vst [vmem:[#allocation2 + $0xc0] sm:$0xff] %v12172_v44   ;;  %v2145_v35 = vrot.slane %v2143_v2, 5  ;;  %v2968_v20 = vrot.slane %v2966_v61, 4  ;;  %v2972_v37 = vshll.u32 %v2592_v28, 16 }
 0x229   :  { %4163 = vmatmul.mubr.bf16.vlgmr.msra.gmra.mrb[0].mxu1 %v14443_v22  ;;  %v3363_v18 = vmax.bf16 %v2965_v47, %v16342_v58  ;;  %v2136_v45 = vsel %vm15804_vm2, %v2131_v36, %v2135_v50  ;;  %v2141_v59 = vrot.slane %v2140_v41, 4  ;;  %v2976_v42 = vshrl.u32 %v2592_v28, 16  ;;  %v2594_v28 = vld [vmem:[#allocation2 + $0x9c] sm:$0xf]  ;;  %v2595_v47 = vld [vmem:[#allocation2 + $0xa0] sm:$0xf] }
 0x22a   :  { %v16393_v55 = vmax.bf16 %v2136_v45, %v16336_v32  ;;  %v2969_v40 = vor.u32 %v2968_v20, %v2964_v4  ;;  %v2974_v1 = vrot.slane %v2972_v37, 5  ;;  %v2982_v52 = vshll.u32 %v2593_v48, 16  ;;  %4170 = vmatprep.mubr.bf16.mxu1 %v14446_v17 }
 0x22b   :  { %v3427_v34 = vmax.bf16 %v3363_v18, %v16362_v7  ;;  %v2146_v61 = vsel %vm15804_vm2, %v2141_v59, %v2145_v35  ;;  %v2978_v16 = vrot.slane %v2976_v42, 4  ;;  %v2986_v54 = vshrl.u32 %v2593_v48, 16  ;;  %v14448_v7 = vld [vmem:[%s19796_s3 + $0x20] ss:$16 sps:$4 sm:$0xff]  }
 0x22c   :  { %v2526_v53 = vmax.bf16 %v2146_v61, %v16342_v58  ;;  %v2970_v5 = vrot.slane %v2969_v40, 4  ;;  %v2984_v22 = vrot.slane %v2982_v52, 5  ;;  %v2149_v32 = vrot.slane %v2147_v57, 4 }
 0x22d   :  { %v11849_v4 = vcombine.low %v3426_v25, %v3427_v34  ;;  %v2979_v3 = vor.u32 %v2978_v16, %v2974_v1  ;;  %v2153_v50 = vshll.u32 %v16378_v39, 16  ;;  %v2159_v30 = vrot.slane %v2157_v33, 4  ;;  %v14449_v25 = vld [vmem:[%s19796_s3 + $0x44] ss:$16 sps:$4 sm:$0xff]  }
 0x22e   :  { %v2975_v49 = vsel %vm15804_vm2, %v2970_v5, %v2974_v1  ;;  %v2150_v44 = vor.u32 %v2149_v32, %v2145_v35  ;;  %v2163_v58 = vshll.u32 %v16398_v56, 16  ;;  %v2167_v2 = vshrl.u32 %v16398_v56, 16 }
 0x22f   :  { %4324 = vmatpush1.bf16.msra.mxu1 %v11849_v4  ;;  %v2980_v17 = vrot.slane %v2979_v3, 4  ;;  %v3364_v36 = vmax.bf16 %v2975_v49, %v16370_v26  ;;  %v2155_v41 = vrot.slane %v2153_v50, 5  ;;  %v2177_v57 = vshrl.u32 %v16401_v6, 16  ;;  %v14451_v3 = vld [vmem:[%s19796_s3 + $0x40] ss:$16 sps:$4 sm:$0xff]  }
 0x230   :  { %4325 = vmatprep.subr.bf16.mxu1 %v16138_v23  ;;  %v2151_v33 = vrot.slane %v2150_v44, 4  ;;  %v2165_v48 = vrot.slane %v2163_v58, 5  ;;  %v2988_v35 = vrot.slane %v2986_v54, 4  ;;  %v2992_v20 = vshll.u32 %v2594_v28, 16 }
 0x231   :  { %v2985_v37 = vsel %vm15804_vm2, %v2980_v17, %v2984_v22  ;;  %v3428_v18 = vmax.bf16 %v3364_v36, %v16393_v55  ;;  %4171 = vmatmul.mubr.bf16.gmra.mrb[4].mxu1 %v14448_v7  ;;  %v2160_v45 = vor.u32 %v2159_v30, %v2155_v41  ;;  %v2996_v59 = vshrl.u32 %v2594_v28, 16  ;;  %v16429_v30 = vld [vmem:[#allocation2 + $0xa0] sm:$0xf]  ;;  %v16431_v28 = vld [vmem:[#allocation2 + $0xa4] sm:$0xf] }
 0x232   :  { %v3365_v42 = vmax.bf16 %v2985_v37, %v16378_v39  ;;  %v2156_v40 = vsel %vm15804_vm2, %v2151_v33, %v2155_v41  ;;  %v2989_v1 = vor.u32 %v2988_v35, %v2984_v22  ;;  %v2994_v52 = vrot.slane %v2992_v20, 5  ;;  %4178 = vmatprep.mubr.bf16.mxu1 %v14449_v25  ;;  %v2596_v33 = vld [vmem:[#allocation2 + $0xa4] sm:$0xf] }
 0x233   :  { %v2161_v34 = vrot.slane %v2160_v45, 4  ;;  %v2527_v61 = vmax.bf16 %v2156_v40, %v16370_v26  ;;  %v2998_v16 = vrot.slane %v2996_v59, 4  ;;  %v3002_v54 = vshll.u32 %v2595_v47, 16  ;;  %v2597_v45 = vld [vmem:[#allocation2 + $0xa8] sm:$0xf] }
 0x234   :  { %v3429_v5 = vmax.bf16 %v3365_v42, %v2526_v53  ;;  %v2990_v32 = vrot.slane %v2989_v1, 4  ;;  %v3006_v4 = vshrl.u32 %v2595_v47, 16  ;;  %v2169_v55 = vrot.slane %v2167_v2, 4  ;;  %v14452_v2 = vld [vmem:[%s19796_s3 + $0x64] ss:$16 sps:$4 sm:$0xff]  }
 0x235   :  { %v2166_v7 = vsel %vm15804_vm2, %v2161_v34, %v2165_v48  ;;  %v2999_v50 = vor.u32 %v2998_v16, %v2994_v52  ;;  %v3004_v22 = vrot.slane %v3002_v54, 5  ;;  %v2173_v26 = vshll.u32 %v16401_v6, 16 }
 0x236   :  { %v11850_v49 = vcombine.low %v3428_v18, %v3429_v5  ;;  %v2528_v53 = vmax.bf16 %v2166_v7, %v16378_v39  ;;  %v2995_v44 = vsel %vm15804_vm2, %v2990_v32, %v2994_v52  ;;  %v2170_v58 = vor.u32 %v2169_v55, %v2165_v48 }
 0x237   :  { %v3000_v25 = vrot.slane %v2999_v50, 4  ;;  %v3366_v17 = vmax.bf16 %v2995_v44, %v16398_v56  ;;  %v2175_v36 = vrot.slane %v2173_v26, 5  ;;  %v2179_v41 = vrot.slane %v2177_v57, 4  ;;  %v16458_v50 = vld [vmem:[#allocation2 + $0xa8] sm:$0xf] }
 0x238   :  { %4326 = vmatpush1.bf16.msra.mxu1 %v11850_v49  ;;  %v2171_v47 = vrot.slane %v2170_v58, 4  ;;  %v2183_v35 = vshll.u32 %v16429_v30, 16  ;;  %v2187_v39 = vshrl.u32 %v16429_v30, 16  ;;  %v2197_v20 = vshrl.u32 %v16431_v28, 16  ;;  %v14455_v58 = vld [vmem:[%s19796_s3 + $0x84] ss:$16 sps:$4 sm:$0xff]  }
 0x239   :  { %4327 = vmatprep.subr.bf16.mxu1 %v16138_v23  ;;  %v3005_v48 = vsel %vm15804_vm2, %v3000_v25, %v3004_v22  ;;  %v3430_v37 = vmax.bf16 %v3366_v17, %v2527_v61  ;;  %v2180_v18 = vor.u32 %v2179_v41, %v2175_v36  ;;  %v3008_v59 = vrot.slane %v3006_v4, 4  ;;  %4179 = vmatmul.mubr.bf16.gmra.mrb[8].mxu1 %v14451_v3  ;;  %v14454_v4 = vld [vmem:[%s19796_s3 + $0x60] ss:$16 sps:$4 sm:$0xff]   ;;  %v2598_v41 = vld [vmem:[#allocation2 + $0xac] sm:$0xf] }
 0x23a   :  { %v3367_v57 = vmax.bf16 %v3005_v48, %v16401_v6  ;;  %v2176_v42 = vsel %vm15804_vm2, %v2171_v47, %v2175_v36  ;;  %v2185_v40 = vrot.slane %v2183_v35, 5  ;;  %v3012_v1 = vshll.u32 %v2596_v33, 16  ;;  %4186 = vmatprep.mubr.bf16.mxu1 %v14452_v2 }
 0x23b   :  { %v2181_v52 = vrot.slane %v2180_v18, 4  ;;  %v16451_v34 = vmax.bf16 %v2176_v42, %v16398_v56  ;;  %v3009_v23 = vor.u32 %v3008_v59, %v3004_v22  ;;  %v3016_v16 = vshrl.u32 %v2596_v33, 16  ;;  %v2599_v42 = vld [vmem:[#allocation2 + $0xb0] sm:$0xf] }
 0x23c   :  { %v3431_v54 = vmax.bf16 %v3367_v57, %v2528_v53  ;;  %v3014_v61 = vrot.slane %v3012_v1, 5  ;;  %v3022_v5 = vshll.u32 %v2597_v45, 16  ;;  %v3026_v32 = vshrl.u32 %v2597_v45, 16  ;;  %v16461_v53 = vld [vmem:[#allocation2 + $0xac] sm:$0xf] }
 0x23d   :  { %v2186_v55 = vsel %vm15804_vm2, %v2181_v52, %v2185_v40  ;;  %v3010_v3 = vrot.slane %v3009_v23, 4  ;;  %v3018_v7 = vrot.slane %v3016_v16, 4  ;;  %v2189_v26 = vrot.slane %v2187_v39, 4  ;;  %v16472_v39 = vld [vmem:[#allocation3] sm:$0xff] }
 0x23e   :  { %v11851_v56 = vcombine.low %v3430_v37, %v3431_v54  ;;  %v2530_v22 = vmax.bf16 %v2186_v55, %v16401_v6  ;;  %v3024_v49 = vrot.slane %v3022_v5, 5  ;;  %v2193_v44 = vshll.u32 %v16431_v28, 16 }
 0x23f   :  { %v3015_v2 = vsel %vm15804_vm2, %v3010_v3, %v3014_v61  ;;  %v3019_v25 = vor.u32 %v3018_v7, %v3014_v61  ;;  %v2190_v17 = vor.u32 %v2189_v26, %v2185_v40  ;;  %v2199_v36 = vrot.slane %v2197_v20, 4  ;;  %v14457_v7 = vld [vmem:[%s19796_s3 + $0x80] ss:$16 sps:$4 sm:$0xff]  }
 0x240   :  { %4328 = vmatpush1.bf16.msra.mxu1 %v11851_v56  ;;  %v3368_v33 = vmax.bf16 %v3015_v2, %v16429_v30  ;;  %v2195_v6 = vrot.slane %v2193_v44, 5  ;;  %v2203_v47 = vshll.u32 %v16458_v50, 16  ;;  %v2207_v35 = vshrl.u32 %v16458_v50, 16 }
 0x241   :  { %4329 = vmatprep.subr.bf16.mxu1 %v16472_v39  ;;  %v3020_v48 = vrot.slane %v3019_v25, 4  ;;  %v2191_v37 = vrot.slane %v2190_v17, 4  ;;  %v2217_v18 = vshrl.u32 %v16461_v53, 16  ;;  %v3028_v45 = vrot.slane %v3026_v32, 4  ;;  %4187 = vmatmul.mubr.bf16.gmra.mrb[12].mxu1 %v14454_v4 }
 0x242   :  { %v3432_v20 = vmax.bf16 %v3368_v33, %v16451_v34  ;;  %v2200_v59 = vor.u32 %v2199_v36, %v2195_v6  ;;  %v2205_v57 = vrot.slane %v2203_v47, 5  ;;  %v3032_v40 = vshll.u32 %v2598_v41, 16  ;;  %4194 = vmatprep.mubr.bf16.mxu1 %v14455_v58  ;;  %v16507_v36 = vld [vmem:[#allocation2 + $0xb0] sm:$0xf] }
 0x243   :  { %v3025_v1 = vsel %vm15804_vm2, %v3020_v48, %v3024_v49  ;;  %v2196_v52 = vsel %vm15804_vm2, %v2191_v37, %v2195_v6  ;;  %v3029_v23 = vor.u32 %v3028_v45, %v3024_v49  ;;  %v3036_v16 = vshrl.u32 %v2598_v41, 16  ;;  %v16491_v49 = vld [vmem:[%s19795_s2] ss:$0 sm:$0xff]  ;;  %v16509_v41 = vld [vmem:[#allocation2 + $0xb4] sm:$0xf] }
 0x244   :  { %v3369_v54 = vmax.bf16 %v3025_v1, %v16431_v28  ;;  %v2201_v61 = vrot.slane %v2200_v59, 4  ;;  %v2531_v5 = vmax.bf16 %v2196_v52, %v16429_v30  ;;  %v3034_v32 = vrot.slane %v3032_v40, 5  ;;  %v2600_v45 = vld [vmem:[#allocation2 + $0xb4] sm:$0xf]  ;;  %v2601_v1 = vld [vmem:[#allocation2 + $0xb8] sm:$0xf] }
 0x245   :  { %v3030_v34 = vrot.slane %v3029_v23, 4  ;;  %v3038_v4 = vrot.slane %v3036_v16, 4  ;;  %v3042_v55 = vshll.u32 %v2599_v42, 16  ;;  %v3046_v3 = vshrl.u32 %v2599_v42, 16 }
 0x246   :  { %v3433_v26 = vmax.bf16 %v3369_v54, %v2530_v22  ;;  %v2206_v56 = vsel %vm15804_vm2, %v2201_v61, %v2205_v57  ;;  %v16495_v30 = vadd.f32 %v16491_v49, %v16112_v46  ;;  %v16499_v44 = vadd.f32 %v16491_v49, %v16127_v21  ;;  %v14458_v22 = vld [vmem:[%s19796_s3 + $0xa4] ss:$16 sps:$4 sm:$0xff]  }
 0x247   :  { %v2532_v58 = vmax.bf16 %v2206_v56, %v16431_v28  ;;  %v3035_v2 = vsel %vm15804_vm2, %v3030_v34, %v3034_v32  ;;  %v3039_v25 = vor.u32 %v3038_v4, %v3034_v32  ;;  %v3044_v17 = vrot.slane %v3042_v55, 5 }
 0x248   :  { %v11852_v46 = vcombine.low %v3432_v20, %v3433_v26  ;;  %v3370_v33 = vmax.bf16 %v3035_v2, %v16458_v50  ;;  %v1385_v21 = vmax.f32 %v16495_v30, 0.0  ;;  %v1383_v6 = vmax.f32 %v16499_v44, 0.0 }
 0x249   :  { %v3040_v47 = vrot.slane %v3039_v25, 4  ;;  %v2209_v48 = vrot.slane %v2207_v35, 4  ;;  %v2213_v28 = vshll.u32 %v16461_v53, 16  ;;  %v2219_v37 = vrot.slane %v2217_v18, 4  ;;  %4195 = vmatmul.mubr.bf16.gmra.mrb[16].mxu1 %v14457_v7  ;;  %v14460_v7 = vld [vmem:[%s19796_s3 + $0xa0] ss:$16 sps:$4 sm:$0xff]  }
 0x24a   :  { %4330 = vmatpush1.bf16.msra.mxu1 %v11852_v46  ;;  %v3434_v59 = vmax.bf16 %v3370_v33, %v2531_v5  ;;  %v2223_v42 = vshll.u32 %v16507_v36, 16  ;;  %v2227_v40 = vshrl.u32 %v16507_v36, 16  ;;  %v2237_v20 = vshrl.u32 %v16509_v41, 16  ;;  %4202 = vmatprep.mubr.bf16.mxu1 %v14458_v22 }
 0x24b   :  { %4331 = vmatprep.subr.bf16.mxu1 %v16472_v39  ;;  %v3045_v35 = vsel %vm15804_vm2, %v3040_v47, %v3044_v17  ;;  %v2210_v52 = vor.u32 %v2209_v48, %v2205_v57  ;;  %v2215_v23 = vrot.slane %v2213_v28, 5  ;;  %v3048_v18 = vrot.slane %v3046_v3, 4  ;;  %v14461_v57 = vld [vmem:[%s19796_s3 + $0xc4] ss:$16 sps:$4 sm:$0xff]  }
 0x24c   :  { %v3371_v16 = vmax.bf16 %v3045_v35, %v16461_v53  ;;  %v2225_v54 = vrot.slane %v2223_v42, 5  ;;  %v3052_v61 = vshll.u32 %v2600_v45, 16  ;;  %v3056_v5 = vshrl.u32 %v2600_v45, 16  ;;  %v16539_v45 = vld [vmem:[#allocation2 + $0xb8] sm:$0xf] }
 0x24d   :  { %v2211_v32 = vrot.slane %v2210_v52, 4  ;;  %v2220_v34 = vor.u32 %v2219_v37, %v2215_v23  ;;  %v3049_v4 = vor.u32 %v3048_v18, %v3044_v17  ;;  %v3062_v55 = vshll.u32 %v2601_v1, 16  ;;  %v16544_v52 = vld [vmem:[#allocation2 + $0xbc] sm:$0xf] }
 0x24e   :  { %v3435_v26 = vmax.bf16 %v3371_v16, %v2532_v58  ;;  %v3054_v56 = vrot.slane %v3052_v61, 5  ;;  %v3058_v30 = vrot.slane %v3056_v5, 4  ;;  %v3066_v22 = vshrl.u32 %v2601_v1, 16  ;;  %v2602_v5 = vld [vmem:[#allocation2 + $0xbc] sm:$0xf] }
 0x24f   :  { %v2216_v3 = vsel %vm15804_vm2, %v2211_v32, %v2215_v23  ;;  %v2221_v2 = vrot.slane %v2220_v34, 4  ;;  %v3050_v25 = vrot.slane %v3049_v4, 4  ;;  %v3064_v46 = vrot.slane %v3062_v55, 5 }
 0x250   :  { %v11853_v17 = vcombine.low %v3434_v59, %v3435_v26  ;;  %v2533_v33 = vmax.bf16 %v2216_v3, %v16458_v50  ;;  %v3059_v47 = vor.u32 %v3058_v30, %v3054_v56  ;;  %v1296_v58 = vadd.f32 %v16491_v49, %v16153_v38  ;;  %v14464_v30 = vld [vmem:[%s19796_s3 + $0xe4] ss:$16 sps:$4 sm:$0xff]  }
 0x251   :  { %v2226_v48 = vsel %vm15804_vm2, %v2221_v2, %v2225_v54  ;;  %v3055_v28 = vsel %vm15804_vm2, %v3050_v25, %v3054_v56  ;;  %v1288_v37 = vadd.f32 %v16491_v49, %v16156_v27  ;;  %v2229_v42 = vrot.slane %v2227_v40, 4  ;;  %4203 = vmatmul.mubr.bf16.gmra.mrb[20].mxu1 %v14460_v7  ;;  %v2603_v7 = vld [vmem:[#allocation2 + $0xc0] sm:$0xf] }
 0x252   :  { %4332 = vmatpush1.bf16.msra.mxu1 %v11853_v17  ;;  %v2534_v50 = vmax.bf16 %v2226_v48, %v16461_v53  ;;  %v3060_v59 = vrot.slane %v3059_v47, 4  ;;  %v3372_v1 = vmax.bf16 %v3055_v28, %v16507_v36  ;;  %v1386_v38 = vmax.f32 %v1296_v58, 0.0  ;;  %4210 = vmatprep.mubr.bf16.mxu1 %v14461_v57  ;;  %v16566_v47 = vld [vmem:[#allocation2 + $0xc0] sm:$0xf] }
 0x253   :  { %4333 = vmatprep.subr.bf16.mxu1 %v16472_v39  ;;  %v1384_v35 = vmax.f32 %v1288_v37, 0.0  ;;  %v2230_v23 = vor.u32 %v2229_v42, %v2225_v54  ;;  %v2233_v27 = vshll.u32 %v16509_v41, 16  ;;  %v2239_v18 = vrot.slane %v2237_v20, 4  ;;  %v14463_v20 = vld [vmem:[%s19796_s3 + $0xc0] ss:$16 sps:$4 sm:$0xff]  }
 0x254   :  { %v3065_v40 = vsel %vm15804_vm2, %v3060_v59, %v3064_v46  ;;  %v3436_v16 = vmax.bf16 %v3372_v1, %v2533_v33  ;;  %v12187_v61 = vpack.c.bf16 %v1386_v38, %v1385_v21  ;;  %v2243_v53 = vshll.u32 %v16539_v45, 16  ;;  %v16570_v1 = vld [vmem:[#allocation2 + $0xc4] sm:$0xf] }
 0x255   :  { %v3373_v32 = vmax.bf16 %v3065_v40, %v16509_v41  ;;  %v12182_v34 = vpack.c.bf16 %v1384_v35, %v1383_v6  ;;  %v2231_v4 = vrot.slane %v2230_v23, 4  ;;  %v2235_v55 = vrot.slane %v2233_v27, 5 }
 0x256   :  { %12335 = vst [vmem:[#allocation2 + $0xd8] sm:$0xff] %v12187_v61   ;;  %v2245_v54 = vrot.slane %v2243_v53, 5  ;;  %v2247_v26 = vshrl.u32 %v16539_v45, 16  ;;  %v2257_v21 = vshrl.u32 %v16544_v52, 16  ;;  %v3068_v56 = vrot.slane %v3066_v22, 4 }
 0x257   :  { %v3437_v44 = vmax.bf16 %v3373_v32, %v2534_v50  ;;  %12334 = vst [vmem:[#allocation2 + $0xd0] sm:$0xff] %v12182_v34   ;;  %v2236_v6 = vsel %vm15804_vm2, %v2231_v4, %v2235_v55  ;;  %v2240_v57 = vor.u32 %v2239_v18, %v2235_v55  ;;  %v3072_v3 = vshll.u32 %v2602_v5, 16  ;;  %v14466_v61 = vld [vmem:[%s19796_s3 + $0xe0] ss:$16 sps:$4 sm:$0xff]   ;;  %v16585_v4 = vld [vmem:[#allocation2 + $0xc8] sm:$0xf] }
 0x258   :  { %v16564_v2 = vmax.bf16 %v2236_v6, %v16507_v36  ;;  %v3069_v25 = vor.u32 %v3068_v56, %v3064_v46  ;;  %v3076_v17 = vshrl.u32 %v2602_v5, 16  ;;  %v3082_v33 = vshll.u32 %v2603_v7, 16 }
 0x259   :  { %v11854_v22 = vcombine.low %v3436_v16, %v3437_v44  ;;  %v2241_v58 = vrot.slane %v2240_v57, 4  ;;  %v3074_v48 = vrot.slane %v3072_v3, 5  ;;  %v3086_v28 = vshrl.u32 %v2603_v7, 16  ;;  %4211 = vmatmul.mubr.bf16.gmra.mrb[24].mxu1 %v14463_v20  ;;  %v2604_v16 = vld [vmem:[#allocation2 + $0xc4] sm:$0xf] }
 0x25a   :  { %v3070_v37 = vrot.slane %v3069_v25, 4  ;;  %v3078_v42 = vrot.slane %v3076_v17, 4  ;;  %v3084_v50 = vrot.slane %v3082_v33, 5  ;;  %v2249_v59 = vrot.slane %v2247_v26, 4  ;;  %4218 = vmatprep.mubr.bf16.mxu1 %v14464_v30 }
 0x25b   :  { %4334 = vmatpush1.bf16.msra.mxu1 %v11854_v22  ;;  %v2246_v36 = vsel %vm15804_vm2, %v2241_v58, %v2245_v54  ;;  %v2253_v46 = vshll.u32 %v16544_v52, 16  ;;  %v2259_v38 = vrot.slane %v2257_v21, 4  ;;  %v2263_v35 = vshll.u32 %v16566_v47, 16 }
 0x25c   :  { %4335 = vmatprep.subr.bf16.mxu1 %v16472_v39  ;;  %v2536_v23 = vmax.bf16 %v2246_v36, %v16509_v41  ;;  %v3075_v27 = vsel %vm15804_vm2, %v3070_v37, %v3074_v48  ;;  %v3079_v18 = vor.u32 %v3078_v42, %v3074_v48  ;;  %v2250_v40 = vor.u32 %v2249_v59, %v2245_v54  ;;  %v14467_v54 = vld [vmem:[%s19796_s3 + $0x104] ss:$16 sps:$4 sm:$0xff]  }
 0x25d   :  { %v3374_v53 = vmax.bf16 %v3075_v27, %v16539_v45  ;;  %v2255_v5 = vrot.slane %v2253_v46, 5  ;;  %v16582_v32 = vrot.slane %v2263_v35, 5  ;;  %v2267_v34 = vshrl.u32 %v16566_v47, 16  ;;  %v16612_v35 = vld [vmem:[#allocation2 + $0xc8] sm:$0xf] }
 0x25e   :  { %v3080_v41 = vrot.slane %v3079_v18, 4  ;;  %v2251_v55 = vrot.slane %v2250_v40, 4  ;;  %v2277_v7 = vshrl.u32 %v16570_v1, 16  ;;  %v3088_v20 = vrot.slane %v3086_v28, 4 }
 0x25f   :  { %v3438_v26 = vmax.bf16 %v3374_v53, %v16564_v2  ;;  %v2260_v21 = vor.u32 %v2259_v38, %v2255_v5  ;;  %v3092_v56 = vshll.u32 %v2604_v16, 16  ;;  %v3096_v30 = vshrl.u32 %v2604_v16, 16 }
 0x260   :  { %v3085_v44 = vsel %vm15804_vm2, %v3080_v41, %v3084_v50  ;;  %v2256_v6 = vsel %vm15804_vm2, %v2251_v55, %v2255_v5  ;;  %v3089_v57 = vor.u32 %v3088_v20, %v3084_v50  ;;  %v3102_v3 = vshll.u32 %v16585_v4, 16  ;;  %v16623_v5 = vld [vmem:[#allocation2 + $0xcc] sm:$0xf] }
 0x261   :  { %v3375_v25 = vmax.bf16 %v3085_v44, %v16544_v52  ;;  %v2261_v17 = vrot.slane %v2260_v21, 4  ;;  %v2537_v33 = vmax.bf16 %v2256_v6, %v16539_v45  ;;  %v3094_v22 = vrot.slane %v3092_v56, 5  ;;  %4219 = vmatmul.mubr.bf16.gmra.mrb[28].mxu1 %v14466_v61  ;;  %v2607_v6 = vld [vmem:[#allocation2 + $0xd0] sm:$0xf] }
 0x262   :  { %v3090_v2 = vrot.slane %v3089_v57, 4  ;;  %v3098_v58 = vrot.slane %v3096_v30, 4  ;;  %v3104_v48 = vrot.slane %v3102_v3, 5  ;;  %v3106_v28 = vshrl.u32 %v16585_v4, 16  ;;  %4226 = vmatprep.mubr.bf16.mxu1 %v14467_v54 }
 0x263   :  { %v3439_v37 = vmax.bf16 %v3375_v25, %v2536_v23  ;;  %v2266_v42 = vsel %vm15804_vm2, %v2261_v17, %v16582_v32  ;;  %v1309_v50 = vadd.f32 %v16491_v49, %v16213_v24  ;;  %v1301_v59 = vadd.f32 %v16491_v49, %v16216_v51  ;;  %v14469_v24 = vld [vmem:[%s19796_s3 + $0x100] ss:$16 sps:$4 sm:$0xff]  }
 0x264   :  { %v2538_v45 = vmax.bf16 %v2266_v42, %v16544_v52  ;;  %v3095_v36 = vsel %vm15804_vm2, %v3090_v2, %v3094_v22  ;;  %v3099_v46 = vor.u32 %v3098_v58, %v3094_v22  ;;  %v1312_v38 = vadd.f32 %v16491_v49, %v16224_v19  ;;  %v14470_v19 = vld [vmem:[%s19796_s3 + $0x124] ss:$16 sps:$4 sm:$0xff]  }
 0x265   :  { %v11855_v23 = vcombine.low %v3438_v26, %v3439_v37  ;;  %v3376_v27 = vmax.bf16 %v3095_v36, %v16566_v47  ;;  %v1389_v18 = vmax.f32 %v1309_v50, 0.0  ;;  %v1387_v40 = vmax.f32 %v1301_v59, 0.0  ;;  %v2606_v26 = vld [vmem:[#allocation2 + $0xcc] sm:$0xf]  ;;  %v16636_v50 = vld [vmem:[#allocation2 + $0xd0] sm:$0xf] }
 0x266   :  { %v3100_v51 = vrot.slane %v3099_v46, 4  ;;  %v1390_v52 = vmax.f32 %v1312_v38, 0.0  ;;  %v1304_v16 = vadd.f32 %v16491_v49, %v16231_v29  ;;  %v2269_v61 = vrot.slane %v2267_v34, 4 }
 0x267   :  { %4336 = vmatpush1.bf16.msra.mxu1 %v11855_v23  ;;  %v3440_v53 = vmax.bf16 %v3376_v27, %v2537_v33  ;;  %v2273_v4 = vshll.u32 %v16570_v1, 16  ;;  %v2279_v41 = vrot.slane %v2277_v7, 4  ;;  %v2283_v55 = vshll.u32 %v16612_v35, 16 }
 0x268   :  { %4337 = vmatprep.subr.bf16.mxu1 %v16472_v39  ;;  %v3105_v20 = vsel %vm15804_vm2, %v3100_v51, %v3104_v48  ;;  %v12197_v29 = vpack.c.bf16 %v1390_v52, %v1389_v18  ;;  %v1388_v34 = vmax.f32 %v1304_v16, 0.0  ;;  %v2270_v54 = vor.u32 %v2269_v61, %v16582_v32 }
 0x269   :  { %v3377_v21 = vmax.bf16 %v3105_v20, %v16570_v1  ;;  %v2275_v56 = vrot.slane %v2273_v4, 5  ;;  %v2285_v30 = vrot.slane %v2283_v55, 5  ;;  %v2287_v44 = vshrl.u32 %v16612_v35, 16  ;;  %4227 = vmatmul.mubr.bf16.gmra.mrb[32].mxu1 %v14469_v24  ;;  %v16647_v24 = vld [vmem:[#allocation2 + $0xd4] sm:$0xf] }
 0x26a   :  { %12337 = vst [vmem:[#allocation2 + $0xe8] sm:$0xff] %v12197_v29   ;;  %v12192_v7 = vpack.c.bf16 %v1388_v34, %v1387_v40  ;;  %v2271_v57 = vrot.slane %v2270_v54, 4  ;;  %v2297_v3 = vshrl.u32 %v16623_v5, 16  ;;  %v3108_v25 = vrot.slane %v3106_v28, 4  ;;  %4234 = vmatprep.mubr.bf16.mxu1 %v14470_v19  ;;  %v14472_v28 = vld [vmem:[%s19796_s3 + $0x120] ss:$16 sps:$4 sm:$0xff]  }
 0x26b   :  { %v3441_v17 = vmax.bf16 %v3377_v21, %v2538_v45  ;;  %v2280_v33 = vor.u32 %v2279_v41, %v2275_v56  ;;  %v3112_v22 = vshll.u32 %v2606_v26, 16  ;;  %v3116_v32 = vshrl.u32 %v2606_v26, 16  ;;  %v2608_v4 = vld [vmem:[#allocation2 + $0xd4] sm:$0xf]  ;;  %v16659_v34 = vld [vmem:[#allocation2 + $0xd8] sm:$0xf] }
 0x26c   :  { %12336 = vst [vmem:[#allocation2 + $0xe0] sm:$0xff] %v12192_v7   ;;  %v2276_v2 = vsel %vm15804_vm2, %v2271_v57, %v2275_v56  ;;  %v3109_v58 = vor.u32 %v3108_v25, %v3104_v48  ;;  %v3122_v37 = vshll.u32 %v2607_v6, 16  ;;  %v3126_v42 = vshrl.u32 %v2607_v6, 16  ;;  %v14473_v48 = vld [vmem:[%s19796_s3 + $0x144] ss:$16 sps:$4 sm:$0xff]  }
 0x26d   :  { %v11856_v59 = vcombine.low %v3440_v53, %v3441_v17  ;;  %v2281_v36 = vrot.slane %v2280_v33, 4  ;;  %v2539_v46 = vmax.bf16 %v2276_v2, %v16566_v47  ;;  %v3114_v38 = vrot.slane %v3112_v22, 5  ;;  %v14475_v2 = vld [vmem:[%s19796_s3 + $0x140] ss:$16 sps:$4 sm:$0xff]  }
 0x26e   :  { %v3110_v45 = vrot.slane %v3109_v58, 4  ;;  %v3118_v23 = vrot.slane %v3116_v32, 4  ;;  %v3124_v27 = vrot.slane %v3122_v37, 5  ;;  %v2289_v18 = vrot.slane %v2287_v44, 4 }
 0x26f   :  { %4338 = vmatpush1.bf16.msra.mxu1 %v11856_v59  ;;  %v2286_v40 = vsel %vm15804_vm2, %v2281_v36, %v2285_v30  ;;  %v2293_v47 = vshll.u32 %v16623_v5, 16  ;;  %v2299_v51 = vrot.slane %v2297_v3, 4  ;;  %v2303_v52 = vshll.u32 %v16636_v50, 16  ;;  %v14476_v36 = vld [vmem:[%s19796_s3 + $0x164] ss:$16 sps:$4 sm:$0xff]  }
 0x270   :  { %4339 = vmatprep.subr.bf16.mxu1 %v16472_v39  ;;  %v2540_v16 = vmax.bf16 %v2286_v40, %v16570_v1  ;;  %v3115_v61 = vsel %vm15804_vm2, %v3110_v45, %v3114_v38  ;;  %v3119_v19 = vor.u32 %v3118_v23, %v3114_v38  ;;  %v2290_v53 = vor.u32 %v2289_v18, %v2285_v30 }
 0x271   :  { %v3378_v41 = vmax.bf16 %v3115_v61, %v16612_v35  ;;  %v2295_v55 = vrot.slane %v2293_v47, 5  ;;  %v16656_v20 = vrot.slane %v2303_v52, 5  ;;  %v2307_v29 = vshrl.u32 %v16636_v50, 16  ;;  %4235 = vmatmul.mubr.bf16.gmra.mrb[36].mxu1 %v14472_v28 }
 0x272   :  { %v3120_v54 = vrot.slane %v3119_v19, 4  ;;  %v2291_v26 = vrot.slane %v2290_v53, 4  ;;  %v2317_v1 = vshrl.u32 %v16647_v24, 16  ;;  %v3128_v21 = vrot.slane %v3126_v42, 4  ;;  %4242 = vmatprep.mubr.bf16.mxu1 %v14473_v48  ;;  %v16688_v48 = vld [vmem:[#allocation2 + $0xd8] sm:$0xf] }
 0x273   :  { %v3442_v56 = vmax.bf16 %v3378_v41, %v2539_v46  ;;  %v2300_v44 = vor.u32 %v2299_v51, %v2295_v55  ;;  %v3132_v30 = vshll.u32 %v2608_v4, 16  ;;  %v3136_v6 = vshrl.u32 %v2608_v4, 16  ;;  %v16693_v19 = vld [vmem:[#allocation2 + $0xdc] sm:$0xf] }
 0x274   :  { %v3125_v7 = vsel %vm15804_vm2, %v3120_v54, %v3124_v27  ;;  %v2296_v57 = vsel %vm15804_vm2, %v2291_v26, %v2295_v55  ;;  %v3129_v3 = vor.u32 %v3128_v21, %v3124_v27  ;;  %v3142_v25 = vshll.u32 %v16659_v34, 16 }
 0x275   :  { %v3379_v17 = vmax.bf16 %v3125_v7, %v16623_v5  ;;  %v2301_v33 = vrot.slane %v2300_v44, 4  ;;  %v2541_v22 = vmax.bf16 %v2296_v57, %v16612_v35  ;;  %v3134_v32 = vrot.slane %v3132_v30, 5 }
 0x276   :  { %v3130_v58 = vrot.slane %v3129_v3, 4  ;;  %v3138_v37 = vrot.slane %v3136_v6, 4  ;;  %v3144_v42 = vrot.slane %v3142_v25, 5  ;;  %v3146_v59 = vshrl.u32 %v16659_v34, 16 }
 0x277   :  { %v3443_v46 = vmax.bf16 %v3379_v17, %v2540_v16  ;;  %v2306_v38 = vsel %vm15804_vm2, %v2301_v33, %v16656_v20  ;;  %v1325_v35 = vadd.f32 %v16491_v49, %v16277_v63  ;;  %v1317_v28 = vadd.f32 %v16491_v49, %v16280_v43 }
 0x278   :  { %v2542_v45 = vmax.bf16 %v2306_v38, %v16623_v5  ;;  %v3135_v23 = vsel %vm15804_vm2, %v3130_v58, %v3134_v32  ;;  %v3139_v27 = vor.u32 %v3138_v37, %v3134_v32  ;;  %v1328_v18 = vadd.f32 %v16491_v49, %v16288_v60  ;;  %v16712_v58 = vld [vmem:[#allocation2 + $0xe0] sm:$0xf] }
 0x279   :  { %v11857_v40 = vcombine.low %v3442_v56, %v3443_v46  ;;  %v3380_v47 = vmax.bf16 %v3135_v23, %v16636_v50  ;;  %v1393_v51 = vmax.f32 %v1325_v35, 0.0  ;;  %v1391_v52 = vmax.f32 %v1317_v28, 0.0  ;;  %4243 = vmatmul.mubr.bf16.gmra.mrb[40].mxu1 %v14475_v2  ;;  %v2611_v56 = vld [vmem:[#allocation2 + $0xe0] sm:$0xf] }
 0x27a   :  { %v3140_v63 = vrot.slane %v3139_v27, 4  ;;  %v1394_v16 = vmax.f32 %v1328_v18, 0.0  ;;  %v1320_v43 = vadd.f32 %v16491_v49, %v16295_v31  ;;  %v2309_v5 = vrot.slane %v2307_v29, 4  ;;  %4250 = vmatprep.mubr.bf16.mxu1 %v14476_v36  ;;  %v2610_v49 = vld [vmem:[#allocation2 + $0xdc] sm:$0xf] }
 0x27b   :  { %4340 = vmatpush1.bf16.msra.mxu1 %v11857_v40  ;;  %v3444_v61 = vmax.bf16 %v3380_v47, %v2541_v22  ;;  %v2313_v60 = vshll.u32 %v16647_v24, 16  ;;  %v2319_v53 = vrot.slane %v2317_v1, 4  ;;  %v2323_v4 = vshll.u32 %v16688_v48, 16  ;;  %v14478_v29 = vld [vmem:[%s19796_s3 + $0x160] ss:$16 sps:$4 sm:$0xff]  }
 0x27c   :  { %4341 = vmatprep.subr.bf16.mxu1 %v16472_v39  ;;  %v3145_v41 = vsel %vm15804_vm2, %v3140_v63, %v3144_v42  ;;  %v12207_v55 = vpack.c.bf16 %v1394_v16, %v1393_v51  ;;  %v1392_v34 = vmax.f32 %v1320_v43, 0.0  ;;  %v2310_v31 = vor.u32 %v2309_v5, %v16656_v20  ;;  %v14479_v20 = vld [vmem:[%s19796_s3 + $0x184] ss:$16 sps:$4 sm:$0xff]   ;;  %v14481_v16 = vld [vmem:[%s19796_s3 + $0x180] ss:$16 sps:$4 sm:$0xff]  }
 0x27d   :  { %v3381_v54 = vmax.bf16 %v3145_v41, %v16647_v24  ;;  %v2315_v26 = vrot.slane %v2313_v60, 5  ;;  %v2325_v1 = vrot.slane %v2323_v4, 5  ;;  %v2327_v21 = vshrl.u32 %v16688_v48, 16  ;;  %v2612_v63 = vld [vmem:[#allocation2 + $0xe4] sm:$0xf] }
 0x27e   :  { %12339 = vst [vmem:[#allocation2 + $0xf8] sm:$0xff] %v12207_v55   ;;  %v12202_v44 = vpack.c.bf16 %v1392_v34, %v1391_v52  ;;  %v2311_v30 = vrot.slane %v2310_v31, 4  ;;  %v2337_v6 = vshrl.u32 %v16693_v19, 16  ;;  %v3148_v7 = vrot.slane %v3146_v59, 4  ;;  %v14482_v34 = vld [vmem:[%s19796_s3 + $0x1a4] ss:$16 sps:$4 sm:$0xff]  }
 0x27f   :  { %v3445_v57 = vmax.bf16 %v3381_v54, %v2542_v45  ;;  %v2320_v3 = vor.u32 %v2319_v53, %v2315_v26  ;;  %v3152_v25 = vshll.u32 %v2610_v49, 16  ;;  %v3156_v17 = vshrl.u32 %v2610_v49, 16  ;;  %v2613_v53 = vld [vmem:[#allocation2 + $0xe8] sm:$0xf] }
 0x280   :  { %12338 = vst [vmem:[#allocation2 + $0xf0] sm:$0xff] %v12202_v44   ;;  %v2316_v33 = vsel %vm15804_vm2, %v2311_v30, %v2315_v26  ;;  %v3149_v22 = vor.u32 %v3148_v7, %v3144_v42  ;;  %v3162_v32 = vshll.u32 %v2611_v56, 16  ;;  %v3166_v2 = vshrl.u32 %v2611_v56, 16  ;;  %v16717_v42 = vld [vmem:[#allocation2 + $0xe4] sm:$0xf] }
 0x281   :  { %v11858_v37 = vcombine.low %v3444_v61, %v3445_v57  ;;  %v2321_v36 = vrot.slane %v2320_v3, 4  ;;  %v2543_v59 = vmax.bf16 %v2316_v33, %v16636_v50  ;;  %v3154_v46 = vrot.slane %v3152_v25, 5  ;;  %4251 = vmatmul.mubr.bf16.gmra.mrb[44].mxu1 %v14478_v29 }
 0x282   :  { %v3150_v38 = vrot.slane %v3149_v22, 4  ;;  %v3158_v35 = vrot.slane %v3156_v17, 4  ;;  %v3164_v28 = vrot.slane %v3162_v32, 5  ;;  %v2329_v45 = vrot.slane %v2327_v21, 4  ;;  %4258 = vmatprep.mubr.bf16.mxu1 %v14479_v20  ;;  %v16742_v22 = vld [vmem:[#allocation2 + $0xe8] sm:$0xf] }
 0x283   :  { %4342 = vmatpush1.bf16.msra.mxu1 %v11858_v37  ;;  %v2326_v23 = vsel %vm15804_vm2, %v2321_v36, %v2325_v1  ;;  %v2333_v27 = vshll.u32 %v16693_v19, 16  ;;  %v2339_v18 = vrot.slane %v2337_v6, 4  ;;  %v2343_v40 = vshll.u32 %v16712_v58, 16  ;;  %v16744_v32 = vld [vmem:[#allocation2 + $0xec] sm:$0xf] }
 0x284   :  { %4343 = vmatprep.subr.bf16.mxu1 %v16472_v39  ;;  %v2544_v50 = vmax.bf16 %v2326_v23, %v16647_v24  ;;  %v3155_v47 = vsel %vm15804_vm2, %v3150_v38, %v3154_v46  ;;  %v3159_v51 = vor.u32 %v3158_v35, %v3154_v46  ;;  %v2330_v52 = vor.u32 %v2329_v45, %v2325_v1  ;;  %v2614_v23 = vld [vmem:[#allocation2 + $0xec] sm:$0xf] }
 0x285   :  { %v3382_v43 = vmax.bf16 %v3155_v47, %v16688_v48  ;;  %v2335_v5 = vrot.slane %v2333_v27, 5  ;;  %v2345_v61 = vrot.slane %v2343_v40, 5  ;;  %v2347_v60 = vshrl.u32 %v16712_v58, 16  ;;  %v14484_v27 = vld [vmem:[%s19796_s3 + $0x1a0] ss:$16 sps:$4 sm:$0xff]  }
 0x286   :  { %v3160_v4 = vrot.slane %v3159_v51, 4  ;;  %v2331_v41 = vrot.slane %v2330_v52, 4  ;;  %v2357_v24 = vshrl.u32 %v16717_v42, 16  ;;  %v3168_v55 = vrot.slane %v3166_v2, 4  ;;  %v14485_v47 = vld [vmem:[%s19796_s3 + $0x1c4] ss:$16 sps:$4 sm:$0xff]  }
 0x287   :  { %v3446_v31 = vmax.bf16 %v3382_v43, %v2543_v59  ;;  %v2340_v49 = vor.u32 %v2339_v18, %v2335_v5  ;;  %v3172_v29 = vshll.u32 %v2612_v63, 16  ;;  %v3176_v54 = vshrl.u32 %v2612_v63, 16 }
 0x288   :  { %v3165_v26 = vsel %vm15804_vm2, %v3160_v4, %v3164_v28  ;;  %v2336_v1 = vsel %vm15804_vm2, %v2331_v41, %v2335_v5  ;;  %v3169_v21 = vor.u32 %v3168_v55, %v3164_v28  ;;  %v3182_v56 = vshll.u32 %v2613_v53, 16 }
 0x289   :  { %v3383_v44 = vmax.bf16 %v3165_v26, %v16693_v19  ;;  %v2341_v30 = vrot.slane %v2340_v49, 4  ;;  %v2545_v6 = vmax.bf16 %v2336_v1, %v16688_v48  ;;  %v3174_v7 = vrot.slane %v3172_v29, 5  ;;  %4259 = vmatmul.mubr.bf16.gmra.mrb[48].mxu1 %v14481_v16  ;;  %v2615_v16 = vld [vmem:[#allocation2 + $0xf0] sm:$0xf] }
 0x28a   :  { %v3170_v20 = vrot.slane %v3169_v21, 4  ;;  %v3178_v57 = vrot.slane %v3176_v54, 4  ;;  %v3184_v3 = vrot.slane %v3182_v56, 5  ;;  %v3186_v25 = vshrl.u32 %v2613_v53, 16  ;;  %4266 = vmatprep.mubr.bf16.mxu1 %v14482_v34  ;;  %v16769_v56 = vld [vmem:[#allocation2 + $0xf0] sm:$0xf] }
 0x28b   :  { %v3447_v17 = vmax.bf16 %v3383_v44, %v2544_v50  ;;  %v2346_v33 = vsel %vm15804_vm2, %v2341_v30, %v2345_v61  ;;  %v2349_v2 = vrot.slane %v2347_v60, 4  ;;  %v2353_v37 = vshll.u32 %v16717_v42, 16 }
 0x28c   :  { %v2546_v48 = vmax.bf16 %v2346_v33, %v16693_v19  ;;  %v3175_v36 = vsel %vm15804_vm2, %v3170_v20, %v3174_v7  ;;  %v3179_v59 = vor.u32 %v3178_v57, %v3174_v7  ;;  %v2359_v46 = vrot.slane %v2357_v24, 4  ;;  %v16772_v7 = vld [vmem:[#allocation2 + $0xf4] sm:$0xf] }
 0x28d   :  { %v11859_v38 = vcombine.low %v3446_v31, %v3447_v17  ;;  %v3384_v35 = vmax.bf16 %v3175_v36, %v16712_v58  ;;  %v2350_v28 = vor.u32 %v2349_v2, %v2345_v61  ;;  %v2355_v45 = vrot.slane %v2353_v37, 5  ;;  %v14487_v17 = vld [vmem:[%s19796_s3 + $0x1c0] ss:$16 sps:$4 sm:$0xff]   ;;  %v14488_v36 = vld [vmem:[%s19796_s3 + $0x1e4] ss:$16 sps:$4 sm:$0xff]  }
 0x28e   :  { %v3180_v18 = vrot.slane %v3179_v59, 4  ;;  %v2363_v40 = vshll.u32 %v16742_v22, 16  ;;  %v2367_v19 = vshrl.u32 %v16742_v22, 16  ;;  %v2377_v50 = vshrl.u32 %v16744_v32, 16 }
 0x28f   :  { %4344 = vmatpush1.bf16.msra.mxu1 %v11859_v38  ;;  %v3448_v51 = vmax.bf16 %v3384_v35, %v2545_v6  ;;  %v2351_v52 = vrot.slane %v2350_v28, 4  ;;  %v2360_v63 = vor.u32 %v2359_v46, %v2355_v45  ;;  %v3188_v43 = vrot.slane %v3186_v25, 4  ;;  %v2617_v35 = vld [vmem:[#allocation2 + $0xf8] sm:$0xf] }
 0x290   :  { %4345 = vmatprep.subr.bf16.mxu1 %v16472_v39  ;;  %v3185_v5 = vsel %vm15804_vm2, %v3180_v18, %v3184_v3  ;;  %v2365_v61 = vrot.slane %v2363_v40, 5  ;;  %v3192_v60 = vshll.u32 %v2614_v23, 16  ;;  %v3196_v53 = vshrl.u32 %v2614_v23, 16 }
 0x291   :  { %v3385_v4 = vmax.bf16 %v3185_v5, %v16717_v42  ;;  %v2356_v41 = vsel %vm15804_vm2, %v2351_v52, %v2355_v45  ;;  %v2361_v24 = vrot.slane %v2360_v63, 4  ;;  %v3189_v55 = vor.u32 %v3188_v43, %v3184_v3  ;;  %4267 = vmatmul.mubr.bf16.gmra.mrb[52].mxu1 %v14484_v27 }
 0x292   :  { %v2547_v34 = vmax.bf16 %v2356_v41, %v16712_v58  ;;  %v3194_v31 = vrot.slane %v3192_v60, 5  ;;  %v3198_v49 = vrot.slane %v3196_v53, 4  ;;  %v3202_v29 = vshll.u32 %v2615_v16, 16  ;;  %4274 = vmatprep.mubr.bf16.mxu1 %v14485_v47 }
 0x293   :  { %v3449_v54 = vmax.bf16 %v3385_v4, %v2546_v48  ;;  %v2366_v26 = vsel %vm15804_vm2, %v2361_v24, %v2365_v61  ;;  %v3190_v1 = vrot.slane %v3189_v55, 4  ;;  %v3206_v21 = vshrl.u32 %v2615_v16, 16  ;;  %v2616_v48 = vld [vmem:[#allocation2 + $0xf4] sm:$0xf]  ;;  %v16794_v24 = vld [vmem:[#allocation2 + $0xf8] sm:$0xf] }
 0x294   :  { %v2548_v44 = vmax.bf16 %v2366_v26, %v16717_v42  ;;  %v3199_v30 = vor.u32 %v3198_v49, %v3194_v31  ;;  %v3204_v6 = vrot.slane %v3202_v29, 5  ;;  %v2369_v20 = vrot.slane %v2367_v19, 4  ;;  %v16798_v49 = vld [vmem:[#allocation2 + $0xfc] sm:$0xf] }
 0x295   :  { %v11860_v58 = vcombine.low %v3448_v51, %v3449_v54  ;;  %v3195_v57 = vsel %vm15804_vm2, %v3190_v1, %v3194_v31  ;;  %v2373_v3 = vshll.u32 %v16744_v32, 16  ;;  %v2379_v25 = vrot.slane %v2377_v50, 4 }
 0x296   :  { %v3200_v33 = vrot.slane %v3199_v30, 4  ;;  %v3386_v2 = vmax.bf16 %v3195_v57, %v16742_v22  ;;  %v2370_v42 = vor.u32 %v2369_v20, %v2365_v61  ;;  %v2383_v37 = vshll.u32 %v16769_v56, 16  ;;  %v2618_v30 = vld [vmem:[#allocation2 + $0xfc] sm:$0xf] }
 0x297   :  { %4346 = vmatpush1.bf16.msra.mxu1 %v11860_v58  ;;  %v2375_v59 = vrot.slane %v2373_v3, 5  ;;  %v2387_v46 = vshrl.u32 %v16769_v56, 16  ;;  %v2397_v38 = vshrl.u32 %v16772_v7, 16  ;;  %v3208_v28 = vrot.slane %v3206_v21, 4 }
 0x298   :  { %4347 = vmatprep.subr.bf16.mxu1 %v16472_v39  ;;  %v3205_v45 = vsel %vm15804_vm2, %v3200_v33, %v3204_v6  ;;  %v3450_v23 = vmax.bf16 %v3386_v2, %v2547_v34  ;;  %v2371_v27 = vrot.slane %v2370_v42, 4  ;;  %v2385_v18 = vrot.slane %v2383_v37, 5 }
 0x299   :  { %v3387_v40 = vmax.bf16 %v3205_v45, %v16744_v32  ;;  %v2380_v19 = vor.u32 %v2379_v25, %v2375_v59  ;;  %v3209_v50 = vor.u32 %v3208_v28, %v3204_v6  ;;  %v3212_v47 = vshll.u32 %v2616_v48, 16  ;;  %4275 = vmatmul.mubr.bf16.gmra.mrb[56].mxu1 %v14487_v17  ;;  %v14491_v6 = vld [vmem:[%s19796_s3 + $0x204] ss:$16 sps:$4 sm:$0xff]  }
 0x29a   :  { %v2376_v51 = vsel %vm15804_vm2, %v2371_v27, %v2375_v59  ;;  %v3216_v52 = vshrl.u32 %v2616_v48, 16  ;;  %v3222_v63 = vshll.u32 %v2617_v35, 16  ;;  %v3226_v16 = vshrl.u32 %v2617_v35, 16  ;;  %4282 = vmatprep.mubr.bf16.mxu1 %v14488_v36  ;;  %v2619_v48 = vld [vmem:[#allocation2 + $0x100] sm:$0xf] }
 0x29b   :  { %v3451_v43 = vmax.bf16 %v3387_v40, %v2548_v44  ;;  %v2381_v5 = vrot.slane %v2380_v19, 4  ;;  %v2549_v61 = vmax.bf16 %v2376_v51, %v16742_v22  ;;  %v3210_v60 = vrot.slane %v3209_v50, 4  ;;  %v14490_v22 = vld [vmem:[%s19796_s3 + $0x1e0] ss:$16 sps:$4 sm:$0xff]  }
 0x29c   :  { %v3214_v53 = vrot.slane %v3212_v47, 5  ;;  %v3218_v4 = vrot.slane %v3216_v52, 4  ;;  %v3224_v41 = vrot.slane %v3222_v63, 5  ;;  %v2389_v55 = vrot.slane %v2387_v46, 4  ;;  %v1779_v51 = vld [vmem:[#allocation2 + $0x100] sm:$0x1] }
 0x29d   :  { %v11861_v34 = vcombine.low %v3450_v23, %v3451_v43  ;;  %v2386_v31 = vsel %vm15804_vm2, %v2381_v5, %v2385_v18  ;;  %v2393_v29 = vshll.u32 %v16772_v7, 16  ;;  %v2399_v54 = vrot.slane %v2397_v38, 4 }
 0x29e   :  { %v2550_v26 = vmax.bf16 %v2386_v31, %v16744_v32  ;;  %v3215_v1 = vsel %vm15804_vm2, %v3210_v60, %v3214_v53  ;;  %v3219_v21 = vor.u32 %v3218_v4, %v3214_v53  ;;  %v2390_v44 = vor.u32 %v2389_v55, %v2385_v18  ;;  %v14493_v60 = vld [vmem:[%s19796_s3 + $0x200] ss:$16 sps:$4 sm:$0xff]  }
 0x29f   :  { %4348 = vmatpush1.bf16.msra.mxu1 %v11861_v34  ;;  %v3388_v20 = vmax.bf16 %v3215_v1, %v16769_v56  ;;  %v2395_v58 = vrot.slane %v2393_v29, 5  ;;  %v2403_v57 = vshll.u32 %v16794_v24, 16  ;;  %v2407_v3 = vshrl.u32 %v16794_v24, 16  ;;  %v14494_v34 = vld [vmem:[%s19796_s3 + $0x224] ss:$16 sps:$4 sm:$0xff]  }
 0x2a0   :  { %4349 = vmatprep.subr.bf16.mxu1 %v16472_v39  ;;  %v3220_v32 = vrot.slane %v3219_v21, 4  ;;  %v2391_v25 = vrot.slane %v2390_v44, 4  ;;  %v2417_v17 = vshrl.u32 %v16798_v49, 16  ;;  %v3228_v33 = vrot.slane %v3226_v16, 4  ;;  %v2621_v1 = vld [vmem:[#allocation2 + $0x108] sm:$0x1] }
 0x2a1   :  { %v3452_v2 = vmax.bf16 %v3388_v20, %v2549_v61  ;;  %v2400_v42 = vor.u32 %v2399_v54, %v2395_v58  ;;  %v2405_v37 = vrot.slane %v2403_v57, 5  ;;  %v3232_v36 = vshll.u32 %v2618_v30, 16  ;;  %4283 = vmatmul.mubr.bf16.gmra.mrb[60].mxu1 %v14490_v22  ;;  %v2620_v61 = vld [vmem:[#allocation2 + $0x104] sm:$0xf] }
 0x2a2   :  { %v3225_v59 = vsel %vm15804_vm2, %v3220_v32, %v3224_v41  ;;  %v2396_v46 = vsel %vm15804_vm2, %v2391_v25, %v2395_v58  ;;  %v3229_v38 = vor.u32 %v3228_v33, %v3224_v41  ;;  %v3236_v35 = vshrl.u32 %v2618_v30, 16  ;;  %4290 = vmatprep.mubr.bf16.mxu1 %v14491_v6  ;;  %v14567_v30 = vld [vmem:[#allocation3] sm:$0xff] }
 0x2a3   :  { %v3389_v39 = vmax.bf16 %v3225_v59, %v16772_v7  ;;  %v2401_v28 = vrot.slane %v2400_v42, 4  ;;  %v2551_v45 = vmax.bf16 %v2396_v46, %v16769_v56  ;;  %v3234_v23 = vrot.slane %v3232_v36, 5 }
 0x2a4   :  { %v3230_v27 = vrot.slane %v3229_v38, 4  ;;  %v3238_v18 = vrot.slane %v3236_v35, 4  ;;  %v3242_v40 = vshll.u32 %v2619_v48, 16  ;;  %v3246_v19 = vshrl.u32 %v2619_v48, 16 }
 0x2a5   :  { %v3453_v50 = vmax.bf16 %v3389_v39, %v2550_v26  ;;  %v2406_v47 = vsel %vm15804_vm2, %v2401_v28, %v2405_v37  ;;  %v2409_v52 = vrot.slane %v2407_v3, 4  ;;  %v2413_v63 = vshll.u32 %v16798_v49, 16  ;;  %v14496_v39 = vld [vmem:[%s19796_s3 + $0x220] ss:$16 sps:$4 sm:$0xff]  }
 0x2a6   :  { %v2552_v16 = vmax.bf16 %v2406_v47, %v16772_v7  ;;  %v3235_v43 = vsel %vm15804_vm2, %v3230_v27, %v3234_v23  ;;  %v3239_v5 = vor.u32 %v3238_v18, %v3234_v23  ;;  %v3244_v56 = vrot.slane %v3242_v40, 5  ;;  %v14497_v18 = vld [vmem:[%s19796_s3 + $0x244] ss:$16 sps:$4 sm:$0xff]  }
 0x2a7   :  { %v11862_v53 = vcombine.low %v3452_v2, %v3453_v50  ;;  %v3390_v4 = vmax.bf16 %v3235_v43, %v16794_v24  ;;  %v2410_v41 = vor.u32 %v2409_v52, %v2405_v37  ;;  %v2415_v55 = vrot.slane %v2413_v63, 5  ;;  %v2555_v2 = vld [vmem:[#allocation2 + $0x100] sm:$0xf]  ;;  %v14500_v63 = vld [vmem:[%s19796_s3 + $0x264] ss:$16 sps:$4 sm:$0xff]  }
 0x2a8   :  { %v3240_v7 = vrot.slane %v3239_v5, 4  ;;  %v2419_v31 = vrot.slane %v2417_v17, 4  ;;  %v2423_v29 = vshll.u32 %v1779_v51, 16  ;;  %v3248_v54 = vrot.slane %v3246_v19, 4  ;;  %v14499_v52 = vld [vmem:[%s19796_s3 + $0x240] ss:$16 sps:$4 sm:$0xff]  }
 0x2a9   :  { %4350 = vmatpush1.bf16.msra.mxu1 %v11862_v53  ;;  %v3454_v22 = vmax.bf16 %v3390_v4, %v2551_v45  ;;  %v2411_v26 = vrot.slane %v2410_v41, 4  ;;  %v3252_v21 = vshll.u32 %v2620_v61, 16  ;;  %v3256_v44 = vshrl.u32 %v2620_v61, 16  ;;  %v2556_v45 = vld [vmem:[#allocation2 + $0x104] sm:$0xf] }
 0x2aa   :  { %4351 = vmatprep.subr.bf16.mxu1 %v14567_v30  ;;  %v3245_v6 = vsel %vm15804_vm2, %v3240_v7, %v3244_v56  ;;  %v2420_v20 = vor.u32 %v2419_v31, %v2415_v55  ;;  %v2425_v58 = vrot.slane %v2423_v29, 5  ;;  %v3249_v57 = vor.u32 %v3248_v54, %v3244_v56  ;;  %4291 = vmatmul.mubr.bf16.gmra.mrb[64].mxu1 %v14493_v60  ;;  %v14503_v43 = vld [vmem:[%s19796_s3 + $0x8] ss:$16 sps:$4 sm:$0xff]   ;;  %v14506_v5 = vld [vmem:[%s19796_s3 + $0x2c] ss:$16 sps:$4 sm:$0xff]  }
 0x2ab   :  { %v3391_v3 = vmax.bf16 %v3245_v6, %v16798_v49  ;;  %v2416_v32 = vsel %vm15804_vm2, %v2411_v26, %v2415_v55  ;;  %v3254_v25 = vrot.slane %v3252_v21, 5  ;;  %v3258_v17 = vrot.slane %v3256_v44, 4  ;;  %4298 = vmatprep.mubr.bf16.mxu1 %v14494_v34  ;;  %v14508_v56 = vld [vmem:[%s19796_s3 + $0x28] ss:$16 sps:$4 sm:$0xff]   ;;  %v14509_v61 = vld [vmem:[%s19796_s3 + $0x4c] ss:$16 sps:$4 sm:$0xff]  }
 0x2ac   :  { %v2421_v33 = vrot.slane %v2420_v20, 4  ;;  %v3250_v42 = vrot.slane %v3249_v57, 4  ;;  %v3262_v37 = vshll.u32 %v2621_v1, 16  ;;  %v2553_v46 = vmax.bf16 %v2416_v32, %v16794_v24  ;;  %v14511_v60 = vld [vmem:[%s19796_s3 + $0x48] ss:$16 sps:$4 sm:$0xff]  }
 0x2ad   :  { %v3455_v48 = vmax.bf16 %v3391_v3, %v2552_v16  ;;  %v3259_v36 = vor.u32 %v3258_v17, %v3254_v25  ;;  %v14505_v16 = vld [vmem:[%s19796_s3 + $0xc] ss:$16 sps:$4 sm:$0xff]   ;;  %v14514_v4 = vld [vmem:[%s19796_s3 + $0x68] ss:$16 sps:$4 sm:$0xff]  }
 0x2ae   :  { %v2426_v59 = vsel %vm15804_vm2, %v2421_v33, %v2425_v58  ;;  %v3255_v38 = vsel %vm15804_vm2, %v3250_v42, %v3254_v25  ;;  %v3264_v35 = vrot.slane %v3262_v37, 5  ;;  %v14512_v53 = vld [vmem:[%s19796_s3 + $0x6c] ss:$16 sps:$4 sm:$0xff]   ;;  %v14517_v55 = vld [vmem:[%s19796_s3 + $0x88] ss:$16 sps:$4 sm:$0xff]  }
 0x2af   :  { %v11863_v28 = vcombine.low %v3454_v22, %v3455_v48  ;;  %v3260_v23 = vrot.slane %v3259_v36, 4  ;;  %v3392_v27 = vmax.bf16 %v3255_v38, %v2555_v2  ;;  %v2554_v40 = vmax.bf16 %v2426_v59, %v16798_v49  ;;  %v14502_v49 = vld [vmem:[%s19796_s3 + $0x260] ss:$16 sps:$4 sm:$0xff]   ;;  %v14515_v41 = vld [vmem:[%s19796_s3 + $0x8c] ss:$16 sps:$4 sm:$0xff]  }
 0x2b0   :  { %v14518_v34 = vld [vmem:[%s19796_s3 + $0xac] ss:$16 sps:$4 sm:$0xff]   ;;  %v14520_v7 = vld [vmem:[%s19796_s3 + $0xa8] ss:$16 sps:$4 sm:$0xff]  }
 0x2b1   :  { %4352 = vmatpush1.bf16.msra.mxu1 %v11863_v28  ;;  %v3265_v24 = vsel %vm15804_vm2, %v3260_v23, %v3264_v35  ;;  %v3456_v50 = vmax.bf16 %v3392_v27, %v2553_v46  ;;  %v14521_v31 = vld [vmem:[%s19796_s3 + $0xcc] ss:$16 sps:$4 sm:$0xff]   ;;  %v14523_v29 = vld [vmem:[%s19796_s3 + $0xc8] ss:$16 sps:$4 sm:$0xff]  }
 0x2b2   :  { %4353 = vmatprep.subr.bf16.mxu1 %v14567_v30  ;;  %v3393_v19 = vmax.bf16 %v3265_v24, %v2556_v45  ;;  %4299 = vmatmul.mubr.bf16.gmra.mrb[68].mxu1 %v14496_v39  ;;  %v14524_v54 = vld [vmem:[%s19796_s3 + $0xec] ss:$16 sps:$4 sm:$0xff]   ;;  %v14526_v22 = vld [vmem:[%s19796_s3 + $0xe8] ss:$16 sps:$4 sm:$0xff]  }
 0x2b3   :  { %4306 = vmatprep.mubr.bf16.mxu1 %v14497_v18  ;;  %v14527_v26 = vld [vmem:[%s19796_s3 + $0x10c] ss:$16 sps:$4 sm:$0xff]   ;;  %v14529_v1 = vld [vmem:[%s19796_s3 + $0x108] ss:$16 sps:$4 sm:$0xff]  }
 0x2b4   :  { %v3457_v47 = vmax.bf16 %v3393_v19, %v2554_v40  ;;  %v14530_v21 = vld [vmem:[%s19796_s3 + $0x12c] ss:$16 sps:$4 sm:$0xff]   ;;  %v14532_v44 = vld [vmem:[%s19796_s3 + $0x128] ss:$16 sps:$4 sm:$0xff]  }
 0x2b5   :  { %v14533_v30 = vld [vmem:[%s19796_s3 + $0x14c] ss:$16 sps:$4 sm:$0xff]   ;;  %v14535_v6 = vld [vmem:[%s19796_s3 + $0x148] ss:$16 sps:$4 sm:$0xff]  }
 0x2b6   :  { %v11864_v51 = vcombine.low %v3456_v50, %v3457_v47  ;;  %v14536_v20 = vld [vmem:[%s19796_s3 + $0x16c] ss:$16 sps:$4 sm:$0xff]   ;;  %v14538_v58 = vld [vmem:[%s19796_s3 + $0x168] ss:$16 sps:$4 sm:$0xff]  }
 0x2b7   :  { %v14539_v57 = vld [vmem:[%s19796_s3 + $0x18c] ss:$16 sps:$4 sm:$0xff]   ;;  %v14541_v3 = vld [vmem:[%s19796_s3 + $0x188] ss:$16 sps:$4 sm:$0xff]  }
 0x2b8   :  { %4354 = vmatpush1.bf16.msra.mxu1 %v11864_v51  ;;  %v14542_v32 = vld [vmem:[%s19796_s3 + $0x1ac] ss:$16 sps:$4 sm:$0xff]   ;;  %v14544_v25 = vld [vmem:[%s19796_s3 + $0x1a8] ss:$16 sps:$4 sm:$0xff]  }
 0x2b9   :  { %v14545_v17 = vld [vmem:[%s19796_s3 + $0x1cc] ss:$16 sps:$4 sm:$0xff]   ;;  %v14547_v33 = vld [vmem:[%s19796_s3 + $0x1c8] ss:$16 sps:$4 sm:$0xff]  }
 0x2ba   :  { %4307 = vmatmul.mubr.bf16.gmra.mrb[72].mxu1 %v14499_v52  ;;  %v14548_v2 = vld [vmem:[%s19796_s3 + $0x1ec] ss:$16 sps:$4 sm:$0xff]   ;;  %v14550_v42 = vld [vmem:[%s19796_s3 + $0x1e8] ss:$16 sps:$4 sm:$0xff]  }
 0x2bb   :  { %4314 = vmatprep.mubr.bf16.mxu1 %v14500_v63  ;;  %v14551_v37 = vld [vmem:[%s19796_s3 + $0x20c] ss:$16 sps:$4 sm:$0xff]   ;;  %v14553_v48 = vld [vmem:[%s19796_s3 + $0x208] ss:$16 sps:$4 sm:$0xff]  }
 0x2bc   :  { %v14554_v36 = vld [vmem:[%s19796_s3 + $0x22c] ss:$16 sps:$4 sm:$0xff]   ;;  %v14556_v59 = vld [vmem:[%s19796_s3 + $0x228] ss:$16 sps:$4 sm:$0xff]  }
 0x2bd   :  { %v14557_v46 = vld [vmem:[%s19796_s3 + $0x24c] ss:$16 sps:$4 sm:$0xff]   ;;  %v14559_v38 = vld [vmem:[%s19796_s3 + $0x248] ss:$16 sps:$4 sm:$0xff]  }
 0x2be   :  { %v14560_v35 = vld [vmem:[%s19796_s3 + $0x26c] ss:$16 sps:$4 sm:$0xff]   ;;  %v14562_v39 = vld [vmem:[%s19796_s3 + $0x268] ss:$16 sps:$4 sm:$0xff]  }
 0x2c2   :  { %4315 = vmatmul.mubr.bf16.gmra.mrb[76].mxu1 %v14502_v49 }
 0x2c3   :  { %4355 = vmatprep.mubr.bf16.mxu1 %v14505_v16 }
 0x2ca   :  { %4356 = vmatmul.mubr.bf16.vlgmr.msra.gmra.mrb[0].mxu1 %v14503_v43 }
 0x2cb   :  { %4363 = vmatprep.mubr.bf16.mxu1 %v14506_v5 }
 0x2d2   :  { %4364 = vmatmul.mubr.bf16.gmra.mrb[4].mxu1 %v14508_v56 }
 0x2d3   :  { %4371 = vmatprep.mubr.bf16.mxu1 %v14509_v61 }
 0x2da   :  { %4372 = vmatmul.mubr.bf16.gmra.mrb[8].mxu1 %v14511_v60 }
 0x2db   :  { %4379 = vmatprep.mubr.bf16.mxu1 %v14512_v53 }
 0x2e2   :  { %4380 = vmatmul.mubr.bf16.gmra.mrb[12].mxu1 %v14514_v4 }
 0x2e3   :  { %4387 = vmatprep.mubr.bf16.mxu1 %v14515_v41 }
 0x2ea   :  { %4388 = vmatmul.mubr.bf16.gmra.mrb[16].mxu1 %v14517_v55 }
 0x2eb   :  { %4395 = vmatprep.mubr.bf16.mxu1 %v14518_v34 }
 0x2f2   :  { %4396 = vmatmul.mubr.bf16.gmra.mrb[20].mxu1 %v14520_v7 }
 0x2f3   :  { %4403 = vmatprep.mubr.bf16.mxu1 %v14521_v31 }
 0x2fa   :  { %4404 = vmatmul.mubr.bf16.gmra.mrb[24].mxu1 %v14523_v29 }
 0x2fb   :  { %4411 = vmatprep.mubr.bf16.mxu1 %v14524_v54 }
 0x302   :  { %4412 = vmatmul.mubr.bf16.gmra.mrb[28].mxu1 %v14526_v22 }
 0x303   :  { %4419 = vmatprep.mubr.bf16.mxu1 %v14527_v26 }
 0x30a   :  { %4420 = vmatmul.mubr.bf16.gmra.mrb[32].mxu1 %v14529_v1 }
 0x30b   :  { %4427 = vmatprep.mubr.bf16.mxu1 %v14530_v21 }
 0x312   :  { %4428 = vmatmul.mubr.bf16.gmra.mrb[36].mxu1 %v14532_v44 }
 0x313   :  { %4435 = vmatprep.mubr.bf16.mxu1 %v14533_v30 }
 0x31a   :  { %4436 = vmatmul.mubr.bf16.gmra.mrb[40].mxu1 %v14535_v6 }
 0x31b   :  { %4443 = vmatprep.mubr.bf16.mxu1 %v14536_v20 }
 0x322   :  { %4444 = vmatmul.mubr.bf16.gmra.mrb[44].mxu1 %v14538_v58 }
 0x323   :  { %4451 = vmatprep.mubr.bf16.mxu1 %v14539_v57 }
 0x32a   :  { %4452 = vmatmul.mubr.bf16.gmra.mrb[48].mxu1 %v14541_v3 }
 0x32b   :  { %4459 = vmatprep.mubr.bf16.mxu1 %v14542_v32 }
 0x332   :  { %4460 = vmatmul.mubr.bf16.gmra.mrb[52].mxu1 %v14544_v25 }
 0x333   :  { %4467 = vmatprep.mubr.bf16.mxu1 %v14545_v17 }
 0x33a   :  { %4468 = vmatmul.mubr.bf16.gmra.mrb[56].mxu1 %v14547_v33 }
 0x33b   :  { %4475 = vmatprep.mubr.bf16.mxu1 %v14548_v2 }
 0x342   :  { %4476 = vmatmul.mubr.bf16.gmra.mrb[60].mxu1 %v14550_v42 }
 0x343   :  { %4483 = vmatprep.mubr.bf16.mxu1 %v14551_v37 }
 0x34a   :  { %4484 = vmatmul.mubr.bf16.gmra.mrb[64].mxu1 %v14553_v48 }
 0x34b   :  { %4491 = vmatprep.mubr.bf16.mxu1 %v14554_v36 }
 0x352   :  { %4492 = vmatmul.mubr.bf16.gmra.mrb[68].mxu1 %v14556_v59 }
 0x353   :  { %4499 = vmatprep.mubr.bf16.mxu1 %v14557_v46 }
 0x35a   :  { %4500 = vmatmul.mubr.bf16.gmra.mrb[72].mxu1 %v14559_v38 }
 0x35b   :  { %4507 = vmatprep.mubr.bf16.mxu1 %v14560_v35 }
 0x362   :  { %4508 = vmatmul.mubr.bf16.gmra.mrb[76].mxu1 %v14562_v39 }
 0x39d   :  { %v4357_v28 = vpop.f32.mrb[0].mxu1 }
 0x39e   :  { %v4359_v45 = vpop.f32.mrb[1].mxu1 }
 0x39f   :  { %v4360_v23 = vpop.f32.mrb[2].mxu1 }
 0x3a0   :  { %v4516_v27 = vpack.c.bf16 %v4360_v23, %v4357_v28  ;;  %v4362_v18 = vpop.f32.mrb[3].mxu1 }
 0x3a2   :  { %v4557_v40 = vrot.slane %v4516_v27, 4 }
 0x3a4   :  { %4617 = vst [vmem:[#allocation3 + $0x8] sm:$0xf0] %v4557_v40 }
 0x3a5   :  { %v4365_v24 = vpop.f32.mrb[4].mxu1 }
 0x3a6   :  { %v4367_v19 = vpop.f32.mrb[5].mxu1 }
 0x3a7   :  { %v4368_v50 = vpop.f32.mrb[6].mxu1 }
 0x3a8   :  { %v4517_v47 = vpack.c.bf16 %v4368_v50, %v4365_v24  ;;  %v4370_v51 = vpop.f32.mrb[7].mxu1 }
 0x3aa   :  { %v4558_v52 = vrot.slane %v4517_v47, 4 }
 0x3ac   :  { %v4559_v63 = vsel %vm4556_vm3, %v4557_v40, %v4558_v52 }
 0x3ad   :  { %4618 = vst [vmem:[#allocation3 + $0x10] sm:$0xff] %v4559_v63  ;;  %v4373_v49 = vpop.f32.mrb[8].mxu1 }
 0x3ae   :  { %v4375_v16 = vpop.f32.mrb[9].mxu1 }
 0x3af   :  { %v4376_v43 = vpop.f32.mrb[10].mxu1 }
 0x3b0   :  { %v4518_v5 = vpack.c.bf16 %v4376_v43, %v4373_v49  ;;  %v4378_v56 = vpop.f32.mrb[11].mxu1 }
 0x3b2   :  { %v4560_v61 = vrot.slane %v4518_v5, 4 }
 0x3b4   :  { %v4561_v60 = vsel %vm4556_vm3, %v4558_v52, %v4560_v61 }
 0x3b5   :  { %4619 = vst [vmem:[#allocation3 + $0x18] sm:$0xff] %v4561_v60  ;;  %v4381_v53 = vpop.f32.mrb[12].mxu1 }
 0x3b6   :  { %v4383_v4 = vpop.f32.mrb[13].mxu1 }
 0x3b7   :  { %v4384_v41 = vpop.f32.mrb[14].mxu1 }
 0x3b8   :  { %v4519_v55 = vpack.c.bf16 %v4384_v41, %v4381_v53  ;;  %v4386_v34 = vpop.f32.mrb[15].mxu1 }
 0x3ba   :  { %v4562_v7 = vrot.slane %v4519_v55, 4 }
 0x3bc   :  { %v4563_v31 = vsel %vm4556_vm3, %v4560_v61, %v4562_v7 }
 0x3bd   :  { %4620 = vst [vmem:[#allocation3 + $0x20] sm:$0xff] %v4563_v31  ;;  %v4389_v29 = vpop.f32.mrb[16].mxu1 }
 0x3be   :  { %v4391_v54 = vpop.f32.mrb[17].mxu1 }
 0x3bf   :  { %v4392_v22 = vpop.f32.mrb[18].mxu1 }
 0x3c0   :  { %v4520_v26 = vpack.c.bf16 %v4392_v22, %v4389_v29  ;;  %v4394_v1 = vpop.f32.mrb[19].mxu1 }
 0x3c2   :  { %v4564_v21 = vrot.slane %v4520_v26, 4 }
 0x3c4   :  { %v4565_v44 = vsel %vm4556_vm3, %v4562_v7, %v4564_v21 }
 0x3c5   :  { %4621 = vst [vmem:[#allocation3 + $0x28] sm:$0xff] %v4565_v44  ;;  %v4397_v30 = vpop.f32.mrb[20].mxu1 }
 0x3c6   :  { %v4399_v6 = vpop.f32.mrb[21].mxu1 }
 0x3c7   :  { %v4400_v20 = vpop.f32.mrb[22].mxu1 }
 0x3c8   :  { %v4521_v58 = vpack.c.bf16 %v4400_v20, %v4397_v30  ;;  %v4402_v57 = vpop.f32.mrb[23].mxu1 }
 0x3ca   :  { %v4566_v3 = vrot.slane %v4521_v58, 4 }
 0x3cc   :  { %v4567_v32 = vsel %vm4556_vm3, %v4564_v21, %v4566_v3 }
 0x3cd   :  { %4622 = vst [vmem:[#allocation3 + $0x30] sm:$0xff] %v4567_v32  ;;  %v4405_v25 = vpop.f32.mrb[24].mxu1 }
 0x3ce   :  { %v4407_v17 = vpop.f32.mrb[25].mxu1 }
 0x3cf   :  { %v4408_v33 = vpop.f32.mrb[26].mxu1 }
 0x3d0   :  { %v4522_v2 = vpack.c.bf16 %v4408_v33, %v4405_v25  ;;  %v4410_v42 = vpop.f32.mrb[27].mxu1 }
 0x3d2   :  { %v4568_v37 = vrot.slane %v4522_v2, 4 }
 0x3d4   :  { %v4569_v48 = vsel %vm4556_vm3, %v4566_v3, %v4568_v37 }
 0x3d5   :  { %4623 = vst [vmem:[#allocation3 + $0x38] sm:$0xff] %v4569_v48  ;;  %v4413_v36 = vpop.f32.mrb[28].mxu1 }
 0x3d6   :  { %v4415_v59 = vpop.f32.mrb[29].mxu1 }
 0x3d7   :  { %v4416_v46 = vpop.f32.mrb[30].mxu1 }
 0x3d8   :  { %v4523_v38 = vpack.c.bf16 %v4416_v46, %v4413_v36  ;;  %v4418_v35 = vpop.f32.mrb[31].mxu1 }
 0x3da   :  { %v4570_v39 = vrot.slane %v4523_v38, 4 }
 0x3dc   :  { %v4571_v28 = vsel %vm4556_vm3, %v4568_v37, %v4570_v39 }
 0x3dd   :  { %4624 = vst [vmem:[#allocation3 + $0x40] sm:$0xff] %v4571_v28  ;;  %v4421_v45 = vpop.f32.mrb[32].mxu1 }
 0x3de   :  { %v4423_v23 = vpop.f32.mrb[33].mxu1 }
 0x3df   :  { %v4424_v27 = vpop.f32.mrb[34].mxu1 }
 0x3e0   :  { %v4524_v18 = vpack.c.bf16 %v4424_v27, %v4421_v45  ;;  %v4426_v40 = vpop.f32.mrb[35].mxu1 }
 0x3e2   :  { %v4572_v24 = vrot.slane %v4524_v18, 4 }
 0x3e4   :  { %v4573_v19 = vsel %vm4556_vm3, %v4570_v39, %v4572_v24 }
 0x3e5   :  { %4625 = vst [vmem:[#allocation3 + $0x48] sm:$0xff] %v4573_v19  ;;  %v4429_v50 = vpop.f32.mrb[36].mxu1 }
 0x3e6   :  { %v4431_v47 = vpop.f32.mrb[37].mxu1 }
 0x3e7   :  { %v4432_v51 = vpop.f32.mrb[38].mxu1 }
 0x3e8   :  { %v4525_v52 = vpack.c.bf16 %v4432_v51, %v4429_v50  ;;  %v4434_v63 = vpop.f32.mrb[39].mxu1 }
 0x3ea   :  { %v4574_v49 = vrot.slane %v4525_v52, 4 }
 0x3ec   :  { %v4575_v16 = vsel %vm4556_vm3, %v4572_v24, %v4574_v49 }
 0x3ed   :  { %4626 = vst [vmem:[#allocation3 + $0x50] sm:$0xff] %v4575_v16  ;;  %v4437_v43 = vpop.f32.mrb[40].mxu1 }
 0x3ee   :  { %v4439_v5 = vpop.f32.mrb[41].mxu1 }
 0x3ef   :  { %v4440_v56 = vpop.f32.mrb[42].mxu1 }
 0x3f0   :  { %v4526_v61 = vpack.c.bf16 %v4440_v56, %v4437_v43  ;;  %v4442_v60 = vpop.f32.mrb[43].mxu1 }
 0x3f2   :  { %v4576_v53 = vrot.slane %v4526_v61, 4 }
 0x3f4   :  { %v4577_v4 = vsel %vm4556_vm3, %v4574_v49, %v4576_v53 }
 0x3f5   :  { %4627 = vst [vmem:[#allocation3 + $0x58] sm:$0xff] %v4577_v4  ;;  %v4445_v41 = vpop.f32.mrb[44].mxu1 }
 0x3f6   :  { %v4447_v55 = vpop.f32.mrb[45].mxu1 }
 0x3f7   :  { %v4448_v34 = vpop.f32.mrb[46].mxu1 }
 0x3f8   :  { %v4527_v7 = vpack.c.bf16 %v4448_v34, %v4445_v41  ;;  %v4450_v31 = vpop.f32.mrb[47].mxu1 }
 0x3fa   :  { %v4578_v29 = vrot.slane %v4527_v7, 4 }
 0x3fc   :  { %v4579_v54 = vsel %vm4556_vm3, %v4576_v53, %v4578_v29 }
 0x3fd   :  { %4628 = vst [vmem:[#allocation3 + $0x60] sm:$0xff] %v4579_v54  ;;  %v4453_v22 = vpop.f32.mrb[48].mxu1 }
 0x3fe   :  { %v4455_v26 = vpop.f32.mrb[49].mxu1 }
 0x3ff   :  { %v4456_v1 = vpop.f32.mrb[50].mxu1 }
 0x400   :  { %v4528_v21 = vpack.c.bf16 %v4456_v1, %v4453_v22  ;;  %v4458_v44 = vpop.f32.mrb[51].mxu1 }
 0x402   :  { %v4580_v30 = vrot.slane %v4528_v21, 4 }
 0x404   :  { %v4581_v6 = vsel %vm4556_vm3, %v4578_v29, %v4580_v30 }
 0x405   :  { %4629 = vst [vmem:[#allocation3 + $0x68] sm:$0xff] %v4581_v6  ;;  %v4461_v20 = vpop.f32.mrb[52].mxu1 }
 0x406   :  { %v4463_v58 = vpop.f32.mrb[53].mxu1 }
 0x407   :  { %v4464_v57 = vpop.f32.mrb[54].mxu1 }
 0x408   :  { %v4529_v3 = vpack.c.bf16 %v4464_v57, %v4461_v20  ;;  %v4466_v32 = vpop.f32.mrb[55].mxu1 }
 0x40a   :  { %v4582_v25 = vrot.slane %v4529_v3, 4 }
 0x40c   :  { %v4583_v17 = vsel %vm4556_vm3, %v4580_v30, %v4582_v25 }
 0x40d   :  { %4630 = vst [vmem:[#allocation3 + $0x70] sm:$0xff] %v4583_v17  ;;  %v4469_v33 = vpop.f32.mrb[56].mxu1 }
 0x40e   :  { %v4471_v2 = vpop.f32.mrb[57].mxu1 }
 0x40f   :  { %v4472_v42 = vpop.f32.mrb[58].mxu1 }
 0x410   :  { %v4530_v37 = vpack.c.bf16 %v4472_v42, %v4469_v33  ;;  %v4474_v48 = vpop.f32.mrb[59].mxu1 }
 0x412   :  { %v4584_v36 = vrot.slane %v4530_v37, 4 }
 0x414   :  { %v4585_v59 = vsel %vm4556_vm3, %v4582_v25, %v4584_v36 }
 0x415   :  { %4631 = vst [vmem:[#allocation3 + $0x78] sm:$0xff] %v4585_v59  ;;  %v4477_v46 = vpop.f32.mrb[60].mxu1 }
 0x416   :  { %v4479_v38 = vpop.f32.mrb[61].mxu1 }
 0x417   :  { %v4480_v35 = vpop.f32.mrb[62].mxu1 }
 0x418   :  { %v4531_v39 = vpack.c.bf16 %v4480_v35, %v4477_v46  ;;  %v4482_v28 = vpop.f32.mrb[63].mxu1 }
 0x41a   :  { %v4586_v45 = vrot.slane %v4531_v39, 4 }
 0x41c   :  { %v4587_v23 = vsel %vm4556_vm3, %v4584_v36, %v4586_v45 }
 0x41d   :  { %4632 = vst [vmem:[#allocation3 + $0x80] sm:$0xff] %v4587_v23  ;;  %v4485_v27 = vpop.f32.mrb[64].mxu1 }
 0x41e   :  { %v4487_v18 = vpop.f32.mrb[65].mxu1 }
 0x41f   :  { %v4488_v40 = vpop.f32.mrb[66].mxu1 }
 0x420   :  { %v4532_v24 = vpack.c.bf16 %v4488_v40, %v4485_v27  ;;  %v4490_v19 = vpop.f32.mrb[67].mxu1 }
 0x422   :  { %v4588_v50 = vrot.slane %v4532_v24, 4 }
 0x424   :  { %v4589_v47 = vsel %vm4556_vm3, %v4586_v45, %v4588_v50 }
 0x425   :  { %4633 = vst [vmem:[#allocation3 + $0x88] sm:$0xff] %v4589_v47  ;;  %v4493_v51 = vpop.f32.mrb[68].mxu1 }
 0x426   :  { %v4495_v52 = vpop.f32.mrb[69].mxu1 }
 0x427   :  { %v4496_v63 = vpop.f32.mrb[70].mxu1 }
 0x428   :  { %v4533_v49 = vpack.c.bf16 %v4496_v63, %v4493_v51  ;;  %v4498_v16 = vpop.f32.mrb[71].mxu1 }
 0x42a   :  { %v4590_v43 = vrot.slane %v4533_v49, 4 }
 0x42c   :  { %v4591_v5 = vsel %vm4556_vm3, %v4588_v50, %v4590_v43 }
 0x42d   :  { %4634 = vst [vmem:[#allocation3 + $0x90] sm:$0xff] %v4591_v5  ;;  %v4501_v56 = vpop.f32.mrb[72].mxu1 }
 0x42e   :  { %v4503_v61 = vpop.f32.mrb[73].mxu1 }
 0x42f   :  { %v4504_v60 = vpop.f32.mrb[74].mxu1 }
 0x430   :  { %v4534_v53 = vpack.c.bf16 %v4504_v60, %v4501_v56  ;;  %v4506_v4 = vpop.f32.mrb[75].mxu1 }
 0x432   :  { %v4592_v41 = vrot.slane %v4534_v53, 4 }
 0x434   :  { %v4593_v55 = vsel %vm4556_vm3, %v4590_v43, %v4592_v41 }
 0x435   :  { %4635 = vst [vmem:[#allocation3 + $0x98] sm:$0xff] %v4593_v55  ;;  %v4509_v34 = vpop.f32.mrb[76].mxu1 }
 0x436   :  { %v4511_v7 = vpop.f32.mrb[77].mxu1 }
 0x437   :  { %v4512_v31 = vpop.f32.mrb[78].mxu1 }
 0x438   :  { %v4535_v29 = vpack.c.bf16 %v4512_v31, %v4509_v34  ;;  %v4514_v54 = vpop.f32.mrb[79].mxu1 }
 0x43a   :  { %v4594_v22 = vrot.slane %v4535_v29, 4 }
 0x43c   :  { %v4595_v26 = vsel %vm4556_vm3, %v4592_v41, %v4594_v22  ;;  %4637 = vst [vmem:[#allocation3 + $0xa8] sm:$0xf] %v4594_v22 }
 0x43d   :  { %4636 = vst [vmem:[#allocation3 + $0xa0] sm:$0xff] %v4595_v26 }
 0x43e   :  { %14591 = dma.done.wait [#allocation11], 9216 }
 0x43f   :  { %14592 = vsyncadd [#allocation11], 4294958080  ;;  %12984 = vmatpush3.bf16.msra.mxu0 %v14713_v8  ;;  %v17006_v1 = vld [vmem:[#allocation3 + $0x8] sm:$0xff]  ;;  %v17008_v21 = vld [vmem:[#allocation3] sm:$0xf0] }
 0x440   :  { %12985 = vmatprep.subr.bf16.mxu0 %v14718_v9  ;;  %v4703_v44 = vrot.slane %v17008_v21, 4  ;;  %v4704_v30 = vrot.slane %v17006_v1, 4  ;;  %v17039_v20 = vld [vmem:[#allocation3 + $0x20] sm:$0xff]  ;;  %v20216_v58 = vld [vmem:[#allocation23_spill] sm:$0xff]  ;;  %v20217_v17 = vld [vmem:[#allocation24_spill] sm:$0xff]  ;;  %v19960_v45 = vshrl.u32 %v17006_v1, 16 }
 0x441   :  { %v17055_v25 = vld [vmem:[#allocation3 + $0x30] sm:$0xff]  ;;  %v20218_v42 = vld [vmem:[#allocation25_spill] sm:$0xff]  ;;  %v20219_v59 = vld [vmem:[#allocation26_spill] sm:$0xff]  ;;  %v19958_v23 = vshll.u32 %v17006_v1, 16  ;;  %v5370_v47 = vshrl.u32 %v17008_v21, 16  ;;  %v5373_v51 = vshll.u32 %v17008_v21, 16 }
 0x442   :  { %v4705_v8 = vsel %vm4556_vm3, %v4703_v44, %v4704_v30  ;;  %v4714_v33 = vrot.slane %v17055_v25, 4  ;;  %v17073_v36 = vld [vmem:[#allocation3 + $0x40] sm:$0xff]  ;;  %v17076_v46 = vld [vmem:[#allocation3 + $0x48] sm:$0xff]  ;;  %v17093_v18 = vld [vmem:[#allocation3 + $0x50] sm:$0xff]  ;;  %v5377_v52 = vrot.slane %v19960_v45, 4  ;;  %v19952_v26 = vshrl.u32 %v17039_v20, 16 }
 0x443   :  { %12986 = vmatpush3.bf16.msra.mxu0 %v14718_v9  ;;  %12999 = vmatprep.mubr.bf16.mxu0 %v4705_v8  ;;  %v17021_v9 = vld [vmem:[#allocation3 + $0x10] sm:$0xff]  ;;  %v4718_v38 = vrot.slane %v17073_v36, 4  ;;  %v4720_v35 = vrot.slane %v17076_v46, 4  ;;  %v17098_v50 = vld [vmem:[#allocation3 + $0x58] sm:$0xff]  ;;  %v5378_v63 = vrot.slane %v19958_v23, 5  ;;  %v4722_v49 = vrot.slane %v17093_v18, 4 }
 0x444   :  { %12987 = vmatprep.subr.bf16.mxu0 %v14723_v10  ;;  %v17027_v6 = vrot.slane %v17021_v9, 4  ;;  %v20220_v39 = vld [vmem:[#allocation27_spill] sm:$0xff]  ;;  %v20221_v40 = vld [vmem:[#allocation28_spill] sm:$0xff]  ;;  %v19956_v24 = vshrl.u32 %v17021_v9, 16  ;;  %v19955_v19 = vshll.u32 %v17021_v9, 16  ;;  %v4724_v5 = vrot.slane %v17098_v50, 4 }
 0x445   :  { %v17091_v27 = vsel %vm4556_vm3, %v4718_v38, %v4720_v35  ;;  %v20222_v56 = vld [vmem:[#allocation29_spill] sm:$0xff]  ;;  %v5372_v61 = vrot.slane %v5370_v47, 4  ;;  %v5375_v60 = vrot.slane %v5373_v51, 5  ;;  %v17116_v53 = vor.u32 %v5378_v63, %v5377_v52  ;;  %v20223_v31 = vld [vmem:[#allocation30_spill] sm:$0xff] }
 0x446   :  { %v5381_v16 = vrot.slane %v19956_v24, 4  ;;  %v5382_v43 = vrot.slane %v19955_v19, 5  ;;  %v17121_v55 = vsel %vm4556_vm3, %v4720_v35, %v4722_v49  ;;  %v17123_v34 = vld [vmem:[#allocation3 + $0x60] sm:$0xff]  ;;  %v17127_v7 = vsel %vm4556_vm3, %v4722_v49, %v4724_v5  ;;  %v17138_v44 = vld [vmem:[#allocation3 + $0x68] sm:$0xff]  ;;  %v17166_v35 = vld [vmem:[#allocation3 + $0x70] sm:$0xff] }
 0x447   :  { %12988 = vmatpush3.bf16.msra.mxu0 %v14723_v10  ;;  %v17023_v10 = vld [vmem:[#allocation3 + $0x18] sm:$0xff]  ;;  %v5376_v41 = vor.u32 %v5375_v60, %v5372_v61  ;;  %v19950_v21 = vshll.u32 %v17039_v20, 16  ;;  %v4730_v63 = vrot.slane %v17166_v35, 4  ;;  %v5069_v23 = vshll.u32 %v17123_v34, 16 }
 0x448   :  { %12989 = vmatprep.subr.bf16.mxu0 %v14728_v11  ;;  %v17118_v4 = vor.u32 %v5382_v43, %v5381_v16  ;;  %v19954_v54 = vshrl.u32 %v17023_v10, 16  ;;  %v19953_v22 = vshll.u32 %v17023_v10, 16  ;;  %v17170_v47 = vld [vmem:[#allocation3 + $0x78] sm:$0xff]  ;;  %vm4957_vm4 = vsmask.f32 4352 }
 0x449   :  { %v17132_v29 = vsel %vm1780_vm0, %v5376_v41, %v17116_v53  ;;  %v4732_v43 = vrot.slane %v17170_v47, 4 }
 0x44a   :  { %v5385_v8 = vrot.slane %v19954_v54, 4 }
 0x44b   :  { %12990 = vmatpush3.bf16.msra.mxu0 %v14728_v11  ;;  %v4708_v11 = vrot.slane %v17023_v10, 4 }
 0x44c   :  { %12991 = vmatprep.subr.bf16.mxu0 %v14733_v12 }
 0x44f   :  { %12992 = vmatpush3.bf16.msra.mxu0 %v14733_v12  ;;  %v4707_v12 = vsel %vm4556_vm3, %v4704_v30, %v17027_v6  ;;  %v4726_v30 = vrot.slane %v17123_v34, 4 }
 0x450   :  { %12993 = vmatprep.subr.bf16.mxu0 %v14738_v13 }
 0x453   :  { %12994 = vmatpush3.bf16.msra.mxu0 %v14738_v13  ;;  %v17037_v13 = vsel %vm4556_vm3, %v17027_v6, %v4708_v11 }
 0x454   :  { %12995 = vmatprep.subr.bf16.mxu0 %v14743_v14 }
 0x457   :  { %12996 = vmatpush3.bf16.msra.mxu0 %v14743_v14  ;;  %v17041_v14 = vld [vmem:[#allocation3 + $0x28] sm:$0xff] }
 0x458   :  { %12997 = vmatprep.subr.bf16.mxu0 %v14748_v15  ;;  %v4712_v57 = vrot.slane %v17041_v14, 4 }
 0x45a   :  { %v17067_v37 = vsel %vm4556_vm3, %v4712_v57, %v4714_v33 }
 0x45b   :  { %12998 = vmatpush3.bf16.msra.mxu0 %v14748_v15  ;;  %v4710_v15 = vrot.slane %v17039_v20, 4 }
 0x45c   :  { %13039 = vmatprep.subr.bf16.mxu0 %v14673_v0 }
 0x45d   :  { %v17049_v3 = vsel %vm4556_vm3, %v4708_v11, %v4710_v15  ;;  %v17053_v32 = vsel %vm4556_vm3, %v4710_v15, %v4712_v57  ;;  %v5386_v11 = vrot.slane %v19953_v22, 5  ;;  %v5390_v15 = vrot.slane %v19950_v21, 5 }
 0x45e   :  { %13000 = vmatmul.mubr.bf16.vlgmr.msra.gmra.mrb[64].mxu0 %v4707_v12  ;;  %v5389_v12 = vrot.slane %v19952_v26, 4 }
 0x45f   :  { %13040 = vmatpush3.bf16.msra.mxu0 %v14673_v0  ;;  %13003 = vmatprep.mubr.bf16.mxu0 %v17037_v13  ;;  %v17058_v0 = vld [vmem:[#allocation3 + $0x38] sm:$0xff]  ;;  %v17152_v57 = vor.u32 %v5386_v11, %v5385_v8  ;;  %v17196_v11 = vsel %vm4556_vm3, %v4730_v63, %v4732_v43 }
 0x460   :  { %13041 = vmatprep.subr.bf16.mxu0 %v20216_v58  ;;  %v4716_v2 = vrot.slane %v17058_v0, 4  ;;  %v19947_v8 = vshll.u32 %v17058_v0, 16  ;;  %20227 = vst [vmem:[#allocation26_spill] sm:$0xff] %v17196_v11 }
 0x462   :  { %v17071_v48 = vsel %vm4556_vm3, %v4714_v33, %v4716_v2  ;;  %v17085_v28 = vsel %vm4556_vm3, %v4716_v2, %v4718_v38  ;;  %v17155_v33 = vsel %vm4556_vm3, %v4724_v5, %v4726_v30 }
 0x463   :  { %13042 = vmatpush3.bf16.msra.mxu0 %v20216_v58  ;;  %v4728_v58 = vrot.slane %v17138_v44, 4  ;;  %20224 = vst [vmem:[#allocation23_spill] sm:$0xff] %v17155_v33 }
 0x464   :  { %13043 = vmatprep.subr.bf16.mxu0 %v20217_v17 }
 0x465   :  { %v17164_v38 = vsel %vm4556_vm3, %v4726_v30, %v4728_v58  ;;  %v17188_v60 = vsel %vm4556_vm3, %v4728_v58, %v4730_v63  ;;  %v19946_v30 = vshrl.u32 %v17058_v0, 16 }
 0x466   :  { %13004 = vmatmul.mubr.bf16.gmra.mrb[68].mxu0 %v17049_v3  ;;  %20225 = vst [vmem:[#allocation24_spill] sm:$0xff] %v17164_v38  ;;  %20226 = vst [vmem:[#allocation25_spill] sm:$0xff] %v17188_v60 }
 0x467   :  { %13007 = vmatprep.mubr.bf16.mxu0 %v17053_v32  ;;  %13044 = vmatpush3.bf16.msra.mxu0 %v20217_v17  ;;  %v5391_v17 = vor.u32 %v5390_v15, %v5389_v12  ;;  %v17198_v12 = vld [vmem:[#allocation3 + $0x80] sm:$0xff]  ;;  %v19949_v15 = vshrl.u32 %v17073_v36, 16  ;;  %v5401_v58 = vrot.slane %v19946_v30, 4 }
 0x468   :  { %13045 = vmatprep.subr.bf16.mxu0 %v20218_v42  ;;  %v4734_v63 = vrot.slane %v17198_v12, 4 }
 0x469   :  { %v17159_v2 = vsel %vm1780_vm0, %v17152_v57, %v5391_v17 }
 0x46a   :  { %v17220_v30 = vsel %vm4556_vm3, %v4732_v43, %v4734_v63  ;;  %v4643_v43 = vld [vmem:[#allocation3] sm:$0xf8] }
 0x46b   :  { %13046 = vmatpush3.bf16.msra.mxu0 %v20218_v42  ;;  %v19948_v42 = vshrl.u32 %v17041_v14, 16  ;;  %20228 = vst [vmem:[#allocation27_spill] sm:$0xff] %v17220_v30  ;;  %v4959_v54 = vshrl.u32 %v4643_v43, 16  ;;  %v4962_v19 = vshll.u32 %v4643_v43, 16  ;;  %v17265_v43 = vld [vmem:[#allocation3 + $0xa0] sm:$0xf] }
 0x46c   :  { %13047 = vmatprep.subr.bf16.mxu0 %v20219_v59 }
 0x46d   :  { %v5393_v51 = vrot.slane %v19948_v42, 4  ;;  %v19957_v42 = vshrl.u32 %v17076_v46, 16 }
 0x46e   :  { %13008 = vmatmul.mubr.bf16.gmra.mrb[72].mxu0 %v17067_v37 }
 0x46f   :  { %13011 = vmatprep.mubr.bf16.mxu0 %v17071_v48  ;;  %13048 = vmatpush3.bf16.msra.mxu0 %v20219_v59  ;;  %v19945_v59 = vshll.u32 %v17041_v14, 16 }
 0x470   :  { %13049 = vmatprep.subr.bf16.mxu0 %v20220_v39 }
 0x471   :  { %v5394_v52 = vrot.slane %v19945_v59, 5 }
 0x473   :  { %13050 = vmatpush3.bf16.msra.mxu0 %v20220_v39  ;;  %v19944_v39 = vshrl.u32 %v17055_v25, 16  ;;  %v5395_v5 = vor.u32 %v5394_v52, %v5393_v51  ;;  %v17202_v51 = vld [vmem:[#allocation3 + $0x88] sm:$0xff]  ;;  %v5402_v52 = vrot.slane %v19947_v8, 5 }
 0x474   :  { %13051 = vmatprep.subr.bf16.mxu0 %v20221_v40 }
 0x475   :  { %v5397_v49 = vrot.slane %v19944_v39, 4  ;;  %v17185_v61 = vsel %vm1780_vm0, %v5391_v17, %v5395_v5  ;;  %v19951_v17 = vshll.u32 %v17073_v36, 16 }
 0x476   :  { %13012 = vmatmul.mubr.bf16.gmra.mrb[76].mxu0 %v17085_v28 }
 0x477   :  { %13015 = vmatprep.mubr.bf16.mxu0 %v17091_v27  ;;  %13052 = vmatpush3.bf16.msra.mxu0 %v20221_v40  ;;  %v19943_v40 = vshll.u32 %v17055_v25, 16 }
 0x478   :  { %13053 = vmatprep.subr.bf16.mxu0 %v20222_v56 }
 0x479   :  { %v5398_v16 = vrot.slane %v19943_v40, 5  ;;  %v5403_v40 = vor.u32 %v5402_v52, %v5401_v58  ;;  %v17232_v58 = vld [vmem:[#allocation3 + $0x98] sm:$0xff]  ;;  %v19964_v52 = vshll.u32 %v17093_v18, 16 }
 0x47b   :  { %13054 = vmatpush3.bf16.msra.mxu0 %v20222_v56  ;;  %v5399_v56 = vor.u32 %v5398_v16, %v5397_v49  ;;  %v5405_v49 = vrot.slane %v19949_v15, 4  ;;  %v5406_v16 = vrot.slane %v19951_v17, 5  ;;  %v19959_v15 = vshll.u32 %v17076_v46, 16  ;;  %v17230_v17 = vld [vmem:[#allocation3 + $0x90] sm:$0xff] }
 0x47c   :  { %13095 = vmatprep.subr.bf16.mxu0 %v20223_v31  ;;  %v5414_v22 = vrot.slane %v19964_v52, 5 }
 0x47d   :  { %v17191_v41 = vsel %vm1780_vm0, %v5395_v5, %v5399_v56  ;;  %v4736_v5 = vrot.slane %v17202_v51, 4  ;;  %v5407_v39 = vor.u32 %v5406_v16, %v5405_v49  ;;  %v17217_v59 = vsel %vm1780_vm0, %v5399_v56, %v5403_v40 }
 0x47e   :  { %13016 = vmatmul.mubr.bf16.gmra.mrb[80].mxu0 %v17121_v55  ;;  %v19963_v56 = vshrl.u32 %v17093_v18, 16  ;;  %v5410_v49 = vrot.slane %v19959_v15, 5  ;;  %v17244_v16 = vrot.slane %v17232_v58, 4 }
 0x47f   :  { %13019 = vmatprep.mubr.bf16.mxu0 %v17127_v7  ;;  %v17223_v8 = vsel %vm1780_vm0, %v5403_v40, %v5407_v39  ;;  %v17228_v21 = vsel %vm4556_vm3, %v4734_v63, %v4736_v5  ;;  %v5409_v40 = vrot.slane %v19957_v42, 4  ;;  %v4738_v63 = vrot.slane %v17230_v17, 4 }
 0x480   :  { %20229 = vst [vmem:[#allocation28_spill] sm:$0xff] %v17228_v21  ;;  %v5413_v26 = vrot.slane %v19963_v56, 4 }
 0x481   :  { %v5411_v24 = vor.u32 %v5410_v49, %v5409_v40  ;;  %v17256_v62 = vsel %vm4556_vm3, %v4736_v5, %v4738_v63  ;;  %v17260_v56 = vsel %vm4556_vm3, %v4738_v63, %v17244_v16  ;;  %v20232_v40 = vshrl.u32 %v17006_v1, 16 }
 0x482   :  { %v5415_v42 = vor.u32 %v5414_v22, %v5413_v26  ;;  %20230 = vst [vmem:[#allocation29_spill] sm:$0xff] %v17256_v62  ;;  %20231 = vst [vmem:[#allocation30_spill] sm:$0xff] %v17260_v56  ;;  %v4961_v22 = vrot.slane %v4959_v54, 3  ;;  %v4964_v26 = vrot.slane %v4962_v19, 4  ;;  %v20233_v49 = vshll.u32 %v17006_v1, 16 }
 0x483   :  { %v17252_v15 = vsel %vm1780_vm0, %v5407_v39, %v5411_v24  ;;  %v4969_v39 = vrot.slane %v20232_v40, 3  ;;  %v19973_v5 = vshrl.u32 %v17123_v34, 16  ;;  %v20234_v63 = vshrl.u32 %v17098_v50, 16 }
 0x484   :  { %v17263_v52 = vsel %vm1780_vm0, %v5411_v24, %v5415_v42  ;;  %v4972_v45 = vrot.slane %v20233_v49, 4  ;;  %v4742_v19 = vrot.slane %v17265_v43, 4  ;;  %v5422_v54 = vrot.slane %v5069_v23, 5 }
 0x485   :  { %v5417_v24 = vrot.slane %v20234_v63, 4  ;;  %v5421_v1 = vrot.slane %v19973_v5, 4  ;;  %v4965_v40 = vor.u32 %v4964_v26, %v4961_v22  ;;  %v20236_v63 = vshrl.u32 %v17021_v9, 16 }
 0x486   :  { %13020 = vmatmul.mubr.bf16.gmra.mrb[84].mxu0 %v17155_v33  ;;  %v4973_v49 = vor.u32 %v4972_v45, %v4969_v39  ;;  %v5075_v33 = vshrl.u32 %v17138_v44, 16  ;;  %v4743_v5 = vsel %vm4556_vm3, %v17244_v16, %v4742_v19  ;;  %v19974_v45 = vshll.u32 %v17138_v44, 16 }
 0x487   :  { %13023 = vmatprep.mubr.bf16.mxu0 %v17164_v38  ;;  %v20238_v26 = vshrl.u32 %v17023_v10, 16 }
 0x488   :  { %v5425_v19 = vrot.slane %v5075_v33, 4 }
 0x489   :  { %v4987_v39 = vrot.slane %v20238_v26, 3 }
 0x48e   :  { %13024 = vmatmul.mubr.bf16.gmra.mrb[88].mxu0 %v17188_v60  ;;  %v4978_v60 = vrot.slane %v20236_v63, 3 }
 0x48f   :  { %13027 = vmatprep.mubr.bf16.mxu0 %v17196_v11 }
 0x496   :  { %13028 = vmatmul.mubr.bf16.gmra.mrb[92].mxu0 %v17220_v30 }
 0x497   :  { %13031 = vmatprep.mubr.bf16.mxu0 %v17228_v21  ;;  %v20235_v21 = vshll.u32 %v17098_v50, 16 }
 0x499   :  { %v5418_v30 = vrot.slane %v20235_v21, 5 }
 0x49b   :  { %v5419_v11 = vor.u32 %v5418_v30, %v5417_v24  ;;  %v4974_v30 = vsel %vm4957_vm4, %v4965_v40, %v4973_v49 }
 0x49d   :  { %v17287_v21 = vsel %vm1780_vm0, %v5415_v42, %v5419_v11  ;;  %v20239_v42 = vshll.u32 %v17023_v10, 16 }
 0x49e   :  { %13032 = vmatmul.mubr.bf16.gmra.mrb[96].mxu0 %v17256_v62  ;;  %v5423_v62 = vor.u32 %v5422_v54, %v5421_v1 }
 0x49f   :  { %13035 = vmatprep.mubr.bf16.mxu0 %v17260_v56  ;;  %v20237_v56 = vshll.u32 %v17021_v9, 16  ;;  %v4990_v24 = vrot.slane %v20239_v42, 4  ;;  %v19975_v9 = vshrl.u32 %v17166_v35, 16 }
 0x4a0   :  { %v17295_v22 = vsel %vm1780_vm0, %v5419_v11, %v5423_v62  ;;  %v5426_v11 = vrot.slane %v19974_v45, 5 }
 0x4a1   :  { %v4981_v38 = vrot.slane %v20237_v56, 4  ;;  %v5087_v56 = vshll.u32 %v17166_v35, 16  ;;  %v5429_v54 = vrot.slane %v19975_v9, 4  ;;  %v4991_v40 = vor.u32 %v4990_v24, %v4987_v39 }
 0x4a2   :  { %v5427_v63 = vor.u32 %v5426_v11, %v5425_v19  ;;  %v20243_v19 = vshll.u32 %v17041_v14, 16  ;;  %v20244_v11 = vld [vmem:[#allocation31_spill] sm:$0xff] }
 0x4a3   :  { %v17309_v1 = vor.u32 %v4981_v38, %v4978_v60  ;;  %v5430_v10 = vrot.slane %v5087_v56, 5  ;;  %v20241_v60 = vshll.u32 %v17039_v20, 16 }
 0x4a5   :  { %v17315_v26 = vor.u32 %v5430_v10, %v5429_v54  ;;  %v4983_v42 = vsel %vm4957_vm4, %v4973_v49, %v17309_v1  ;;  %v4999_v45 = vrot.slane %v20241_v60, 4  ;;  %v17332_v39 = vsel %vm4957_vm4, %v17309_v1, %v4991_v40 }
 0x4a6   :  { %13036 = vmatmul.mubr.bf16.gmra.mrb[100].mxu0 %v4743_v5  ;;  %v17318_v5 = vsel %vm1780_vm0, %v5423_v62, %v5427_v63  ;;  %v20242_v62 = vshrl.u32 %v17041_v14, 16  ;;  %v5008_v49 = vrot.slane %v20243_v19, 4  ;;  %v20246_v14 = vshll.u32 %v17055_v25, 16  ;;  %v20250_v19 = vld [vmem:[#allocation33_spill] sm:$0xff] }
 0x4a7   :  { %13055 = vmatprep.mubr.bf16.mxu0 %v4974_v30  ;;  %v20240_v30 = vshrl.u32 %v17039_v20, 16  ;;  %v17328_v9 = vsel %vm1780_vm0, %v5427_v63, %v17315_v26  ;;  %v20245_v63 = vshrl.u32 %v17055_v25, 16 }
 0x4a8   :  { %v5005_v24 = vrot.slane %v20242_v62, 3  ;;  %v5017_v60 = vrot.slane %v20246_v14, 4  ;;  %v20249_v62 = vshll.u32 %v17058_v0, 16 }
 0x4a9   :  { %v4996_v38 = vrot.slane %v20240_v30, 3  ;;  %v5014_v30 = vrot.slane %v20245_v63, 3  ;;  %v20252_v63 = vshll.u32 %v17073_v36, 16 }
 0x4aa   :  { %v5009_v54 = vor.u32 %v5008_v49, %v5005_v24 }
 0x4ab   :  { %v5000_v20 = vor.u32 %v4999_v45, %v4996_v38  ;;  %v20248_v45 = vshrl.u32 %v17058_v0, 16  ;;  %v5018_v24 = vor.u32 %v5017_v60, %v5014_v30  ;;  %v5035_v0 = vrot.slane %v20252_v63, 4 }
 0x4ac   :  { %v20253_v30 = vshrl.u32 %v17076_v46, 16 }
 0x4ad   :  { %v17342_v10 = vsel %vm4957_vm4, %v4991_v40, %v5000_v20  ;;  %v5023_v38 = vrot.slane %v20248_v45, 3  ;;  %v5026_v40 = vrot.slane %v20249_v62, 4  ;;  %v17362_v49 = vsel %vm4957_vm4, %v5009_v54, %v5018_v24  ;;  %v20256_v62 = vld [vmem:[#allocation35_spill] sm:$0xff] }
 0x4ae   :  { %13056 = vmatmul.mubr.bf16.vlgmr.msra.gmra.mrb[64].mxu0 %v4983_v42  ;;  %v17350_v42 = vsel %vm4957_vm4, %v5000_v20, %v5009_v54  ;;  %v20251_v20 = vshrl.u32 %v17073_v36, 16  ;;  %v5041_v60 = vrot.slane %v20253_v30, 3  ;;  %v20260_v30 = vshll.u32 %v17098_v50, 16 }
 0x4af   :  { %13096 = vmatpush3.bf16.msra.mxu0 %v20223_v31  ;;  %13059 = vmatprep.mubr.bf16.mxu0 %v17332_v39  ;;  %v20247_v31 = vld [vmem:[#allocation32_spill] sm:$0xff]  ;;  %v5027_v25 = vor.u32 %v5026_v40, %v5023_v38  ;;  %v20255_v38 = vld [vmem:[#allocation34_spill] sm:$0xff] }
 0x4b0   :  { %13097 = vmatprep.subr.bf16.mxu0 %v20244_v11 }
 0x4b1   :  { %v17370_v14 = vsel %vm4957_vm4, %v5018_v24, %v5027_v25  ;;  %v20257_v24 = vshrl.u32 %v17093_v18, 16 }
 0x4b3   :  { %13098 = vmatpush3.bf16.msra.mxu0 %v20244_v11  ;;  %v5032_v11 = vrot.slane %v20251_v20, 3 }
 0x4b4   :  { %13099 = vmatprep.subr.bf16.mxu0 %v20247_v31 }
 0x4b5   :  { %v5036_v54 = vor.u32 %v5035_v0, %v5032_v11  ;;  %v20259_v11 = vshrl.u32 %v17098_v50, 16  ;;  %v5071_v50 = vrot.slane %v5069_v23, 4  ;;  %v19983_v23 = vshrl.u32 %v17170_v47, 16 }
 0x4b6   :  { %13060 = vmatmul.mubr.bf16.gmra.mrb[68].mxu0 %v17342_v10 }
 0x4b7   :  { %13063 = vmatprep.mubr.bf16.mxu0 %v17350_v42  ;;  %13100 = vmatpush3.bf16.msra.mxu0 %v20247_v31  ;;  %v20254_v31 = vshll.u32 %v17076_v46, 16  ;;  %v17382_v40 = vsel %vm4957_vm4, %v5027_v25, %v5036_v54  ;;  %v20258_v46 = vshll.u32 %v17093_v18, 16  ;;  %v5059_v0 = vrot.slane %v20259_v11, 3  ;;  %v20265_v11 = vld [vmem:[#allocation38_spill] sm:$0xff] }
 0x4b8   :  { %13101 = vmatprep.subr.bf16.mxu0 %v20250_v19 }
 0x4b9   :  { %v5044_v45 = vrot.slane %v20254_v31, 4  ;;  %v5053_v20 = vrot.slane %v20258_v46, 4  ;;  %v20261_v31 = vld [vmem:[#allocation36_spill] sm:$0xff]  ;;  %v20264_v46 = vshll.u32 %v17138_v44, 16  ;;  %v5089_v44 = vrot.slane %v5087_v56, 4 }
 0x4ba   :  { %v19978_v56 = vshll.u32 %v17202_v51, 16 }
 0x4bb   :  { %13102 = vmatpush3.bf16.msra.mxu0 %v20250_v19  ;;  %v5045_v36 = vor.u32 %v5044_v45, %v5041_v60  ;;  %v5050_v19 = vrot.slane %v20257_v24, 3  ;;  %v5062_v60 = vrot.slane %v20260_v30, 4  ;;  %v20262_v45 = vld [vmem:[#allocation37_spill] sm:$0xff] }
 0x4bc   :  { %13103 = vmatprep.subr.bf16.mxu0 %v20255_v38 }
 0x4bd   :  { %v17390_v63 = vsel %vm4957_vm4, %v5036_v54, %v5045_v36  ;;  %v5054_v25 = vor.u32 %v5053_v20, %v5050_v19  ;;  %v5063_v18 = vor.u32 %v5062_v60, %v5059_v0  ;;  %v20263_v54 = vshrl.u32 %v17123_v34, 16 }
 0x4be   :  { %13064 = vmatmul.mubr.bf16.gmra.mrb[72].mxu0 %v17362_v49  ;;  %v5077_v19 = vrot.slane %v5075_v33, 3  ;;  %v5080_v20 = vrot.slane %v20264_v46, 4  ;;  %v19980_v34 = vshll.u32 %v17170_v47, 16  ;;  %v20266_v33 = vshrl.u32 %v17166_v35, 16 }
 0x4bf   :  { %13067 = vmatprep.mubr.bf16.mxu0 %v17370_v14  ;;  %13104 = vmatpush3.bf16.msra.mxu0 %v20255_v38  ;;  %v17402_v38 = vsel %vm4957_vm4, %v5045_v36, %v5054_v25  ;;  %v17410_v24 = vsel %vm4957_vm4, %v5054_v25, %v5063_v18  ;;  %v5095_v25 = vrot.slane %v19983_v23, 3  ;;  %v19979_v35 = vshrl.u32 %v17202_v51, 16 }
 0x4c0   :  { %13105 = vmatprep.subr.bf16.mxu0 %v20256_v62  ;;  %v5081_v0 = vor.u32 %v5080_v20, %v5077_v19  ;;  %v5086_v60 = vrot.slane %v20266_v33, 3 }
 0x4c1   :  { %v5113_v33 = vrot.slane %v19979_v35, 3 }
 0x4c3   :  { %13106 = vmatpush3.bf16.msra.mxu0 %v20256_v62  ;;  %v5068_v62 = vrot.slane %v20263_v54, 3  ;;  %v19976_v54 = vshll.u32 %v17198_v12, 16 }
 0x4c4   :  { %13107 = vmatprep.subr.bf16.mxu0 %v20261_v31 }
 0x4c5   :  { %v5072_v36 = vor.u32 %v5071_v50, %v5068_v62  ;;  %v5090_v62 = vor.u32 %v5089_v44, %v5086_v60  ;;  %v5107_v20 = vrot.slane %v19976_v54, 4  ;;  %v5116_v60 = vrot.slane %v19978_v56, 4 }
 0x4c6   :  { %13068 = vmatmul.mubr.bf16.gmra.mrb[76].mxu0 %v17382_v40  ;;  %v19982_v44 = vshll.u32 %v17230_v17, 16 }
 0x4c7   :  { %13071 = vmatprep.mubr.bf16.mxu0 %v17390_v63  ;;  %13108 = vmatpush3.bf16.msra.mxu0 %v20261_v31  ;;  %v17422_v30 = vsel %vm4957_vm4, %v5063_v18, %v5072_v36  ;;  %v17429_v31 = vsel %vm4957_vm4, %v5072_v36, %v5081_v0  ;;  %v19977_v18 = vshrl.u32 %v17198_v12, 16  ;;  %v17442_v19 = vsel %vm4957_vm4, %v5081_v0, %v5090_v62 }
 0x4c8   :  { %13109 = vmatprep.subr.bf16.mxu0 %v20262_v45  ;;  %v19981_v0 = vshrl.u32 %v17230_v17, 16  ;;  %v5117_v54 = vor.u32 %v5116_v60, %v5113_v33  ;;  %v5125_v35 = vrot.slane %v19982_v44, 4  ;;  %v5141_v33 = vshll.u32 %v17265_v43, 16 }
 0x4c9   :  { %v5104_v46 = vrot.slane %v19977_v18, 3 }
 0x4ca   :  { %v5122_v56 = vrot.slane %v19981_v0, 3  ;;  %v5143_v23 = vrot.slane %v5141_v33, 4 }
 0x4cb   :  { %13110 = vmatpush3.bf16.msra.mxu0 %v20262_v45  ;;  %v5098_v45 = vrot.slane %v19980_v34, 4 }
 0x4cc   :  { %13151 = vmatprep.subr.bf16.mxu0 %v20265_v11  ;;  %v5126_v60 = vor.u32 %v5125_v35, %v5122_v56  ;;  %v17499_v35 = vsel %vm1780_vm0, %v17118_v4, %v17152_v57  ;;  %v20268_v56 = vld [vmem:[#allocation40_spill] sm:$0xff]  ;;  %v20271_v57 = vld [vmem:[#allocation43_spill] sm:$0xff] }
 0x4cd   :  { %v5099_v50 = vor.u32 %v5098_v45, %v5095_v25  ;;  %v5108_v25 = vor.u32 %v5107_v20, %v5104_v46  ;;  %v19984_v45 = vshrl.u32 %v17232_v58, 16 }
 0x4ce   :  { %13072 = vmatmul.mubr.bf16.gmra.mrb[80].mxu0 %v17402_v38 }
 0x4cf   :  { %13075 = vmatprep.mubr.bf16.mxu0 %v17410_v24  ;;  %v17449_v36 = vsel %vm4957_vm4, %v5090_v62, %v5099_v50  ;;  %v19985_v62 = vshll.u32 %v17232_v58, 16  ;;  %v17462_v18 = vsel %vm4957_vm4, %v5099_v50, %v5108_v25  ;;  %v17469_v34 = vsel %vm4957_vm4, %v5108_v25, %v5117_v54 }
 0x4d0   :  { %v5131_v46 = vrot.slane %v19984_v45, 3  ;;  %v5138_v50 = vshrl.u32 %v17265_v43, 16  ;;  %v17482_v25 = vsel %vm4957_vm4, %v5117_v54, %v5126_v60  ;;  %v5384_v54 = vsel %vm1780_vm0, %v17116_v53, %v17118_v4  ;;  %v20269_v53 = vld [vmem:[#allocation41_spill] sm:$0xff] }
 0x4d1   :  { %v5134_v20 = vrot.slane %v19985_v62, 4 }
 0x4d2   :  { %v5140_v44 = vrot.slane %v5138_v50, 3  ;;  %v20276_v50 = vshll.u32 %v17170_v47, 16 }
 0x4d3   :  { %v17479_v0 = vor.u32 %v5134_v20, %v5131_v46  ;;  %v20275_v46 = vshrl.u32 %v17170_v47, 16  ;;  %v20281_v47 = vshll.u32 %v17202_v51, 16 }
 0x4d4   :  { %v5144_v62 = vor.u32 %v5143_v23, %v5140_v44  ;;  %v20267_v23 = vld [vmem:[#allocation39_spill] sm:$0xff]  ;;  %v20273_v44 = vld [vmem:[#allocation45_spill] sm:$0xff]  ;;  %v5434_v33 = vrot.slane %v20276_v50, 5 }
 0x4d5   :  { %v17486_v45 = vsel %vm4957_vm4, %v5126_v60, %v17479_v0  ;;  %v5433_v20 = vrot.slane %v20275_v46, 4 }
 0x4d6   :  { %13076 = vmatmul.mubr.bf16.gmra.mrb[84].mxu0 %v17422_v30  ;;  %v5145_v43 = vsel %vm4957_vm4, %v17479_v0, %v5144_v62  ;;  %v20274_v62 = vld [vmem:[#allocation46_spill] sm:$0xff] }
 0x4d7   :  { %13079 = vmatprep.mubr.bf16.mxu0 %v17429_v31  ;;  %v5435_v60 = vor.u32 %v5434_v33, %v5433_v20 }
 0x4de   :  { %13080 = vmatmul.mubr.bf16.gmra.mrb[88].mxu0 %v17442_v19 }
 0x4df   :  { %13083 = vmatprep.mubr.bf16.mxu0 %v17449_v36 }
 0x4e6   :  { %13084 = vmatmul.mubr.bf16.gmra.mrb[92].mxu0 %v17462_v18 }
 0x4e7   :  { %13087 = vmatprep.mubr.bf16.mxu0 %v17469_v34 }
 0x4ee   :  { %13088 = vmatmul.mubr.bf16.gmra.mrb[96].mxu0 %v17482_v25 }
 0x4ef   :  { %13091 = vmatprep.mubr.bf16.mxu0 %v17486_v45 }
 0x4f6   :  { %13092 = vmatmul.mubr.bf16.gmra.mrb[100].mxu0 %v5145_v43  ;;  %v20277_v43 = vshrl.u32 %v17198_v12, 16 }
 0x4f7   :  { %13111 = vmatprep.mubr.bf16.mxu0 %v17132_v29  ;;  %v20270_v29 = vld [vmem:[#allocation42_spill] sm:$0xff] }
 0x4fe   :  { %13112 = vmatmul.mubr.bf16.vlgmr.msra.gmra.mrb[64].mxu0 %v5384_v54  ;;  %v5437_v54 = vrot.slane %v20277_v43, 4 }
 0x4ff   :  { %13152 = vmatpush3.bf16.msra.mxu0 %v20265_v11  ;;  %13115 = vmatprep.mubr.bf16.mxu0 %v17499_v35  ;;  %v20272_v11 = vld [vmem:[#allocation44_spill] sm:$0xff] }
 0x500   :  { %13153 = vmatprep.subr.bf16.mxu0 %v20267_v23 }
 0x503   :  { %13154 = vmatpush3.bf16.msra.mxu0 %v20267_v23  ;;  %v20278_v23 = vshll.u32 %v17198_v12, 16  ;;  %v20283_v12 = vshrl.u32 %v17230_v17, 16 }
 0x504   :  { %13155 = vmatprep.subr.bf16.mxu0 %v20268_v56 }
 0x505   :  { %v5445_v50 = vrot.slane %v20283_v12, 4 }
 0x506   :  { %13116 = vmatmul.mubr.bf16.gmra.mrb[68].mxu0 %v17159_v2 }
 0x507   :  { %13119 = vmatprep.mubr.bf16.mxu0 %v17185_v61  ;;  %13156 = vmatpush3.bf16.msra.mxu0 %v20268_v56  ;;  %v5438_v56 = vrot.slane %v20278_v23, 5 }
 0x508   :  { %13157 = vmatprep.subr.bf16.mxu0 %v20269_v53 }
 0x50b   :  { %13158 = vmatpush3.bf16.msra.mxu0 %v20269_v53  ;;  %v17538_v53 = vsel %vm1780_vm0, %v17315_v26, %v5435_v60  ;;  %v20284_v26 = vshll.u32 %v17230_v17, 16 }
 0x50c   :  { %13159 = vmatprep.subr.bf16.mxu0 %v20270_v29  ;;  %20279 = vst [vmem:[#allocation31_spill] sm:$0xff] %v17538_v53 }
 0x50d   :  { %v5446_v33 = vrot.slane %v20284_v26, 5 }
 0x50e   :  { %13120 = vmatmul.mubr.bf16.gmra.mrb[72].mxu0 %v17191_v41 }
 0x50f   :  { %13123 = vmatprep.mubr.bf16.mxu0 %v17217_v59  ;;  %13160 = vmatpush3.bf16.msra.mxu0 %v20270_v29  ;;  %v20280_v29 = vshrl.u32 %v17202_v51, 16  ;;  %v20285_v51 = vshrl.u32 %v17232_v58, 16 }
 0x510   :  { %13161 = vmatprep.subr.bf16.mxu0 %v20271_v57 }
 0x511   :  { %v5449_v23 = vrot.slane %v20285_v51, 4 }
 0x513   :  { %13162 = vmatpush3.bf16.msra.mxu0 %v20271_v57  ;;  %v5441_v57 = vrot.slane %v20280_v29, 4  ;;  %v20286_v29 = vshll.u32 %v17232_v58, 16 }
 0x514   :  { %13163 = vmatprep.subr.bf16.mxu0 %v20272_v11 }
 0x516   :  { %13124 = vmatmul.mubr.bf16.gmra.mrb[76].mxu0 %v17223_v8 }
 0x517   :  { %13127 = vmatprep.mubr.bf16.mxu0 %v17252_v15  ;;  %13164 = vmatpush3.bf16.msra.mxu0 %v20272_v11  ;;  %v5442_v11 = vrot.slane %v20281_v47, 5  ;;  %v5450_v47 = vrot.slane %v20286_v29, 5 }
 0x518   :  { %13165 = vmatprep.subr.bf16.mxu0 %v20273_v44 }
 0x519   :  { %v5443_v46 = vor.u32 %v5442_v11, %v5441_v57  ;;  %v17562_v17 = vor.u32 %v5450_v47, %v5449_v23  ;;  %v20287_v47 = vld [vmem:[#allocation47_spill] sm:$0xff] }
 0x51b   :  { %13166 = vmatpush3.bf16.msra.mxu0 %v20273_v44  ;;  %v5439_v44 = vor.u32 %v5438_v56, %v5437_v54  ;;  %v5359_v54 = vld [vmem:[#allocation3 + $0xa0] sm:$0x1f]  ;;  %v5715_v56 = vld [vmem:[#allocation3 + $0x8] sm:$0xf8] }
 0x51c   :  { %13207 = vmatprep.subr.bf16.mxu0 %v20274_v62  ;;  %v5454_v57 = vshrl.u32 %v5359_v54, 16  ;;  %v5457_v11 = vshll.u32 %v5359_v54, 16  ;;  %v5746_v12 = vshrl.u32 %v5715_v56, 16 }
 0x51d   :  { %v17547_v20 = vsel %vm1780_vm0, %v5435_v60, %v5439_v44  ;;  %v17554_v43 = vsel %vm1780_vm0, %v5439_v44, %v5443_v46  ;;  %v5447_v60 = vor.u32 %v5446_v33, %v5445_v50  ;;  %v5749_v44 = vshll.u32 %v5715_v56, 16  ;;  %v6186_v56 = vld [vmem:[#allocation3 + $0x8] sm:$0xf0] }
 0x51e   :  { %13128 = vmatmul.mubr.bf16.gmra.mrb[80].mxu0 %v17263_v52  ;;  %20282 = vst [vmem:[#allocation32_spill] sm:$0xff] %v17547_v20  ;;  %v5456_v51 = vrot.slane %v5454_v57, 4  ;;  %v5748_v29 = vrot.slane %v5746_v12, 3  ;;  %v6217_v57 = vrot.slane %v6186_v56, 4  ;;  %v20305_v12 = vld [vmem:[#allocation25_spill] sm:$0xff] }
 0x51f   :  { %13131 = vmatprep.mubr.bf16.mxu0 %v17287_v21  ;;  %v17565_v26 = vsel %vm1780_vm0, %v5443_v46, %v5447_v60  ;;  %v17569_v58 = vsel %vm1780_vm0, %v5447_v60, %v17562_v17 }
 0x526   :  { %13132 = vmatmul.mubr.bf16.gmra.mrb[84].mxu0 %v17295_v22 }
 0x527   :  { %13135 = vmatprep.mubr.bf16.mxu0 %v17318_v5 }
 0x52e   :  { %13136 = vmatmul.mubr.bf16.gmra.mrb[88].mxu0 %v17328_v9 }
 0x52f   :  { %13139 = vmatprep.mubr.bf16.mxu0 %v17538_v53  ;;  %v5459_v53 = vrot.slane %v5457_v11, 5  ;;  %v20304_v11 = vld [vmem:[#allocation24_spill] sm:$0xff] }
 0x531   :  { %v5460_v50 = vor.u32 %v5459_v53, %v5456_v51  ;;  %v20288_v53 = vld [vmem:[#allocation48_spill] sm:$0xff]  ;;  %v20309_v51 = vld [vmem:[#allocation29_spill] sm:$0xff] }
 0x533   :  { %v5461_v23 = vsel %vm1780_vm0, %v17562_v17, %v5460_v50  ;;  %v6522_v50 = vshrl.u32 %v6186_v56, 16 }
 0x536   :  { %13140 = vmatmul.mubr.bf16.gmra.mrb[92].mxu0 %v17547_v20  ;;  %v5751_v20 = vrot.slane %v5749_v44, 4  ;;  %v20306_v44 = vld [vmem:[#allocation26_spill] sm:$0xff] }
 0x537   :  { %13143 = vmatprep.mubr.bf16.mxu0 %v17554_v43 }
 0x538   :  { %v5752_v33 = vor.u32 %v5751_v20, %v5748_v29 }
 0x53a   :  { %v5761_v46 = vsel %vm4957_vm4, %v5752_v33, %v17309_v1  ;;  %v20289_v1 = vld [vmem:[#allocation49_spill] sm:$0xff]  ;;  %v6525_v33 = vshll.u32 %v6186_v56, 16  ;;  %v17721_v56 = vld [vmem:[#allocation3 + $0x28] sm:$0xff] }
 0x53e   :  { %13144 = vmatmul.mubr.bf16.gmra.mrb[96].mxu0 %v17565_v26 }
 0x53f   :  { %13147 = vmatprep.mubr.bf16.mxu0 %v17569_v58 }
 0x546   :  { %13148 = vmatmul.mubr.bf16.gmra.mrb[100].mxu0 %v5461_v23  ;;  %v6524_v23 = vrot.slane %v6522_v50, 4 }
 0x547   :  { %13167 = vmatprep.mubr.bf16.mxu0 %v5761_v46  ;;  %v6527_v46 = vrot.slane %v6525_v33, 5 }
 0x54e   :  { %13168 = vmatmul.mubr.bf16.vlgmr.msra.gmra.mrb[64].mxu0 %v17332_v39  ;;  %v20290_v39 = vld [vmem:[#allocation50_spill] sm:$0xff] }
 0x54f   :  { %13208 = vmatpush3.bf16.msra.mxu0 %v20274_v62  ;;  %13171 = vmatprep.mubr.bf16.mxu0 %v17342_v10  ;;  %v20291_v10 = vld [vmem:[#allocation51_spill] sm:$0xff] }
 0x550   :  { %13209 = vmatprep.subr.bf16.mxu0 %v20287_v47 }
 0x553   :  { %13210 = vmatpush3.bf16.msra.mxu0 %v20287_v47  ;;  %v20310_v47 = vld [vmem:[#allocation30_spill] sm:$0xff] }
 0x554   :  { %13211 = vmatprep.subr.bf16.mxu0 %v20288_v53 }
 0x556   :  { %13172 = vmatmul.mubr.bf16.gmra.mrb[68].mxu0 %v17350_v42  ;;  %v20292_v42 = vld [vmem:[#allocation52_spill] sm:$0xff] }
 0x557   :  { %13175 = vmatprep.mubr.bf16.mxu0 %v17362_v49  ;;  %13212 = vmatpush3.bf16.msra.mxu0 %v20288_v53  ;;  %v20293_v49 = vld [vmem:[#allocation53_spill] sm:$0xff] }
 0x558   :  { %13213 = vmatprep.subr.bf16.mxu0 %v20289_v1 }
 0x55b   :  { %13214 = vmatpush3.bf16.msra.mxu0 %v20289_v1  ;;  %v6528_v1 = vor.u32 %v6527_v46, %v6524_v23 }
 0x55c   :  { %13215 = vmatprep.subr.bf16.mxu0 %v20290_v39 }
 0x55e   :  { %13176 = vmatmul.mubr.bf16.gmra.mrb[72].mxu0 %v17370_v14  ;;  %v20294_v14 = vld [vmem:[#allocation54_spill] sm:$0xff] }
 0x55f   :  { %13179 = vmatprep.mubr.bf16.mxu0 %v17382_v40  ;;  %13216 = vmatpush3.bf16.msra.mxu0 %v20290_v39  ;;  %v17605_v40 = vld [vmem:[#allocation3 + $0xa0] sm:$0xff] }
 0x560   :  { %13217 = vmatprep.subr.bf16.mxu0 %v20291_v10  ;;  %v17660_v29 = vrot.slane %v17605_v40, 4 }
 0x563   :  { %13218 = vmatpush3.bf16.msra.mxu0 %v20291_v10  ;;  %v6532_v10 = vsel %vm1780_vm0, %v6528_v1, %v17118_v4  ;;  %v20313_v4 = vld [vmem:[#allocation65_spill] sm:$0xff]  ;;  %v17759_v1 = vld [vmem:[#allocation3 + $0x48] sm:$0xff] }
 0x564   :  { %13219 = vmatprep.subr.bf16.mxu0 %v20292_v42 }
 0x566   :  { %13180 = vmatmul.mubr.bf16.gmra.mrb[76].mxu0 %v17390_v63  ;;  %v5916_v63 = vshrl.u32 %v17605_v40, 16 }
 0x567   :  { %13183 = vmatprep.mubr.bf16.mxu0 %v17402_v38  ;;  %13220 = vmatpush3.bf16.msra.mxu0 %v20292_v42  ;;  %v5919_v38 = vshll.u32 %v17605_v40, 16  ;;  %v20312_v42 = vld [vmem:[#allocation64_spill] sm:$0xff] }
 0x568   :  { %13221 = vmatprep.subr.bf16.mxu0 %v20293_v49  ;;  %v5918_v62 = vrot.slane %v5916_v63, 3 }
 0x56b   :  { %13222 = vmatpush3.bf16.msra.mxu0 %v20293_v49  ;;  %v6602_v49 = vrot.slane %v5919_v38, 5 }
 0x56c   :  { %13263 = vmatprep.subr.bf16.mxu0 %v20294_v14 }
 0x56e   :  { %13184 = vmatmul.mubr.bf16.gmra.mrb[80].mxu0 %v17410_v24  ;;  %v5921_v24 = vrot.slane %v5919_v38, 4 }
 0x56f   :  { %13187 = vmatprep.mubr.bf16.mxu0 %v17422_v30  ;;  %v5735_v30 = vld [vmem:[#allocation3 + $0xa8] sm:$0xf] }
 0x570   :  { %v6256_v53 = vrot.slane %v5735_v30, 4 }
 0x572   :  { %v6257_v39 = vsel %vm4556_vm3, %v17660_v29, %v6256_v53  ;;  %v17757_v53 = vld [vmem:[#allocation3 + $0x40] sm:$0xff] }
 0x576   :  { %13188 = vmatmul.mubr.bf16.gmra.mrb[84].mxu0 %v17429_v31  ;;  %v5925_v31 = vshrl.u32 %v5735_v30, 16 }
 0x577   :  { %13191 = vmatprep.mubr.bf16.mxu0 %v17442_v19  ;;  %v5928_v19 = vshll.u32 %v5735_v30, 16 }
 0x579   :  { %v5930_v20 = vrot.slane %v5928_v19, 4 }
 0x57e   :  { %13192 = vmatmul.mubr.bf16.gmra.mrb[88].mxu0 %v17449_v36  ;;  %v17617_v36 = vor.u32 %v5921_v24, %v5918_v62  ;;  %v6867_v62 = vld [vmem:[#allocation3 + $0x10] sm:$0xf8]  ;;  %v17704_v24 = vld [vmem:[#allocation3 + $0x18] sm:$0xff] }
 0x57f   :  { %13195 = vmatprep.mubr.bf16.mxu0 %v17462_v18  ;;  %v5927_v18 = vrot.slane %v5925_v31, 3  ;;  %v6901_v30 = vshll.u32 %v6867_v62, 16  ;;  %v6906_v31 = vshrl.u32 %v17704_v24, 16 }
 0x580   :  { %v5923_v54 = vsel %vm4957_vm4, %v17479_v0, %v17617_v36  ;;  %v20295_v0 = vld [vmem:[#allocation55_spill] sm:$0xff] }
 0x581   :  { %v5931_v60 = vor.u32 %v5930_v20, %v5927_v18 }
 0x586   :  { %13196 = vmatmul.mubr.bf16.gmra.mrb[92].mxu0 %v17469_v34  ;;  %v5932_v34 = vsel %vm4957_vm4, %v17617_v36, %v5931_v60 }
 0x587   :  { %13199 = vmatprep.mubr.bf16.mxu0 %v17482_v25  ;;  %v6219_v25 = vsel %vm4556_vm3, %v6217_v57, %v17027_v6  ;;  %v20297_v6 = vld [vmem:[#allocation57_spill] sm:$0xff] }
 0x58e   :  { %13200 = vmatmul.mubr.bf16.gmra.mrb[96].mxu0 %v17486_v45  ;;  %v20296_v45 = vld [vmem:[#allocation56_spill] sm:$0xff] }
 0x58f   :  { %13203 = vmatprep.mubr.bf16.mxu0 %v5923_v54  ;;  %v17719_v54 = vld [vmem:[#allocation3 + $0x20] sm:$0xff] }
 0x590   :  { %v6918_v57 = vshll.u32 %v17719_v54, 16 }
 0x596   :  { %13204 = vmatmul.mubr.bf16.gmra.mrb[100].mxu0 %v5932_v34 }
 0x597   :  { %13223 = vmatprep.mubr.bf16.mxu0 %v6219_v25 }
 0x59e   :  { %13224 = vmatmul.mubr.bf16.vlgmr.msra.gmra.mrb[64].mxu0 %v17037_v13  ;;  %v20298_v13 = vld [vmem:[#allocation58_spill] sm:$0xff] }
 0x59f   :  { %13264 = vmatpush3.bf16.msra.mxu0 %v20294_v14  ;;  %13227 = vmatprep.mubr.bf16.mxu0 %v17049_v3  ;;  %v20299_v3 = vld [vmem:[#allocation59_spill] sm:$0xff]  ;;  %v6511_v14 = vld [vmem:[#allocation3 + $0xa8] sm:$0x1f] }
 0x5a0   :  { %13265 = vmatprep.subr.bf16.mxu0 %v20295_v0 }
 0x5a3   :  { %13266 = vmatpush3.bf16.msra.mxu0 %v20295_v0  ;;  %v6924_v0 = vshrl.u32 %v17721_v56, 16 }
 0x5a4   :  { %13267 = vmatprep.subr.bf16.mxu0 %v20296_v45 }
 0x5a6   :  { %13228 = vmatmul.mubr.bf16.gmra.mrb[68].mxu0 %v17053_v32  ;;  %v20300_v32 = vld [vmem:[#allocation60_spill] sm:$0xff] }
 0x5a7   :  { %13231 = vmatprep.mubr.bf16.mxu0 %v17067_v37  ;;  %13268 = vmatpush3.bf16.msra.mxu0 %v20296_v45  ;;  %v20301_v37 = vld [vmem:[#allocation61_spill] sm:$0xff]  ;;  %v6927_v45 = vshll.u32 %v17721_v56, 16 }
 0x5a8   :  { %13269 = vmatprep.subr.bf16.mxu0 %v20297_v6 }
 0x5ab   :  { %13270 = vmatpush3.bf16.msra.mxu0 %v20297_v6 }
 0x5ac   :  { %13271 = vmatprep.subr.bf16.mxu0 %v20298_v13 }
 0x5ae   :  { %13232 = vmatmul.mubr.bf16.gmra.mrb[72].mxu0 %v17071_v48  ;;  %v20302_v48 = vld [vmem:[#allocation62_spill] sm:$0xff] }
 0x5af   :  { %13235 = vmatprep.mubr.bf16.mxu0 %v17085_v28  ;;  %13272 = vmatpush3.bf16.msra.mxu0 %v20298_v13  ;;  %v20303_v28 = vld [vmem:[#allocation23_spill] sm:$0xff] }
 0x5b0   :  { %13273 = vmatprep.subr.bf16.mxu0 %v20299_v3 }
 0x5b3   :  { %13274 = vmatpush3.bf16.msra.mxu0 %v20299_v3 }
 0x5b4   :  { %13275 = vmatprep.subr.bf16.mxu0 %v20300_v32 }
 0x5b6   :  { %13236 = vmatmul.mubr.bf16.gmra.mrb[76].mxu0 %v17091_v27  ;;  %v20307_v27 = vld [vmem:[#allocation27_spill] sm:$0xff] }
 0x5b7   :  { %13239 = vmatprep.mubr.bf16.mxu0 %v17121_v55  ;;  %13276 = vmatpush3.bf16.msra.mxu0 %v20300_v32  ;;  %v20308_v55 = vld [vmem:[#allocation28_spill] sm:$0xff]  ;;  %v6926_v32 = vrot.slane %v6924_v0, 3 }
 0x5b8   :  { %13277 = vmatprep.subr.bf16.mxu0 %v20301_v37 }
 0x5bb   :  { %13278 = vmatpush3.bf16.msra.mxu0 %v20301_v37  ;;  %v6929_v37 = vrot.slane %v6927_v45, 4 }
 0x5bc   :  { %13319 = vmatprep.subr.bf16.mxu0 %v20302_v48 }
 0x5be   :  { %13240 = vmatmul.mubr.bf16.gmra.mrb[80].mxu0 %v17127_v7  ;;  %v6255_v7 = vsel %vm4556_vm3, %v17244_v16, %v17660_v29  ;;  %v20311_v16 = vld [vmem:[#allocation63_spill] sm:$0xff] }
 0x5bf   :  { %13243 = vmatprep.mubr.bf16.mxu0 %v20303_v28  ;;  %v17741_v28 = vld [vmem:[#allocation3 + $0x38] sm:$0xff] }
 0x5c6   :  { %13244 = vmatmul.mubr.bf16.gmra.mrb[84].mxu0 %v20304_v11 }
 0x5c7   :  { %13247 = vmatprep.mubr.bf16.mxu0 %v20305_v12 }
 0x5ce   :  { %13248 = vmatmul.mubr.bf16.gmra.mrb[88].mxu0 %v20306_v44 }
 0x5cf   :  { %13251 = vmatprep.mubr.bf16.mxu0 %v20307_v27  ;;  %v6930_v27 = vor.u32 %v6929_v37, %v6926_v32 }
 0x5d6   :  { %13252 = vmatmul.mubr.bf16.gmra.mrb[92].mxu0 %v20308_v55  ;;  %v6942_v55 = vshrl.u32 %v17741_v28, 16 }
 0x5d7   :  { %13255 = vmatprep.mubr.bf16.mxu0 %v20309_v51  ;;  %v6945_v51 = vshll.u32 %v17741_v28, 16 }
 0x5d8   :  { %v6944_v46 = vrot.slane %v6942_v55, 3 }
 0x5de   :  { %13256 = vmatmul.mubr.bf16.gmra.mrb[96].mxu0 %v20310_v47  ;;  %v6947_v47 = vrot.slane %v6945_v51, 4 }
 0x5df   :  { %13259 = vmatprep.mubr.bf16.mxu0 %v6255_v7 }
 0x5e6   :  { %13260 = vmatmul.mubr.bf16.gmra.mrb[100].mxu0 %v6257_v39 }
 0x5e7   :  { %13279 = vmatprep.mubr.bf16.mxu0 %v6532_v10  ;;  %v6951_v10 = vshrl.u32 %v17757_v53, 16 }
 0x5ee   :  { %13280 = vmatmul.mubr.bf16.vlgmr.msra.gmra.mrb[64].mxu0 %v17499_v35  ;;  %v20314_v35 = vld [vmem:[#allocation66_spill] sm:$0xff] }
 0x5ef   :  { %13320 = vmatpush3.bf16.msra.mxu0 %v20302_v48  ;;  %13283 = vmatprep.mubr.bf16.mxu0 %v17159_v2  ;;  %v20315_v2 = vld [vmem:[#allocation67_spill] sm:$0xff] }
 0x5f0   :  { %13321 = vmatprep.subr.bf16.mxu0 %v20311_v16  ;;  %v17739_v48 = vld [vmem:[#allocation3 + $0x30] sm:$0xff] }
 0x5f1   :  { %v6933_v12 = vshrl.u32 %v17739_v48, 16  ;;  %v6936_v44 = vshll.u32 %v17739_v48, 16 }
 0x5f3   :  { %13322 = vmatpush3.bf16.msra.mxu0 %v20311_v16  ;;  %v6935_v33 = vrot.slane %v6933_v12, 3  ;;  %v6938_v7 = vrot.slane %v6936_v44, 4  ;;  %v6954_v16 = vshll.u32 %v17757_v53, 16 }
 0x5f4   :  { %13323 = vmatprep.subr.bf16.mxu0 %v20312_v42 }
 0x5f5   :  { %v6939_v39 = vor.u32 %v6938_v7, %v6935_v33 }
 0x5f6   :  { %13284 = vmatmul.mubr.bf16.gmra.mrb[68].mxu0 %v17185_v61  ;;  %v20316_v61 = vld [vmem:[#allocation68_spill] sm:$0xff] }
 0x5f7   :  { %13287 = vmatprep.mubr.bf16.mxu0 %v17191_v41  ;;  %13324 = vmatpush3.bf16.msra.mxu0 %v20312_v42  ;;  %v20317_v41 = vld [vmem:[#allocation69_spill] sm:$0xff]  ;;  %v20321_v42 = vld [vmem:[#allocation71_spill] sm:$0xff] }
 0x5f8   :  { %13325 = vmatprep.subr.bf16.mxu0 %v20313_v4 }
 0x5fb   :  { %13326 = vmatpush3.bf16.msra.mxu0 %v20313_v4  ;;  %v6948_v4 = vor.u32 %v6947_v47, %v6944_v46 }
 0x5fc   :  { %13327 = vmatprep.subr.bf16.mxu0 %v20314_v35 }
 0x5fe   :  { %13288 = vmatmul.mubr.bf16.gmra.mrb[72].mxu0 %v17217_v59  ;;  %v20318_v59 = vld [vmem:[#allocation70_spill] sm:$0xff] }
 0x5ff   :  { %13291 = vmatprep.mubr.bf16.mxu0 %v17223_v8  ;;  %13328 = vmatpush3.bf16.msra.mxu0 %v20314_v35  ;;  %v20319_v8 = vld [vmem:[#allocation31_spill] sm:$0xff]  ;;  %v6960_v35 = vshrl.u32 %v17759_v1, 16 }
 0x600   :  { %13329 = vmatprep.subr.bf16.mxu0 %v20315_v2 }
 0x603   :  { %13330 = vmatpush3.bf16.msra.mxu0 %v20315_v2  ;;  %v6963_v2 = vshll.u32 %v17759_v1, 16 }
 0x604   :  { %13331 = vmatprep.subr.bf16.mxu0 %v20316_v61 }
 0x606   :  { %13292 = vmatmul.mubr.bf16.gmra.mrb[76].mxu0 %v17252_v15  ;;  %v20320_v15 = vld [vmem:[#allocation32_spill] sm:$0xff] }
 0x607   :  { %13295 = vmatprep.mubr.bf16.mxu0 %v17263_v52  ;;  %13332 = vmatpush3.bf16.msra.mxu0 %v20316_v61  ;;  %v6601_v52 = vrot.slane %v5916_v63, 4  ;;  %v6909_v63 = vshll.u32 %v17704_v24, 16  ;;  %v6940_v61 = vsel %vm4957_vm4, %v6930_v27, %v6939_v39 }
 0x608   :  { %13333 = vmatprep.subr.bf16.mxu0 %v20317_v41 }
 0x609   :  { %v6911_v20 = vrot.slane %v6909_v63, 4 }
 0x60b   :  { %13334 = vmatpush3.bf16.msra.mxu0 %v20317_v41  ;;  %v6953_v41 = vrot.slane %v6951_v10, 3 }
 0x60c   :  { %13375 = vmatprep.subr.bf16.mxu0 %v20318_v59 }
 0x60e   :  { %13296 = vmatmul.mubr.bf16.gmra.mrb[80].mxu0 %v17287_v21  ;;  %v17708_v21 = vor.u32 %v6602_v49, %v6601_v52  ;;  %v6962_v52 = vrot.slane %v6960_v35, 3  ;;  %v6965_v49 = vrot.slane %v6963_v2, 4 }
 0x60f   :  { %13299 = vmatprep.mubr.bf16.mxu0 %v17295_v22  ;;  %v6606_v22 = vshrl.u32 %v6511_v14, 16 }
 0x610   :  { %v6604_v40 = vsel %vm1780_vm0, %v17562_v17, %v17708_v21  ;;  %v6915_v17 = vshrl.u32 %v17719_v54, 16 }
 0x611   :  { %v6608_v38 = vrot.slane %v6606_v22, 4 }
 0x612   :  { %v6917_v13 = vrot.slane %v6915_v17, 3 }
 0x616   :  { %13300 = vmatmul.mubr.bf16.gmra.mrb[84].mxu0 %v17318_v5  ;;  %v6898_v5 = vshrl.u32 %v6867_v62, 16  ;;  %v17781_v62 = vld [vmem:[#allocation3 + $0x58] sm:$0xff] }
 0x617   :  { %13303 = vmatprep.mubr.bf16.mxu0 %v17328_v9  ;;  %v6609_v9 = vshll.u32 %v6511_v14, 16  ;;  %v17779_v14 = vld [vmem:[#allocation3 + $0x50] sm:$0xff] }
 0x618   :  { %v6900_v18 = vrot.slane %v6898_v5, 3  ;;  %v6972_v5 = vshll.u32 %v17779_v14, 16 }
 0x619   :  { %v6611_v19 = vrot.slane %v6609_v9, 5  ;;  %v6969_v9 = vshrl.u32 %v17779_v14, 16 }
 0x61b   :  { %v6612_v60 = vor.u32 %v6611_v19, %v6608_v38  ;;  %v6978_v38 = vshrl.u32 %v17781_v62, 16  ;;  %v6981_v19 = vshll.u32 %v17781_v62, 16 }
 0x61d   :  { %v6613_v6 = vsel %vm1780_vm0, %v17708_v21, %v6612_v60  ;;  %v6980_v60 = vrot.slane %v6978_v38, 3 }
 0x61e   :  { %13304 = vmatmul.mubr.bf16.gmra.mrb[88].mxu0 %v20319_v8  ;;  %v6949_v8 = vsel %vm4957_vm4, %v6939_v39, %v6948_v4 }
 0x61f   :  { %13307 = vmatprep.mubr.bf16.mxu0 %v20320_v15  ;;  %v20322_v15 = vld [vmem:[#allocation72_spill] sm:$0xff] }
 0x626   :  { %13308 = vmatmul.mubr.bf16.gmra.mrb[92].mxu0 %v17554_v43  ;;  %v6903_v43 = vrot.slane %v6901_v30, 4  ;;  %v6966_v30 = vor.u32 %v6965_v49, %v6962_v52 }
 0x627   :  { %13311 = vmatprep.mubr.bf16.mxu0 %v17565_v26  ;;  %v6908_v26 = vrot.slane %v6906_v31, 3 }
 0x628   :  { %v6904_v34 = vor.u32 %v6903_v43, %v6900_v18  ;;  %v6971_v43 = vrot.slane %v6969_v9, 3 }
 0x629   :  { %v6912_v25 = vor.u32 %v6911_v20, %v6908_v26  ;;  %v6974_v26 = vrot.slane %v6972_v5, 4 }
 0x62b   :  { %v6913_v3 = vsel %vm4957_vm4, %v6904_v34, %v6912_v25  ;;  %v6983_v34 = vrot.slane %v6981_v19, 4 }
 0x62d   :  { %v6984_v37 = vor.u32 %v6983_v34, %v6980_v60  ;;  %v17844_v60 = vld [vmem:[#allocation3 + $0x80] sm:$0xff] }
 0x62e   :  { %13312 = vmatmul.mubr.bf16.gmra.mrb[96].mxu0 %v17569_v58  ;;  %v6920_v58 = vrot.slane %v6918_v57, 4  ;;  %v20328_v34 = vld [vmem:[#allocation78_spill] sm:$0xff] }
 0x62f   :  { %13315 = vmatprep.mubr.bf16.mxu0 %v6604_v40  ;;  %v20323_v40 = vld [vmem:[#allocation73_spill] sm:$0xff] }
 0x630   :  { %v6921_v11 = vor.u32 %v6920_v58, %v6917_v13  ;;  %v17803_v13 = vld [vmem:[#allocation3 + $0x68] sm:$0xff]  ;;  %v6975_v58 = vor.u32 %v6974_v26, %v6971_v43 }
 0x632   :  { %v6922_v50 = vsel %vm4957_vm4, %v6912_v25, %v6921_v11  ;;  %v6931_v23 = vsel %vm4957_vm4, %v6921_v11, %v6930_v27  ;;  %v17800_v25 = vld [vmem:[#allocation3 + $0x60] sm:$0xff]  ;;  %v6996_v11 = vshrl.u32 %v17803_v13, 16  ;;  %v6999_v27 = vshll.u32 %v17803_v13, 16 }
 0x633   :  { %v6990_v32 = vshll.u32 %v17800_v25, 16  ;;  %v6976_v33 = vsel %vm4957_vm4, %v6966_v30, %v6975_v58  ;;  %v6985_v46 = vsel %vm4957_vm4, %v6975_v58, %v6984_v37 }
 0x634   :  { %v6998_v47 = vrot.slane %v6996_v11, 3  ;;  %v7001_v39 = vrot.slane %v6999_v27, 4 }
 0x636   :  { %13316 = vmatmul.mubr.bf16.gmra.mrb[100].mxu0 %v6613_v6  ;;  %v20324_v6 = vld [vmem:[#allocation74_spill] sm:$0xff] }
 0x637   :  { %13335 = vmatprep.mubr.bf16.mxu0 %v6913_v3  ;;  %v6987_v3 = vshrl.u32 %v17800_v25, 16 }
 0x639   :  { %v6989_v7 = vrot.slane %v6987_v3, 3 }
 0x63e   :  { %13336 = vmatmul.mubr.bf16.vlgmr.msra.gmra.mrb[64].mxu0 %v6922_v50  ;;  %v20325_v50 = vld [vmem:[#allocation75_spill] sm:$0xff] }
 0x63f   :  { %13376 = vmatpush3.bf16.msra.mxu0 %v20318_v59  ;;  %13339 = vmatprep.mubr.bf16.mxu0 %v6931_v23  ;;  %v6956_v59 = vrot.slane %v6954_v16, 4  ;;  %v6992_v23 = vrot.slane %v6990_v32, 4 }
 0x640   :  { %13377 = vmatprep.subr.bf16.mxu0 %v20321_v42 }
 0x641   :  { %v6957_v22 = vor.u32 %v6956_v59, %v6953_v41  ;;  %v6993_v41 = vor.u32 %v6992_v23, %v6989_v7 }
 0x643   :  { %13378 = vmatpush3.bf16.msra.mxu0 %v20321_v42  ;;  %v6958_v18 = vsel %vm4957_vm4, %v6948_v4, %v6957_v22  ;;  %v6967_v20 = vsel %vm4957_vm4, %v6957_v22, %v6966_v30  ;;  %v17822_v42 = vld [vmem:[#allocation3 + $0x70] sm:$0xff]  ;;  %v20327_v22 = vld [vmem:[#allocation77_spill] sm:$0xff]  ;;  %v6994_v30 = vsel %vm4957_vm4, %v6984_v37, %v6993_v41  ;;  %v19995_v37 = vshrl.u32 %v17844_v60, 16 }
 0x644   :  { %13379 = vmatprep.subr.bf16.mxu0 %v20322_v15  ;;  %v20326_v4 = vld [vmem:[#allocation76_spill] sm:$0xff]  ;;  %v7005_v59 = vshrl.u32 %v17822_v42, 16 }
 0x646   :  { %13340 = vmatmul.mubr.bf16.gmra.mrb[68].mxu0 %v6940_v61  ;;  %v17825_v61 = vld [vmem:[#allocation3 + $0x78] sm:$0xff] }
 0x647   :  { %13343 = vmatprep.mubr.bf16.mxu0 %v6949_v8  ;;  %13380 = vmatpush3.bf16.msra.mxu0 %v20322_v15  ;;  %v7008_v8 = vshll.u32 %v17822_v42, 16  ;;  %v7002_v15 = vor.u32 %v7001_v39, %v6998_v47  ;;  %v7014_v52 = vshrl.u32 %v17825_v61, 16  ;;  %v7017_v49 = vshll.u32 %v17825_v61, 16 }
 0x648   :  { %13381 = vmatprep.subr.bf16.mxu0 %v20323_v40  ;;  %v7025_v47 = vrot.slane %v19995_v37, 3  ;;  %v17891_v37 = vld [vmem:[#allocation3 + $0xb0] sm:$0xf] }
 0x649   :  { %v7003_v43 = vsel %vm4957_vm4, %v6993_v41, %v7002_v15  ;;  %v7016_v26 = vrot.slane %v7014_v52, 3 }
 0x64b   :  { %13382 = vmatpush3.bf16.msra.mxu0 %v20323_v40  ;;  %v7007_v40 = vrot.slane %v7005_v59, 3 }
 0x64c   :  { %13383 = vmatprep.subr.bf16.mxu0 %v20324_v6 }
 0x64e   :  { %13344 = vmatmul.mubr.bf16.gmra.mrb[72].mxu0 %v6958_v18  ;;  %v7010_v18 = vrot.slane %v7008_v8, 4 }
 0x64f   :  { %13347 = vmatprep.mubr.bf16.mxu0 %v6967_v20  ;;  %13384 = vmatpush3.bf16.msra.mxu0 %v20324_v6  ;;  %v7019_v20 = vrot.slane %v7017_v49, 4  ;;  %v17847_v6 = vld [vmem:[#allocation3 + $0x88] sm:$0xff] }
 0x650   :  { %13385 = vmatprep.subr.bf16.mxu0 %v20325_v50  ;;  %v7011_v58 = vor.u32 %v7010_v18, %v7007_v40  ;;  %v19988_v7 = vshrl.u32 %v17847_v6, 16  ;;  %v19989_v23 = vshll.u32 %v17847_v6, 16  ;;  %v17865_v40 = vld [vmem:[#allocation3 + $0x98] sm:$0xff] }
 0x652   :  { %v7034_v41 = vrot.slane %v19988_v7, 3 }
 0x653   :  { %13386 = vmatpush3.bf16.msra.mxu0 %v20325_v50  ;;  %v19990_v50 = vshll.u32 %v17844_v60, 16 }
 0x654   :  { %13387 = vmatprep.subr.bf16.mxu0 %v20326_v4 }
 0x655   :  { %v7028_v39 = vrot.slane %v19990_v50, 4 }
 0x656   :  { %13348 = vmatmul.mubr.bf16.gmra.mrb[76].mxu0 %v6976_v33  ;;  %v7020_v33 = vor.u32 %v7019_v20, %v7016_v26  ;;  %v19993_v20 = vshrl.u32 %v17865_v40, 16 }
 0x657   :  { %13351 = vmatprep.mubr.bf16.mxu0 %v6985_v46  ;;  %13388 = vmatpush3.bf16.msra.mxu0 %v20326_v4  ;;  %v7012_v46 = vsel %vm4957_vm4, %v7002_v15, %v7011_v58  ;;  %v7029_v15 = vor.u32 %v7028_v39, %v7025_v47 }
 0x658   :  { %13389 = vmatprep.subr.bf16.mxu0 %v20327_v22  ;;  %v7021_v4 = vsel %vm4957_vm4, %v7011_v58, %v7020_v33  ;;  %v19994_v58 = vshll.u32 %v17865_v40, 16  ;;  %v7052_v47 = vrot.slane %v19993_v20, 3 }
 0x659   :  { %v7030_v7 = vsel %vm4957_vm4, %v7020_v33, %v7029_v15 }
 0x65a   :  { %v7055_v39 = vrot.slane %v19994_v58, 4 }
 0x65b   :  { %13390 = vmatpush3.bf16.msra.mxu0 %v20327_v22  ;;  %v7037_v22 = vrot.slane %v19989_v23, 4 }
 0x65c   :  { %13431 = vmatprep.subr.bf16.mxu0 %v20328_v34  ;;  %v7056_v33 = vor.u32 %v7055_v39, %v7052_v47 }
 0x65d   :  { %v7038_v26 = vor.u32 %v7037_v22, %v7034_v41 }
 0x65e   :  { %13352 = vmatmul.mubr.bf16.gmra.mrb[80].mxu0 %v6994_v30  ;;  %v17863_v30 = vld [vmem:[#allocation3 + $0x90] sm:$0xff] }
 0x65f   :  { %13355 = vmatprep.mubr.bf16.mxu0 %v7003_v43  ;;  %v19991_v18 = vshrl.u32 %v17863_v30, 16  ;;  %v19992_v43 = vshll.u32 %v17863_v30, 16 }
 0x661   :  { %v7043_v23 = vrot.slane %v19991_v18, 3  ;;  %v7046_v50 = vrot.slane %v19992_v43, 4 }
 0x663   :  { %v7047_v41 = vor.u32 %v7046_v50, %v7043_v23  ;;  %v7077_v50 = vshrl.u32 %v17891_v37, 16 }
 0x665   :  { %v7048_v43 = vsel %vm4957_vm4, %v7038_v26, %v7047_v41 }
 0x666   :  { %13356 = vmatmul.mubr.bf16.gmra.mrb[84].mxu0 %v7012_v46  ;;  %v7039_v46 = vsel %vm4957_vm4, %v7029_v15, %v7038_v26  ;;  %v7057_v15 = vsel %vm4957_vm4, %v7047_v41, %v7056_v33  ;;  %v7066_v26 = vsel %vm4957_vm4, %v7056_v33, %v17617_v36  ;;  %v17899_v41 = vld [vmem:[#allocation3 + $0x10] sm:$0xf0]  ;;  %v7374_v33 = vrot.slane %v17721_v56, 4 }
 0x667   :  { %13359 = vmatprep.mubr.bf16.mxu0 %v7021_v4  ;;  %v17881_v4 = vld [vmem:[#allocation3 + $0xa8] sm:$0xff]  ;;  %v7698_v56 = vrot.slane %v6945_v51, 5 }
 0x668   :  { %v19997_v22 = vshrl.u32 %v17881_v4, 16  ;;  %v19996_v18 = vshll.u32 %v17881_v4, 16 }
 0x66a   :  { %v7070_v20 = vrot.slane %v19997_v22, 3  ;;  %v7073_v58 = vrot.slane %v19996_v18, 4 }
 0x66c   :  { %v7074_v23 = vor.u32 %v7073_v58, %v7070_v20  ;;  %v7372_v58 = vrot.slane %v17719_v54, 4  ;;  %v7694_v54 = vrot.slane %v6936_v44, 5 }
 0x66e   :  { %13360 = vmatmul.mubr.bf16.gmra.mrb[88].mxu0 %v7030_v7  ;;  %v7080_v7 = vshll.u32 %v17891_v37, 16  ;;  %v7075_v39 = vsel %vm4957_vm4, %v17617_v36, %v7074_v23 }
 0x66f   :  { %13363 = vmatprep.mubr.bf16.mxu0 %v7039_v46  ;;  %v7079_v46 = vrot.slane %v7077_v50, 3  ;;  %v7375_v50 = vsel %vm4556_vm3, %v7372_v58, %v7374_v33 }
 0x670   :  { %v7082_v47 = vrot.slane %v7080_v7, 4  ;;  %v7376_v7 = vrot.slane %v17739_v48, 4  ;;  %v7702_v48 = vrot.slane %v6954_v16, 5 }
 0x672   :  { %v7083_v18 = vor.u32 %v7082_v47, %v7079_v46  ;;  %v20330_v46 = vld [vmem:[#allocation80_spill] sm:$0xff]  ;;  %v7380_v47 = vrot.slane %v17757_v53, 4  ;;  %v7710_v53 = vrot.slane %v6972_v5, 5 }
 0x674   :  { %v7084_v22 = vsel %vm4957_vm4, %v7074_v23, %v7083_v18  ;;  %v7378_v18 = vrot.slane %v17741_v28, 4  ;;  %v7706_v28 = vrot.slane %v6963_v2, 5 }
 0x676   :  { %13364 = vmatmul.mubr.bf16.gmra.mrb[92].mxu0 %v7048_v43  ;;  %v7369_v43 = vrot.slane %v17899_v41, 4  ;;  %v7379_v23 = vsel %vm4556_vm3, %v7376_v7, %v7378_v18 }
 0x677   :  { %13367 = vmatprep.mubr.bf16.mxu0 %v7057_v15  ;;  %v7370_v15 = vrot.slane %v17704_v24, 4  ;;  %v7689_v24 = vrot.slane %v6924_v0, 4  ;;  %v7697_v0 = vrot.slane %v6942_v55, 4  ;;  %v7705_v55 = vrot.slane %v6960_v35, 4 }
 0x678   :  { %v7713_v35 = vrot.slane %v6978_v38, 4  ;;  %v7721_v38 = vrot.slane %v6996_v11, 4  ;;  %v7729_v11 = vrot.slane %v7014_v52, 4 }
 0x679   :  { %v7371_v20 = vsel %vm4556_vm3, %v7369_v43, %v7370_v15  ;;  %v7373_v36 = vsel %vm4556_vm3, %v7370_v15, %v7372_v58  ;;  %v7381_v43 = vsel %vm4556_vm3, %v7378_v18, %v7380_v47  ;;  %v7384_v58 = vrot.slane %v17779_v14, 4 }
 0x67a   :  { %v7388_v18 = vrot.slane %v17800_v25, 4  ;;  %v7718_v14 = vrot.slane %v6990_v32, 5  ;;  %v7726_v25 = vrot.slane %v7008_v8, 5 }
 0x67e   :  { %13368 = vmatmul.mubr.bf16.gmra.mrb[96].mxu0 %v7066_v26  ;;  %v20329_v26 = vld [vmem:[#allocation79_spill] sm:$0xff] }
 0x67f   :  { %13371 = vmatprep.mubr.bf16.mxu0 %v7075_v39  ;;  %v20331_v39 = vld [vmem:[#allocation81_spill] sm:$0xff] }
 0x686   :  { %13372 = vmatmul.mubr.bf16.gmra.mrb[100].mxu0 %v7084_v22  ;;  %v7377_v22 = vsel %vm4556_vm3, %v7374_v33, %v7376_v7  ;;  %v7386_v33 = vrot.slane %v17781_v62, 4  ;;  %v7722_v62 = vrot.slane %v6999_v27, 5 }
 0x687   :  { %13391 = vmatprep.mubr.bf16.mxu0 %v7371_v20  ;;  %v20332_v20 = vld [vmem:[#allocation82_spill] sm:$0xff] }
 0x688   :  { %v7387_v7 = vsel %vm4556_vm3, %v7384_v58, %v7386_v33 }
 0x68e   :  { %13392 = vmatmul.mubr.bf16.vlgmr.msra.gmra.mrb[64].mxu0 %v7373_v36  ;;  %v20333_v36 = vld [vmem:[#allocation83_spill] sm:$0xff] }
 0x68f   :  { %13432 = vmatpush3.bf16.msra.mxu0 %v20328_v34  ;;  %13395 = vmatprep.mubr.bf16.mxu0 %v7375_v50  ;;  %v7382_v34 = vrot.slane %v17759_v1, 4  ;;  %v7714_v1 = vrot.slane %v6981_v19, 5 }
 0x690   :  { %13433 = vmatprep.subr.bf16.mxu0 %v20329_v26 }
 0x691   :  { %v7383_v15 = vsel %vm4556_vm3, %v7380_v47, %v7382_v34  ;;  %v7385_v50 = vsel %vm4556_vm3, %v7382_v34, %v7384_v58  ;;  %v7392_v34 = vrot.slane %v17822_v42, 4  ;;  %v7398_v58 = vrot.slane %v17847_v6, 4 }
 0x692   :  { %v20337_v42 = vshll.u32 %v17844_v60, 16 }
 0x693   :  { %13434 = vmatpush3.bf16.msra.mxu0 %v20329_v26  ;;  %v20334_v26 = vld [vmem:[#allocation84_spill] sm:$0xff] }
 0x694   :  { %13435 = vmatprep.subr.bf16.mxu0 %v20330_v46  ;;  %v7734_v8 = vrot.slane %v20337_v42, 5 }
 0x696   :  { %13396 = vmatmul.mubr.bf16.gmra.mrb[68].mxu0 %v7377_v22  ;;  %v7390_v22 = vrot.slane %v17803_v13, 4  ;;  %v7730_v13 = vrot.slane %v7017_v49, 5 }
 0x697   :  { %13399 = vmatprep.mubr.bf16.mxu0 %v7379_v23  ;;  %13436 = vmatpush3.bf16.msra.mxu0 %v20330_v46  ;;  %v20335_v23 = vld [vmem:[#allocation85_spill] sm:$0xff]  ;;  %v7389_v46 = vsel %vm4556_vm3, %v7386_v33, %v7388_v18 }
 0x698   :  { %13437 = vmatprep.subr.bf16.mxu0 %v20331_v39  ;;  %v7391_v47 = vsel %vm4556_vm3, %v7388_v18, %v7390_v22 }
 0x69b   :  { %13438 = vmatpush3.bf16.msra.mxu0 %v20331_v39  ;;  %v7394_v39 = vrot.slane %v17825_v61, 4  ;;  %v20339_v61 = vshll.u32 %v17847_v6, 16 }
 0x69c   :  { %13439 = vmatprep.subr.bf16.mxu0 %v20332_v20 }
 0x69d   :  { %v7738_v49 = vrot.slane %v20339_v61, 5 }
 0x69e   :  { %13400 = vmatmul.mubr.bf16.gmra.mrb[72].mxu0 %v7381_v43  ;;  %v7393_v43 = vsel %vm4556_vm3, %v7390_v22, %v7392_v34  ;;  %v7406_v22 = vrot.slane %v17881_v4, 4 }
 0x69f   :  { %13403 = vmatprep.mubr.bf16.mxu0 %v7383_v15  ;;  %13440 = vmatpush3.bf16.msra.mxu0 %v20332_v20  ;;  %v7395_v15 = vsel %vm4556_vm3, %v7392_v34, %v7394_v39  ;;  %v7396_v20 = vrot.slane %v17844_v60, 4 }
 0x6a0   :  { %13441 = vmatprep.subr.bf16.mxu0 %v20333_v36  ;;  %v7407_v34 = vsel %vm4556_vm3, %v17660_v29, %v7406_v22 }
 0x6a1   :  { %v7397_v33 = vsel %vm4556_vm3, %v7394_v39, %v7396_v20 }
 0x6a3   :  { %13442 = vmatpush3.bf16.msra.mxu0 %v20333_v36  ;;  %v7399_v36 = vsel %vm4556_vm3, %v7396_v20, %v7398_v58  ;;  %v7682_v20 = vrot.slane %v6909_v63, 5 }
 0x6a4   :  { %13443 = vmatprep.subr.bf16.mxu0 %v20334_v26 }
 0x6a6   :  { %13404 = vmatmul.mubr.bf16.gmra.mrb[76].mxu0 %v7385_v50  ;;  %v7400_v50 = vrot.slane %v17863_v30, 4 }
 0x6a7   :  { %13407 = vmatprep.mubr.bf16.mxu0 %v7387_v7  ;;  %13444 = vmatpush3.bf16.msra.mxu0 %v20334_v26  ;;  %v7402_v7 = vrot.slane %v17865_v40, 4 }
 0x6a8   :  { %13445 = vmatprep.subr.bf16.mxu0 %v20335_v23  ;;  %v7401_v26 = vsel %vm4556_vm3, %v7398_v58, %v7400_v50  ;;  %v7408_v58 = vrot.slane %v17891_v37, 4 }
 0x6a9   :  { %v7403_v18 = vsel %vm4556_vm3, %v7400_v50, %v7402_v7  ;;  %v7685_v50 = vrot.slane %v6915_v17, 4  ;;  %v7693_v17 = vrot.slane %v6933_v12, 4  ;;  %v7701_v12 = vrot.slane %v6951_v10, 4 }
 0x6aa   :  { %v7709_v10 = vrot.slane %v6969_v9, 4  ;;  %v7717_v9 = vrot.slane %v6987_v3, 4  ;;  %v7725_v3 = vrot.slane %v7005_v59, 4 }
 0x6ab   :  { %13446 = vmatpush3.bf16.msra.mxu0 %v20335_v23  ;;  %v7674_v23 = vshrl.u32 %v17899_v41, 16  ;;  %v7703_v51 = vor.u32 %v7702_v48, %v7701_v12  ;;  %v7663_v12 = vld [vmem:[#allocation3 + $0xb0] sm:$0x1f] }
 0x6ac   :  { %v7711_v2 = vor.u32 %v7710_v53, %v7709_v10  ;;  %v7719_v19 = vor.u32 %v7718_v14, %v7717_v9  ;;  %v7727_v27 = vor.u32 %v7726_v25, %v7725_v3  ;;  %v7758_v48 = vshrl.u32 %v7663_v12, 16  ;;  %v18058_v10 = vld [vmem:[%s19797_s4] ss:$0 sm:$0xff] }
 0x6ad   :  { %v7676_v39 = vrot.slane %v7674_v23, 4  ;;  %v7707_v23 = vor.u32 %v7706_v28, %v7705_v55 }
 0x6ae   :  { %13408 = vmatmul.mubr.bf16.gmra.mrb[80].mxu0 %v7389_v46  ;;  %v7677_v46 = vshll.u32 %v17899_v41, 16  ;;  %v7760_v28 = vrot.slane %v7758_v48, 4 }
 0x6af   :  { %13411 = vmatprep.mubr.bf16.mxu0 %v7391_v47  ;;  %v7405_v47 = vsel %vm4556_vm3, %v7402_v7, %v17660_v29  ;;  %v7686_v29 = vrot.slane %v6918_v57, 5  ;;  %v7708_v16 = vsel %vm1780_vm0, %v7703_v51, %v7707_v23 }
 0x6b1   :  { %v7687_v63 = vor.u32 %v7686_v29, %v7685_v50 }
 0x6b6   :  { %13412 = vmatmul.mubr.bf16.gmra.mrb[84].mxu0 %v7393_v43  ;;  %v7679_v43 = vrot.slane %v7677_v46, 5 }
 0x6b7   :  { %13415 = vmatprep.mubr.bf16.mxu0 %v7395_v15  ;;  %v7681_v15 = vrot.slane %v6906_v31, 4  ;;  %v7690_v31 = vrot.slane %v6927_v45, 5  ;;  %v7695_v45 = vor.u32 %v7694_v54, %v7693_v17 }
 0x6b9   :  { %v7683_v41 = vor.u32 %v7682_v20, %v7681_v15  ;;  %v7691_v37 = vor.u32 %v7690_v31, %v7689_v24  ;;  %v7731_v15 = vor.u32 %v7730_v13, %v7729_v11 }
 0x6bb   :  { %v7692_v57 = vsel %vm1780_vm0, %v7687_v63, %v7691_v37 }
 0x6be   :  { %13416 = vmatmul.mubr.bf16.gmra.mrb[88].mxu0 %v7397_v33  ;;  %v7680_v33 = vor.u32 %v7679_v43, %v7676_v39  ;;  %v7723_v39 = vor.u32 %v7722_v62, %v7721_v38 }
 0x6bf   :  { %13419 = vmatprep.mubr.bf16.mxu0 %v7399_v36  ;;  %v7409_v36 = vsel %vm4556_vm3, %v7406_v22, %v7408_v58  ;;  %v7696_v22 = vsel %vm1780_vm0, %v7691_v37, %v7695_v45  ;;  %v20336_v58 = vshrl.u32 %v17844_v60, 16  ;;  %v20341_v60 = vshll.u32 %v17863_v30, 16 }
 0x6c0   :  { %v7684_v7 = vsel %vm1780_vm0, %v7680_v33, %v7683_v41  ;;  %v7724_v32 = vsel %vm1780_vm0, %v7719_v19, %v7723_v39  ;;  %v7728_v20 = vsel %vm1780_vm0, %v7723_v39, %v7727_v27  ;;  %v7732_v33 = vsel %vm1780_vm0, %v7727_v27, %v7731_v15 }
 0x6c1   :  { %v7733_v59 = vrot.slane %v20336_v58, 4  ;;  %v7742_v31 = vrot.slane %v20341_v60, 5  ;;  %v20342_v37 = vshrl.u32 %v17865_v40, 16 }
 0x6c6   :  { %13420 = vmatmul.mubr.bf16.gmra.mrb[92].mxu0 %v7401_v26  ;;  %v7688_v26 = vsel %vm1780_vm0, %v7683_v41, %v7687_v63  ;;  %v20338_v41 = vshrl.u32 %v17847_v6, 16  ;;  %v20343_v6 = vshll.u32 %v17865_v40, 16  ;;  %v7761_v40 = vshll.u32 %v7663_v12, 16 }
 0x6c7   :  { %13423 = vmatprep.mubr.bf16.mxu0 %v7403_v18  ;;  %v7699_v18 = vor.u32 %v7698_v56, %v7697_v0 }
 0x6c8   :  { %v7737_v52 = vrot.slane %v20338_v41, 4  ;;  %v7746_v17 = vrot.slane %v20343_v6, 5 }
 0x6c9   :  { %v7700_v44 = vsel %vm1780_vm0, %v7695_v45, %v7699_v18  ;;  %v7704_v46 = vsel %vm1780_vm0, %v7699_v18, %v7703_v51  ;;  %v20344_v45 = vshrl.u32 %v17881_v4, 16  ;;  %v20345_v18 = vshll.u32 %v17881_v4, 16 }
 0x6ca   :  { %v7739_v50 = vor.u32 %v7738_v49, %v7737_v52  ;;  %v7763_v51 = vrot.slane %v7761_v40, 5 }
 0x6ce   :  { %13424 = vmatmul.mubr.bf16.gmra.mrb[96].mxu0 %v7405_v47  ;;  %v7715_v47 = vor.u32 %v7714_v1, %v7713_v35 }
 0x6cf   :  { %13427 = vmatprep.mubr.bf16.mxu0 %v7407_v34  ;;  %v7712_v34 = vsel %vm1780_vm0, %v7707_v23, %v7711_v2 }
 0x6d0   :  { %v7716_v5 = vsel %vm1780_vm0, %v7711_v2, %v7715_v47  ;;  %v7720_v43 = vsel %vm1780_vm0, %v7715_v47, %v7719_v19 }
 0x6d6   :  { %13428 = vmatmul.mubr.bf16.gmra.mrb[100].mxu0 %v7409_v36  ;;  %v7735_v36 = vor.u32 %v7734_v8, %v7733_v59 }
 0x6d7   :  { %13447 = vmatprep.mubr.bf16.mxu0 %v7684_v7  ;;  %v20340_v7 = vshrl.u32 %v17863_v30, 16  ;;  %v7753_v30 = vrot.slane %v20344_v45, 4 }
 0x6d8   :  { %v7736_v29 = vsel %vm1780_vm0, %v7731_v15, %v7735_v36  ;;  %v7740_v63 = vsel %vm1780_vm0, %v7735_v36, %v7739_v50 }
 0x6d9   :  { %v7741_v24 = vrot.slane %v20340_v7, 4 }
 0x6db   :  { %v7743_v54 = vor.u32 %v7742_v31, %v7741_v24 }
 0x6dd   :  { %v7744_v0 = vsel %vm1780_vm0, %v7739_v50, %v7743_v54 }
 0x6de   :  { %13448 = vmatmul.mubr.bf16.vlgmr.msra.gmra.mrb[64].mxu0 %v7688_v26  ;;  %v7745_v26 = vrot.slane %v20342_v37, 4 }
 0x6df   :  { %13451 = vmatprep.mubr.bf16.mxu0 %v7692_v57 }
 0x6e0   :  { %v7747_v57 = vor.u32 %v7746_v17, %v7745_v26 }
 0x6e2   :  { %v7748_v56 = vsel %vm1780_vm0, %v7743_v54, %v7747_v57  ;;  %v7752_v55 = vsel %vm1780_vm0, %v7747_v57, %v17708_v21 }
 0x6e6   :  { %13452 = vmatmul.mubr.bf16.gmra.mrb[68].mxu0 %v7696_v22  ;;  %v7754_v22 = vrot.slane %v20345_v18, 5 }
 0x6e7   :  { %13455 = vmatprep.mubr.bf16.mxu0 %v7700_v44 }
 0x6e8   :  { %v7755_v44 = vor.u32 %v7754_v22, %v7753_v30 }
 0x6ea   :  { %v7756_v23 = vsel %vm1780_vm0, %v17708_v21, %v7755_v44 }
 0x6ee   :  { %13456 = vmatmul.mubr.bf16.gmra.mrb[72].mxu0 %v7704_v46  ;;  %v7764_v46 = vor.u32 %v7763_v51, %v7760_v28 }
 0x6ef   :  { %13459 = vmatprep.mubr.bf16.mxu0 %v7708_v16 }
 0x6f0   :  { %v7765_v4 = vsel %vm1780_vm0, %v7755_v44, %v7764_v46 }
 0x6f6   :  { %13460 = vmatmul.mubr.bf16.gmra.mrb[76].mxu0 %v7712_v34 }
 0x6f7   :  { %13463 = vmatprep.mubr.bf16.mxu0 %v7716_v5 }
 0x6fe   :  { %13464 = vmatmul.mubr.bf16.gmra.mrb[80].mxu0 %v7720_v43 }
 0x6ff   :  { %13467 = vmatprep.mubr.bf16.mxu0 %v7724_v32 }
 0x706   :  { %13468 = vmatmul.mubr.bf16.gmra.mrb[84].mxu0 %v7728_v20 }
 0x707   :  { %13471 = vmatprep.mubr.bf16.mxu0 %v7732_v33 }
 0x70e   :  { %13472 = vmatmul.mubr.bf16.gmra.mrb[88].mxu0 %v7736_v29 }
 0x70f   :  { %13475 = vmatprep.mubr.bf16.mxu0 %v7740_v63 }
 0x716   :  { %13476 = vmatmul.mubr.bf16.gmra.mrb[92].mxu0 %v7744_v0 }
 0x717   :  { %13479 = vmatprep.mubr.bf16.mxu0 %v7748_v56 }
 0x71e   :  { %13480 = vmatmul.mubr.bf16.gmra.mrb[96].mxu0 %v7752_v55 }
 0x71f   :  { %13483 = vmatprep.mubr.bf16.mxu0 %v7756_v23 }
 0x726   :  { %13484 = vmatmul.mubr.bf16.gmra.mrb[100].mxu0 %v7765_v4 }
 0x7b1   :  { %v13449_v53 = vpop.f32.mrb[64].mxu0 }
 0x7b2   :  { %v8028_v16 = vadd.f32 %v13449_v53, %v18058_v10  ;;  %v7820_v35 = vpop.f32.mrb[65].mxu0 }
 0x7b3   :  { %v8026_v1 = vadd.f32 %v18058_v10, %v7820_v35  ;;  %v13450_v2 = vpop.f32.mrb[66].mxu0 }
 0x7b4   :  { %v8029_v21 = vadd.f32 %v13450_v2, %v18058_v10  ;;  %v7823_v47 = vpop.f32.mrb[67].mxu0  ;;  %v8068_v9 = vmax.f32 %v8028_v16, 0.0 }
 0x7b5   :  { %v8027_v34 = vadd.f32 %v18058_v10, %v7823_v47  ;;  %v8066_v5 = vmax.f32 %v8026_v1, 0.0 }
 0x7b6   :  { %v8069_v14 = vmax.f32 %v8029_v21, 0.0 }
 0x7b7   :  { %v8067_v38 = vmax.f32 %v8027_v34, 0.0 }
 0x7b8   :  { %v12217_v62 = vpack.c.bf16 %v8069_v14, %v8068_v9 }
 0x7b9   :  { %v12212_v19 = vpack.c.bf16 %v8067_v38, %v8066_v5  ;;  %v13453_v39 = vpop.f32.mrb[68].mxu0 }
 0x7ba   :  { %12340 = vst [vmem:[#allocation4 + $0x8] sm:$0xff] %v12217_v62   ;;  %v8032_v43 = vadd.f32 %v13453_v39, %v18058_v10  ;;  %v7836_v3 = vpop.f32.mrb[69].mxu0 }
 0x7bb   :  { %12213 = vst [vmem:[#allocation4] sm:$0xff] %v12212_v19   ;;  %v8030_v25 = vadd.f32 %v18058_v10, %v7836_v3  ;;  %v13454_v32 = vpop.f32.mrb[70].mxu0 }
 0x7bc   :  { %v8033_v11 = vadd.f32 %v13454_v32, %v18058_v10  ;;  %v7839_v13 = vpop.f32.mrb[71].mxu0  ;;  %v8072_v15 = vmax.f32 %v8032_v43, 0.0 }
 0x7bd   :  { %v8031_v27 = vadd.f32 %v18058_v10, %v7839_v13  ;;  %v8070_v58 = vmax.f32 %v8030_v25, 0.0 }
 0x7be   :  { %v8073_v20 = vmax.f32 %v8033_v11, 0.0 }
 0x7bf   :  { %v8071_v59 = vmax.f32 %v8031_v27, 0.0 }
 0x7c0   :  { %v12227_v42 = vpack.c.bf16 %v8073_v20, %v8072_v15 }
 0x7c1   :  { %v18068_v8 = vld [vmem:[#allocation4 + $0x8] sm:$0xf]  ;;  %v18070_v33 = vld [vmem:[#allocation4 + $0xc] sm:$0xf]  ;;  %v12222_v52 = vpack.c.bf16 %v8071_v59, %v8070_v58  ;;  %v18080_v0 = vpop.f32.mrb[72].mxu0 }
 0x7c2   :  { %v8833_v41 = vld [vmem:[#allocation4 + $0x8] sm:$0xf]  ;;  %v8367_v61 = vshll.u32 %v18068_v8, 16  ;;  %v8371_v49 = vshrl.u32 %v18068_v8, 16  ;;  %v8377_v36 = vshll.u32 %v18070_v33, 16  ;;  %v8381_v50 = vshrl.u32 %v18070_v33, 16 }
 0x7c3   :  { %v8834_v29 = vld [vmem:[#allocation4 + $0xc] sm:$0xf]  ;;  %12342 = vst [vmem:[#allocation4 + $0x18] sm:$0xff] %v12227_v42   ;;  %v8875_v7 = vshrl.u32 %v8833_v41, 16  ;;  %v8878_v24 = vshll.u32 %v8833_v41, 16  ;;  %12341 = vst [vmem:[#allocation4 + $0x10] sm:$0xff] %v12222_v52  }
 0x7c4   :  { %v8884_v60 = vshll.u32 %v8834_v29, 16  ;;  %v8306_v31 = vld [vmem:[#allocation4] sm:$0xf]  ;;  %v18076_v63 = vrot.slane %v8367_v61, 5  ;;  %v8373_v37 = vrot.slane %v8371_v49, 4  ;;  %v8888_v26 = vshrl.u32 %v8834_v29, 16 }
 0x7c5   :  { %v18078_v6 = vld [vmem:[#allocation4 + $0x4] sm:$0xf]  ;;  %v8379_v17 = vrot.slane %v8377_v36, 5  ;;  %v8877_v54 = vrot.slane %v8875_v7, 4  ;;  %v8880_v57 = vrot.slane %v8878_v24, 5  ;;  %v8383_v45 = vrot.slane %v8381_v50, 4 }
 0x7c6   :  { %v8374_v56 = vor.u32 %v8373_v37, %v18076_v63  ;;  %v8348_v30 = vshrl.u32 %v8306_v31, 16  ;;  %v8351_v18 = vshll.u32 %v8306_v31, 16  ;;  %v18083_v22 = vpop.f32.mrb[73].mxu0  ;;  %v8886_v48 = vrot.slane %v8884_v60, 5 }
 0x7c7   :  { %v8881_v12 = vor.u32 %v8880_v57, %v8877_v54  ;;  %v8357_v40 = vshll.u32 %v18078_v6, 16  ;;  %v8361_v44 = vshrl.u32 %v18078_v6, 16  ;;  %v18087_v55 = vpop.f32.mrb[74].mxu0  ;;  %v8890_v51 = vrot.slane %v8888_v26, 4 }
 0x7c8   :  { %v8375_v28 = vrot.slane %v8374_v56, 4  ;;  %v8350_v23 = vrot.slane %v8348_v30, 4  ;;  %v8353_v46 = vrot.slane %v8351_v18, 5  ;;  %v18089_v4 = vpop.f32.mrb[75].mxu0  ;;  %v8384_v39 = vor.u32 %v8383_v45, %v8379_v17 }
 0x7c9   :  { %v8882_v53 = vrot.slane %v8881_v12, 4  ;;  %v8359_v16 = vrot.slane %v8357_v40, 5  ;;  %v8363_v35 = vrot.slane %v8361_v44, 4  ;;  %v18099_v62 = vpop.f32.mrb[76].mxu0  ;;  %v8891_v43 = vor.u32 %v8890_v51, %v8886_v48 }
 0x7ca   :  { %v18091_v1 = vld [vmem:[#allocation4 + $0x18] sm:$0xf]  ;;  %v8354_v2 = vor.u32 %v8353_v46, %v8350_v23  ;;  %v18097_v38 = vld [vmem:[#allocation4 + $0x1c] sm:$0xf]  ;;  %v8380_v19 = vsel %vm15804_vm2, %v8375_v28, %v8379_v17  ;;  %v18105_v32 = vpop.f32.mrb[77].mxu0  ;;  %v8385_v24 = vrot.slane %v8384_v39, 4 }
 0x7cb   :  { %v8407_v21 = vshll.u32 %v18091_v1, 16  ;;  %v8411_v47 = vshrl.u32 %v18091_v1, 16  ;;  %v8837_v34 = vld [vmem:[#allocation4 + $0x18] sm:$0xf]  ;;  %v8887_v14 = vsel %vm15804_vm2, %v8882_v53, %v8886_v48  ;;  %v8364_v5 = vor.u32 %v8363_v35, %v8359_v16  ;;  %v18103_v25 = vld [vmem:[#allocation4 + $0x1c] sm:$0xf] }
 0x7cc   :  { %v8355_v3 = vrot.slane %v8354_v2, 4  ;;  %v18108_v11 = vmax.bf16 %v8887_v14, %v18068_v8  ;;  %v8914_v15 = vshll.u32 %v8837_v34, 16  ;;  %v8417_v59 = vshll.u32 %v18097_v38, 16  ;;  %v18115_v41 = vld [vmem:[#allocation4 + $0x10] sm:$0xf]  ;;  %v18117_v52 = vpop.f32.mrb[78].mxu0 }
 0x7cd   :  { %v18110_v13 = vrot.slane %v8407_v21, 5  ;;  %v8413_v27 = vrot.slane %v8411_v47, 4  ;;  %v8365_v58 = vrot.slane %v8364_v5, 4  ;;  %v8918_v42 = vshrl.u32 %v8837_v34, 16  ;;  %v18125_v29 = vld [vmem:[#allocation4 + $0x14] sm:$0xf] }
 0x7ce   :  { %v8360_v20 = vsel %vm15804_vm2, %v8355_v3, %v8359_v16  ;;  %v8421_v49 = vshrl.u32 %v18097_v38, 16  ;;  %v18122_v36 = vrot.slane %v8914_v15, 5  ;;  %v8924_v50 = vshll.u32 %v18103_v25, 16  ;;  %v18127_v7 = vpop.f32.mrb[79].mxu0  ;;  %v8835_v18 = vld [vmem:[#allocation4 + $0x10] sm:$0xf] }
 0x7cf   :  { %v18119_v61 = vmax.bf16 %v8360_v20, %v8306_v31  ;;  %v8892_v60 = vrot.slane %v8891_v43, 4  ;;  %v8920_v37 = vrot.slane %v8918_v42, 4  ;;  %v18130_v26 = vmax.bf16 %v8380_v19, %v18068_v8  ;;  %v8836_v21 = vld [vmem:[#allocation4 + $0x14] sm:$0xf] }
 0x7d0   :  { %v8414_v17 = vor.u32 %v8413_v27, %v18110_v13  ;;  %v8387_v54 = vshll.u32 %v18115_v41, 16  ;;  %v8370_v56 = vsel %vm15804_vm2, %v8365_v58, %v18076_v63  ;;  %v8391_v30 = vshrl.u32 %v18115_v41, 16 }
 0x7d1   :  { %20347 = vst [vmem:[#allocation33_spill] sm:$0xff] %v18119_v61  ;;  %20348 = vst [vmem:[#allocation34_spill] sm:$0xff] %v18130_v26  ;;  %v18136_v57 = vpop.f32.mrb[80].mxu0  ;;  %v8921_v45 = vor.u32 %v8920_v37, %v18122_v36  ;;  %v8397_v8 = vshll.u32 %v18125_v29, 16  ;;  %v18146_v48 = vrot.slane %v8417_v59, 5  ;;  %v18148_v40 = vrot.slane %v8421_v49, 4 }
 0x7d2   :  { %v18144_v12 = vpop.f32.mrb[81].mxu0  ;;  %v18150_v44 = vrot.slane %v8924_v50, 5  ;;  %v8389_v28 = vrot.slane %v8387_v54, 5  ;;  %v8393_v63 = vrot.slane %v8391_v30, 4  ;;  %v8401_v53 = vshrl.u32 %v18125_v29, 16 }
 0x7d3   :  { %v18152_v51 = vpop.f32.mrb[82].mxu0  ;;  %v8922_v23 = vrot.slane %v8921_v45, 4  ;;  %v8399_v46 = vrot.slane %v8397_v8, 5  ;;  %v18158_v35 = vmax.bf16 %v8370_v56, %v18078_v6  ;;  %v18160_v2 = vrot.slane %v8414_v17, 4 }
 0x7d4   :  { %v18155_v16 = vpop.f32.mrb[83].mxu0  ;;  %v8894_v47 = vshll.u32 %v8835_v18, 16  ;;  %v8898_v34 = vshrl.u32 %v8835_v18, 16  ;;  %v8928_v5 = vshrl.u32 %v18103_v25, 16  ;;  %v8394_v19 = vor.u32 %v8393_v63, %v8389_v28 }
 0x7d5   :  { %v8927_v14 = vsel %vm15804_vm2, %v8922_v23, %v18150_v44  ;;  %v8403_v39 = vrot.slane %v8401_v53, 4  ;;  %v8390_v6 = vsel %vm15804_vm2, %v8385_v24, %v8389_v28  ;;  %v8904_v58 = vshll.u32 %v8836_v21, 16 }
 0x7d6   :  { %v18167_v43 = vmax.bf16 %v8927_v14, %v18091_v1  ;;  %v8896_v3 = vrot.slane %v8894_v47, 5  ;;  %v8900_v27 = vrot.slane %v8898_v34, 4  ;;  %v8395_v15 = vrot.slane %v8394_v19, 4 }
 0x7d7   :  { %v8404_v20 = vor.u32 %v8403_v39, %v8399_v46  ;;  %v8908_v59 = vshrl.u32 %v8836_v21, 16  ;;  %v8036_v25 = vadd.f32 %v18080_v0, %v18058_v10  ;;  %v8034_v50 = vadd.f32 %v18058_v10, %v18083_v22 }
 0x7d8   :  { %20349 = vst [vmem:[#allocation35_spill] sm:$0xff] %v18167_v43  ;;  %v8897_v42 = vsel %vm15804_vm2, %v8892_v60, %v8896_v3  ;;  %v8901_v49 = vor.u32 %v8900_v27, %v8896_v3  ;;  %v18177_v17 = vrot.slane %v8928_v5, 4  ;;  %v8400_v24 = vsel %vm15804_vm2, %v8395_v15, %v8399_v46 }
 0x7d9   :  { %v13469_v37 = vpop.f32.mrb[84].mxu0  ;;  %v8906_v54 = vrot.slane %v8904_v58, 5  ;;  %v8910_v56 = vrot.slane %v8908_v59, 4  ;;  %v18184_v30 = vmax.bf16 %v8390_v6, %v18070_v33  ;;  %v18187_v60 = vmax.bf16 %v8400_v24, %v18115_v41 }
 0x7da   :  { %v18181_v45 = vpop.f32.mrb[85].mxu0  ;;  %v8902_v0 = vrot.slane %v8901_v49, 4  ;;  %v18190_v8 = vmax.bf16 %v8897_v42, %v18070_v33  ;;  %v18192_v18 = vrot.slane %v8404_v20, 4  ;;  %v8076_v23 = vmax.f32 %v8036_v25, 0.0 }
 0x7db   :  { %20350 = vst [vmem:[#allocation36_spill] sm:$0xff] %v18184_v30  ;;  %20351 = vst [vmem:[#allocation37_spill] sm:$0xff] %v18187_v60  ;;  %v13470_v22 = vpop.f32.mrb[86].mxu0  ;;  %v8911_v28 = vor.u32 %v8910_v56, %v8906_v54  ;;  %v8037_v63 = vadd.f32 %v18087_v55, %v18058_v10  ;;  %v8074_v33 = vmax.f32 %v8034_v50, 0.0  ;;  %v8035_v19 = vadd.f32 %v18058_v10, %v18089_v4 }
 0x7dc   :  { %v7903_v46 = vpop.f32.mrb[87].mxu0  ;;  %v8907_v53 = vsel %vm15804_vm2, %v8902_v0, %v8906_v54  ;;  %v8040_v55 = vadd.f32 %v18099_v62, %v18058_v10  ;;  %v8038_v39 = vadd.f32 %v18058_v10, %v18105_v32  ;;  %v8041_v6 = vadd.f32 %v18117_v52, %v18058_v10 }
 0x7dd   :  { %v8912_v34 = vrot.slane %v8911_v28, 4  ;;  %v18203_v14 = vmax.bf16 %v8907_v53, %v18115_v41  ;;  %v8077_v5 = vmax.f32 %v8037_v63, 0.0  ;;  %v8039_v3 = vadd.f32 %v18058_v10, %v18127_v7 }
 0x7de   :  { %v8075_v15 = vmax.f32 %v8035_v19, 0.0  ;;  %v8080_v20 = vmax.f32 %v8040_v55, 0.0  ;;  %v8078_v32 = vmax.f32 %v8038_v39, 0.0  ;;  %v8081_v58 = vmax.f32 %v8041_v6, 0.0 }
 0x7df   :  { %20352 = vst [vmem:[#allocation38_spill] sm:$0xff] %v18203_v14  ;;  %v8917_v41 = vsel %vm15804_vm2, %v8912_v34, %v18122_v36  ;;  %v12237_v4 = vpack.c.bf16 %v8077_v5, %v8076_v23  ;;  %v8079_v42 = vmax.f32 %v8039_v3, 0.0  ;;  %v8044_v7 = vadd.f32 %v18136_v57, %v18058_v10 }
 0x7e0   :  { %v18221_v62 = vmax.bf16 %v8917_v41, %v18125_v29  ;;  %v12232_v52 = vpack.c.bf16 %v8075_v15, %v8074_v33  ;;  %v8042_v36 = vadd.f32 %v18058_v10, %v18144_v12  ;;  %v12247_v50 = vpack.c.bf16 %v8081_v58, %v8080_v20 }
 0x7e1   :  { %v13473_v59 = vpop.f32.mrb[88].mxu0  ;;  %12344 = vst [vmem:[#allocation4 + $0x28] sm:$0xff] %v12237_v4   ;;  %v8045_v24 = vadd.f32 %v18152_v51, %v18058_v10  ;;  %v8043_v54 = vadd.f32 %v18058_v10, %v18155_v16  ;;  %v8424_v0 = vor.u32 %v18148_v40, %v18146_v48  ;;  %v12242_v57 = vpack.c.bf16 %v8079_v42, %v8078_v32 }
 0x7e2   :  { %20353 = vst [vmem:[#allocation39_spill] sm:$0xff] %v18221_v62  ;;  %v7916_v49 = vpop.f32.mrb[89].mxu0  ;;  %12343 = vst [vmem:[#allocation4 + $0x20] sm:$0xff] %v12232_v52   ;;  %v8084_v28 = vmax.f32 %v8044_v7, 0.0  ;;  %v8048_v12 = vadd.f32 %v13469_v37, %v18058_v10  ;;  %v8082_v63 = vmax.f32 %v8042_v36, 0.0  ;;  %v8049_v51 = vadd.f32 %v13470_v22, %v18058_v10 }
 0x7e3   :  { %v18233_v56 = vpop.f32.mrb[90].mxu0  ;;  %12346 = vst [vmem:[#allocation4 + $0x38] sm:$0xff] %v12247_v50   ;;  %v8085_v53 = vmax.f32 %v8045_v24, 0.0  ;;  %v8083_v33 = vmax.f32 %v8043_v54, 0.0  ;;  %v8420_v16 = vsel %vm15804_vm2, %v18160_v2, %v18146_v48  ;;  %v8931_v40 = vor.u32 %v18177_v17, %v18150_v44  ;;  %12345 = vst [vmem:[#allocation4 + $0x30] sm:$0xff] %v12242_v57  }
 0x7e4   :  { %v18238_v23 = vpop.f32.mrb[91].mxu0  ;;  %v8410_v37 = vsel %vm15804_vm2, %v18192_v18, %v18110_v13  ;;  %v8088_v19 = vmax.f32 %v8048_v12, 0.0  ;;  %v8089_v55 = vmax.f32 %v8049_v51, 0.0  ;;  %v18251_v39 = vrot.slane %v8424_v0, 4 }
 0x7e5   :  { %v12257_v34 = vpack.c.bf16 %v8085_v53, %v8084_v28  ;;  %v12252_v5 = vpack.c.bf16 %v8083_v33, %v8082_v63  ;;  %v18255_v22 = vadd.f32 %v18058_v10, %v18181_v45  ;;  %v18258_v48 = vadd.f32 %v18058_v10, %v7903_v46 }
 0x7e6   :  { %v12267_v13 = vpack.c.bf16 %v8089_v55, %v8088_v19  ;;  %v18265_v18 = vadd.f32 %v13473_v59, %v18058_v10  ;;  %v18268_v6 = vmax.bf16 %v8420_v16, %v18091_v1  ;;  %v18270_v3 = vrot.slane %v8931_v40, 4 }
 0x7e7   :  { %12348 = vst [vmem:[#allocation4 + $0x48] sm:$0xff] %v12257_v34   ;;  %12347 = vst [vmem:[#allocation4 + $0x40] sm:$0xff] %v12252_v5   ;;  %v18273_v45 = vmax.bf16 %v8410_v37, %v18125_v29  ;;  %v18280_v58 = vadd.f32 %v18058_v10, %v7916_v49  ;;  %v20407_v9 = vmax.bf16 %v18190_v8, %v18158_v35 }
 0x7e8   :  { %v18260_v44 = vld [vmem:[#allocation4 + $0x28] sm:$0xf]  ;;  %v18262_v2 = vld [vmem:[#allocation4 + $0x2c] sm:$0xf]  ;;  %20354 = vst [vmem:[#allocation40_spill] sm:$0xff] %v18268_v6  ;;  %12350 = vst [vmem:[#allocation4 + $0x58] sm:$0xff] %v12267_v13  }
 0x7e9   :  { %v8841_v17 = vld [vmem:[#allocation4 + $0x28] sm:$0xf]  ;;  %20355 = vst [vmem:[#allocation41_spill] sm:$0xff] %v18273_v45  ;;  %v8447_v46 = vshll.u32 %v18260_v44, 16  ;;  %v8842_v41 = vld [vmem:[#allocation4 + $0x2c] sm:$0xf] }
 0x7ea   :  { %v8451_v4 = vshrl.u32 %v18260_v44, 16  ;;  %v8954_v15 = vshll.u32 %v8841_v17, 16  ;;  %v8958_v20 = vshrl.u32 %v8841_v17, 16  ;;  %v18277_v32 = vld [vmem:[#allocation4 + $0x20] sm:$0xf]  ;;  %v8457_v1 = vshll.u32 %v18262_v2, 16 }
 0x7eb   :  { %v8461_v59 = vshrl.u32 %v18262_v2, 16  ;;  %v18284_v52 = vld [vmem:[#allocation4 + $0x24] sm:$0xf]  ;;  %v8964_v50 = vshll.u32 %v8842_v41, 16  ;;  %v18291_v54 = vrot.slane %v8447_v46, 5  ;;  %v8968_v49 = vshrl.u32 %v8842_v41, 16 }
 0x7ec   :  { %v18288_v7 = vrot.slane %v8954_v15, 5  ;;  %v8960_v36 = vrot.slane %v8958_v20, 4  ;;  %v8427_v0 = vshll.u32 %v18277_v32, 16  ;;  %v8431_v57 = vshrl.u32 %v18277_v32, 16  ;;  %v8839_v33 = vld [vmem:[#allocation4 + $0x20] sm:$0xf] }
 0x7ed   :  { %v8453_v28 = vrot.slane %v8451_v4, 4  ;;  %v8437_v63 = vshll.u32 %v18284_v52, 16  ;;  %v8441_v53 = vshrl.u32 %v18284_v52, 16  ;;  %v18298_v51 = vrot.slane %v8457_v1, 5  ;;  %v8840_v13 = vld [vmem:[#allocation4 + $0x24] sm:$0xf] }
 0x7ee   :  { %v8961_v12 = vor.u32 %v8960_v36, %v18288_v7  ;;  %v18300_v16 = vrot.slane %v8461_v59, 4  ;;  %v18302_v40 = vrot.slane %v8427_v0, 5  ;;  %v8433_v37 = vrot.slane %v8431_v57, 4  ;;  %v18312_v15 = vpop.f32.mrb[92].mxu0  ;;  %v18318_v36 = vld [vmem:[#allocation4 + $0x38] sm:$0xf] }
 0x7ef   :  { %v18304_v5 = vrot.slane %v8964_v50, 5  ;;  %v8439_v19 = vrot.slane %v8437_v63, 5  ;;  %v8443_v55 = vrot.slane %v8441_v53, 4  ;;  %v8934_v46 = vshll.u32 %v8839_v33, 16  ;;  %v18326_v63 = vpop.f32.mrb[93].mxu0 }
 0x7f0   :  { %v8962_v34 = vrot.slane %v8961_v12, 4  ;;  %v8434_v17 = vor.u32 %v8433_v37, %v18302_v40  ;;  %v18310_v4 = vadd.f32 %v18233_v56, %v18058_v10  ;;  %v8454_v20 = vor.u32 %v8453_v28, %v18291_v54  ;;  %v18357_v25 = vld [vmem:[#allocation4 + $0x3c] sm:$0xf]  ;;  %v18397_v29 = vld [vmem:[#allocation4 + $0x34] sm:$0xf] }
 0x7f1   :  { %v8970_v59 = vrot.slane %v8968_v49, 4  ;;  %v18322_v50 = vadd.f32 %v18058_v10, %v18238_v23  ;;  %v8464_v0 = vor.u32 %v18300_v16, %v18298_v51  ;;  %v8936_v57 = vrot.slane %v8934_v46, 5  ;;  %v18431_v43 = vld [vmem:[#allocation4 + $0x48] sm:$0xf] }
 0x7f2   :  { %v8967_v1 = vsel %vm15804_vm2, %v8962_v34, %v18304_v5  ;;  %v8435_v56 = vrot.slane %v8434_v17, 4  ;;  %v8938_v12 = vshrl.u32 %v8839_v33, 16  ;;  %v8444_v53 = vor.u32 %v8443_v55, %v8439_v19  ;;  %v8845_v55 = vld [vmem:[#allocation4 + $0x38] sm:$0xf] }
 0x7f3   :  { %v18329_v28 = vmax.bf16 %v8967_v1, %v18260_v44  ;;  %v8944_v37 = vshll.u32 %v8840_v13, 16  ;;  %v8948_v49 = vshrl.u32 %v8840_v13, 16  ;;  %v8937_v23 = vsel %vm15804_vm2, %v18270_v3, %v8936_v57  ;;  %v18347_v3 = vld [vmem:[#allocation4 + $0x3c] sm:$0xf] }
 0x7f4   :  { %v8440_v34 = vsel %vm15804_vm2, %v8435_v56, %v8439_v19  ;;  %v8940_v47 = vrot.slane %v8938_v12, 4  ;;  %v8487_v16 = vshll.u32 %v18318_v36, 16  ;;  %v8491_v1 = vshrl.u32 %v18318_v36, 16  ;;  %v18349_v12 = vpop.f32.mrb[94].mxu0 }
 0x7f5   :  { %20356 = vst [vmem:[#allocation42_spill] sm:$0xff] %v18329_v28  ;;  %v18338_v33 = vmax.bf16 %v8440_v34, %v18277_v32  ;;  %v8946_v17 = vrot.slane %v8944_v37, 5  ;;  %v8950_v46 = vrot.slane %v8948_v49, 4  ;;  %v18341_v27 = vrot.slane %v8454_v20, 4 }
 0x7f6   :  { %v8971_v13 = vor.u32 %v8970_v59, %v18304_v5  ;;  %v8941_v19 = vor.u32 %v8940_v47, %v8936_v57  ;;  %v18345_v56 = vmax.bf16 %v8937_v23, %v18097_v38  ;;  %v8430_v37 = vsel %vm15804_vm2, %v18251_v39, %v18302_v40  ;;  %v18363_v23 = vpop.f32.mrb[95].mxu0  ;;  %v18374_v5 = vld [vmem:[#allocation4 + $0x30] sm:$0xf] }
 0x7f7   :  { %20357 = vst [vmem:[#allocation43_spill] sm:$0xff] %v18338_v33  ;;  %v8445_v49 = vrot.slane %v8444_v53, 4  ;;  %v8951_v34 = vor.u32 %v8950_v46, %v8946_v17  ;;  %v18361_v59 = vrot.slane %v8487_v16, 5  ;;  %v8994_v57 = vshll.u32 %v8845_v55, 16  ;;  %v18366_v53 = vpop.f32.mrb[96].mxu0 }
 0x7f8   :  { %20358 = vst [vmem:[#allocation44_spill] sm:$0xff] %v18345_v56  ;;  %v8942_v47 = vrot.slane %v8941_v19, 4  ;;  %v8493_v21 = vrot.slane %v8491_v1, 4  ;;  %v8497_v39 = vshll.u32 %v18347_v3, 16  ;;  %v8998_v40 = vshrl.u32 %v8845_v55, 16  ;;  %v18376_v41 = vpop.f32.mrb[97].mxu0 }
 0x7f9   :  { %v8952_v31 = vrot.slane %v8951_v34, 4  ;;  %v8501_v19 = vshrl.u32 %v18347_v3, 16  ;;  %v18371_v20 = vrot.slane %v8994_v57, 5  ;;  %v9004_v16 = vshll.u32 %v18357_v25, 16  ;;  %v8844_v33 = vld [vmem:[#allocation4 + $0x34] sm:$0xf] }
 0x7fa   :  { %v8947_v46 = vsel %vm15804_vm2, %v8942_v47, %v8946_v17  ;;  %v18378_v34 = vrot.slane %v8464_v0, 4  ;;  %v9000_v17 = vrot.slane %v8998_v40, 4  ;;  %v18386_v47 = vpop.f32.mrb[98].mxu0  ;;  %v8972_v57 = vrot.slane %v8971_v13, 4 }
 0x7fb   :  { %v8957_v1 = vsel %vm15804_vm2, %v8952_v31, %v18288_v7  ;;  %v18384_v55 = vmax.bf16 %v8947_v46, %v18277_v32  ;;  %v8450_v24 = vsel %vm15804_vm2, %v8445_v49, %v18291_v54  ;;  %v18392_v42 = vmax.bf16 %v8430_v37, %v18097_v38  ;;  %v18399_v31 = vpop.f32.mrb[99].mxu0  ;;  %v8843_v54 = vld [vmem:[#allocation4 + $0x30] sm:$0xf] }
 0x7fc   :  { %v18395_v0 = vmax.bf16 %v8957_v1, %v18284_v52  ;;  %v8494_v7 = vor.u32 %v8493_v21, %v18361_v59  ;;  %v9001_v13 = vor.u32 %v9000_v17, %v18371_v20  ;;  %v8467_v40 = vshll.u32 %v18374_v5, 16  ;;  %v18406_v49 = vpop.f32.mrb[100].mxu0 }
 0x7fd   :  { %20359 = vst [vmem:[#allocation45_spill] sm:$0xff] %v18384_v55  ;;  %20360 = vst [vmem:[#allocation46_spill] sm:$0xff] %v18392_v42  ;;  %v8499_v37 = vrot.slane %v8497_v39, 5  ;;  %v8503_v46 = vrot.slane %v8501_v19, 4  ;;  %v18410_v1 = vrot.slane %v9004_v16, 5  ;;  %v18412_v28 = vpop.f32.mrb[101].mxu0 }
 0x7fe   :  { %20361 = vst [vmem:[#allocation47_spill] sm:$0xff] %v18395_v0  ;;  %v9002_v32 = vrot.slane %v9001_v13, 4  ;;  %v18414_v6 = vrot.slane %v8467_v40, 5  ;;  %v8471_v21 = vshrl.u32 %v18374_v5, 16  ;;  %v8477_v17 = vshll.u32 %v18397_v29, 16  ;;  %v18418_v55 = vpop.f32.mrb[102].mxu0 }
 0x7ff   :  { %v9008_v60 = vshrl.u32 %v18357_v25, 16  ;;  %v8481_v38 = vshrl.u32 %v18397_v29, 16  ;;  %v8974_v39 = vshll.u32 %v8843_v54, 16  ;;  %v8978_v19 = vshrl.u32 %v8843_v54, 16  ;;  %v18422_v16 = vpop.f32.mrb[103].mxu0 }
 0x800   :  { %v8460_v13 = vsel %vm15804_vm2, %v18341_v27, %v18298_v51  ;;  %v18429_v40 = vmax.bf16 %v8450_v24, %v18284_v52  ;;  %v8495_v42 = vrot.slane %v8494_v7, 4  ;;  %v8473_v0 = vrot.slane %v8471_v21, 4 }
 0x801   :  { %v8504_v45 = vor.u32 %v8503_v46, %v8499_v37  ;;  %v9007_v25 = vsel %vm15804_vm2, %v9002_v32, %v18410_v1  ;;  %v8479_v54 = vrot.slane %v8477_v17, 5  ;;  %v8483_v56 = vrot.slane %v8481_v38, 4 }
 0x802   :  { %20362 = vst [vmem:[#allocation48_spill] sm:$0xff] %v18429_v40  ;;  %v8474_v26 = vor.u32 %v8473_v0, %v18414_v6  ;;  %v8976_v14 = vrot.slane %v8974_v39, 5  ;;  %v8980_v30 = vrot.slane %v8978_v19, 4  ;;  %v8984_v62 = vshll.u32 %v8844_v33, 16 }
 0x803   :  { %v9010_v27 = vrot.slane %v9008_v60, 4  ;;  %v8988_v51 = vshrl.u32 %v8844_v33, 16  ;;  %v8527_v52 = vshll.u32 %v18431_v43, 16  ;;  %v8531_v24 = vshrl.u32 %v18431_v43, 16 }
 0x804   :  { %v8475_v7 = vrot.slane %v8474_v26, 4  ;;  %v8977_v46 = vsel %vm15804_vm2, %v8972_v57, %v8976_v14  ;;  %v8981_v21 = vor.u32 %v8980_v30, %v8976_v14  ;;  %v8986_v61 = vrot.slane %v8984_v62, 5  ;;  %v8849_v57 = vld [vmem:[#allocation4 + $0x48] sm:$0xf]  ;;  %v8848_v62 = vld [vmem:[#allocation4 + $0x44] sm:$0xf] }
 0x805   :  { %v18442_v32 = vmax.bf16 %v9007_v25, %v18318_v36  ;;  %v8484_v38 = vor.u32 %v8483_v56, %v8479_v54  ;;  %v8990_v0 = vrot.slane %v8988_v51, 4  ;;  %v18445_v17 = vmax.bf16 %v8977_v46, %v18262_v2 }
 0x806   :  { %v8500_v60 = vsel %vm15804_vm2, %v8495_v42, %v8499_v37  ;;  %v8480_v33 = vsel %vm15804_vm2, %v8475_v7, %v8479_v54  ;;  %v8982_v26 = vrot.slane %v8981_v21, 4  ;;  %v18451_v39 = vrot.slane %v8527_v52, 5  ;;  %v18468_v54 = vld [vmem:[#allocation4 + $0x4c] sm:$0xf] }
 0x807   :  { %20363 = vst [vmem:[#allocation49_spill] sm:$0xff] %v18442_v32  ;;  %20364 = vst [vmem:[#allocation50_spill] sm:$0xff] %v18445_v17  ;;  %v18454_v30 = vmax.bf16 %v8480_v33, %v18374_v5  ;;  %v8991_v14 = vor.u32 %v8990_v0, %v8986_v61  ;;  %v8533_v56 = vrot.slane %v8531_v24, 4  ;;  %v18459_v19 = vmax.bf16 %v8460_v13, %v18260_v44 }
 0x808   :  { %v9011_v42 = vor.u32 %v9010_v27, %v18410_v1  ;;  %v8470_v37 = vsel %vm15804_vm2, %v18378_v34, %v18414_v6  ;;  %v8987_v25 = vsel %vm15804_vm2, %v8982_v26, %v8986_v61  ;;  %v8485_v51 = vrot.slane %v8484_v38, 4  ;;  %v18480_v27 = vld [vmem:[#allocation4 + $0x4c] sm:$0xf] }
 0x809   :  { %20365 = vst [vmem:[#allocation51_spill] sm:$0xff] %v18454_v30  ;;  %20366 = vst [vmem:[#allocation52_spill] sm:$0xff] %v18459_v19  ;;  %v8992_v52 = vrot.slane %v8991_v14, 4  ;;  %v18471_v24 = vmax.bf16 %v8987_v25, %v18374_v5  ;;  %v18475_v13 = vrot.slane %v8504_v45, 4  ;;  %v18478_v1 = vmax.bf16 %v8500_v60, %v18318_v36  ;;  %v18489_v45 = vld [vmem:[#allocation4 + $0x40] sm:$0xf] }
 0x80a   :  { %v9034_v6 = vshll.u32 %v8849_v57, 16  ;;  %v9038_v34 = vshrl.u32 %v8849_v57, 16  ;;  %v8534_v7 = vor.u32 %v8533_v56, %v18451_v39  ;;  %v9044_v46 = vshll.u32 %v18468_v54, 16  ;;  %v18499_v60 = vld [vmem:[#allocation4 + $0x44] sm:$0xf] }
 0x80b   :  { %20367 = vst [vmem:[#allocation53_spill] sm:$0xff] %v18471_v24  ;;  %20368 = vst [vmem:[#allocation54_spill] sm:$0xff] %v18478_v1  ;;  %v8997_v61 = vsel %vm15804_vm2, %v8992_v52, %v18371_v20  ;;  %v18492_v36 = vmax.bf16 %v8470_v37, %v18262_v2  ;;  %v9012_v20 = vrot.slane %v9011_v42, 4  ;;  %v8490_v33 = vsel %vm15804_vm2, %v8485_v51, %v18361_v59  ;;  %v8847_v56 = vld [vmem:[#allocation4 + $0x40] sm:$0xf] }
 0x80c   :  { %v18495_v21 = vmax.bf16 %v8997_v61, %v18397_v29  ;;  %v18497_v38 = vrot.slane %v9034_v6, 5  ;;  %v9040_v0 = vrot.slane %v9038_v34, 4  ;;  %v8537_v26 = vshll.u32 %v18480_v27, 16 }
 0x80d   :  { %20369 = vst [vmem:[#allocation55_spill] sm:$0xff] %v18492_v36  ;;  %v8541_v14 = vshrl.u32 %v18480_v27, 16  ;;  %v8507_v37 = vshll.u32 %v18489_v45, 16  ;;  %v8511_v25 = vshrl.u32 %v18489_v45, 16  ;;  %v18511_v52 = vrot.slane %v8534_v7, 4 }
 0x80e   :  { %20370 = vst [vmem:[#allocation56_spill] sm:$0xff] %v18495_v21  ;;  %v9041_v57 = vor.u32 %v9040_v0, %v18497_v38  ;;  %v18513_v42 = vrot.slane %v9044_v46, 5  ;;  %v8517_v59 = vshll.u32 %v18499_v60, 16  ;;  %v8521_v51 = vshrl.u32 %v18499_v60, 16 }
 0x80f   :  { %v8509_v34 = vrot.slane %v8507_v37, 5  ;;  %v8513_v61 = vrot.slane %v8511_v25, 4  ;;  %v9014_v44 = vshll.u32 %v8847_v56, 16  ;;  %v18518_v5 = vmax.bf16 %v8490_v33, %v18397_v29  ;;  %v18528_v37 = vld [vmem:[#allocation4 + $0x58] sm:$0xf] }
 0x810   :  { %v9042_v6 = vrot.slane %v9041_v57, 4  ;;  %v18520_v0 = vrot.slane %v8537_v26, 5  ;;  %v18522_v2 = vrot.slane %v8541_v14, 4  ;;  %v9018_v7 = vshrl.u32 %v8847_v56, 16 }
 0x811   :  { %20371 = vst [vmem:[#allocation57_spill] sm:$0xff] %v18518_v5  ;;  %v9048_v30 = vshrl.u32 %v18468_v54, 16  ;;  %v8514_v32 = vor.u32 %v8513_v61, %v8509_v34  ;;  %v9016_v57 = vrot.slane %v9014_v44, 5  ;;  %v8519_v33 = vrot.slane %v8517_v59, 5 }
 0x812   :  { %v9047_v46 = vsel %vm15804_vm2, %v9042_v6, %v18513_v42  ;;  %v8523_v26 = vrot.slane %v8521_v51, 4  ;;  %v9020_v14 = vrot.slane %v9018_v7, 4  ;;  %v9024_v19 = vshll.u32 %v8848_v62, 16 }
 0x813   :  { %v8515_v25 = vrot.slane %v8514_v32, 4  ;;  %v9017_v56 = vsel %vm15804_vm2, %v9012_v20, %v9016_v57  ;;  %v9028_v6 = vshrl.u32 %v8848_v62, 16  ;;  %v18537_v54 = vmax.bf16 %v9047_v46, %v18431_v43  ;;  %v18545_v32 = vld [vmem:[#allocation4 + $0x5c] sm:$0xf] }
 0x814   :  { %v9021_v44 = vor.u32 %v9020_v14, %v9016_v57  ;;  %v18540_v61 = vmax.bf16 %v9017_v56, %v18347_v3  ;;  %v8567_v24 = vshll.u32 %v18528_v37, 16  ;;  %v9026_v51 = vrot.slane %v9024_v19, 5  ;;  %v8853_v14 = vld [vmem:[#allocation4 + $0x58] sm:$0xf] }
 0x815   :  { %v8520_v59 = vsel %vm15804_vm2, %v8515_v25, %v8519_v33  ;;  %v9030_v7 = vrot.slane %v9028_v6, 4  ;;  %v8571_v20 = vshrl.u32 %v18528_v37, 16  ;;  %v8524_v29 = vor.u32 %v8523_v26, %v8519_v33 }
 0x816   :  { %20372 = vst [vmem:[#allocation58_spill] sm:$0xff] %v18540_v61  ;;  %v18549_v62 = vmax.bf16 %v8520_v59, %v18489_v45  ;;  %v9022_v46 = vrot.slane %v9021_v44, 4  ;;  %v8510_v56 = vsel %vm15804_vm2, %v18475_v13, %v8509_v34  ;;  %v18556_v19 = vrot.slane %v8567_v24, 5 }
 0x817   :  { %v9031_v25 = vor.u32 %v9030_v7, %v9026_v51  ;;  %v8573_v6 = vrot.slane %v8571_v20, 4  ;;  %v8577_v26 = vshll.u32 %v18545_v32, 16  ;;  %v8581_v44 = vshrl.u32 %v18545_v32, 16 }
 0x818   :  { %v9027_v36 = vsel %vm15804_vm2, %v9022_v46, %v9026_v51  ;;  %v8544_v59 = vor.u32 %v18522_v2, %v18520_v0  ;;  %v9074_v24 = vshll.u32 %v8853_v14, 16  ;;  %v9050_v34 = vrot.slane %v9048_v30, 4  ;;  %v8854_v51 = vld [vmem:[#allocation4 + $0x5c] sm:$0xf] }
 0x819   :  { %v9032_v57 = vrot.slane %v9031_v25, 4  ;;  %v18567_v13 = vmax.bf16 %v9027_v36, %v18489_v45  ;;  %v8525_v7 = vrot.slane %v8524_v29, 4  ;;  %v18570_v20 = vmax.bf16 %v8510_v56, %v18347_v3 }
 0x81a   :  { %v9078_v46 = vshrl.u32 %v8853_v14, 16  ;;  %v8574_v2 = vor.u32 %v8573_v6, %v18556_v19  ;;  %v18578_v25 = vrot.slane %v9074_v24, 5  ;;  %v8579_v30 = vrot.slane %v8577_v26, 5 }
 0x81b   :  { %20373 = vst [vmem:[#allocation59_spill] sm:$0xff] %v18567_v13  ;;  %20374 = vst [vmem:[#allocation60_spill] sm:$0xff] %v18570_v20  ;;  %v9037_v33 = vsel %vm15804_vm2, %v9032_v57, %v18497_v38  ;;  %v8583_v36 = vrot.slane %v8581_v44, 4  ;;  %v9084_v29 = vshll.u32 %v8854_v51, 16  ;;  %v9088_v56 = vshrl.u32 %v8854_v51, 16 }
 0x81c   :  { %v18581_v45 = vmax.bf16 %v9037_v33, %v18499_v60  ;;  %v9080_v3 = vrot.slane %v9078_v46, 4  ;;  %v20376_v14 = vmax.f32 %v18255_v22, 0.0  ;;  %v20377_v61 = vmax.f32 %v18258_v48, 0.0 }
 0x81d   :  { %v8093_v57 = vmax.f32 %v18310_v4, 0.0  ;;  %v9051_v5 = vor.u32 %v9050_v34, %v18513_v42  ;;  %v8530_v6 = vsel %vm15804_vm2, %v8525_v7, %v18451_v39  ;;  %v8575_v44 = vrot.slane %v8574_v2, 4 }
 0x81e   :  { %20375 = vst [vmem:[#allocation61_spill] sm:$0xff] %v18581_v45  ;;  %v12262_v38 = vpack.c.bf16 %v20377_v61, %v20376_v14  ;;  %v9081_v26 = vor.u32 %v9080_v3, %v18578_v25  ;;  %v20378_v22 = vmax.f32 %v18265_v18, 0.0  ;;  %v8091_v48 = vmax.f32 %v18322_v50, 0.0 }
 0x81f   :  { %v8056_v4 = vadd.f32 %v18312_v15, %v18058_v10  ;;  %v8584_v42 = vor.u32 %v8583_v36, %v8579_v30  ;;  %v8054_v61 = vadd.f32 %v18058_v10, %v18326_v63  ;;  %v8057_v39 = vadd.f32 %v18349_v12, %v18058_v10 }
 0x820   :  { %12349 = vst [vmem:[#allocation4 + $0x50] sm:$0xff] %v12262_v38   ;;  %v12277_v24 = vpack.c.bf16 %v8093_v57, %v20378_v22  ;;  %v8055_v34 = vadd.f32 %v18058_v10, %v18363_v23  ;;  %v9082_v7 = vrot.slane %v9081_v26, 4  ;;  %v9086_v51 = vrot.slane %v9084_v29, 5 }
 0x821   :  { %v9090_v46 = vrot.slane %v9088_v56, 4  ;;  %v20379_v18 = vmax.f32 %v18280_v58, 0.0  ;;  %v8096_v2 = vmax.f32 %v8056_v4, 0.0  ;;  %v8094_v3 = vmax.f32 %v8054_v61, 0.0 }
 0x822   :  { %12352 = vst [vmem:[#allocation4 + $0x68] sm:$0xff] %v12277_v24   ;;  %v8097_v15 = vmax.f32 %v8057_v39, 0.0  ;;  %v8095_v36 = vmax.f32 %v8055_v34, 0.0  ;;  %v8580_v63 = vsel %vm15804_vm2, %v8575_v44, %v8579_v30  ;;  %v20380_v10 = vsel %vm15804_vm2, %v18511_v52, %v18520_v0 }
 0x823   :  { %v12272_v50 = vpack.c.bf16 %v8091_v48, %v20379_v18  ;;  %v18616_v12 = vmax.bf16 %v20380_v10, %v18431_v43  ;;  %v8545_v58 = vrot.slane %v8544_v59, 4  ;;  %v9052_v56 = vrot.slane %v9051_v5, 4  ;;  %v18633_v5 = vld [vmem:[%s19797_s4] ss:$0 sm:$0xff] }
 0x824   :  { %v12287_v23 = vpack.c.bf16 %v8097_v15, %v8096_v2  ;;  %v12282_v29 = vpack.c.bf16 %v8095_v36, %v8094_v3  ;;  %v18619_v14 = vmax.bf16 %v8530_v6, %v18499_v60  ;;  %v18621_v38 = vrot.slane %v8584_v42, 4 }
 0x825   :  { %12351 = vst [vmem:[#allocation4 + $0x60] sm:$0xff] %v12272_v50   ;;  %v18624_v30 = vmax.bf16 %v8580_v63, %v18528_v37  ;;  %v9087_v57 = vsel %vm15804_vm2, %v9082_v7, %v9086_v51  ;;  %v9091_v26 = vor.u32 %v9090_v46, %v9086_v51  ;;  %v18637_v60 = vadd.f32 %v18633_v5, %v18366_v53 }
 0x826   :  { %12354 = vst [vmem:[#allocation4 + $0x78] sm:$0xff] %v12287_v23   ;;  %12353 = vst [vmem:[#allocation4 + $0x70] sm:$0xff] %v12282_v29   ;;  %v18644_v3 = vmax.bf16 %v9087_v57, %v18528_v37  ;;  %v18660_v37 = vadd.f32 %v18633_v5, %v18386_v47 }
 0x827   :  { %20381 = vst [vmem:[#allocation62_spill] sm:$0xff] %v18624_v30  ;;  %v8326_v44 = vld [vmem:[#allocation4 + $0x50] sm:$0xf]  ;;  %v18628_v52 = vld [vmem:[#allocation4 + $0x54] sm:$0xf]  ;;  %v18641_v2 = vrot.slane %v9091_v26, 4 }
 0x828   :  { %v8851_v43 = vld [vmem:[#allocation4 + $0x50] sm:$0xf]  ;;  %v8547_v0 = vshll.u32 %v8326_v44, 16  ;;  %v8551_v59 = vshrl.u32 %v8326_v44, 16  ;;  %v8557_v6 = vshll.u32 %v18628_v52, 16  ;;  %v8561_v22 = vshrl.u32 %v18628_v52, 16 }
 0x829   :  { %v8852_v24 = vld [vmem:[#allocation4 + $0x54] sm:$0xf]  ;;  %v9054_v48 = vshll.u32 %v8851_v43, 16  ;;  %v9058_v4 = vshrl.u32 %v8851_v43, 16  ;;  %v18649_v29 = vld [vmem:[#allocation4 + $0x68] sm:$0xf]  ;;  %v18653_v43 = vadd.f32 %v18633_v5, %v18376_v41 }
 0x82a   :  { %v9064_v42 = vshll.u32 %v8852_v24, 16  ;;  %v9068_v61 = vshrl.u32 %v8852_v24, 16  ;;  %v8549_v39 = vrot.slane %v8547_v0, 5  ;;  %v8553_v34 = vrot.slane %v8551_v59, 4 }
 0x82b   :  { %v8559_v7 = vrot.slane %v8557_v6, 5  ;;  %v8563_v51 = vrot.slane %v8561_v22, 4  ;;  %v9056_v46 = vrot.slane %v9054_v48, 5  ;;  %v9060_v18 = vrot.slane %v9058_v4, 4  ;;  %v8857_v4 = vld [vmem:[#allocation4 + $0x68] sm:$0xf] }
 0x82c   :  { %v9066_v50 = vrot.slane %v9064_v42, 5  ;;  %v9070_v53 = vrot.slane %v9068_v61, 4  ;;  %v8554_v15 = vor.u32 %v8553_v34, %v8549_v39  ;;  %v18666_v22 = vadd.f32 %v18633_v5, %v18399_v31 }
 0x82d   :  { %v9057_v63 = vsel %vm15804_vm2, %v9052_v56, %v9056_v46  ;;  %v9061_v10 = vor.u32 %v9060_v18, %v9056_v46  ;;  %v8564_v26 = vor.u32 %v8563_v51, %v8559_v7  ;;  %v8550_v56 = vsel %vm15804_vm2, %v8545_v58, %v8549_v39  ;;  %v8858_v46 = vld [vmem:[#allocation4 + $0x6c] sm:$0xf]  ;;  %v18740_v20 = vld [vmem:[#allocation4 + $0x78] sm:$0xf]  ;;  %v8860_v17 = vld [vmem:[#allocation4 + $0x74] sm:$0xf] }
 0x82e   :  { %v9071_v23 = vor.u32 %v9070_v53, %v9066_v50  ;;  %v8555_v0 = vrot.slane %v8554_v15, 4  ;;  %v18656_v59 = vmax.bf16 %v9057_v63, %v18480_v27  ;;  %v8607_v48 = vshll.u32 %v18649_v29, 16 }
 0x82f   :  { %v9062_v57 = vrot.slane %v9061_v10, 4  ;;  %v8611_v47 = vshrl.u32 %v18649_v29, 16  ;;  %v8565_v39 = vrot.slane %v8564_v26, 4  ;;  %v18683_v34 = vmax.bf16 %v8550_v56, %v18480_v27 }
 0x830   :  { %v9072_v6 = vrot.slane %v9071_v23, 4  ;;  %v8560_v41 = vsel %vm15804_vm2, %v8555_v0, %v8559_v7  ;;  %v9114_v53 = vshll.u32 %v8857_v4, 16  ;;  %v9118_v15 = vshrl.u32 %v8857_v4, 16  ;;  %v18706_v0 = vld [vmem:[#allocation4 + $0x64] sm:$0xf] }
 0x831   :  { %v18674_v42 = vmax.bf16 %v8560_v41, %v8326_v44  ;;  %v9067_v58 = vsel %vm15804_vm2, %v9062_v57, %v9066_v50  ;;  %v18692_v50 = vld [vmem:[#allocation4 + $0x6c] sm:$0xf]  ;;  %v18698_v63 = vadd.f32 %v18633_v5, %v18406_v49  ;;  %v18704_v10 = vrot.slane %v8607_v48, 5 }
 0x832   :  { %v9077_v31 = vsel %vm15804_vm2, %v9072_v6, %v18578_v25  ;;  %v18685_v7 = vmax.bf16 %v9067_v58, %v8326_v44  ;;  %v18694_v25 = vld [vmem:[#allocation4 + $0x60] sm:$0xf]  ;;  %v8613_v23 = vrot.slane %v8611_v47, 4  ;;  %v18708_v26 = vrot.slane %v9114_v53, 5 }
 0x833   :  { %v18688_v51 = vmax.bf16 %v9077_v31, %v18628_v52  ;;  %v9120_v56 = vrot.slane %v9118_v15, 4  ;;  %v9124_v57 = vshll.u32 %v8858_v46, 16  ;;  %v18712_v6 = vadd.f32 %v18633_v5, %v18412_v28  ;;  %v8855_v53 = vld [vmem:[#allocation4 + $0x60] sm:$0xf] }
 0x834   :  { %v8570_v49 = vsel %vm15804_vm2, %v8565_v39, %v18556_v19  ;;  %v8617_v41 = vshll.u32 %v18692_v50, 16  ;;  %v8587_v48 = vshll.u32 %v18694_v25, 16  ;;  %v8591_v47 = vshrl.u32 %v18694_v25, 16 }
 0x835   :  { %v8621_v4 = vshrl.u32 %v18692_v50, 16  ;;  %v9121_v58 = vor.u32 %v9120_v56, %v18708_v26  ;;  %v8597_v31 = vshll.u32 %v18706_v0, 16  ;;  %v18725_v28 = vadd.f32 %v18633_v5, %v18418_v55  ;;  %v8856_v55 = vld [vmem:[#allocation4 + $0x64] sm:$0xf] }
 0x836   :  { %v8614_v15 = vor.u32 %v8613_v23, %v18704_v10  ;;  %v18728_v19 = vrot.slane %v8587_v48, 5  ;;  %v8593_v39 = vrot.slane %v8591_v47, 4  ;;  %v8601_v33 = vshrl.u32 %v18706_v0, 16 }
 0x837   :  { %v18732_v18 = vmax.bf16 %v8570_v49, %v18628_v52  ;;  %v9122_v27 = vrot.slane %v9121_v58, 4  ;;  %v18734_v44 = vrot.slane %v9124_v57, 5  ;;  %v8599_v56 = vrot.slane %v8597_v31, 5 }
 0x838   :  { %v8619_v24 = vrot.slane %v8617_v41, 5  ;;  %v8594_v61 = vor.u32 %v8593_v39, %v18728_v19  ;;  %v8603_v36 = vrot.slane %v8601_v33, 4  ;;  %v9094_v1 = vshll.u32 %v8855_v53, 16 }
 0x839   :  { %v8623_v13 = vrot.slane %v8621_v4, 4  ;;  %v9127_v23 = vsel %vm15804_vm2, %v9122_v27, %v18734_v44  ;;  %v9128_v48 = vshrl.u32 %v8858_v46, 16  ;;  %v9098_v47 = vshrl.u32 %v8855_v53, 16 }
 0x83a   :  { %v8615_v52 = vrot.slane %v8614_v15, 4  ;;  %v18743_v57 = vmax.bf16 %v9127_v23, %v18649_v29  ;;  %v8595_v49 = vrot.slane %v8594_v61, 4  ;;  %v9096_v41 = vrot.slane %v9094_v1, 5 }
 0x83b   :  { %v8604_v58 = vor.u32 %v8603_v36, %v8599_v56  ;;  %v9100_v31 = vrot.slane %v9098_v47, 4  ;;  %v9104_v33 = vshll.u32 %v8856_v55, 16  ;;  %v9108_v39 = vshrl.u32 %v8856_v55, 16 }
 0x83c   :  { %20382 = vst [vmem:[#allocation23_spill] sm:$0xff] %v18743_v57  ;;  %v8600_v4 = vsel %vm15804_vm2, %v8595_v49, %v8599_v56  ;;  %v9097_v46 = vsel %vm15804_vm2, %v18641_v2, %v9096_v41  ;;  %v8647_v27 = vshll.u32 %v18740_v20, 16  ;;  %v8651_v53 = vshrl.u32 %v18740_v20, 16  ;;  %v8861_v49 = vld [vmem:[#allocation4 + $0x78] sm:$0xf] }
 0x83d   :  { %v18753_v15 = vmax.bf16 %v8600_v4, %v18694_v25  ;;  %v9101_v61 = vor.u32 %v9100_v31, %v9096_v41  ;;  %v9106_v1 = vrot.slane %v9104_v33, 5  ;;  %v9110_v36 = vrot.slane %v9108_v39, 4 }
 0x83e   :  { %v8620_v55 = vsel %vm15804_vm2, %v8615_v52, %v8619_v24  ;;  %v8624_v23 = vor.u32 %v8623_v13, %v8619_v24  ;;  %v9130_v47 = vrot.slane %v9128_v48, 4  ;;  %v18758_v56 = vmax.bf16 %v9097_v46, %v18545_v32  ;;  %v8862_v48 = vld [vmem:[#allocation4 + $0x7c] sm:$0xf] }
 0x83f   :  { %20383 = vst [vmem:[#allocation24_spill] sm:$0xff] %v18753_v15  ;;  %v8590_v2 = vsel %vm15804_vm2, %v18621_v38, %v18728_v19  ;;  %v9102_v45 = vrot.slane %v9101_v61, 4  ;;  %v9111_v4 = vor.u32 %v9110_v36, %v9106_v1  ;;  %v8605_v31 = vrot.slane %v8604_v58, 4  ;;  %v18780_v61 = vld [vmem:[#allocation4 + $0x7c] sm:$0xf] }
 0x840   :  { %v18768_v13 = vrot.slane %v8647_v27, 5  ;;  %v8653_v24 = vrot.slane %v8651_v53, 4  ;;  %v9154_v46 = vshll.u32 %v8861_v49, 16  ;;  %v9158_v21 = vshrl.u32 %v8861_v49, 16 }
 0x841   :  { %v9107_v33 = vsel %vm15804_vm2, %v9102_v45, %v9106_v1  ;;  %v9112_v39 = vrot.slane %v9111_v4, 4  ;;  %v18772_v38 = vrot.slane %v8624_v23, 4  ;;  %v18775_v19 = vmax.bf16 %v8620_v55, %v18649_v29  ;;  %v8334_v23 = vld [vmem:[#allocation4 + $0x70] sm:$0xf] }
 0x842   :  { %v18778_v58 = vmax.bf16 %v9107_v33, %v18694_v25  ;;  %v18784_v27 = vadd.f32 %v18633_v5, %v18422_v16  ;;  %v18789_v53 = vrot.slane %v9154_v46, 5  ;;  %v9160_v1 = vrot.slane %v9158_v21, 4  ;;  %v18800_v5 = vld [vmem:[#allocation4 + $0x74] sm:$0xf] }
 0x843   :  { %20384 = vst [vmem:[#allocation25_spill] sm:$0xff] %v18775_v19  ;;  %v9117_v45 = vsel %vm15804_vm2, %v9112_v39, %v18708_v26  ;;  %v9164_v36 = vshll.u32 %v8862_v48, 16  ;;  %v9131_v29 = vor.u32 %v9130_v47, %v18734_v44  ;;  %v18793_v25 = vmax.bf16 %v8590_v2, %v18545_v32  ;;  %v8859_v32 = vld [vmem:[#allocation4 + $0x70] sm:$0xf] }
 0x844   :  { %20385 = vst [vmem:[#allocation26_spill] sm:$0xff] %v18778_v58  ;;  %v18796_v55 = vmax.bf16 %v9117_v45, %v18706_v0  ;;  %v8610_v26 = vsel %vm15804_vm2, %v8605_v31, %v18704_v10  ;;  %v8654_v21 = vor.u32 %v8653_v24, %v18768_v13  ;;  %v8657_v49 = vshll.u32 %v18780_v61, 16 }
 0x845   :  { %v9161_v44 = vor.u32 %v9160_v1, %v18789_v53  ;;  %v8661_v2 = vshrl.u32 %v18780_v61, 16  ;;  %v8627_v4 = vshll.u32 %v8334_v23, 16  ;;  %v8631_v33 = vshrl.u32 %v8334_v23, 16 }
 0x846   :  { %v18811_v46 = vrot.slane %v9164_v36, 5  ;;  %v8637_v45 = vshll.u32 %v18800_v5, 16  ;;  %v8641_v10 = vshrl.u32 %v18800_v5, 16  ;;  %v9134_v41 = vshll.u32 %v8859_v32, 16 }
 0x847   :  { %v9162_v39 = vrot.slane %v9161_v44, 4  ;;  %v8629_v31 = vrot.slane %v8627_v4, 5  ;;  %v8633_v24 = vrot.slane %v8631_v33, 4  ;;  %v9138_v16 = vshrl.u32 %v8859_v32, 16 }
 0x848   :  { %v9132_v1 = vrot.slane %v9131_v29, 4  ;;  %v18816_v52 = vmax.bf16 %v8610_v26, %v18706_v0  ;;  %v18818_v47 = vrot.slane %v8654_v21, 4  ;;  %v18820_v40 = vrot.slane %v8657_v49, 5 }
 0x849   :  { %v8663_v44 = vrot.slane %v8661_v2, 4  ;;  %v9167_v36 = vsel %vm15804_vm2, %v9162_v39, %v18811_v46  ;;  %v8634_v15 = vor.u32 %v8633_v24, %v8629_v31  ;;  %v9136_v57 = vrot.slane %v9134_v41, 5 }
 0x84a   :  { %20386 = vst [vmem:[#allocation27_spill] sm:$0xff] %v18816_v52  ;;  %v9168_v4 = vshrl.u32 %v8862_v48, 16  ;;  %v8639_v33 = vrot.slane %v8637_v45, 5  ;;  %v8643_v30 = vrot.slane %v8641_v10, 4  ;;  %v9140_v32 = vrot.slane %v9138_v16, 4 }
 0x84b   :  { %v8635_v29 = vrot.slane %v8634_v15, 4  ;;  %v9137_v0 = vsel %vm15804_vm2, %v9132_v1, %v9136_v57  ;;  %v9144_v26 = vshll.u32 %v8860_v17, 16  ;;  %v9148_v21 = vshrl.u32 %v8860_v17, 16 }
 0x84c   :  { %v18828_v49 = vmax.bf16 %v9167_v36, %v18740_v20  ;;  %v9141_v2 = vor.u32 %v9140_v32, %v9136_v57  ;;  %v18831_v58 = vmax.bf16 %v9137_v0, %v18692_v50  ;;  %v8101_v39 = vmax.f32 %v18660_v37, 0.0  ;;  %v8871_v0 = vld [vmem:[#allocation4 + $0xa0] sm:$0xf] }
 0x84d   :  { %v8640_v41 = vsel %vm15804_vm2, %v8635_v29, %v8639_v33  ;;  %v9146_v48 = vrot.slane %v9144_v26, 5  ;;  %v9150_v16 = vrot.slane %v9148_v21, 4  ;;  %v8099_v15 = vmax.f32 %v18666_v22, 0.0 }
 0x84e   :  { %20387 = vst [vmem:[#allocation28_spill] sm:$0xff] %v18828_v49  ;;  %v9170_v45 = vrot.slane %v9168_v4, 4  ;;  %v18837_v10 = vmax.bf16 %v8640_v41, %v8334_v23  ;;  %v9142_v17 = vrot.slane %v9141_v2, 4  ;;  %v8664_v57 = vor.u32 %v8663_v44, %v18820_v40 }
 0x84f   :  { %v9151_v1 = vor.u32 %v9150_v16, %v9146_v48  ;;  %v20389_v36 = vmax.f32 %v18637_v60, 0.0  ;;  %v20390_v32 = vmax.f32 %v18653_v43, 0.0  ;;  %v8630_v22 = vsel %vm15804_vm2, %v18772_v38, %v8629_v31 }
 0x850   :  { %20388 = vst [vmem:[#allocation29_spill] sm:$0xff] %v18837_v10  ;;  %v8644_v4 = vor.u32 %v8643_v30, %v8639_v33  ;;  %v9147_v26 = vsel %vm15804_vm2, %v9142_v17, %v9146_v48  ;;  %v8104_v60 = vmax.f32 %v18698_v63, 0.0  ;;  %v8105_v43 = vmax.f32 %v18725_v28, 0.0  ;;  %v8346_v33 = vld [vmem:[#allocation4 + $0xa0] sm:$0x1] }
 0x851   :  { %v12297_v37 = vpack.c.bf16 %v8101_v39, %v20389_v36  ;;  %v12292_v29 = vpack.c.bf16 %v8099_v15, %v20390_v32  ;;  %v9152_v44 = vrot.slane %v9151_v1, 4  ;;  %v18853_v2 = vmax.bf16 %v9147_v26, %v8334_v23  ;;  %v8872_v23 = vld [vmem:[#allocation4 + $0xa4] sm:$0xf] }
 0x852   :  { %v9171_v39 = vor.u32 %v9170_v45, %v18811_v46  ;;  %v9254_v41 = vshll.u32 %v8871_v0, 16  ;;  %v12307_v31 = vpack.c.bf16 %v8105_v43, %v8104_v60  ;;  %v9258_v48 = vshrl.u32 %v8871_v0, 16 }
 0x853   :  { %20391 = vst [vmem:[#allocation30_spill] sm:$0xff] %v18853_v2  ;;  %12356 = vst [vmem:[#allocation4 + $0x88] sm:$0xff] %v12297_v37   ;;  %v9157_v30 = vsel %vm15804_vm2, %v9152_v44, %v18789_v53  ;;  %v8645_v16 = vrot.slane %v8644_v4, 4  ;;  %v18864_v15 = vmax.bf16 %v8630_v22, %v18692_v50  ;;  %v8660_v28 = vsel %vm15804_vm2, %v18818_v47, %v18820_v40  ;;  %v8873_v37 = vld [vmem:[#allocation4 + $0xa8] sm:$0x1] }
 0x854   :  { %12355 = vst [vmem:[#allocation4 + $0x80] sm:$0xff] %v12292_v29   ;;  %v18867_v63 = vmax.bf16 %v9157_v30, %v18800_v5  ;;  %v18873_v53 = vrot.slane %v8664_v57, 4  ;;  %v8102_v46 = vmax.f32 %v18712_v6, 0.0  ;;  %12358 = vst [vmem:[#allocation4 + $0x98] sm:$0xff] %v12307_v31   ;;  %v8103_v45 = vmax.f32 %v18784_v27, 0.0 }
 0x855   :  { %20392 = vst [vmem:[#allocation63_spill] sm:$0xff] %v18864_v15  ;;  %v18877_v17 = vrot.slane %v9171_v39, 4  ;;  %v8747_v1 = vshll.u32 %v8346_v33, 16  ;;  %v9264_v36 = vshll.u32 %v8872_v23, 16  ;;  %v18881_v32 = vrot.slane %v9254_v41, 5 }
 0x856   :  { %20393 = vst [vmem:[#allocation64_spill] sm:$0xff] %v18867_v63  ;;  %v18883_v29 = vrot.slane %v9258_v48, 4  ;;  %v9268_v40 = vshrl.u32 %v8872_v23, 16  ;;  %v12302_v47 = vpack.c.bf16 %v8103_v45, %v8102_v46  ;;  %v18886_v57 = vmax.bf16 %v8660_v28, %v18740_v20 }
 0x857   :  { %v8650_v6 = vsel %vm15804_vm2, %v8645_v16, %v18768_v13  ;;  %v18905_v23 = vrot.slane %v9264_v36, 5  ;;  %v9274_v16 = vshll.u32 %v8873_v37, 16 }
 0x858   :  { %20394 = vst [vmem:[#allocation65_spill] sm:$0xff] %v18886_v57  ;;  %12357 = vst [vmem:[#allocation4 + $0x90] sm:$0xff] %v12302_v47   ;;  %v18907_v48 = vrot.slane %v9268_v40, 4 }
 0x85a   :  { %v18891_v27 = vld [vmem:[#allocation4 + $0x88] sm:$0xf]  ;;  %v18893_v0 = vld [vmem:[#allocation4 + $0x8c] sm:$0xf] }
 0x85b   :  { %v8865_v22 = vld [vmem:[#allocation4 + $0x88] sm:$0xf]  ;;  %v8687_v4 = vshll.u32 %v18891_v27, 16  ;;  %v8691_v26 = vshrl.u32 %v18891_v27, 16  ;;  %v8697_v44 = vshll.u32 %v18893_v0, 16  ;;  %v8701_v60 = vshrl.u32 %v18893_v0, 16 }
 0x85c   :  { %v8866_v43 = vld [vmem:[#allocation4 + $0x8c] sm:$0xf]  ;;  %v9194_v20 = vshll.u32 %v8865_v22, 16  ;;  %v9198_v39 = vshrl.u32 %v8865_v22, 16  ;;  %v18899_v13 = vld [vmem:[#allocation4 + $0x80] sm:$0xf] }
 0x85d   :  { %v9204_v41 = vshll.u32 %v8866_v43, 16  ;;  %v9208_v30 = vshrl.u32 %v8866_v43, 16  ;;  %v18901_v31 = vrot.slane %v8687_v4, 5  ;;  %v18903_v33 = vld [vmem:[#allocation4 + $0x84] sm:$0xf]  ;;  %v18909_v28 = vrot.slane %v8691_v26, 4 }
 0x85e   :  { %v18911_v46 = vrot.slane %v8697_v44, 5  ;;  %v18913_v45 = vrot.slane %v9194_v20, 5  ;;  %v9200_v47 = vrot.slane %v9198_v39, 4  ;;  %v18915_v22 = vrot.slane %v8701_v60, 4  ;;  %v8863_v44 = vld [vmem:[#allocation4 + $0x80] sm:$0xf] }
 0x85f   :  { %v18917_v43 = vrot.slane %v9204_v41, 5  ;;  %v8667_v4 = vshll.u32 %v18899_v13, 16  ;;  %v8671_v21 = vshrl.u32 %v18899_v13, 16  ;;  %v18922_v40 = vrot.slane %v9208_v30, 4 }
 0x860   :  { %v9201_v36 = vor.u32 %v9200_v47, %v18913_v45  ;;  %v8677_v37 = vshll.u32 %v18903_v33, 16  ;;  %v8681_v26 = vshrl.u32 %v18903_v33, 16  ;;  %v18927_v20 = vmax.bf16 %v8650_v6, %v18800_v5 }
 0x861   :  { %v8669_v60 = vrot.slane %v8667_v4, 5  ;;  %v8673_v39 = vrot.slane %v8671_v21, 4  ;;  %v18929_v41 = vrot.slane %v8747_v1, 5  ;;  %v18935_v47 = vrot.slane %v9274_v16, 5  ;;  %v8864_v4 = vld [vmem:[#allocation4 + $0x84] sm:$0xf] }
 0x862   :  { %20395 = vst [vmem:[#allocation66_spill] sm:$0xff] %v18927_v20  ;;  %v9202_v38 = vrot.slane %v9201_v36, 4  ;;  %v9174_v21 = vshll.u32 %v8863_v44, 16  ;;  %v18941_v1 = vld [vmem:[#allocation4 + $0x98] sm:$0xf]  ;;  %v18948_v16 = vrot.slane %v8677_v37, 5 }
 0x863   :  { %v8674_v6 = vor.u32 %v8673_v39, %v8669_v60  ;;  %v18950_v50 = vrot.slane %v8681_v26, 4  ;;  %v8670_v5 = vsel %vm15804_vm2, %v18873_v53, %v8669_v60  ;;  %v9178_v10 = vshrl.u32 %v8863_v44, 16  ;;  %v18965_v53 = vld [vmem:[#allocation4 + $0x9c] sm:$0xf] }
 0x864   :  { %v9207_v36 = vsel %vm15804_vm2, %v9202_v38, %v18917_v43  ;;  %v9176_v24 = vrot.slane %v9174_v21, 5  ;;  %v9184_v19 = vshll.u32 %v8864_v4, 16  ;;  %v9188_v2 = vshrl.u32 %v8864_v4, 16 }
 0x865   :  { %v8675_v39 = vrot.slane %v8674_v6, 4  ;;  %v18956_v49 = vmax.bf16 %v9207_v36, %v18891_v27  ;;  %v8727_v38 = vshll.u32 %v18941_v1, 16  ;;  %v9180_v30 = vrot.slane %v9178_v10, 4  ;;  %v8869_v36 = vld [vmem:[#allocation4 + $0x98] sm:$0xf] }
 0x866   :  { %v9177_v26 = vsel %vm15804_vm2, %v18877_v17, %v9176_v24  ;;  %v8731_v44 = vshrl.u32 %v18941_v1, 16  ;;  %v8684_v60 = vor.u32 %v18950_v50, %v18948_v16  ;;  %v9186_v4 = vrot.slane %v9184_v19, 5 }
 0x867   :  { %20396 = vst [vmem:[#allocation67_spill] sm:$0xff] %v18956_v49  ;;  %v8680_v37 = vsel %vm15804_vm2, %v8675_v39, %v18948_v16  ;;  %v9190_v21 = vrot.slane %v9188_v2, 4  ;;  %v18974_v39 = vmax.bf16 %v8670_v5, %v18780_v61  ;;  %v9181_v15 = vor.u32 %v9180_v30, %v9176_v24 }
 0x868   :  { %v18971_v6 = vmax.bf16 %v8680_v37, %v18899_v13  ;;  %v18977_v17 = vmax.bf16 %v9177_v26, %v18780_v61  ;;  %v18979_v10 = vrot.slane %v8727_v38, 5  ;;  %v8733_v50 = vrot.slane %v8731_v44, 4  ;;  %v8870_v37 = vld [vmem:[#allocation4 + $0x9c] sm:$0xf] }
 0x869   :  { %v9191_v63 = vor.u32 %v9190_v21, %v9186_v4  ;;  %v8737_v16 = vshll.u32 %v18965_v53, 16  ;;  %v9182_v19 = vrot.slane %v9181_v15, 4  ;;  %v8741_v5 = vshrl.u32 %v18965_v53, 16 }
 0x86a   :  { %20397 = vst [vmem:[#allocation68_spill] sm:$0xff] %v18971_v6  ;;  %v9234_v24 = vshll.u32 %v8869_v36, 16  ;;  %v8734_v61 = vor.u32 %v8733_v50, %v18979_v10  ;;  %v9238_v26 = vshrl.u32 %v8869_v36, 16  ;;  %v9244_v6 = vshll.u32 %v8870_v37, 16 }
 0x86b   :  { %v9192_v30 = vrot.slane %v9191_v63, 4  ;;  %v8739_v38 = vrot.slane %v8737_v16, 5  ;;  %v9187_v21 = vsel %vm15804_vm2, %v9182_v19, %v9186_v4  ;;  %v8743_v52 = vrot.slane %v8741_v5, 4  ;;  %v19001_v4 = vld [vmem:[#allocation4 + $0x90] sm:$0xf] }
 0x86c   :  { %v18990_v44 = vrot.slane %v9234_v24, 5  ;;  %v18996_v2 = vmax.bf16 %v9187_v21, %v18899_v13  ;;  %v8735_v49 = vrot.slane %v8734_v61, 4  ;;  %v9240_v63 = vrot.slane %v9238_v26, 4  ;;  %v8832_v26 = vld [vmem:[#allocation4 + $0xa4] sm:$0xf] }
 0x86d   :  { %v9197_v15 = vsel %vm15804_vm2, %v9192_v30, %v18913_v45  ;;  %v8744_v36 = vor.u32 %v8743_v52, %v8739_v38  ;;  %v9246_v16 = vrot.slane %v9244_v6, 5  ;;  %v9248_v20 = vshrl.u32 %v8870_v37, 16  ;;  %v8831_v45 = vld [vmem:[#allocation4 + $0xa0] sm:$0xf] }
 0x86e   :  { %v18999_v50 = vmax.bf16 %v9197_v15, %v18903_v33  ;;  %v8740_v5 = vsel %vm15804_vm2, %v8735_v49, %v8739_v38  ;;  %v9241_v13 = vor.u32 %v9240_v63, %v18990_v44  ;;  %v20398_v24 = vor.u32 %v18883_v29, %v18881_v32 }
 0x86f   :  { %v8745_v6 = vrot.slane %v8744_v36, 4  ;;  %v19014_v37 = vmax.bf16 %v8740_v5, %v18941_v1  ;;  %v9250_v61 = vrot.slane %v9248_v20, 4  ;;  %v20400_v38 = vor.u32 %v18907_v48, %v18905_v23  ;;  %v8343_v20 = vld [vmem:[#allocation4 + $0x94] sm:$0xf] }
 0x870   :  { %v9262_v30 = vrot.slane %v20398_v24, 4  ;;  %v9242_v21 = vrot.slane %v9241_v13, 4  ;;  %v8707_v29 = vshll.u32 %v19001_v4, 16  ;;  %v8711_v13 = vshrl.u32 %v19001_v4, 16 }
 0x871   :  { %20399 = vst [vmem:[#allocation69_spill] sm:$0xff] %v19014_v37  ;;  %v9272_v15 = vrot.slane %v20400_v38, 4  ;;  %v8750_v63 = vsel %vm15804_vm2, %v8745_v6, %v18929_v41  ;;  %v9251_v36 = vor.u32 %v9250_v61, %v9246_v16  ;;  %v8685_v24 = vrot.slane %v8684_v60, 4 }
 0x872   :  { %v9267_v49 = vsel %vm15804_vm2, %v9262_v30, %v18905_v23  ;;  %v19030_v19 = vmax.bf16 %v8750_v63, %v18965_v53  ;;  %v8709_v48 = vrot.slane %v8707_v29, 5  ;;  %v8867_v30 = vld [vmem:[#allocation4 + $0x90] sm:$0xf]  ;;  %v20402_v38 = vor.u32 %v18909_v28, %v18901_v31 }
 0x873   :  { %v19026_v5 = vmax.bf16 %v9267_v49, %v8831_v45  ;;  %v9277_v23 = vsel %vm15804_vm2, %v9272_v15, %v18935_v47  ;;  %v20403_v45 = vor.u32 %v18915_v22, %v18911_v46  ;;  %v9252_v49 = vrot.slane %v9251_v36, 4  ;;  %v8868_v47 = vld [vmem:[#allocation4 + $0x94] sm:$0xf] }
 0x874   :  { %v8695_v41 = vrot.slane %v20402_v38, 4  ;;  %v19041_v61 = vmax.bf16 %v9277_v23, %v8832_v26  ;;  %v8713_v63 = vrot.slane %v8711_v13, 4  ;;  %v8717_v52 = vshll.u32 %v8343_v20, 16 }
 0x875   :  { %20401 = vst [vmem:[#allocation70_spill] sm:$0xff] %v19026_v5  ;;  %v8705_v6 = vrot.slane %v20403_v45, 4  ;;  %v8721_v57 = vshrl.u32 %v8343_v20, 16  ;;  %v20404_v15 = vor.u32 %v18922_v40, %v18917_v43  ;;  %v9247_v28 = vsel %vm15804_vm2, %v9242_v21, %v9246_v16 }
 0x876   :  { %v9397_v22 = vmax.bf16 %v19041_v61, %v19030_v19  ;;  %v9214_v26 = vshll.u32 %v8867_v30, 16  ;;  %v8690_v23 = vsel %vm15804_vm2, %v8685_v24, %v18901_v31  ;;  %v8714_v36 = vor.u32 %v8713_v63, %v8709_v48 }
 0x877   :  { %v9212_v29 = vrot.slane %v20404_v15, 4  ;;  %v8719_v13 = vrot.slane %v8717_v52, 5  ;;  %v8723_v38 = vrot.slane %v8721_v57, 4  ;;  %v9218_v60 = vshrl.u32 %v8867_v30, 16 }
 0x878   :  { %v9216_v45 = vrot.slane %v9214_v26, 5  ;;  %v9224_v37 = vshll.u32 %v8868_v47, 16  ;;  %v9228_v5 = vshrl.u32 %v8868_v47, 16  ;;  %v9257_v43 = vsel %vm15804_vm2, %v9252_v49, %v18881_v32 }
 0x879   :  { %v19059_v40 = vmax.bf16 %v9247_v28, %v18941_v1  ;;  %v8715_v16 = vrot.slane %v8714_v36, 4  ;;  %v8724_v21 = vor.u32 %v8723_v38, %v8719_v13  ;;  %v9220_v31 = vrot.slane %v9218_v60, 4 }
 0x87a   :  { %v9217_v15 = vsel %vm15804_vm2, %v9212_v29, %v9216_v45  ;;  %v9226_v24 = vrot.slane %v9224_v37, 5  ;;  %v9230_v52 = vrot.slane %v9228_v5, 4  ;;  %v8824_v57 = vmax.bf16 %v8690_v23, %v18903_v33 }
 0x87b   :  { %v8720_v30 = vsel %vm15804_vm2, %v8715_v16, %v8719_v13  ;;  %v8725_v63 = vrot.slane %v8724_v21, 4  ;;  %v9351_v47 = vmax.bf16 %v9217_v15, %v18893_v0  ;;  %v19068_v32 = vmax.bf16 %v9257_v43, %v18965_v53 }
 0x87c   :  { %v19071_v1 = vmax.bf16 %v8720_v30, %v19001_v4  ;;  %v9221_v49 = vor.u32 %v9220_v31, %v9216_v45  ;;  %v9231_v28 = vor.u32 %v9230_v52, %v9226_v24  ;;  %v8700_v37 = vsel %vm15804_vm2, %v8695_v41, %v18911_v46 }
 0x87d   :  { %v8710_v33 = vsel %vm15804_vm2, %v8705_v6, %v8709_v48  ;;  %v8730_v5 = vsel %vm15804_vm2, %v8725_v63, %v18979_v10  ;;  %v9391_v60 = vmax.bf16 %v9351_v47, %v8824_v57  ;;  %v8825_v41 = vmax.bf16 %v8700_v37, %v18891_v27 }
 0x87e   :  { %v8828_v29 = vmax.bf16 %v8730_v5, %v8343_v20  ;;  %v9222_v53 = vrot.slane %v9221_v49, 4  ;;  %v9232_v26 = vrot.slane %v9231_v28, 4  ;;  %v9394_v23 = vmax.bf16 %v19059_v40, %v19071_v1 }
 0x87f   :  { %v8826_v10 = vmax.bf16 %v8710_v33, %v18893_v0  ;;  %v20405_v43 = vmax.bf16 %v18656_v59, %v18619_v14  ;;  %v20406_v40 = vmax.bf16 %v18537_v54, %v18549_v62  ;;  %v20410_v0 = vmax.bf16 %v18688_v51, %v18683_v34 }
 0x880   :  { %v9227_v36 = vsel %vm15804_vm2, %v9222_v53, %v9226_v24  ;;  %v9237_v46 = vsel %vm15804_vm2, %v9232_v26, %v18990_v44  ;;  %v9395_v48 = vmax.bf16 %v19068_v32, %v8828_v29  ;;  %v20408_v44 = vld [vmem:[#allocation33_spill] sm:$0xff] }
 0x881   :  { %v9352_v6 = vmax.bf16 %v9227_v36, %v19001_v4  ;;  %v9353_v13 = vmax.bf16 %v9237_v46, %v8343_v20  ;;  %v11914_v16 = vcombine.low %v20406_v40, %v20405_v43  ;;  %v20409_v27 = vmax.bf16 %v18108_v11, %v20408_v44 }
 0x882   :  { %v20411_v4 = vmax.bf16 %v18685_v7, %v18616_v12 }
 0x883   :  { %v9392_v38 = vmax.bf16 %v9352_v6, %v8825_v41  ;;  %v9393_v45 = vmax.bf16 %v9353_v13, %v8826_v10  ;;  %v11906_v21 = vcombine.low %v20409_v27, %v20407_v9 }
 0x884   :  { %v11915_v20 = vcombine.low %v20411_v4, %v20410_v0 }
 0x885   :  { %14593 = dma.done.wait [#allocation11 + $0x2], 2304 }
 0x886   :  { %14594 = vsyncadd [#allocation11 + $0x2], 4294964992  ;;  %12651 = vmatprep.subr.bf16.mxu1 %v11914_v16  ;;  %v20412_v54 = vld [vmem:[#allocation39_spill] sm:$0xff]  ;;  %v20413_v62 = vld [vmem:[#allocation36_spill] sm:$0xff]  ;;  %v20418_v11 = vmax.bf16 %v18758_v56, %v18732_v18  ;;  %v20419_v34 = vmax.bf16 %v18644_v3, %v18674_v42  ;;  %v20426_v47 = vmax.bf16 %v18796_v55, %v18793_v25  ;;  %vm9540_vm5 = vcmask 523264  }
 0x887   :  { %12652 = vmatpush3.bf16.msra.mxu1 %v11906_v21  ;;  %v20414_v14 = vmax.bf16 %v20412_v54, %v20413_v62  ;;  %v20415_v59 = vld [vmem:[#allocation38_spill] sm:$0xff]  ;;  %v20420_v7 = vld [vmem:[#allocation44_spill] sm:$0xff]  ;;  %v20421_v51 = vld [vmem:[#allocation41_spill] sm:$0xff] }
 0x888   :  { %v20416_v35 = vld [vmem:[#allocation34_spill] sm:$0xff]  ;;  %12653 = vmatprep.subr.bf16.mxu1 %v11915_v20  ;;  %v11916_v12 = vcombine.low %v20419_v34, %v20418_v11  ;;  %v20422_v31 = vmax.bf16 %v20420_v7, %v20421_v51  ;;  %v20423_v24 = vld [vmem:[#allocation35_spill] sm:$0xff]  ;;  %v20424_v52 = vld [vmem:[#allocation37_spill] sm:$0xff] }
 0x889   :  { %v20417_v8 = vmax.bf16 %v20415_v59, %v20416_v35  ;;  %v20425_v57 = vmax.bf16 %v20423_v24, %v20424_v52  ;;  %v9403_v63 = vld [vmem:[#allocation9 + $0x8] sm:$0xff]  ;;  %v20430_v3 = vld [vmem:[#allocation47_spill] sm:$0xff]  ;;  %v20434_v37 = vld [vmem:[#allocation40_spill] sm:$0xff] }
 0x88a   :  { %v20427_v32 = vld [vmem:[#allocation26_spill] sm:$0xff]  ;;  %9591 = vmatprep.mubr.bf16.mxu1 %v9403_v63  ;;  %v20433_v28 = vld [vmem:[#allocation45_spill] sm:$0xff]  ;;  %v20436_v29 = vld [vmem:[#allocation27_spill] sm:$0xff] }
 0x88b   :  { %v11907_v15 = vcombine.low %v20417_v8, %v20414_v14  ;;  %v11908_v30 = vcombine.low %v20425_v57, %v20422_v31  ;;  %v20428_v1 = vld [vmem:[#allocation62_spill] sm:$0xff]  ;;  %v20435_v33 = vmax.bf16 %v20433_v28, %v20434_v37  ;;  %v20437_v53 = vmax.bf16 %v18831_v58, %v20436_v29  ;;  %v20438_v26 = vld [vmem:[#allocation23_spill] sm:$0xff]  ;;  %v20439_v36 = vld [vmem:[#allocation24_spill] sm:$0xff] }
 0x88c   :  { %v20429_v18 = vmax.bf16 %v20427_v32, %v20428_v1  ;;  %v20431_v42 = vld [vmem:[#allocation46_spill] sm:$0xff]  ;;  %v20440_v25 = vmax.bf16 %v20438_v26, %v20439_v36  ;;  %v20442_v41 = vld [vmem:[#allocation48_spill] sm:$0xff]  ;;  %v20445_v13 = vld [vmem:[#allocation43_spill] sm:$0xff] }
 0x88d   :  { %12654 = vmatpush3.bf16.msra.mxu1 %v11907_v15  ;;  %v20432_v49 = vmax.bf16 %v20430_v3, %v20431_v42  ;;  %v20441_v46 = vld [vmem:[#allocation50_spill] sm:$0xff]  ;;  %v20447_v16 = vld [vmem:[#allocation64_spill] sm:$0xff]  ;;  %v20448_v9 = vld [vmem:[#allocation63_spill] sm:$0xff] }
 0x88e   :  { %12655 = vmatprep.subr.bf16.mxu1 %v11916_v12  ;;  %v11917_v56 = vcombine.low %v20429_v18, %v20426_v47  ;;  %v11918_v55 = vcombine.low %v20440_v25, %v20437_v53  ;;  %v20443_v10 = vmax.bf16 %v20441_v46, %v20442_v41  ;;  %v20444_v6 = vld [vmem:[#allocation42_spill] sm:$0xff]  ;;  %v20449_v44 = vmax.bf16 %v20447_v16, %v20448_v9  ;;  %v20451_v21 = vld [vmem:[#allocation25_spill] sm:$0xff]  ;;  %v20453_v4 = vld [vmem:[#allocation56_spill] sm:$0xff] }
 0x88f   :  { %v11909_v5 = vcombine.low %v20435_v33, %v20432_v49  ;;  %v20446_v43 = vmax.bf16 %v20444_v6, %v20445_v13  ;;  %v20450_v27 = vld [vmem:[#allocation30_spill] sm:$0xff]  ;;  %v20454_v20 = vld [vmem:[#allocation55_spill] sm:$0xff]  ;;  %v20456_v62 = vld [vmem:[#allocation53_spill] sm:$0xff]  ;;  %v20470_v47 = vmax.bf16 %v18999_v50, %v18974_v39  ;;  %v11923_v50 = vcombine.low %v9392_v38, %v9393_v45 }
 0x890   :  { %v20452_v0 = vmax.bf16 %v20450_v27, %v20451_v21  ;;  %v20455_v54 = vmax.bf16 %v20453_v4, %v20454_v20  ;;  %v20457_v14 = vld [vmem:[#allocation52_spill] sm:$0xff]  ;;  %v20459_v8 = vld [vmem:[#allocation66_spill] sm:$0xff]  ;;  %v20462_v34 = vld [vmem:[#allocation29_spill] sm:$0xff] }
 0x891   :  { %12656 = vmatpush3.bf16.msra.mxu1 %v11908_v30  ;;  %v11910_v40 = vcombine.low %v20446_v43, %v20443_v10  ;;  %v20458_v59 = vmax.bf16 %v20456_v62, %v20457_v14  ;;  %v20460_v15 = vmax.bf16 %v18977_v17, %v20459_v8  ;;  %v20461_v11 = vld [vmem:[#allocation28_spill] sm:$0xff]  ;;  %v20464_v51 = vld [vmem:[#allocation58_spill] sm:$0xff]  ;;  %v20465_v31 = vld [vmem:[#allocation57_spill] sm:$0xff] }
 0x892   :  { %12657 = vmatprep.subr.bf16.mxu1 %v11917_v56  ;;  %v11919_v58 = vcombine.low %v20452_v0, %v20449_v44  ;;  %v20463_v12 = vmax.bf16 %v20461_v11, %v20462_v34  ;;  %v20466_v24 = vmax.bf16 %v20464_v51, %v20465_v31  ;;  %v20467_v52 = vld [vmem:[#allocation49_spill] sm:$0xff]  ;;  %v20468_v57 = vld [vmem:[#allocation51_spill] sm:$0xff]  ;;  %v20474_v56 = vld [vmem:[#allocation60_spill] sm:$0xff] }
 0x893   :  { %v11911_v35 = vcombine.low %v20458_v59, %v20455_v54  ;;  %v20469_v30 = vmax.bf16 %v20467_v52, %v20468_v57  ;;  %v20471_v32 = vld [vmem:[#allocation65_spill] sm:$0xff]  ;;  %v20476_v42 = vld [vmem:[#allocation59_spill] sm:$0xff]  ;;  %v20477_v49 = vld [vmem:[#allocation54_spill] sm:$0xff] }
 0x894   :  { %v11920_v7 = vcombine.low %v20463_v12, %v20460_v15  ;;  %v20472_v1 = vmax.bf16 %v18996_v2, %v20471_v32  ;;  %v20473_v18 = vld [vmem:[#allocation61_spill] sm:$0xff]  ;;  %v20478_v28 = vmax.bf16 %v20476_v42, %v20477_v49  ;;  %v20479_v33 = vld [vmem:[#allocation67_spill] sm:$0xff]  ;;  %v11924_v2 = vcombine.low %v9394_v23, %v9395_v48 }
 0x895   :  { %12658 = vmatpush3.bf16.msra.mxu1 %v11909_v5  ;;  %v11912_v63 = vcombine.low %v20469_v30, %v20466_v24  ;;  %v20475_v3 = vmax.bf16 %v20473_v18, %v20474_v56  ;;  %v20480_v5 = vld [vmem:[#allocation68_spill] sm:$0xff]  ;;  %v20483_v46 = vld [vmem:[#allocation69_spill] sm:$0xff]  ;;  %v9408_v38 = vld [vmem:[#allocation9 + $0x30] sm:$0xff] }
 0x896   :  { %12659 = vmatprep.subr.bf16.mxu1 %v11918_v55  ;;  %v11921_v17 = vcombine.low %v20472_v1, %v20470_v47  ;;  %v20481_v29 = vmax.bf16 %v20479_v33, %v20480_v5  ;;  %v9402_v26 = vld [vmem:[#allocation9] sm:$0xff]  ;;  %v9405_v36 = vld [vmem:[#allocation9 + $0x18] sm:$0xff]  ;;  %v20482_v55 = vld [vmem:[#allocation70_spill] sm:$0xff] }
 0x897   :  { %v11913_v37 = vcombine.low %v20478_v28, %v20475_v3  ;;  %v9406_v39 = vld [vmem:[#allocation9 + $0x20] sm:$0xff]  ;;  %v9409_v25 = vld [vmem:[#allocation9 + $0x38] sm:$0xff]  ;;  %v9412_v45 = vld [vmem:[#allocation9 + $0x50] sm:$0xff] }
 0x898   :  { %v11922_v53 = vcombine.low %v20481_v29, %v9391_v60  ;;  %v20484_v60 = vmax.bf16 %v20482_v55, %v20483_v46  ;;  %v9411_v23 = vld [vmem:[#allocation9 + $0x48] sm:$0xff]  ;;  %v9414_v10 = vld [vmem:[#allocation9 + $0x60] sm:$0xff]  ;;  %v9417_v19 = vld [vmem:[#allocation9 + $0x78] sm:$0xff] }
 0x899   :  { %12660 = vmatpush3.bf16.msra.mxu1 %v11910_v40  ;;  %v9415_v48 = vld [vmem:[#allocation9 + $0x68] sm:$0xff]  ;;  %v9418_v6 = vld [vmem:[#allocation9 + $0x80] sm:$0xff]  ;;  %v9404_v61 = vld [vmem:[#allocation9 + $0x10] sm:$0xff] }
 0x89a   :  { %12661 = vmatprep.subr.bf16.mxu1 %v11919_v58  ;;  %v11925_v41 = vcombine.low %v20484_v60, %v9397_v22  ;;  %v9407_v22 = vld [vmem:[#allocation9 + $0x28] sm:$0xff]  ;;  %v9410_v13 = vld [vmem:[#allocation9 + $0x40] sm:$0xff]  ;;  %v9413_v43 = vld [vmem:[#allocation9 + $0x58] sm:$0xff] }
 0x89b   :  { %v9416_v40 = vld [vmem:[#allocation9 + $0x70] sm:$0xff]  ;;  %v9419_v16 = vld [vmem:[#allocation9 + $0x88] sm:$0xff] }
 0x89d   :  { %12662 = vmatpush3.bf16.msra.mxu1 %v11911_v35 }
 0x89e   :  { %12663 = vmatprep.subr.bf16.mxu1 %v11920_v7 }
 0x8a1   :  { %12664 = vmatpush3.bf16.msra.mxu1 %v11912_v63 }
 0x8a2   :  { %12665 = vmatprep.subr.bf16.mxu1 %v11921_v17 }
 0x8a5   :  { %12666 = vmatpush3.bf16.msra.mxu1 %v11913_v37 }
 0x8a6   :  { %13487 = vmatprep.subr.bf16.mxu1 %v11922_v53 }
 0x8a8   :  { %9592 = vmatmul.mubr.bf16.vlgmr.msra.gmra.mrb[80].mxu1 %v9402_v26 }
 0x8a9   :  { %13488 = vmatpush3.bf16.msra.mxu1 %v11922_v53  ;;  %9599 = vmatprep.mubr.bf16.mxu1 %v9406_v39 }
 0x8aa   :  { %13489 = vmatprep.subr.bf16.mxu1 %v11923_v50 }
 0x8ad   :  { %13490 = vmatpush3.bf16.msra.mxu1 %v11923_v50 }
 0x8ae   :  { %13491 = vmatprep.subr.bf16.mxu1 %v11924_v2 }
 0x8b0   :  { %9600 = vmatmul.mubr.bf16.gmra.mrb[84].mxu1 %v9405_v36 }
 0x8b1   :  { %9607 = vmatprep.mubr.bf16.mxu1 %v9409_v25  ;;  %13492 = vmatpush3.bf16.msra.mxu1 %v11924_v2 }
 0x8b2   :  { %13493 = vmatprep.subr.bf16.mxu1 %v11925_v41 }
 0x8b5   :  { %13494 = vmatpush3.bf16.msra.mxu1 %v11925_v41 }
 0x8b8   :  { %9608 = vmatmul.mubr.bf16.gmra.mrb[88].mxu1 %v9408_v38 }
 0x8b9   :  { %9615 = vmatprep.mubr.bf16.mxu1 %v9412_v45 }
 0x8c0   :  { %9616 = vmatmul.mubr.bf16.gmra.mrb[92].mxu1 %v9411_v23 }
 0x8c1   :  { %9623 = vmatprep.mubr.bf16.mxu1 %v9415_v48 }
 0x8c8   :  { %9624 = vmatmul.mubr.bf16.gmra.mrb[96].mxu1 %v9414_v10 }
 0x8c9   :  { %9631 = vmatprep.mubr.bf16.mxu1 %v9418_v6 }
 0x8d0   :  { %9632 = vmatmul.mubr.bf16.gmra.mrb[100].mxu1 %v9417_v19 }
 0x8d1   :  { %13495 = vmatprep.mubr.msk.bf16.mxu1 %vm9540_vm5, %v9404_v61 }
 0x8d8   :  { %13496 = vmatmul.mubr.msk.bf16.vlgmr.msra.gmra.mrb[104].mxu1 %vm9540_vm5, %v9407_v22 }
 0x8d9   :  { %13499 = vmatprep.mubr.msk.bf16.mxu1 %vm9540_vm5, %v9410_v13 }
 0x8e0   :  { %13500 = vmatmul.mubr.msk.bf16.gmra.mrb[108].mxu1 %vm9540_vm5, %v9413_v43 }
 0x8e1   :  { %13503 = vmatprep.mubr.msk.bf16.mxu1 %vm9540_vm5, %v9416_v40 }
 0x8e8   :  { %13504 = vmatmul.mubr.msk.bf16.gmra.mrb[112].mxu1 %vm9540_vm5, %v9419_v16 }
 0x97b   :  { %v12667_v9 = vpop.f32.mrb[80].mxu1 }
 0x97c   :  { %v12668_v44 = vpop.f32.mrb[81].mxu1 }
 0x97d   :  { %v12669_v27 = vadd.f32 %v12668_v44, %v12667_v9  ;;  %v12670_v21 = vpop.f32.mrb[82].mxu1 }
 0x97e   :  { %v12671_v0 = vpop.f32.mrb[83].mxu1 }
 0x97f   :  { %v12672_v58 = vadd.f32 %v12671_v0, %v12670_v21 }
 0x983   :  { %v12673_v4 = vpop.f32.mrb[84].mxu1 }
 0x984   :  { %v12674_v20 = vpop.f32.mrb[85].mxu1 }
 0x985   :  { %v12675_v54 = vadd.f32 %v12674_v20, %v12673_v4  ;;  %v12676_v62 = vpop.f32.mrb[86].mxu1 }
 0x986   :  { %v12677_v14 = vpop.f32.mrb[87].mxu1 }
 0x987   :  { %v12678_v59 = vadd.f32 %v12677_v14, %v12676_v62 }
 0x98b   :  { %v12679_v35 = vpop.f32.mrb[88].mxu1 }
 0x98c   :  { %v12680_v8 = vpop.f32.mrb[89].mxu1 }
 0x98d   :  { %v12681_v15 = vadd.f32 %v12680_v8, %v12679_v35  ;;  %v12682_v11 = vpop.f32.mrb[90].mxu1 }
 0x98e   :  { %v12683_v34 = vpop.f32.mrb[91].mxu1 }
 0x98f   :  { %v12684_v12 = vadd.f32 %v12683_v34, %v12682_v11 }
 0x993   :  { %v12685_v7 = vpop.f32.mrb[92].mxu1 }
 0x994   :  { %v12686_v51 = vpop.f32.mrb[93].mxu1 }
 0x995   :  { %v12687_v31 = vadd.f32 %v12686_v51, %v12685_v7  ;;  %v12688_v24 = vpop.f32.mrb[94].mxu1 }
 0x996   :  { %v12689_v52 = vpop.f32.mrb[95].mxu1 }
 0x997   :  { %v12690_v57 = vadd.f32 %v12689_v52, %v12688_v24 }
 0x99b   :  { %v12691_v30 = vpop.f32.mrb[96].mxu1 }
 0x99c   :  { %v12692_v63 = vpop.f32.mrb[97].mxu1 }
 0x99d   :  { %v12693_v47 = vadd.f32 %v12692_v63, %v12691_v30  ;;  %v12694_v32 = vpop.f32.mrb[98].mxu1 }
 0x99e   :  { %v12695_v1 = vpop.f32.mrb[99].mxu1 }
 0x99f   :  { %v12696_v17 = vadd.f32 %v12695_v1, %v12694_v32 }
 0x9a3   :  { %v12697_v18 = vpop.f32.mrb[100].mxu1 }
 0x9a4   :  { %v12698_v56 = vpop.f32.mrb[101].mxu1 }
 0x9a5   :  { %v12699_v3 = vadd.f32 %v12698_v56, %v12697_v18  ;;  %v12700_v42 = vpop.f32.mrb[102].mxu1 }
 0x9a6   :  { %v12701_v49 = vpop.f32.mrb[103].mxu1 }
 0x9a7   :  { %v12702_v28 = vadd.f32 %v12701_v49, %v12700_v42 }
 0x9ab   :  { %v13497_v37 = vpop.f32.mrb[104].mxu1 }
 0x9ac   :  { %v9683_v33 = vadd.f32 %v13497_v37, %v12675_v54  ;;  %v9674_v5 = vpop.f32.mrb[105].mxu1 }
 0x9ad   :  { %v9675_v29 = vadd.f32 %v12669_v27, %v9674_v5  ;;  %v13498_v53 = vpop.f32.mrb[106].mxu1  ;;  %v20485_v27 = vld [vmem:[#allocation94_spill] sm:$0xff] }
 0x9ae   :  { %v9686_v26 = vadd.f32 %v13498_v53, %v12678_v59  ;;  %v9677_v39 = vpop.f32.mrb[107].mxu1  ;;  %13507 = vmatprep.subr.bf16.mxu1 %v20485_v27 }
 0x9af   :  { %v9678_v50 = vadd.f32 %v12672_v58, %v9677_v39 }
 0x9b0   :  { %v9722_v2 = vpack.c.bf16 %v9686_v26, %v9683_v33 }
 0x9b1   :  { %v9721_v36 = vpack.c.bf16 %v9678_v50, %v9675_v29 }
 0x9b2   :  { %9728 = vst [vmem:[#allocation5 + $0x10] sm:$0xff] %v9722_v2 }
 0x9b3   :  { %9727 = vst [vmem:[#allocation5 + $0x8] sm:$0xff] %v9721_v36  ;;  %v13501_v25 = vpop.f32.mrb[108].mxu1 }
 0x9b4   :  { %v9699_v55 = vadd.f32 %v13501_v25, %v12687_v31  ;;  %v9690_v46 = vpop.f32.mrb[109].mxu1 }
 0x9b5   :  { %v9691_v60 = vadd.f32 %v12681_v15, %v9690_v46  ;;  %v13502_v41 = vpop.f32.mrb[110].mxu1 }
 0x9b6   :  { %v9702_v38 = vadd.f32 %v13502_v41, %v12690_v57  ;;  %v9693_v45 = vpop.f32.mrb[111].mxu1 }
 0x9b7   :  { %v9694_v23 = vadd.f32 %v12684_v12, %v9693_v45 }
 0x9b8   :  { %v9724_v48 = vpack.c.bf16 %v9702_v38, %v9699_v55 }
 0x9b9   :  { %v9723_v10 = vpack.c.bf16 %v9694_v23, %v9691_v60 }
 0x9ba   :  { %9730 = vst [vmem:[#allocation5 + $0x20] sm:$0xff] %v9724_v48 }
 0x9bb   :  { %9729 = vst [vmem:[#allocation5 + $0x18] sm:$0xff] %v9723_v10  ;;  %v13505_v6 = vpop.f32.mrb[112].mxu1 }
 0x9bc   :  { %v9715_v19 = vadd.f32 %v13505_v6, %v12699_v3  ;;  %v9706_v61 = vpop.f32.mrb[113].mxu1 }
 0x9bd   :  { %v9707_v22 = vadd.f32 %v12693_v47, %v9706_v61  ;;  %v13506_v13 = vpop.f32.mrb[114].mxu1 }
 0x9be   :  { %v9718_v43 = vadd.f32 %v13506_v13, %v12702_v28  ;;  %v9709_v40 = vpop.f32.mrb[115].mxu1 }
 0x9bf   :  { %v9710_v16 = vadd.f32 %v12696_v17, %v9709_v40 }
 0x9c0   :  { %v9726_v9 = vpack.c.bf16 %v9718_v43, %v9715_v19 }
 0x9c1   :  { %v9725_v44 = vpack.c.bf16 %v9710_v16, %v9707_v22 }
 0x9c2   :  { %9732 = vst [vmem:[#allocation5 + $0x30] sm:$0xff] %v9726_v9 }
 0x9c3   :  { %9731 = vst [vmem:[#allocation5 + $0x28] sm:$0xff] %v9725_v44 }
 0x9c4   :  { %14595 = dma.done.wait [#allocation11 + $0x1], 9216 }
 0x9c5   :  { %14596 = vsyncadd [#allocation11 + $0x1], 4294958080  ;;  %13508 = vmatpush3.bf16.msra.mxu1 %v20485_v27  ;;  %v20486_v21 = vld [vmem:[#allocation95_spill] sm:$0xff]  ;;  %v20487_v0 = vld [vmem:[#allocation96_spill] sm:$0xff]  ;;  %vm10173_vm6 = vsmask.f32 256 }
 0x9c6   :  { %13509 = vmatprep.subr.bf16.mxu1 %v20486_v21  ;;  %v19202_v58 = vld [vmem:[#allocation5 + $0x8] sm:$0xff]  ;;  %v19204_v4 = vld [vmem:[#allocation5] sm:$0xf0]  ;;  %v20488_v62 = vld [vmem:[#allocation97_spill] sm:$0xff]  ;;  %vm10418_vm7 = vsmask.f32 7424 }
 0x9c7   :  { %v9767_v20 = vrot.slane %v19204_v4, 4  ;;  %v9768_v54 = vrot.slane %v19202_v58, 4  ;;  %v20489_v59 = vld [vmem:[#allocation98_spill] sm:$0xff]  ;;  %v20490_v35 = vld [vmem:[#allocation99_spill] sm:$0xff]  ;;  %v20491_v15 = vld [vmem:[#allocation100_spill] sm:$0xff]  ;;  %v19228_v51 = vshrl.u32 %v19202_v58, 16 }
 0x9c8   :  { %v19216_v8 = vld [vmem:[#allocation5 + $0x10] sm:$0xff]  ;;  %v19219_v11 = vld [vmem:[#allocation5 + $0x18] sm:$0xff]  ;;  %v19234_v24 = vshll.u32 %v19202_v58, 16  ;;  %v19239_v57 = vld [vmem:[#allocation5 + $0x20] sm:$0xff] }
 0x9c9   :  { %13510 = vmatpush3.bf16.msra.mxu1 %v20486_v21  ;;  %v9769_v14 = vsel %vm4556_vm3, %v9767_v20, %v9768_v54  ;;  %v19222_v34 = vrot.slane %v19216_v8, 4  ;;  %v9772_v12 = vrot.slane %v19219_v11, 4  ;;  %v20492_v7 = vld [vmem:[#allocation101_spill] sm:$0xff]  ;;  %v19231_v31 = vshrl.u32 %v19216_v8, 16  ;;  %v20493_v49 = vld [vmem:[#allocation86_spill] sm:$0xff]  ;;  %v20494_v60 = vld [vmem:[#allocation87_spill] sm:$0xff] }
 0x9ca   :  { %13511 = vmatprep.subr.bf16.mxu1 %v20487_v0  ;;  %13523 = vmatprep.mubr.bf16.mxu1 %v9769_v14  ;;  %v19237_v52 = vshll.u32 %v19216_v8, 16  ;;  %v19242_v30 = vshrl.u32 %v19219_v11, 16  ;;  %v19246_v47 = vld [vmem:[#allocation5 + $0x28] sm:$0xff]  ;;  %v19249_v32 = vshrl.u32 %v19239_v57, 16  ;;  %v10178_v1 = vrot.slane %v19228_v51, 7  ;;  %v20495_v6 = vld [vmem:[#allocation88_spill] sm:$0xff] }
 0x9cb   :  { %v9771_v63 = vsel %vm4556_vm3, %v9768_v54, %v19222_v34  ;;  %v10181_v17 = vrot.slane %v19231_v31, 7  ;;  %v19256_v18 = vsel %vm4556_vm3, %v19222_v34, %v9772_v12  ;;  %v19259_v56 = vshll.u32 %v19219_v11, 16  ;;  %v9735_v29 = vld [vmem:[#allocation5] sm:$0xf8]  ;;  %v9741_v19 = vld [vmem:[#allocation5 + $0x30] sm:$0xf] }
 0x9cc   :  { %v19262_v3 = vshrl.u32 %v19246_v47, 16  ;;  %v10184_v42 = vrot.slane %v19242_v30, 7  ;;  %v19267_v28 = vshll.u32 %v19239_v57, 16  ;;  %v19270_v37 = vor.u32 %v10178_v1, %v19234_v24  ;;  %v20496_v16 = vld [vmem:[#allocation89_spill] sm:$0xff]  ;;  %v20497_v21 = vld [vmem:[#allocation90_spill] sm:$0xff]  ;;  %v20498_v20 = vld [vmem:[#allocation91_spill] sm:$0xff] }
 0x9cd   :  { %13512 = vmatpush3.bf16.msra.mxu1 %v20487_v0  ;;  %v10182_v33 = vor.u32 %v10181_v17, %v19237_v52  ;;  %v10187_v5 = vrot.slane %v19249_v32, 7  ;;  %v19275_v53 = vshll.u32 %v19246_v47, 16  ;;  %v9774_v36 = vrot.slane %v19239_v57, 4  ;;  %v20499_v14 = vld [vmem:[#allocation92_spill] sm:$0xff] }
 0x9ce   :  { %13513 = vmatprep.subr.bf16.mxu1 %v20488_v62  ;;  %v10185_v26 = vor.u32 %v10184_v42, %v19259_v56  ;;  %v10190_v39 = vrot.slane %v19262_v3, 7  ;;  %v19287_v25 = vrot.slane %v19246_v47, 4  ;;  %v9868_v41 = vshrl.u32 %v9735_v29, 16 }
 0x9cf   :  { %v19280_v50 = vsel %vm10173_vm6, %v10178_v1, %v10182_v33  ;;  %v10188_v2 = vor.u32 %v10187_v5, %v19267_v28  ;;  %v9871_v38 = vshll.u32 %v9735_v29, 16  ;;  %v19304_v48 = vsel %vm4556_vm3, %v9772_v12, %v9774_v36  ;;  %v20500_v12 = vld [vmem:[#allocation93_spill] sm:$0xff]  ;;  %v20501_v29 = vld [vmem:[#allocation102_spill] sm:$0xff] }
 0x9d0   :  { %v19290_v55 = vsel %vm10173_vm6, %v10181_v17, %v10185_v26  ;;  %v10191_v46 = vor.u32 %v10190_v39, %v19275_v53  ;;  %v19308_v10 = vsel %vm4556_vm3, %v9774_v36, %v19287_v25  ;;  %v9870_v61 = vrot.slane %v9868_v41, 3 }
 0x9d1   :  { %13514 = vmatpush3.bf16.msra.mxu1 %v20488_v62  ;;  %v19297_v45 = vsel %vm10173_vm6, %v10184_v42, %v10188_v2  ;;  %v9873_v22 = vrot.slane %v9871_v38, 4  ;;  %v9878_v13 = vrot.slane %v19228_v51, 3  ;;  %v9881_v43 = vrot.slane %v19234_v24, 4 }
 0x9d2   :  { %13515 = vmatprep.subr.bf16.mxu1 %v20489_v59  ;;  %v19300_v23 = vsel %vm10173_vm6, %v10187_v5, %v10191_v46  ;;  %v9778_v40 = vrot.slane %v9741_v19, 4  ;;  %v9887_v54 = vrot.slane %v19231_v31, 3  ;;  %v9890_v62 = vrot.slane %v19237_v52, 4 }
 0x9d3   :  { %v9874_v9 = vor.u32 %v9873_v22, %v9870_v61  ;;  %v9882_v44 = vor.u32 %v9881_v43, %v9878_v13  ;;  %v9905_v1 = vrot.slane %v19249_v32, 3  ;;  %v9908_v17 = vrot.slane %v19267_v28, 4  ;;  %v20502_v22 = vld [vmem:[#allocation103_spill] sm:$0xff] }
 0x9d4   :  { %v9779_v27 = vsel %vm4556_vm3, %v19287_v25, %v9778_v40  ;;  %v10429_v42 = vrot.slane %v19237_v52, 1  ;;  %v9914_v33 = vrot.slane %v19262_v3, 3  ;;  %v9917_v2 = vrot.slane %v19275_v53, 4 }
 0x9d5   :  { %13516 = vmatpush3.bf16.msra.mxu1 %v20489_v59  ;;  %v9883_v0 = vsel %vm4957_vm4, %v9874_v9, %v9882_v44  ;;  %v9896_v59 = vrot.slane %v19242_v30, 3  ;;  %v10437_v46 = vrot.slane %v19259_v56, 1  ;;  %v9909_v38 = vor.u32 %v9908_v17, %v9905_v1 }
 0x9d6   :  { %13517 = vmatprep.subr.bf16.mxu1 %v20490_v35  ;;  %v10433_v36 = vor.u32 %v10429_v42, %v19231_v31  ;;  %v9924_v61 = vshll.u32 %v9741_v19, 16  ;;  %v19360_v13 = vor.u32 %v9917_v2, %v9914_v33  ;;  %v10027_v43 = vshrl.u32 %v19204_v4, 16 }
 0x9d7   :  { %v10030_v40 = vshll.u32 %v19204_v4, 16  ;;  %v10453_v1 = vrot.slane %v19275_v53, 1  ;;  %v10038_v33 = vrot.slane %v19231_v31, 4  ;;  %v10042_v2 = vrot.slane %v19242_v30, 4 }
 0x9d8   :  { %v19355_v41 = vsel %vm10418_vm7, %v10433_v36, %v10437_v46  ;;  %v10043_v36 = vrot.slane %v19259_v56, 5 }
 0x9d9   :  { %13518 = vmatpush3.bf16.msra.mxu1 %v20490_v35  ;;  %v9899_v35 = vrot.slane %v19259_v56, 4  ;;  %v10050_v56 = vrot.slane %v19262_v3, 4 }
 0x9da   :  { %13519 = vmatprep.subr.bf16.mxu1 %v20491_v15 }
 0x9dd   :  { %13520 = vmatpush3.bf16.msra.mxu1 %v20491_v15  ;;  %v19331_v15 = vor.u32 %v9890_v62, %v9887_v54  ;;  %v10035_v54 = vrot.slane %v19234_v24, 5  ;;  %v20504_v62 = vld [vmem:[#allocation105_spill] sm:$0xff] }
 0x9de   :  { %13521 = vmatprep.subr.bf16.mxu1 %v20492_v7 }
 0x9e1   :  { %13522 = vmatpush3.bf16.msra.mxu1 %v20492_v7  ;;  %v9900_v7 = vor.u32 %v9899_v35, %v9896_v59  ;;  %v10445_v59 = vrot.slane %v19267_v28, 1 }
 0x9e2   :  { %13535 = vmatprep.subr.bf16.mxu1 %v20493_v49 }
 0x9e3   :  { %v19346_v26 = vsel %vm4957_vm4, %v19331_v15, %v9900_v7 }
 0x9e4   :  { %13524 = vmatmul.mubr.bf16.vlgmr.msra.gmra.mrb[116].mxu1 %v9771_v63  ;;  %v10424_v63 = vrot.slane %v19234_v24, 1  ;;  %v10441_v24 = vor.u32 %v10437_v46, %v19242_v30 }
 0x9e5   :  { %13536 = vmatpush3.bf16.msra.mxu1 %v20493_v49  ;;  %13527 = vmatprep.mubr.bf16.mxu1 %v19256_v18  ;;  %v9892_v49 = vsel %vm4957_vm4, %v9882_v44, %v19331_v15  ;;  %v9926_v44 = vrot.slane %v9924_v61, 4  ;;  %v10047_v61 = vrot.slane %v19267_v28, 5  ;;  %v20510_v28 = vld [vmem:[#allocation111_spill] sm:$0xff] }
 0x9e6   :  { %13537 = vmatprep.subr.bf16.mxu1 %v20494_v60  ;;  %v10425_v5 = vor.u32 %v10424_v63, %v19228_v51  ;;  %v10449_v63 = vor.u32 %v10445_v59, %v19249_v32  ;;  %v19389_v17 = vsel %vm10418_vm7, %v10441_v24, %v10445_v59  ;;  %v20512_v59 = vld [vmem:[#allocation113_spill] sm:$0xff] }
 0x9e9   :  { %13538 = vmatpush3.bf16.msra.mxu1 %v20494_v60  ;;  %v19352_v60 = vsel %vm10418_vm7, %v10425_v5, %v10429_v42  ;;  %v19394_v42 = vsel %vm10418_vm7, %v10449_v63, %v10453_v1  ;;  %v10039_v5 = vrot.slane %v19237_v52, 5  ;;  %v10046_v52 = vrot.slane %v19249_v32, 4  ;;  %v20514_v63 = vld [vmem:[#allocation115_spill] sm:$0xff] }
 0x9ea   :  { %13539 = vmatprep.subr.bf16.mxu1 %v20495_v6 }
 0x9eb   :  { %v19405_v46 = vor.u32 %v10039_v5, %v10038_v33  ;;  %v20516_v33 = vld [vmem:[#allocation117_spill] sm:$0xff]  ;;  %v20517_v5 = vld [vmem:[#allocation118_spill] sm:$0xff] }
 0x9ec   :  { %13528 = vmatmul.mubr.bf16.gmra.mrb[120].mxu1 %v19304_v48 }
 0x9ed   :  { %13540 = vmatpush3.bf16.msra.mxu1 %v20495_v6  ;;  %13531 = vmatprep.mubr.bf16.mxu1 %v19308_v10  ;;  %v9921_v6 = vshrl.u32 %v9741_v19, 16  ;;  %v19372_v19 = vsel %vm4957_vm4, %v9909_v38, %v19360_v13 }
 0x9ee   :  { %13541 = vmatprep.subr.bf16.mxu1 %v20496_v16 }
 0x9ef   :  { %v9923_v9 = vrot.slane %v9921_v6, 3  ;;  %v10044_v6 = vor.u32 %v10043_v36, %v10042_v2  ;;  %v20518_v2 = vld [vmem:[#allocation119_spill] sm:$0xff] }
 0x9f1   :  { %13542 = vmatpush3.bf16.msra.mxu1 %v20496_v16  ;;  %v19366_v16 = vsel %vm4957_vm4, %v9900_v7, %v9909_v38  ;;  %v9927_v4 = vor.u32 %v9926_v44, %v9923_v9  ;;  %v20508_v38 = vld [vmem:[#allocation109_spill] sm:$0xff]  ;;  %v19416_v30 = vsel %vm1780_vm0, %v19405_v46, %v10044_v6  ;;  %v10048_v9 = vor.u32 %v10047_v61, %v10046_v52  ;;  %v20521_v52 = vld [vmem:[#allocation122_spill] sm:$0xff] }
 0x9f2   :  { %13543 = vmatprep.subr.bf16.mxu1 %v20497_v21  ;;  %v20524_v61 = vld [vmem:[#allocation125_spill] sm:$0xff] }
 0x9f3   :  { %v9928_v35 = vsel %vm4957_vm4, %v19360_v13, %v9927_v4  ;;  %v20511_v4 = vld [vmem:[#allocation112_spill] sm:$0xff] }
 0x9f4   :  { %13532 = vmatmul.mubr.bf16.gmra.mrb[124].mxu1 %v9779_v27  ;;  %v10034_v27 = vrot.slane %v19228_v51, 4 }
 0x9f5   :  { %13544 = vmatpush3.bf16.msra.mxu1 %v20497_v21  ;;  %13551 = vmatprep.mubr.bf16.mxu1 %v9883_v0  ;;  %v20503_v21 = vld [vmem:[#allocation104_spill] sm:$0xff]  ;;  %v10029_v0 = vrot.slane %v10027_v43, 4  ;;  %v10051_v43 = vrot.slane %v19275_v53, 5 }
 0x9f6   :  { %13545 = vmatprep.subr.bf16.mxu1 %v20498_v20 }
 0x9f9   :  { %13546 = vmatpush3.bf16.msra.mxu1 %v20498_v20  ;;  %v10032_v20 = vrot.slane %v10030_v40, 5  ;;  %v10016_v40 = vld [vmem:[#allocation5 + $0x30] sm:$0x1f] }
 0x9fa   :  { %13547 = vmatprep.subr.bf16.mxu1 %v20499_v14  ;;  %v10055_v32 = vshrl.u32 %v10016_v40, 16  ;;  %v10058_v44 = vshll.u32 %v10016_v40, 16  ;;  %v10570_v40 = vld [vmem:[#allocation5 + $0x8] sm:$0xf8] }
 0x9fb   :  { %v10033_v51 = vor.u32 %v10032_v20, %v10029_v0  ;;  %v19427_v0 = vsel %vm1780_vm0, %v10044_v6, %v10048_v9  ;;  %v20519_v6 = vld [vmem:[#allocation120_spill] sm:$0xff] }
 0x9fc   :  { %v10057_v20 = vrot.slane %v10055_v32, 4 }
 0x9fd   :  { %13548 = vmatpush3.bf16.msra.mxu1 %v20499_v14  ;;  %v10036_v14 = vor.u32 %v10035_v54, %v10034_v27  ;;  %v19423_v27 = vor.u32 %v10051_v43, %v10050_v56  ;;  %v10060_v54 = vrot.slane %v10058_v44, 5  ;;  %v20528_v56 = vld [vmem:[#allocation129_spill] sm:$0xff]  ;;  %v20533_v43 = vld [vmem:[#allocation134_spill] sm:$0xff]  ;;  %v10408_v44 = vld [vmem:[#allocation5 + $0x38] sm:$0x1] }
 0x9fe   :  { %13549 = vmatprep.subr.bf16.mxu1 %v20500_v12 }
 0x9ff   :  { %v10037_v7 = vsel %vm1780_vm0, %v10033_v51, %v10036_v14  ;;  %v10041_v31 = vsel %vm1780_vm0, %v10036_v14, %v19405_v46  ;;  %v10061_v14 = vor.u32 %v10060_v54, %v10057_v20  ;;  %v10467_v20 = vshll.u32 %v10408_v44, 16  ;;  %v20535_v54 = vld [vmem:[#allocation136_spill] sm:$0xff]  ;;  %v20556_v44 = vld [vmem:[#allocation157_spill] sm:$0xff] }
 0xa01   :  { %13550 = vmatpush3.bf16.msra.mxu1 %v20500_v12  ;;  %v20505_v12 = vld [vmem:[#allocation106_spill] sm:$0xff]  ;;  %v10062_v24 = vsel %vm1780_vm0, %v19423_v27, %v10061_v14  ;;  %v10469_v53 = vrot.slane %v10467_v20, 1 }
 0xa02   :  { %13563 = vmatprep.subr.bf16.mxu1 %v20501_v29 }
 0xa04   :  { %13552 = vmatmul.mubr.bf16.vlgmr.msra.gmra.mrb[116].mxu1 %v9892_v49  ;;  %v20506_v49 = vld [vmem:[#allocation107_spill] sm:$0xff] }
 0xa05   :  { %13564 = vmatpush3.bf16.msra.mxu1 %v20501_v29  ;;  %13555 = vmatprep.mubr.bf16.mxu1 %v19346_v26  ;;  %v20507_v29 = vld [vmem:[#allocation108_spill] sm:$0xff] }
 0xa06   :  { %13565 = vmatprep.subr.bf16.mxu1 %v20502_v22 }
 0xa09   :  { %13566 = vmatpush3.bf16.msra.mxu1 %v20502_v22  ;;  %v20509_v22 = vld [vmem:[#allocation110_spill] sm:$0xff] }
 0xa0a   :  { %13567 = vmatprep.subr.bf16.mxu1 %v20503_v21 }
 0xa0c   :  { %13556 = vmatmul.mubr.bf16.gmra.mrb[120].mxu1 %v19366_v16 }
 0xa0d   :  { %13568 = vmatpush3.bf16.msra.mxu1 %v20503_v21  ;;  %13559 = vmatprep.mubr.bf16.mxu1 %v19372_v19  ;;  %v10162_v21 = vld [vmem:[#allocation5] sm:$0x80] }
 0xa0e   :  { %13569 = vmatprep.subr.bf16.mxu1 %v20504_v62  ;;  %v10175_v51 = vshrl.u32 %v10162_v21, 16  ;;  %v10585_v21 = vshll.u32 %v10570_v40, 16 }
 0xa11   :  { %13570 = vmatpush3.bf16.msra.mxu1 %v20504_v62  ;;  %v19432_v62 = vsel %vm1780_vm0, %v10048_v9, %v19423_v27  ;;  %v10457_v9 = vor.u32 %v10453_v1, %v19262_v3  ;;  %v20536_v1 = vld [vmem:[#allocation137_spill] sm:$0xff] }
 0xa12   :  { %13571 = vmatprep.subr.bf16.mxu1 %v20505_v12 }
 0xa14   :  { %13560 = vmatmul.mubr.bf16.gmra.mrb[124].mxu1 %v9928_v35  ;;  %v10177_v35 = vrot.slane %v10175_v51, 7 }
 0xa15   :  { %13572 = vmatpush3.bf16.msra.mxu1 %v20505_v12  ;;  %13579 = vmatprep.mubr.bf16.mxu1 %v10037_v7  ;;  %v20513_v12 = vld [vmem:[#allocation114_spill] sm:$0xff] }
 0xa16   :  { %13573 = vmatprep.subr.bf16.mxu1 %v20506_v49  ;;  %v10180_v7 = vsel %vm10173_vm6, %v10177_v35, %v19270_v37 }
 0xa19   :  { %13574 = vmatpush3.bf16.msra.mxu1 %v20506_v49  ;;  %v20515_v49 = vld [vmem:[#allocation116_spill] sm:$0xff] }
 0xa1a   :  { %13575 = vmatprep.subr.bf16.mxu1 %v20507_v29 }
 0xa1d   :  { %13576 = vmatpush3.bf16.msra.mxu1 %v20507_v29  ;;  %v19452_v29 = vld [vmem:[#allocation5 + $0x30] sm:$0xff] }
 0xa1e   :  { %13577 = vmatprep.subr.bf16.mxu1 %v20508_v38  ;;  %v19458_v37 = vshrl.u32 %v19452_v29, 16 }
 0xa20   :  { %v10196_v36 = vrot.slane %v19458_v37, 7 }
 0xa21   :  { %13578 = vmatpush3.bf16.msra.mxu1 %v20508_v38  ;;  %v19464_v38 = vshll.u32 %v19452_v29, 16 }
 0xa22   :  { %13591 = vmatprep.subr.bf16.mxu1 %v20509_v22 }
 0xa23   :  { %v10461_v32 = vrot.slane %v19464_v38, 1 }
 0xa24   :  { %13580 = vmatmul.mubr.bf16.vlgmr.msra.gmra.mrb[116].mxu1 %v10041_v31 }
 0xa25   :  { %13592 = vmatpush3.bf16.msra.mxu1 %v20509_v22  ;;  %13583 = vmatprep.mubr.bf16.mxu1 %v19416_v30  ;;  %v20527_v22 = vld [vmem:[#allocation128_spill] sm:$0xff]  ;;  %v10465_v3 = vor.u32 %v10461_v32, %v19458_v37 }
 0xa26   :  { %13593 = vmatprep.subr.bf16.mxu1 %v20510_v28 }
 0xa27   :  { %v10470_v14 = vsel %vm10418_vm7, %v10465_v3, %v10469_v53 }
 0xa29   :  { %13594 = vmatpush3.bf16.msra.mxu1 %v20510_v28  ;;  %v10582_v28 = vshrl.u32 %v10570_v40, 16 }
 0xa2a   :  { %13595 = vmatprep.subr.bf16.mxu1 %v20511_v4 }
 0xa2c   :  { %13584 = vmatmul.mubr.bf16.gmra.mrb[120].mxu1 %v19427_v0 }
 0xa2d   :  { %13596 = vmatpush3.bf16.msra.mxu1 %v20511_v4  ;;  %13587 = vmatprep.mubr.bf16.mxu1 %v19432_v62  ;;  %v10584_v4 = vrot.slane %v10582_v28, 3  ;;  %v10880_v28 = vrot.slane %v19458_v37, 4 }
 0xa2e   :  { %13597 = vmatprep.subr.bf16.mxu1 %v20512_v59 }
 0xa31   :  { %13598 = vmatpush3.bf16.msra.mxu1 %v20512_v59  ;;  %v20537_v59 = vld [vmem:[#allocation138_spill] sm:$0xff] }
 0xa32   :  { %13599 = vmatprep.subr.bf16.mxu1 %v20513_v12 }
 0xa34   :  { %13588 = vmatmul.mubr.bf16.gmra.mrb[124].mxu1 %v10062_v24  ;;  %v20539_v24 = vld [vmem:[#allocation140_spill] sm:$0xff] }
 0xa35   :  { %13600 = vmatpush3.bf16.msra.mxu1 %v20513_v12  ;;  %13607 = vmatprep.mubr.bf16.mxu1 %v10180_v7  ;;  %v20540_v12 = vld [vmem:[#allocation141_spill] sm:$0xff]  ;;  %v20541_v7 = vld [vmem:[#allocation142_spill] sm:$0xff] }
 0xa36   :  { %13601 = vmatprep.subr.bf16.mxu1 %v20514_v63 }
 0xa39   :  { %13602 = vmatpush3.bf16.msra.mxu1 %v20514_v63  ;;  %v10606_v63 = vrot.slane %v19464_v38, 4 }
 0xa3a   :  { %13603 = vmatprep.subr.bf16.mxu1 %v20515_v49 }
 0xa3d   :  { %13604 = vmatpush3.bf16.msra.mxu1 %v20515_v49  ;;  %v10571_v49 = vld [vmem:[#allocation5 + $0x38] sm:$0xf] }
 0xa3e   :  { %13605 = vmatprep.subr.bf16.mxu1 %v20516_v33 }
 0xa41   :  { %13606 = vmatpush3.bf16.msra.mxu1 %v20516_v33  ;;  %v10610_v33 = vshrl.u32 %v10571_v49, 16 }
 0xa42   :  { %13619 = vmatprep.subr.bf16.mxu1 %v20517_v5 }
 0xa44   :  { %13608 = vmatmul.mubr.bf16.vlgmr.msra.gmra.mrb[116].mxu1 %v19280_v50  ;;  %v10199_v50 = vor.u32 %v19464_v38, %v10196_v36 }
 0xa45   :  { %13620 = vmatpush3.bf16.msra.mxu1 %v20517_v5  ;;  %13611 = vmatprep.mubr.bf16.mxu1 %v19290_v55  ;;  %v20520_v55 = vld [vmem:[#allocation121_spill] sm:$0xff]  ;;  %v10613_v5 = vshll.u32 %v10571_v49, 16 }
 0xa46   :  { %13621 = vmatprep.subr.bf16.mxu1 %v20518_v2  ;;  %v10200_v31 = vsel %vm10173_vm6, %v10190_v39, %v10199_v50  ;;  %v20525_v39 = vld [vmem:[#allocation126_spill] sm:$0xff] }
 0xa47   :  { %v10615_v50 = vrot.slane %v10613_v5, 4 }
 0xa49   :  { %13622 = vmatpush3.bf16.msra.mxu1 %v20518_v2  ;;  %v20542_v2 = vld [vmem:[#allocation143_spill] sm:$0xff] }
 0xa4a   :  { %13623 = vmatprep.subr.bf16.mxu1 %v20519_v6 }
 0xa4c   :  { %13612 = vmatmul.mubr.bf16.gmra.mrb[120].mxu1 %v19297_v45  ;;  %v20522_v45 = vld [vmem:[#allocation123_spill] sm:$0xff] }
 0xa4d   :  { %13624 = vmatpush3.bf16.msra.mxu1 %v20519_v6  ;;  %13615 = vmatprep.mubr.bf16.mxu1 %v19300_v23  ;;  %v20523_v23 = vld [vmem:[#allocation124_spill] sm:$0xff]  ;;  %v10612_v6 = vrot.slane %v10610_v33, 3 }
 0xa4e   :  { %13625 = vmatprep.subr.bf16.mxu1 %v20520_v55 }
 0xa51   :  { %13626 = vmatpush3.bf16.msra.mxu1 %v20520_v55  ;;  %v20543_v55 = vld [vmem:[#allocation144_spill] sm:$0xff] }
 0xa52   :  { %13627 = vmatprep.subr.bf16.mxu1 %v20521_v52 }
 0xa54   :  { %13616 = vmatmul.mubr.bf16.gmra.mrb[124].mxu1 %v10200_v31 }
 0xa55   :  { %13628 = vmatpush3.bf16.msra.mxu1 %v20521_v52  ;;  %13635 = vmatprep.mubr.bf16.mxu1 %v19202_v58  ;;  %v20526_v58 = vld [vmem:[#allocation127_spill] sm:$0xff] }
 0xa56   :  { %13629 = vmatprep.subr.bf16.mxu1 %v20522_v45  ;;  %v10717_v52 = vld [vmem:[#allocation5 + $0x8] sm:$0xf0] }
 0xa59   :  { %13630 = vmatpush3.bf16.msra.mxu1 %v20522_v45  ;;  %v10734_v45 = vrot.slane %v10717_v52, 4 }
 0xa5a   :  { %13631 = vmatprep.subr.bf16.mxu1 %v20523_v23 }
 0xa5d   :  { %13632 = vmatpush3.bf16.msra.mxu1 %v20523_v23 }
 0xa5e   :  { %13633 = vmatprep.subr.bf16.mxu1 %v20524_v61 }
 0xa61   :  { %13634 = vmatpush3.bf16.msra.mxu1 %v20524_v61  ;;  %v20545_v61 = vld [vmem:[#allocation146_spill] sm:$0xff] }
 0xa62   :  { %13647 = vmatprep.subr.bf16.mxu1 %v20525_v39 }
 0xa64   :  { %13636 = vmatmul.mubr.bf16.vlgmr.msra.gmra.mrb[116].mxu1 %v19216_v8  ;;  %v20529_v8 = vld [vmem:[#allocation130_spill] sm:$0xff] }
 0xa65   :  { %13648 = vmatpush3.bf16.msra.mxu1 %v20525_v39  ;;  %13639 = vmatprep.mubr.bf16.mxu1 %v19219_v11  ;;  %v20530_v11 = vld [vmem:[#allocation131_spill] sm:$0xff]  ;;  %v10736_v39 = vsel %vm4556_vm3, %v10734_v45, %v19222_v34 }
 0xa66   :  { %13649 = vmatprep.subr.bf16.mxu1 %v20526_v58  ;;  %v20550_v34 = vld [vmem:[#allocation151_spill] sm:$0xff] }
 0xa69   :  { %13650 = vmatpush3.bf16.msra.mxu1 %v20526_v58  ;;  %v20548_v58 = vld [vmem:[#allocation149_spill] sm:$0xff] }
 0xa6a   :  { %13651 = vmatprep.subr.bf16.mxu1 %v20527_v22 }
 0xa6c   :  { %13640 = vmatmul.mubr.bf16.gmra.mrb[120].mxu1 %v19239_v57  ;;  %v20531_v57 = vld [vmem:[#allocation132_spill] sm:$0xff] }
 0xa6d   :  { %13652 = vmatpush3.bf16.msra.mxu1 %v20527_v22  ;;  %13643 = vmatprep.mubr.bf16.mxu1 %v19246_v47  ;;  %v20532_v47 = vld [vmem:[#allocation133_spill] sm:$0xff]  ;;  %v20549_v22 = vld [vmem:[#allocation150_spill] sm:$0xff] }
 0xa6e   :  { %13653 = vmatprep.subr.bf16.mxu1 %v20528_v56 }
 0xa71   :  { %13654 = vmatpush3.bf16.msra.mxu1 %v20528_v56  ;;  %v10743_v56 = vrot.slane %v19452_v29, 4 }
 0xa72   :  { %13655 = vmatprep.subr.bf16.mxu1 %v20529_v8 }
 0xa74   :  { %13644 = vmatmul.mubr.bf16.gmra.mrb[124].mxu1 %v19452_v29 }
 0xa75   :  { %13656 = vmatpush3.bf16.msra.mxu1 %v20529_v8  ;;  %13663 = vmatprep.mubr.bf16.mxu1 %v19352_v60  ;;  %v20534_v60 = vld [vmem:[#allocation135_spill] sm:$0xff]  ;;  %v10857_v8 = vshrl.u32 %v10717_v52, 16 }
 0xa76   :  { %13657 = vmatprep.subr.bf16.mxu1 %v20530_v11 }
 0xa79   :  { %13658 = vmatpush3.bf16.msra.mxu1 %v20530_v11  ;;  %v10860_v11 = vshll.u32 %v10717_v52, 16 }
 0xa7a   :  { %13659 = vmatprep.subr.bf16.mxu1 %v20531_v57 }
 0xa7b   :  { %v10862_v40 = vrot.slane %v10860_v11, 5 }
 0xa7d   :  { %13660 = vmatpush3.bf16.msra.mxu1 %v20531_v57  ;;  %v20551_v57 = vld [vmem:[#allocation152_spill] sm:$0xff] }
 0xa7e   :  { %13661 = vmatprep.subr.bf16.mxu1 %v20532_v47 }
 0xa81   :  { %13662 = vmatpush3.bf16.msra.mxu1 %v20532_v47  ;;  %v10744_v47 = vsel %vm4556_vm3, %v19287_v25, %v10743_v56 }
 0xa82   :  { %13675 = vmatprep.subr.bf16.mxu1 %v20533_v43 }
 0xa84   :  { %13664 = vmatmul.mubr.bf16.vlgmr.msra.gmra.mrb[116].mxu1 %v19355_v41  ;;  %v10462_v41 = vsel %vm10418_vm7, %v10457_v9, %v10461_v32  ;;  %v20553_v9 = vld [vmem:[#allocation154_spill] sm:$0xff]  ;;  %v20555_v32 = vld [vmem:[#allocation156_spill] sm:$0xff] }
 0xa85   :  { %13676 = vmatpush3.bf16.msra.mxu1 %v20533_v43  ;;  %13667 = vmatprep.mubr.bf16.mxu1 %v19389_v17  ;;  %v10587_v17 = vrot.slane %v10585_v21, 4  ;;  %v10859_v43 = vrot.slane %v10857_v8, 4  ;;  %v10846_v21 = vld [vmem:[#allocation5 + $0x38] sm:$0x1f] }
 0xa86   :  { %13677 = vmatprep.subr.bf16.mxu1 %v20534_v60  ;;  %v10885_v20 = vshrl.u32 %v10846_v21, 16 }
 0xa87   :  { %v10588_v51 = vor.u32 %v10587_v17, %v10584_v4  ;;  %v10863_v29 = vor.u32 %v10862_v40, %v10859_v43 }
 0xa88   :  { %v10887_v4 = vrot.slane %v10885_v20, 4 }
 0xa89   :  { %13678 = vmatpush3.bf16.msra.mxu1 %v20534_v60  ;;  %v10592_v35 = vsel %vm4957_vm4, %v10588_v51, %v19331_v15  ;;  %v10605_v15 = vrot.slane %v19458_v37, 3  ;;  %v10867_v25 = vsel %vm1780_vm0, %v10863_v29, %v19405_v46  ;;  %v10881_v46 = vrot.slane %v19464_v38, 5 }
 0xa8a   :  { %13679 = vmatprep.subr.bf16.mxu1 %v20535_v54 }
 0xa8b   :  { %v10607_v36 = vor.u32 %v10606_v63, %v10605_v15 }
 0xa8c   :  { %13668 = vmatmul.mubr.bf16.gmra.mrb[120].mxu1 %v19394_v42  ;;  %v20538_v42 = vld [vmem:[#allocation139_spill] sm:$0xff] }
 0xa8d   :  { %13680 = vmatpush3.bf16.msra.mxu1 %v20535_v54  ;;  %13671 = vmatprep.mubr.bf16.mxu1 %v10462_v41  ;;  %v10608_v31 = vsel %vm4957_vm4, %v19360_v13, %v10607_v36  ;;  %v20546_v13 = vld [vmem:[#allocation147_spill] sm:$0xff]  ;;  %v10888_v54 = vshll.u32 %v10846_v21, 16  ;;  %v10882_v41 = vor.u32 %v10881_v46, %v10880_v28 }
 0xa8e   :  { %13681 = vmatprep.subr.bf16.mxu1 %v20536_v1 }
 0xa8f   :  { %v10890_v17 = vrot.slane %v10888_v54, 5  ;;  %v10883_v3 = vsel %vm1780_vm0, %v19423_v27, %v10882_v41 }
 0xa91   :  { %13682 = vmatpush3.bf16.msra.mxu1 %v20536_v1  ;;  %v10891_v53 = vor.u32 %v10890_v17, %v10887_v4 }
 0xa92   :  { %13683 = vmatprep.subr.bf16.mxu1 %v20537_v59 }
 0xa93   :  { %v10892_v37 = vsel %vm1780_vm0, %v10882_v41, %v10891_v53 }
 0xa94   :  { %13672 = vmatmul.mubr.bf16.gmra.mrb[124].mxu1 %v10470_v14 }
 0xa95   :  { %13684 = vmatpush3.bf16.msra.mxu1 %v20537_v59  ;;  %13691 = vmatprep.mubr.bf16.mxu1 %v10592_v35 }
 0xa96   :  { %13685 = vmatprep.subr.bf16.mxu1 %v20538_v42 }
 0xa99   :  { %13686 = vmatpush3.bf16.msra.mxu1 %v20538_v42 }
 0xa9a   :  { %13687 = vmatprep.subr.bf16.mxu1 %v20539_v24 }
 0xa9d   :  { %13688 = vmatpush3.bf16.msra.mxu1 %v20539_v24 }
 0xa9e   :  { %13689 = vmatprep.subr.bf16.mxu1 %v20540_v12 }
 0xaa1   :  { %13690 = vmatpush3.bf16.msra.mxu1 %v20540_v12 }
 0xaa2   :  { %13703 = vmatprep.subr.bf16.mxu1 %v20541_v7 }
 0xaa4   :  { %13692 = vmatmul.mubr.bf16.vlgmr.msra.gmra.mrb[116].mxu1 %v19346_v26  ;;  %v10616_v26 = vor.u32 %v10615_v50, %v10612_v6  ;;  %v11114_v50 = vld [vmem:[#allocation6 + $0x30] sm:$0x1f] }
 0xaa5   :  { %13704 = vmatpush3.bf16.msra.mxu1 %v20541_v7  ;;  %13695 = vmatprep.mubr.bf16.mxu1 %v19366_v16  ;;  %v20544_v16 = vld [vmem:[#allocation145_spill] sm:$0xff] }
 0xaa6   :  { %13705 = vmatprep.subr.bf16.mxu1 %v20542_v2  ;;  %v10617_v23 = vsel %vm4957_vm4, %v10607_v36, %v10616_v26 }
 0xaa9   :  { %13706 = vmatpush3.bf16.msra.mxu1 %v20542_v2 }
 0xaaa   :  { %13707 = vmatprep.subr.bf16.mxu1 %v20543_v55 }
 0xaac   :  { %13696 = vmatmul.mubr.bf16.gmra.mrb[120].mxu1 %v19372_v19  ;;  %v20547_v19 = vld [vmem:[#allocation148_spill] sm:$0xff] }
 0xaad   :  { %13708 = vmatpush3.bf16.msra.mxu1 %v20543_v55  ;;  %13699 = vmatprep.mubr.bf16.mxu1 %v10608_v31 }
 0xaae   :  { %13709 = vmatprep.subr.bf16.mxu1 %v20544_v16 }
 0xab1   :  { %13710 = vmatpush3.bf16.msra.mxu1 %v20544_v16 }
 0xab2   :  { %13711 = vmatprep.subr.bf16.mxu1 %v20545_v61 }
 0xab4   :  { %13700 = vmatmul.mubr.bf16.gmra.mrb[124].mxu1 %v10617_v23 }
 0xab5   :  { %13712 = vmatpush3.bf16.msra.mxu1 %v20545_v61  ;;  %13719 = vmatprep.mubr.bf16.mxu1 %v10736_v39  ;;  %v11047_v61 = vld [vmem:[#allocation6 + $0x30] sm:$0x1]  ;;  %v11124_v39 = vshll.u32 %v11114_v50, 16 }
 0xab6   :  { %13713 = vmatprep.subr.bf16.mxu1 %v20546_v13 }
 0xab9   :  { %13714 = vmatpush3.bf16.msra.mxu1 %v20546_v13 }
 0xaba   :  { %13715 = vmatprep.subr.bf16.mxu1 %v20547_v19 }
 0xabd   :  { %13716 = vmatpush3.bf16.msra.mxu1 %v20547_v19 }
 0xabe   :  { %13717 = vmatprep.subr.bf16.mxu1 %v20548_v58 }
 0xac1   :  { %13718 = vmatpush3.bf16.msra.mxu1 %v20548_v58 }
 0xac2   :  { %13731 = vmatprep.subr.bf16.mxu1 %v20549_v22 }
 0xac4   :  { %13720 = vmatmul.mubr.bf16.vlgmr.msra.gmra.mrb[116].mxu1 %v19256_v18  ;;  %v10745_v18 = vrot.slane %v10571_v49, 4 }
 0xac5   :  { %13732 = vmatpush3.bf16.msra.mxu1 %v20549_v22  ;;  %13723 = vmatprep.mubr.bf16.mxu1 %v19304_v48  ;;  %v20552_v48 = vld [vmem:[#allocation153_spill] sm:$0xff] }
 0xac6   :  { %13733 = vmatprep.subr.bf16.mxu1 %v20550_v34  ;;  %v10746_v60 = vsel %vm4556_vm3, %v10743_v56, %v10745_v18 }
 0xac9   :  { %13734 = vmatpush3.bf16.msra.mxu1 %v20550_v34 }
 0xaca   :  { %13735 = vmatprep.subr.bf16.mxu1 %v20551_v57 }
 0xacc   :  { %13724 = vmatmul.mubr.bf16.gmra.mrb[120].mxu1 %v19308_v10  ;;  %v20554_v10 = vld [vmem:[#allocation155_spill] sm:$0xff] }
 0xacd   :  { %13736 = vmatpush3.bf16.msra.mxu1 %v20551_v57  ;;  %13727 = vmatprep.mubr.bf16.mxu1 %v10744_v47  ;;  %v11096_v57 = vshll.u32 %v11047_v61, 16 }
 0xace   :  { %13737 = vmatprep.subr.bf16.mxu1 %v20552_v48 }
 0xad1   :  { %13738 = vmatpush3.bf16.msra.mxu1 %v20552_v48 }
 0xad2   :  { %13739 = vmatprep.subr.bf16.mxu1 %v20553_v9 }
 0xad4   :  { %13728 = vmatmul.mubr.bf16.gmra.mrb[124].mxu1 %v10746_v60 }
 0xad5   :  { %13740 = vmatpush3.bf16.msra.mxu1 %v20553_v9  ;;  %13747 = vmatprep.mubr.bf16.mxu1 %v10867_v25 }
 0xad6   :  { %13741 = vmatprep.subr.bf16.mxu1 %v20554_v10 }
 0xad9   :  { %13742 = vmatpush3.bf16.msra.mxu1 %v20554_v10  ;;  %v11126_v10 = vrot.slane %v11124_v39, 1 }
 0xada   :  { %13743 = vmatprep.subr.bf16.mxu1 %v20555_v32 }
 0xadd   :  { %13744 = vmatpush3.bf16.msra.mxu1 %v20555_v32  ;;  %v11128_v32 = vshrl.u32 %v11114_v50, 16 }
 0xade   :  { %13745 = vmatprep.subr.bf16.mxu1 %v20556_v44 }
 0xae1   :  { %13746 = vmatpush3.bf16.msra.mxu1 %v20556_v44 }
 0xae4   :  { %13748 = vmatmul.mubr.bf16.vlgmr.msra.gmra.mrb[116].mxu1 %v19416_v30  ;;  %v11932_v30 = vld [vmem:[%s19798_s5] ss:$0 sm:$0xff] }
 0xae5   :  { %13751 = vmatprep.mubr.bf16.mxu1 %v19427_v0 }
 0xaec   :  { %13752 = vmatmul.mubr.bf16.gmra.mrb[120].mxu1 %v19432_v62 }
 0xaed   :  { %13755 = vmatprep.mubr.bf16.mxu1 %v10883_v3 }
 0xaf4   :  { %13756 = vmatmul.mubr.bf16.gmra.mrb[124].mxu1 %v10892_v37 }
 0xbb7   :  { %v13749_v0 = vpop.f32.mrb[116].mxu1 }
 0xbb8   :  { %v11001_v38 = vadd.f32 %v13749_v0, %v11932_v30  ;;  %v10933_v1 = vpop.f32.mrb[117].mxu1 }
 0xbb9   :  { %v10999_v51 = vadd.f32 %v11932_v30, %v10933_v1  ;;  %v13750_v14 = vpop.f32.mrb[118].mxu1 }
 0xbba   :  { %v11002_v59 = vadd.f32 %v13750_v14, %v11932_v30  ;;  %v10936_v35 = vpop.f32.mrb[119].mxu1  ;;  %v11013_v27 = vmax.f32 %v11001_v38, 0.0 }
 0xbbb   :  { %v11000_v42 = vadd.f32 %v11932_v30, %v10936_v35  ;;  %v11011_v62 = vmax.f32 %v10999_v51, 0.0 }
 0xbbc   :  { %v11014_v24 = vmax.f32 %v11002_v59, 0.0 }
 0xbbd   :  { %v11012_v12 = vmax.f32 %v11000_v42, 0.0 }
 0xbbe   :  { %v11024_v7 = vpack.c.bf16 %v11014_v24, %v11013_v27  ;;  %v11130_v24 = vor.u32 %v11128_v32, %v11126_v10 }
 0xbbf   :  { %v19597_v15 = vpack.c.bf16 %v11012_v12, %v11011_v62  ;;  %v13753_v63 = vpop.f32.mrb[120].mxu1 }
 0xbc0   :  { %v11005_v49 = vadd.f32 %v13753_v63, %v11932_v30  ;;  %v10949_v33 = vpop.f32.mrb[121].mxu1  ;;  %v11056_v5 = vshll.u32 %v11024_v7, 16  ;;  %v11060_v47 = vshrl.u32 %v11024_v7, 16  ;;  %v11113_v63 = vld [vmem:[#allocation6 + $0x30] sm:$0xf] }
 0xbc1   :  { %11029 = vst [vmem:[#allocation6] sm:$0xff] %v19597_v15  ;;  %v11051_v2 = vshll.u32 %v19597_v15, 16  ;;  %v11003_v36 = vadd.f32 %v11932_v30, %v10949_v33  ;;  %v13754_v6 = vpop.f32.mrb[122].mxu1  ;;  %v11049_v52 = vshrl.u32 %v19597_v15, 16 }
 0xbc2   :  { %v11006_v55 = vadd.f32 %v13754_v6, %v11932_v30  ;;  %v10952_v31 = vpop.f32.mrb[123].mxu1  ;;  %v11017_v45 = vmax.f32 %v11005_v49, 0.0  ;;  %v11058_v13 = vrot.slane %v11056_v5, 1  ;;  %v11098_v5 = vrot.slane %v11096_v57, 1 }
 0xbc3   :  { %v11053_v26 = vrot.slane %v11051_v2, 1  ;;  %v11004_v16 = vadd.f32 %v11932_v30, %v10952_v31  ;;  %v11015_v58 = vmax.f32 %v11003_v36, 0.0  ;;  %v11140_v31 = vmax.bf16 %v11130_v24, %v11113_v63 }
 0xbc4   :  { %v11018_v23 = vmax.f32 %v11006_v55, 0.0  ;;  %v11062_v44 = vor.u32 %v11060_v47, %v11058_v13 }
 0xbc5   :  { %v11054_v19 = vor.u32 %v11053_v26, %v11049_v52  ;;  %v11016_v22 = vmax.f32 %v11004_v16, 0.0 }
 0xbc6   :  { %v19602_v34 = vpack.c.bf16 %v11018_v23, %v11017_v45 }
 0xbc7   :  { %v11059_v56 = vsel %vm10418_vm7, %v11054_v19, %v11058_v13  ;;  %v11025_v8 = vpack.c.bf16 %v11016_v22, %v11015_v58  ;;  %v13757_v11 = vpop.f32.mrb[124].mxu1 }
 0xbc8   :  { %v11106_v43 = vmax.bf16 %v11059_v56, %v19597_v15  ;;  %v11112_v40 = vld [vmem:[#allocation6] sm:$0xf0]  ;;  %v11072_v18 = vshll.u32 %v19602_v34, 16  ;;  %v11009_v48 = vadd.f32 %v13757_v11, %v11932_v30  ;;  %v10965_v29 = vpop.f32.mrb[125].mxu1  ;;  %v11076_v49 = vshrl.u32 %v19602_v34, 16 }
 0xbc9   :  { %v11118_v60 = vshll.u32 %v11112_v40, 16  ;;  %v11064_v9 = vshll.u32 %v11025_v8, 16  ;;  %v13758_v25 = vpop.f32.mrb[126].mxu1  ;;  %v11116_v28 = vshrl.u32 %v11112_v40, 16  ;;  %v11007_v46 = vadd.f32 %v11932_v30, %v10965_v29 }
 0xbca   :  { %v11010_v21 = vadd.f32 %v13758_v25, %v11932_v30  ;;  %v10968_v20 = vpop.f32.mrb[127].mxu1  ;;  %v11068_v4 = vshrl.u32 %v11025_v8, 16  ;;  %v11074_v3 = vrot.slane %v11072_v18, 1  ;;  %v11021_v53 = vmax.f32 %v11009_v48, 0.0 }
 0xbcb   :  { %v11120_v54 = vrot.slane %v11118_v60, 1  ;;  %v11066_v41 = vrot.slane %v11064_v9, 1  ;;  %v11008_v17 = vadd.f32 %v11932_v30, %v10968_v20  ;;  %v11019_v37 = vmax.f32 %v11007_v46, 0.0 }
 0xbcc   :  { %v11022_v0 = vmax.f32 %v11010_v21, 0.0  ;;  %v11078_v55 = vor.u32 %v11076_v49, %v11074_v3  ;;  %v11159_v11 = vrot.slane %v11140_v31, 4 }
 0xbcd   :  { %v11121_v38 = vor.u32 %v11120_v54, %v11116_v28  ;;  %v11067_v1 = vsel %vm10418_vm7, %v11062_v44, %v11066_v41  ;;  %v11070_v51 = vor.u32 %v11068_v4, %v11066_v41  ;;  %v11020_v14 = vmax.f32 %v11008_v17, 0.0 }
 0xbce   :  { %v11107_v59 = vmax.bf16 %v11067_v1, %v11024_v7  ;;  %v11028_v35 = vpack.c.bf16 %v11022_v0, %v11021_v53 }
 0xbcf   :  { %v11122_v42 = vsel %vm10418_vm7, %v11121_v38, %v11058_v13  ;;  %v11075_v27 = vsel %vm10418_vm7, %v11070_v51, %v11074_v3  ;;  %v11027_v62 = vpack.c.bf16 %v11020_v14, %v11019_v37 }
 0xbd0   :  { %v11134_v12 = vmax.bf16 %v11122_v42, %v11112_v40  ;;  %v11108_v15 = vmax.bf16 %v11075_v27, %v11025_v8  ;;  %v11088_v30 = vshll.u32 %v11028_v35, 16  ;;  %v11149_v33 = vrot.slane %v11107_v59, 4 }
 0xbd1   :  { %v11080_v2 = vshll.u32 %v11027_v62, 16  ;;  %v11092_v7 = vshrl.u32 %v11028_v35, 16  ;;  %v11084_v26 = vshrl.u32 %v11027_v62, 16 }
 0xbd2   :  { %v11148_v36 = vrot.slane %v11134_v12, 4  ;;  %v11151_v6 = vrot.slane %v11108_v15, 4  ;;  %v11090_v50 = vrot.slane %v11088_v30, 1 }
 0xbd3   :  { %v11082_v52 = vrot.slane %v11080_v2, 1 }
 0xbd4   :  { %v11150_v16 = vsel %vm4556_vm3, %v11148_v36, %v11149_v33  ;;  %v11152_v45 = vsel %vm4556_vm3, %v11149_v33, %v11151_v6  ;;  %v11094_v23 = vor.u32 %v11092_v7, %v11090_v50 }
 0xbd5   :  { %v19613_v61 = vmax.bf16 %v11150_v16, %v11106_v43  ;;  %v19615_v39 = vmax.bf16 %v11152_v45, %v11107_v59  ;;  %v11083_v13 = vsel %vm10418_vm7, %v11078_v55, %v11082_v52  ;;  %v11086_v19 = vor.u32 %v11084_v26, %v11082_v52 }
 0xbd6   :  { %v11127_v58 = vsel %vm10418_vm7, %v11094_v23, %v11126_v10  ;;  %v11109_v22 = vmax.bf16 %v11083_v13, %v19602_v34  ;;  %v11099_v56 = vsel %vm10418_vm7, %v11094_v23, %v11098_v5 }
 0xbd7   :  { %v11139_v8 = vmax.bf16 %v11127_v58, %v11028_v35  ;;  %v11091_v57 = vsel %vm10418_vm7, %v11086_v19, %v11090_v50  ;;  %v11111_v43 = vmax.bf16 %v11099_v56, %v11028_v35 }
 0xbd8   :  { %v11110_v47 = vmax.bf16 %v11091_v57, %v11027_v62  ;;  %v11153_v40 = vrot.slane %v11109_v22, 4 }
 0xbd9   :  { %v11157_v18 = vrot.slane %v11139_v8, 4 }
 0xbda   :  { %v11154_v48 = vsel %vm4556_vm3, %v11151_v6, %v11153_v40  ;;  %v11155_v29 = vrot.slane %v11110_v47, 4 }
 0xbdb   :  { %v11160_v60 = vsel %vm4556_vm3, %v11157_v18, %v11159_v11  ;;  %v19624_v9 = vmax.bf16 %v11154_v48, %v11108_v15 }
 0xbdc   :  { %v19626_v25 = vmax.bf16 %v11160_v60, %v11111_v43  ;;  %v11156_v34 = vsel %vm4556_vm3, %v11153_v40, %v11155_v29  ;;  %v11158_v10 = vsel %vm4556_vm3, %v11155_v29, %v11157_v18 }
 0xbdd   :  { %v19630_v32 = vmax.bf16 %v11156_v34, %v11109_v22  ;;  %v19632_v44 = vmax.bf16 %v11158_v10, %v11110_v47 }
 0xbde   :  { %14597 = dma.done.wait [#allocation11 + $0x3], 4096 }
 0xbdf   :  { %14598 = vsyncadd [#allocation11 + $0x3], 4294963200  ;;  %v14602_v28 = vmov 0.0   ;;  %vm14603_vm8 = vmmov 0   ;;  %v20557_v46 = vld [vmem:[#allocation174_spill] sm:$0xff]  ;;  %v20558_v21 = vld [vmem:[#allocation175_spill] sm:$0xff] }
 0xbe0   :  { %13759 = vmatprep.subr.bf16.mxu1 %v14602_v28  ;;  %13771 = vmatprep.mubr.msk.bf16.mxu1 %vm14603_vm8, %v14602_v28  ;;  %v20559_v20 = vld [vmem:[#allocation176_spill] sm:$0xff]  ;;  %v20560_v54 = vld [vmem:[#allocation177_spill] sm:$0xff]  ;;  %v20561_v41 = vld [vmem:[#allocation178_spill] sm:$0xff]  ;;  %vm11179_vm9 = vcmask 785408   ;;  %s14604_s2 = smov [#allocation12]   ;;  %vm11567_vm10 = vcmask 254976  }
 0xbe1   :  { %13760 = vmatpush3.bf16.msra.mxu1 %v19613_v61  ;;  %13847 = vmatprep.subr.bf16.mxu0 %v14602_v28  ;;  %v11178_v4 = vld [vmem:[%s19799_s6] sm:$0x1]  ;;  %v20563_v3 = vld [vmem:[#allocation180_spill] sm:$0xff]  ;;  %v20564_v53 = vld [vmem:[#allocation181_spill] sm:$0xff]  ;;  %s11575_s27 = sshll.u32 %s14604_s2, 4  ;;  %s11576_s27 = int_to_ptr.vmem [resolvable:$true] %s11575_s27 }
 0xbe2   :  { %13761 = vmatprep.subr.bf16.mxu1 %v14602_v28  ;;  %13848 = vmatpush3.bf16.msra.mxu0 %v20557_v46  ;;  %v20562_v17 = vld [vmem:[#allocation179_spill] sm:$0xff]  ;;  %v20565_v0 = vld [vmem:[#allocation166_spill] sm:$0xff]  ;;  %v20567_v1 = vld [vmem:[#allocation168_spill] sm:$0xff]  ;;  %s14569_s28 = scalar_lea.vmem %s11576_s27, 32  ;;  %p14574_p1 = scmp.lt.s32.totalorder %s11576_s27, %s11576_s27 }
 0xbe3   :  { %13849 = vmatprep.subr.bf16.mxu0 %v14602_v28  ;;  %13863 = vmatprep.mubr.msk.bf16.mxu0 %vm14603_vm8, %v14602_v28  ;;  %v11934_v37 = vld [vmem:[%s19799_s6 + $0x1] sm:$0x1]  ;;  %v20568_v51 = vld [vmem:[#allocation169_spill] sm:$0xff]  ;;  %v20569_v14 = vld [vmem:[#allocation170_spill] sm:$0xff]  ;;  %p14570_p0 = scmp.ne.s32.totalorder %s11576_s27, %s14569_s28  ;;  %p14575_p2 = scmp.lt.s32.totalorder %s14569_s28, %s14569_s28 }
 0xbe4   :  { %v20566_v38 = vld [vmem:[#allocation167_spill] sm:$0xff]  ;;  %v20571_v35 = vld [vmem:[#allocation172_spill] sm:$0xff]  ;;  %v20572_v42 = vld [vmem:[#allocation173_spill] sm:$0xff] }
 0xbe5   :  { %13762 = vmatpush3.bf16.msra.mxu1 %v19615_v39  ;;  %v20570_v59 = vld [vmem:[#allocation171_spill] sm:$0xff]  ;;  %v20573_v5 = vld [vmem:[#allocation158_spill] sm:$0xff]  ;;  %v20575_v36 = vld [vmem:[#allocation160_spill] sm:$0xff]  ;;  %p14576_p3 = por %p14575_p2, %p14574_p1 }
 0xbe6   :  { %13763 = vmatprep.subr.bf16.mxu1 %v14602_v28  ;;  %13850 = vmatpush3.bf16.msra.mxu0 %v20558_v21  ;;  %v20574_v2 = vld [vmem:[#allocation159_spill] sm:$0xff]  ;;  %v20576_v6 = vld [vmem:[#allocation161_spill] sm:$0xff]  ;;  %v20577_v50 = vld [vmem:[#allocation162_spill] sm:$0xff] }
 0xbe7   :  { %13851 = vmatprep.subr.bf16.mxu0 %v14602_v28  ;;  %v20578_v7 = vld [vmem:[#allocation163_spill] sm:$0xff]  ;;  %v20579_v55 = vld [vmem:[#allocation164_spill] sm:$0xff]  ;;  %v20580_v31 = vld [vmem:[#allocation165_spill] sm:$0xff]  ;;  %p14577_p4 = pnand %p14576_p3, %p14570_p0 }
 0xbe8   :  { %v11936_v26 = vld [vmem:[%s19799_s6 + $0x2] sm:$0x1]  ;;  %v11938_v16 = vld [vmem:[%s19799_s6 + $0x3] sm:$0x1]  ;;  %v20581_v18 = vld [vmem:[#allocation182_spill] sm:$0xff] }
 0xbe9   :  { %13764 = vmatpush3.bf16.msra.mxu1 %v19624_v9  ;;  %v20582_v43 = vld [vmem:[#allocation183_spill] sm:$0xff]  ;;  %v20583_v48 = vld [vmem:[#allocation184_spill] sm:$0xff]  ;;  %v20584_v29 = vld [vmem:[#allocation185_spill] sm:$0xff] }
 0xbea   :  { %13765 = vmatprep.subr.bf16.mxu1 %v14602_v28  ;;  %13852 = vmatpush3.bf16.msra.mxu0 %v20559_v20  ;;  %v20585_v60 = vld [vmem:[#allocation186_spill] sm:$0xff]  ;;  %v20588_v21 = vld [vmem:[#allocation189_spill] sm:$0xff] }
 0xbeb   :  { %13853 = vmatprep.subr.bf16.mxu0 %v14602_v28 }
 0xbed   :  { %13766 = vmatpush3.bf16.msra.mxu1 %v19630_v32 }
 0xbee   :  { %13767 = vmatprep.subr.bf16.mxu1 %v14602_v28  ;;  %13854 = vmatpush3.bf16.msra.mxu0 %v20560_v54 }
 0xbef   :  { %13855 = vmatprep.subr.bf16.mxu0 %v14602_v28 }
 0xbf1   :  { %13768 = vmatpush3.bf16.msra.mxu1 %v19632_v44 }
 0xbf2   :  { %13769 = vmatprep.subr.bf16.mxu1 %v14602_v28  ;;  %13856 = vmatpush3.bf16.msra.mxu0 %v20561_v41 }
 0xbf3   :  { %13857 = vmatprep.subr.bf16.mxu0 %v14602_v28 }
 0xbf5   :  { %13770 = vmatpush3.bf16.msra.mxu1 %v19626_v25 }
 0xbf6   :  { %13775 = vmatprep.subr.bf16.mxu1 %v14602_v28  ;;  %13858 = vmatpush3.bf16.msra.mxu0 %v20562_v17 }
 0xbf7   :  { %13859 = vmatprep.subr.bf16.mxu0 %v14602_v28 }
 0xbf8   :  { %13772 = vmatmul.mubr.msk.bf16.vlgmr.msra.gmra.mrb[128].mxu1 %vm11179_vm9, %v11178_v4 }
 0xbf9   :  { %13776 = vmatpush3.bf16.msra.mxu1 %v19613_v61  ;;  %13787 = vmatprep.mubr.msk.bf16.mxu1 %vm14603_vm8, %v14602_v28 }
 0xbfa   :  { %13777 = vmatprep.subr.bf16.mxu1 %v14602_v28  ;;  %13860 = vmatpush3.bf16.msra.mxu0 %v20563_v3 }
 0xbfb   :  { %13861 = vmatprep.subr.bf16.mxu0 %v14602_v28 }
 0xbfd   :  { %13778 = vmatpush3.bf16.msra.mxu1 %v19615_v39 }
 0xbfe   :  { %13779 = vmatprep.subr.bf16.mxu1 %v14602_v28  ;;  %13862 = vmatpush3.bf16.msra.mxu0 %v20564_v53  ;;  %v11940_v53 = vld [vmem:[%s19800_s7] ss:$0 sm:$0xff] }
 0xbff   :  { %13883 = vmatprep.subr.bf16.mxu0 %v14602_v28 }
 0xc01   :  { %13780 = vmatpush3.bf16.msra.mxu1 %v19624_v9 }
 0xc02   :  { %13781 = vmatprep.subr.bf16.mxu1 %v14602_v28 }
 0xc05   :  { %13782 = vmatpush3.bf16.msra.mxu1 %v19630_v32 }
 0xc06   :  { %13783 = vmatprep.subr.bf16.mxu1 %v14602_v28 }
 0xc09   :  { %13784 = vmatpush3.bf16.msra.mxu1 %v19632_v44 }
 0xc0a   :  { %13785 = vmatprep.subr.bf16.mxu1 %v14602_v28 }
 0xc0d   :  { %13786 = vmatpush3.bf16.msra.mxu1 %v19626_v25 }
 0xc0e   :  { %13791 = vmatprep.subr.bf16.mxu1 %v14602_v28 }
 0xc10   :  { %13788 = vmatmul.mubr.msk.bf16.vlgmr.msra.gmra.mrb[132].mxu1 %vm11179_vm9, %v11934_v37 }
 0xc11   :  { %13792 = vmatpush3.bf16.msra.mxu1 %v20565_v0  ;;  %13807 = vmatprep.mubr.msk.bf16.mxu1 %vm14603_vm8, %v14602_v28 }
 0xc12   :  { %13793 = vmatprep.subr.bf16.mxu1 %v14602_v28 }
 0xc15   :  { %13794 = vmatpush3.bf16.msra.mxu1 %v20566_v38 }
 0xc16   :  { %13795 = vmatprep.subr.bf16.mxu1 %v14602_v28 }
 0xc19   :  { %13796 = vmatpush3.bf16.msra.mxu1 %v20567_v1 }
 0xc1a   :  { %13797 = vmatprep.subr.bf16.mxu1 %v14602_v28 }
 0xc1d   :  { %13798 = vmatpush3.bf16.msra.mxu1 %v20568_v51 }
 0xc1e   :  { %13799 = vmatprep.subr.bf16.mxu1 %v14602_v28 }
 0xc21   :  { %13800 = vmatpush3.bf16.msra.mxu1 %v20569_v14 }
 0xc22   :  { %13801 = vmatprep.subr.bf16.mxu1 %v14602_v28 }
 0xc25   :  { %13802 = vmatpush3.bf16.msra.mxu1 %v20570_v59 }
 0xc26   :  { %13803 = vmatprep.subr.bf16.mxu1 %v14602_v28 }
 0xc29   :  { %13804 = vmatpush3.bf16.msra.mxu1 %v20571_v35 }
 0xc2a   :  { %13805 = vmatprep.subr.bf16.mxu1 %v14602_v28 }
 0xc2d   :  { %13806 = vmatpush3.bf16.msra.mxu1 %v20572_v42 }
 0xc2e   :  { %13811 = vmatprep.subr.bf16.mxu1 %v14602_v28 }
 0xccb   :  { %v11217_v27 = vpop.f32.mrb[128].mxu1 }
 0xccc   :  { %v13773_v24 = vpop.f32.mrb[129].mxu1  ;;  %v11223_v52 = vpack.c.bf16 %v11217_v27, %v11217_v27 }
 0xccd   :  { %v11220_v62 = vpop.f32.mrb[130].mxu1 }
 0xcce   :  { %v13774_v12 = vpop.f32.mrb[131].mxu1 }
 0xce3   :  { %v11271_v15 = vpop.f32.mrb[132].mxu1 }
 0xce4   :  { %v11277_v30 = vpack.c.bf16 %v11271_v15, %v11271_v15  ;;  %v13789_v63 = vpop.f32.mrb[133].mxu1 }
 0xce5   :  { %v11274_v49 = vpop.f32.mrb[134].mxu1 }
 0xce6   :  { %v13790_v33 = vpop.f32.mrb[135].mxu1  ;;  %13808 = vmatmul.mubr.bf16.vlgmr.msra.gmra.mrb[136].mxu1 %v11277_v30 }
 0xce7   :  { %13812 = vmatpush3.bf16.msra.mxu1 %v20573_v5  ;;  %13827 = vmatprep.mubr.msk.bf16.mxu1 %vm14603_vm8, %v14602_v28 }
 0xce8   :  { %13813 = vmatprep.subr.bf16.mxu1 %v14602_v28 }
 0xceb   :  { %13814 = vmatpush3.bf16.msra.mxu1 %v20574_v2 }
 0xcec   :  { %13815 = vmatprep.subr.bf16.mxu1 %v14602_v28 }
 0xcef   :  { %13816 = vmatpush3.bf16.msra.mxu1 %v20575_v36 }
 0xcf0   :  { %13817 = vmatprep.subr.bf16.mxu1 %v14602_v28 }
 0xcf3   :  { %13818 = vmatpush3.bf16.msra.mxu1 %v20576_v6 }
 0xcf4   :  { %13819 = vmatprep.subr.bf16.mxu1 %v14602_v28 }
 0xcf7   :  { %13820 = vmatpush3.bf16.msra.mxu1 %v20577_v50 }
 0xcf8   :  { %13821 = vmatprep.subr.bf16.mxu1 %v14602_v28 }
 0xcfb   :  { %13822 = vmatpush3.bf16.msra.mxu1 %v20578_v7 }
 0xcfc   :  { %13823 = vmatprep.subr.bf16.mxu1 %v14602_v28 }
 0xcff   :  { %13824 = vmatpush3.bf16.msra.mxu1 %v20579_v55 }
 0xd00   :  { %13825 = vmatprep.subr.bf16.mxu1 %v14602_v28 }
 0xd03   :  { %13826 = vmatpush3.bf16.msra.mxu1 %v20580_v31 }
 0xd04   :  { %13831 = vmatprep.subr.bf16.mxu1 %v14602_v28 }
 0xd06   :  { %13828 = vmatmul.mubr.bf16.vlgmr.msra.gmra.mrb[140].mxu1 %v11223_v52 }
 0xd07   :  { %13832 = vmatpush3.bf16.msra.mxu1 %v19613_v61  ;;  %13843 = vmatprep.mubr.msk.bf16.mxu1 %vm14603_vm8, %v14602_v28 }
 0xd08   :  { %13833 = vmatprep.subr.bf16.mxu1 %v14602_v28 }
 0xd0b   :  { %13834 = vmatpush3.bf16.msra.mxu1 %v19615_v39 }
 0xd0c   :  { %13835 = vmatprep.subr.bf16.mxu1 %v14602_v28 }
 0xd0f   :  { %13836 = vmatpush3.bf16.msra.mxu1 %v19624_v9 }
 0xd10   :  { %13837 = vmatprep.subr.bf16.mxu1 %v14602_v28 }
 0xd13   :  { %13838 = vmatpush3.bf16.msra.mxu1 %v19630_v32 }
 0xd14   :  { %13839 = vmatprep.subr.bf16.mxu1 %v14602_v28 }
 0xd17   :  { %13840 = vmatpush3.bf16.msra.mxu1 %v19632_v44 }
 0xd18   :  { %13841 = vmatprep.subr.bf16.mxu1 %v14602_v28 }
 0xd1b   :  { %13842 = vmatpush3.bf16.msra.mxu1 %v19626_v25 }
 0xd1c   :  { %13867 = vmatprep.subr.bf16.mxu1 %v14602_v28 }
 0xd1e   :  { %13844 = vmatmul.mubr.msk.bf16.vlgmr.msra.gmra.mrb[144].mxu1 %vm11179_vm9, %v11936_v26 }
 0xd1f   :  { %13868 = vmatpush3.bf16.msra.mxu1 %v19613_v61  ;;  %13879 = vmatprep.mubr.msk.bf16.mxu1 %vm14603_vm8, %v14602_v28 }
 0xd20   :  { %13869 = vmatprep.subr.bf16.mxu1 %v14602_v28 }
 0xd23   :  { %13870 = vmatpush3.bf16.msra.mxu1 %v19615_v39 }
 0xd24   :  { %13871 = vmatprep.subr.bf16.mxu1 %v14602_v28 }
 0xd27   :  { %13872 = vmatpush3.bf16.msra.mxu1 %v19624_v9  ;;  %v20586_v9 = vld [vmem:[#allocation187_spill] sm:$0xff] }
 0xd28   :  { %13873 = vmatprep.subr.bf16.mxu1 %v14602_v28 }
 0xd2b   :  { %13874 = vmatpush3.bf16.msra.mxu1 %v19630_v32 }
 0xd2c   :  { %13875 = vmatprep.subr.bf16.mxu1 %v14602_v28 }
 0xd2f   :  { %13876 = vmatpush3.bf16.msra.mxu1 %v19632_v44  ;;  %v20587_v44 = vld [vmem:[#allocation188_spill] sm:$0xff] }
 0xd30   :  { %13877 = vmatprep.subr.bf16.mxu1 %v14602_v28 }
 0xd33   :  { %13878 = vmatpush3.bf16.msra.mxu1 %v19626_v25 }
 0xd36   :  { %13880 = vmatmul.mubr.msk.bf16.vlgmr.msra.gmra.mrb[148].mxu1 %vm11179_vm9, %v11938_v16 }
 0xdb9   :  { %v11321_v45 = vpop.f32.mrb[136].mxu1 }
 0xdba   :  { %v13809_v23 = vpop.f32.mrb[137].mxu1 }
 0xdbb   :  { %v11324_v61 = vpop.f32.mrb[138].mxu1 }
 0xdbc   :  { %v13810_v39 = vpop.f32.mrb[139].mxu1 }
 0xdd9   :  { %v11361_v13 = vpop.f32.mrb[140].mxu1 }
 0xdda   :  { %v11362_v19 = vadd.f32 %v11361_v13, %v11321_v45  ;;  %v13829_v58 = vpop.f32.mrb[141].mxu1 }
 0xddb   :  { %v11364_v22 = vpop.f32.mrb[142].mxu1 }
 0xddc   :  { %v13830_v56 = vpop.f32.mrb[143].mxu1 }
 0xdf1   :  { %v11406_v8 = vpop.f32.mrb[144].mxu1 }
 0xdf2   :  { %v11412_v11 = vpack.c.bf16 %v11406_v8, %v11406_v8  ;;  %v13845_v57 = vpop.f32.mrb[145].mxu1 }
 0xdf3   :  { %v11409_v47 = vpop.f32.mrb[146].mxu1 }
 0xdf4   :  { %v13846_v40 = vpop.f32.mrb[147].mxu1  ;;  %13864 = vmatmul.mubr.bf16.vlgmr.msra.gmra.mrb[104].mxu0 %v11412_v11 }
 0xdf5   :  { %13884 = vmatpush3.bf16.msra.mxu0 %v20581_v18  ;;  %13899 = vmatprep.mubr.msk.bf16.mxu0 %vm14603_vm8, %v14602_v28 }
 0xdf6   :  { %13885 = vmatprep.subr.bf16.mxu0 %v14602_v28 }
 0xdf9   :  { %13886 = vmatpush3.bf16.msra.mxu0 %v20582_v43 }
 0xdfa   :  { %13887 = vmatprep.subr.bf16.mxu0 %v14602_v28 }
 0xdfd   :  { %13888 = vmatpush3.bf16.msra.mxu0 %v20583_v48 }
 0xdfe   :  { %13889 = vmatprep.subr.bf16.mxu0 %v14602_v28 }
 0xe01   :  { %13890 = vmatpush3.bf16.msra.mxu0 %v20584_v29 }
 0xe02   :  { %13891 = vmatprep.subr.bf16.mxu0 %v14602_v28 }
 0xe05   :  { %13892 = vmatpush3.bf16.msra.mxu0 %v20585_v60 }
 0xe06   :  { %13893 = vmatprep.subr.bf16.mxu0 %v14602_v28 }
 0xe09   :  { %13894 = vmatpush3.bf16.msra.mxu0 %v20586_v9  ;;  %v11502_v25 = vpop.f32.mrb[148].mxu1 }
 0xe0a   :  { %13895 = vmatprep.subr.bf16.mxu0 %v14602_v28  ;;  %v13881_v34 = vpop.f32.mrb[149].mxu1  ;;  %v11508_v46 = vpack.c.bf16 %v11502_v25, %v11502_v25 }
 0xe0b   :  { %v11505_v10 = vpop.f32.mrb[150].mxu1 }
 0xe0c   :  { %v13882_v32 = vpop.f32.mrb[151].mxu1 }
 0xe0d   :  { %13896 = vmatpush3.bf16.msra.mxu0 %v20587_v44 }
 0xe0e   :  { %13897 = vmatprep.subr.bf16.mxu0 %v14602_v28 }
 0xe11   :  { %13898 = vmatpush3.bf16.msra.mxu0 %v20588_v21 }
 0xe14   :  { %13900 = vmatmul.mubr.bf16.vlgmr.msra.gmra.mrb[108].mxu0 %v11508_v46 }
 0xec7   :  { %v11456_v20 = vpop.f32.mrb[104].mxu0 }
 0xec8   :  { %v11462_v54 = vadd.f32 %v11456_v20, %v11362_v19  ;;  %v13865_v41 = vpop.f32.mrb[105].mxu0 }
 0xec9   :  { %v11459_v4 = vpop.f32.mrb[106].mxu0 }
 0xeca   :  { %v13866_v17 = vpop.f32.mrb[107].mxu0 }
 0xee7   :  { %v11552_v3 = vpop.f32.mrb[108].mxu0 }
 0xee8   :  { %v11558_v37 = vadd.f32 %v11552_v3, %v11462_v54  ;;  %v13901_v0 = vpop.f32.mrb[109].mxu0 }
 0xee9   :  { %v11555_v38 = vpop.f32.mrb[110].mxu0 }
 0xeea   :  { %v11566_v28 = vadd.f32 %v11940_v53, %v11558_v37  ;;  %v13902_v1 = vpop.f32.mrb[111].mxu0 }
 0xeec   :  { %11568 = vst.msk [vmem:[#allocation12] sm:$0x3] %vm11567_vm10, %v11566_v28 }
 0xeed   :  { %14580 = shalt.err (!%p14577_p4)
}
 0xeee   :  { %s14581_s7 = scalar_lea.hbm %s19805_s12, 32 }
 0xeef   :  { %p14582_p5 = scmp.ne.s32.totalorder %s19805_s12, %s14581_s7  ;;  %p14585_p6 = scmp.lt.u32.totalorder %s14581_s7, %s19805_s12 }
 0xef1   :  { %p14587_p7 = pnand %p14585_p6, %p14582_p5 }
 0xef3   :  { %14590 = shalt.err (!%p14587_p7)
}
 0xef4   :  { %11578 = dma.vmem_to_hbm [thread:$0]  %s11576_s27, 32, %s19805_s12, [#allocation13]  }
 0xef5   :  { %14599 = dma.done.wait [#allocation13], 32  }
 0xef6   :  { %14600 = vsyncadd [#allocation13], 4294967264 }
 0xef7   :  { %11582 = vsyncpa [#allocation13], 1 }
 0xef8   :  { %11583 = vsyncmov [#allocation11] }
 0xefb   :  { %s11584_s18 = vpop.sfrf %11583 }
 0xefc   :  { %p11941_p8 = scmp.ne.s32.totalorder %s11584_s18, 0 }
 0xefe   :  { %11588 = shalt.err (%p11941_p8)  }
 0xeff   :  { %11590 = vsyncmov [#allocation11 + $0x1] }
 0xf02   :  { %s11591_s19 = vpop.sfrf %11590 }
 0xf03   :  { %p11942_p9 = scmp.ne.s32.totalorder %s11591_s19, 0 }
 0xf05   :  { %11595 = shalt.err (%p11942_p9)  }
 0xf06   :  { %11597 = vsyncmov [#allocation11 + $0x2] }
 0xf09   :  { %s11598_s3 = vpop.sfrf %11597 }
 0xf0a   :  { %p11943_p10 = scmp.ne.s32.totalorder %s11598_s3, 0 }
 0xf0c   :  { %11602 = shalt.err (%p11943_p10)  }
 0xf0d   :  { %11604 = vsyncmov [#allocation11 + $0x3] }
 0xf10   :  { %s11605_s1 = vpop.sfrf %11604 }
 0xf11   :  { %p11944_p11 = scmp.ne.s32.totalorder %s11605_s1, 0 }
 0xf13   :  { %11609 = shalt.err (%p11944_p11)  }

</bundles_post_ra>
